<compile_context>
chip_gen: v7x
topology: tpu7x:2x2x1
jax: 0.10.0
libtpu: 0.0.40
codegen_flags: <defaults>
</compile_context>

<pallas_src>
import functools

import jax
import jax.numpy as jnp
from jax.experimental import pallas as pl
from jax.experimental.pallas import tpu as pltpu

COUT = 6      # conv1 out channels
KH = KW = 2   # conv1 kernel size


def conv_relu_flat_kernel(w_ref, b_ref, x_ref, o_ref, q_ref, *, H, W, hw_chunk):
    # w_ref: SMEM (COUT*KH*KW,)   flattened conv1 weight, index = c*4 + kh*2 + kw
    # b_ref: SMEM (COUT,)         conv1 bias
    # x_ref: VMEM (TILE_N, H*W)   row-flattened input tile (lane-dense)
    # o_ref: VMEM (TILE_N, COUT*Ho*Wo)  flattened output tile (torch .view order)
    # q_ref: VMEM (2, TILE_N, H*Wo)     scratch: lane-dense shifted input copies
    Ho, Wo = H - 1, W - 1
    hw = Ho * Wo

    # ---- Phase 1: im2col-lite relayout into two lane-dense shifted copies ----
    # q[0][n, r*Wo + ow] = x[n, r*W + ow]       (kw = 0 tap columns)
    # q[1][n, r*Wo + ow] = x[n, r*W + ow + 1]   (kw = 1 tap columns)
    for r in range(H):                                   # static, unrolled
        q_ref[0, :, r * Wo:(r + 1) * Wo] = x_ref[:, r * W:r * W + Wo]
        q_ref[1, :, r * Wo:(r + 1) * Wo] = x_ref[:, r * W + 1:r * W + 1 + Wo]

    # ---- Phase 2: dense 4-tap conv + bias + ReLU ----
    # hw-chunks outermost, channels innermost: the four tap slices (and their
    # lane-rotate extraction at the misaligned +Wo offset) are produced once
    # per chunk and reused by all 6 channels.
    n_out = b_ref.shape[0]
    wv = [[w_ref[4 * c + t] for t in range(4)] for c in range(n_out)]  # sregs
    bv = [b_ref[c] for c in range(n_out)]
    for start in range(0, hw, hw_chunk):                 # static, unrolled
        sz = min(hw_chunk, hw - start)
        a00 = q_ref[0, :, start:start + sz]              # x[oh    , ow    ]
        a01 = q_ref[1, :, start:start + sz]              # x[oh    , ow + 1]
        a10 = q_ref[0, :, Wo + start:Wo + start + sz]    # x[oh + 1, ow    ]
        a11 = q_ref[1, :, Wo + start:Wo + start + sz]    # x[oh + 1, ow + 1]
        for c in range(n_out):                           # static, unrolled (6)
            acc = (wv[c][0] * a00 + wv[c][1] * a01
                   + wv[c][2] * a10 + wv[c][3] * a11 + bv[c])
            o_ref[:, c * hw + start:c * hw + start + sz] = jnp.maximum(acc, 0.0)


def _fused_xla_forward(x, w, b):
    # Fused XLA conv + bias + ReLU + flatten (also the correctness reference).
    y = jax.lax.conv_general_dilated(
        x, w, window_strides=(1, 1), padding="VALID",
        dimension_numbers=("NCHW", "OIHW", "NCHW"))
    y = jnp.maximum(y + b[None, :, None, None], 0.0)
    return y.reshape(y.shape[0], -1)


def reference_forward(x, w, b):
    return _fused_xla_forward(x, w, b)


def _round_up(v, m):
    return ((v + m - 1) // m) * m


def _vmem_capacity_bytes():
    try:
        info = pltpu.get_tpu_info()
        cap = getattr(info, "vmem_capacity_bytes", None)
        if cap:
            return int(cap)
    except Exception:
        pass
    return 64 * 1024 * 1024   # conservative: assume v7x-sized VMEM


def conv_basic_forward(x, w, b, *, max_tile_n=None, min_pallas_n=64):
    """x: (N,1,H,W) f32; w: (6,1,2,2) f32; b: (6,) f32 -> (N, 6*(H-1)*(W-1))."""
    N, Cin, H, W = x.shape
    assert Cin == 1
    Cout, _, kh, kw = w.shape
    assert (Cout, kh, kw) == (COUT, KH, KW)
    Ho, Wo = H - 1, W - 1
    feat = Cout * Ho * Wo

    # Tiny batches: fixed pallas_call launch + pipeline prologue dominates;
    # the fused XLA path is strictly cheaper below this threshold.
    if N < min_pallas_n:
        return _fused_xla_forward(x, w, b)

    # Generation-aware tile / scoped-VMEM budget.
    # Per image (flattened x): 1 KiB x + 5.5 KiB out (both double-buffered)
    # + 2 KiB q scratch  ~= 15 KiB -> tile_n=1024 ~ 15 MiB, tile_n=2048 ~ 30 MiB.
    if _vmem_capacity_bytes() >= 128 * 1024 * 1024:   # v5e / v6e
        gen_tile_cap, vmem_limit = 2048, 64 * 1024 * 1024
    else:                                             # v7x (64 MiB physical VMEM)
        gen_tile_cap, vmem_limit = 1024, 40 * 1024 * 1024

    tile_n = gen_tile_cap if max_tile_n is None else min(max_tile_n, gen_tile_cap)
    # Guarantee >= 2 grid steps so ("parallel",) shards across v7x's 2 TCs.
    tile_n = min(tile_n, _round_up(pl.cdiv(N, 2), 8))
    tile_n = max(tile_n, 8)
    grid = (pl.cdiv(N, tile_n),)

    x_flat = x.reshape(N, H * W).astype(jnp.float32)          # free reshape
    w_flat = w.reshape(Cout * kh * kw).astype(jnp.float32)    # idx = c*4+kh*2+kw
    b_flat = b.astype(jnp.float32)

    kernel = functools.partial(conv_relu_flat_kernel, H=H, W=W, hw_chunk=256)

    return pl.pallas_call(
        kernel,
        out_shape=jax.ShapeDtypeStruct((N, feat), jnp.float32),
        grid=grid,
        in_specs=[
            pl.BlockSpec((Cout * kh * kw,), lambda n: (0,),
                         memory_space=pltpu.MemorySpace.SMEM),
            pl.BlockSpec((Cout,), lambda n: (0,),
                         memory_space=pltpu.MemorySpace.SMEM),
            pl.BlockSpec((tile_n, H * W), lambda n: (n, 0)),
        ],
        out_specs=pl.BlockSpec((tile_n, feat), lambda n: (n, 0)),
        scratch_shapes=[pltpu.VMEM((2, tile_n, H * Wo), jnp.float32)],
        compiler_params=pltpu.CompilerParams(
            dimension_semantics=("parallel",),
            vmem_limit_bytes=vmem_limit,
        ),
    )(w_flat, b_flat, x_flat)


if __name__ == "__main__":
    key = jax.random.PRNGKey(0)
    kx, kw_, kb = jax.random.split(key, 3)

    H, W = 16, 16
    N = 192   # large enough to take the Pallas path with a 2-step parallel grid

    x = jax.random.normal(kx, (N, 1, H, W), dtype=jnp.float32)

    # Deterministic conv1 parameter init (PyTorch-style uniform, fan_in = 1*2*2).
    bound = 1.0 / (1 * KH * KW) ** 0.5
    w = jax.random.uniform(kw_, (COUT, 1, KH, KW), minval=-bound, maxval=bound,
                           dtype=jnp.float32)
    b = jax.random.uniform(kb, (COUT,), minval=-bound, maxval=bound,
                           dtype=jnp.float32)

    out = jax.block_until_ready(conv_basic_forward(x, w, b))
    ref = reference_forward(x, w, b)

    assert out.shape == (N, COUT * (H - 1) * (W - 1)), out.shape
    assert jnp.allclose(out, ref, atol=1e-5, rtol=1e-5), \
        float(jnp.max(jnp.abs(out - ref)))

    # Tiny-batch dispatch (XLA fallback path) still produces the right shape/values.
    x_small = x[:2]
    out_small = jax.block_until_ready(conv_basic_forward(x_small, w, b))
    assert out_small.shape == (2, COUT * (H - 1) * (W - 1))
    assert jnp.allclose(out_small, reference_forward(x_small, w, b),
                        atol=1e-5, rtol=1e-5)

    print("KERNEL_OK")
</pallas_src>

<mosaic_0001>
module attributes {stable_mosaic.version = 11 : i64} {
  func.func @conv_relu_flat_kernel(%arg0: i32, %arg1: memref<24xf32, #tpu.memory_space<smem>>, %arg2: memref<6xf32, #tpu.memory_space<smem>>, %arg3: memref<96x256xf32, #tpu.memory_space<vmem>>, %arg4: memref<96x1350xf32, #tpu.memory_space<vmem>>, %arg5: memref<2x96x240xf32, #tpu.memory_space<vmem>>) attributes {dimension_semantics = [#tpu.dimension_semantics<parallel>], iteration_bounds = array<i64: 2>, scalar_prefetch = 0 : i64, scratch_operands = 1 : i64, tpu.core_type = #tpu.core_type<tc>, window_params = [{transform_indices = @transform_0, window_bounds = array<i64: 24>}, {transform_indices = @transform_1, window_bounds = array<i64: 6>}, {transform_indices = @transform_2, window_bounds = array<i64: 96, 256>}, {transform_indices = @transform_3, window_bounds = array<i64: 96, 1350>}]} {
    %c0 = arith.constant 0 : index
    %c0_0 = arith.constant 0 : index
    %0 = vector.load %arg3[%c0, %c0_0] : memref<96x256xf32, #tpu.memory_space<vmem>>, vector<96x15xf32>
    %c0_1 = arith.constant 0 : index
    %c0_2 = arith.constant 0 : index
    %c0_3 = arith.constant 0 : index
    %1 = vector.load %arg5[%c0_1, %c0_2, %c0_3] : memref<2x96x240xf32, #tpu.memory_space<vmem>>, vector<1x96x15xf32>
    %2 = vector.shape_cast %1 : vector<1x96x15xf32> to vector<96x15xf32>
    %3 = vector.shape_cast %0 : vector<96x15xf32> to vector<1x96x15xf32>
    tpu.vector_store %arg5[%c0_1, %c0_2, %c0_3], %3 {strides = array<i32>} : memref<2x96x240xf32, #tpu.memory_space<vmem>>, vector<1x96x15xf32>,
    %c0_4 = arith.constant 0 : index
    %c1 = arith.constant 1 : index
    %4 = vector.load %arg3[%c0_4, %c1] : memref<96x256xf32, #tpu.memory_space<vmem>>, vector<96x15xf32>
    %c1_5 = arith.constant 1 : index
    %c0_6 = arith.constant 0 : index
    %c0_7 = arith.constant 0 : index
    %5 = vector.load %arg5[%c1_5, %c0_6, %c0_7] : memref<2x96x240xf32, #tpu.memory_space<vmem>>, vector<1x96x15xf32>
    %6 = vector.shape_cast %5 : vector<1x96x15xf32> to vector<96x15xf32>
    %7 = vector.shape_cast %4 : vector<96x15xf32> to vector<1x96x15xf32>
    tpu.vector_store %arg5[%c1_5, %c0_6, %c0_7], %7 {strides = array<i32>} : memref<2x96x240xf32, #tpu.memory_space<vmem>>, vector<1x96x15xf32>,
    %c0_8 = arith.constant 0 : index
    %c16 = arith.constant 16 : index
    %8 = vector.load %arg3[%c0_8, %c16] : memref<96x256xf32, #tpu.memory_space<vmem>>, vector<96x15xf32>
    %c0_9 = arith.constant 0 : index
    %c0_10 = arith.constant 0 : index
    %c15 = arith.constant 15 : index
    %9 = vector.load %arg5[%c0_9, %c0_10, %c15] : memref<2x96x240xf32, #tpu.memory_space<vmem>>, vector<1x96x15xf32>
    %10 = vector.shape_cast %9 : vector<1x96x15xf32> to vector<96x15xf32>
    %11 = vector.shape_cast %8 : vector<96x15xf32> to vector<1x96x15xf32>
    tpu.vector_store %arg5[%c0_9, %c0_10, %c15], %11 {strides = array<i32>} : memref<2x96x240xf32, #tpu.memory_space<vmem>>, vector<1x96x15xf32>,
    %c0_11 = arith.constant 0 : index
    %c17 = arith.constant 17 : index
    %12 = vector.load %arg3[%c0_11, %c17] : memref<96x256xf32, #tpu.memory_space<vmem>>, vector<96x15xf32>
    %c1_12 = arith.constant 1 : index
    %c0_13 = arith.constant 0 : index
    %c15_14 = arith.constant 15 : index
    %13 = vector.load %arg5[%c1_12, %c0_13, %c15_14] : memref<2x96x240xf32, #tpu.memory_space<vmem>>, vector<1x96x15xf32>
    %14 = vector.shape_cast %13 : vector<1x96x15xf32> to vector<96x15xf32>
    %15 = vector.shape_cast %12 : vector<96x15xf32> to vector<1x96x15xf32>
    tpu.vector_store %arg5[%c1_12, %c0_13, %c15_14], %15 {strides = array<i32>} : memref<2x96x240xf32, #tpu.memory_space<vmem>>, vector<1x96x15xf32>,
    %c0_15 = arith.constant 0 : index
    %c32 = arith.constant 32 : index
    %16 = vector.load %arg3[%c0_15, %c32] : memref<96x256xf32, #tpu.memory_space<vmem>>, vector<96x15xf32>
    %c0_16 = arith.constant 0 : index
    %c0_17 = arith.constant 0 : index
    %c30 = arith.constant 30 : index
    %17 = vector.load %arg5[%c0_16, %c0_17, %c30] : memref<2x96x240xf32, #tpu.memory_space<vmem>>, vector<1x96x15xf32>
    %18 = vector.shape_cast %17 : vector<1x96x15xf32> to vector<96x15xf32>
    %19 = vector.shape_cast %16 : vector<96x15xf32> to vector<1x96x15xf32>
    tpu.vector_store %arg5[%c0_16, %c0_17, %c30], %19 {strides = array<i32>} : memref<2x96x240xf32, #tpu.memory_space<vmem>>, vector<1x96x15xf32>,
    %c0_18 = arith.constant 0 : index
    %c33 = arith.constant 33 : index
    %20 = vector.load %arg3[%c0_18, %c33] : memref<96x256xf32, #tpu.memory_space<vmem>>, vector<96x15xf32>
    %c1_19 = arith.constant 1 : index
    %c0_20 = arith.constant 0 : index
    %c30_21 = arith.constant 30 : index
    %21 = vector.load %arg5[%c1_19, %c0_20, %c30_21] : memref<2x96x240xf32, #tpu.memory_space<vmem>>, vector<1x96x15xf32>
    %22 = vector.shape_cast %21 : vector<1x96x15xf32> to vector<96x15xf32>
    %23 = vector.shape_cast %20 : vector<96x15xf32> to vector<1x96x15xf32>
    tpu.vector_store %arg5[%c1_19, %c0_20, %c30_21], %23 {strides = array<i32>} : memref<2x96x240xf32, #tpu.memory_space<vmem>>, vector<1x96x15xf32>,
    %c0_22 = arith.constant 0 : index
    %c48 = arith.constant 48 : index
    %24 = vector.load %arg3[%c0_22, %c48] : memref<96x256xf32, #tpu.memory_space<vmem>>, vector<96x15xf32>
    %c0_23 = arith.constant 0 : index
    %c0_24 = arith.constant 0 : index
    %c45 = arith.constant 45 : index
    %25 = vector.load %arg5[%c0_23, %c0_24, %c45] : memref<2x96x240xf32, #tpu.memory_space<vmem>>, vector<1x96x15xf32>
    %26 = vector.shape_cast %25 : vector<1x96x15xf32> to vector<96x15xf32>
    %27 = vector.shape_cast %24 : vector<96x15xf32> to vector<1x96x15xf32>
    tpu.vector_store %arg5[%c0_23, %c0_24, %c45], %27 {strides = array<i32>} : memref<2x96x240xf32, #tpu.memory_space<vmem>>, vector<1x96x15xf32>,
    %c0_25 = arith.constant 0 : index
    %c49 = arith.constant 49 : index
    %28 = vector.load %arg3[%c0_25, %c49] : memref<96x256xf32, #tpu.memory_space<vmem>>, vector<96x15xf32>
    %c1_26 = arith.constant 1 : index
    %c0_27 = arith.constant 0 : index
    %c45_28 = arith.constant 45 : index
    %29 = vector.load %arg5[%c1_26, %c0_27, %c45_28] : memref<2x96x240xf32, #tpu.memory_space<vmem>>, vector<1x96x15xf32>
    %30 = vector.shape_cast %29 : vector<1x96x15xf32> to vector<96x15xf32>
    %31 = vector.shape_cast %28 : vector<96x15xf32> to vector<1x96x15xf32>
    tpu.vector_store %arg5[%c1_26, %c0_27, %c45_28], %31 {strides = array<i32>} : memref<2x96x240xf32, #tpu.memory_space<vmem>>, vector<1x96x15xf32>,
    %c0_29 = arith.constant 0 : index
    %c64 = arith.constant 64 : index
    %32 = vector.load %arg3[%c0_29, %c64] : memref<96x256xf32, #tpu.memory_space<vmem>>, vector<96x15xf32>
    %c0_30 = arith.constant 0 : index
    %c0_31 = arith.constant 0 : index
    %c60 = arith.constant 60 : index
    %33 = vector.load %arg5[%c0_30, %c0_31, %c60] : memref<2x96x240xf32, #tpu.memory_space<vmem>>, vector<1x96x15xf32>
    %34 = vector.shape_cast %33 : vector<1x96x15xf32> to vector<96x15xf32>
    %35 = vector.shape_cast %32 : vector<96x15xf32> to vector<1x96x15xf32>
    tpu.vector_store %arg5[%c0_30, %c0_31, %c60], %35 {strides = array<i32>} : memref<2x96x240xf32, #tpu.memory_space<vmem>>, vector<1x96x15xf32>,
    %c0_32 = arith.constant 0 : index
    %c65 = arith.constant 65 : index
    %36 = vector.load %arg3[%c0_32, %c65] : memref<96x256xf32, #tpu.memory_space<vmem>>, vector<96x15xf32>
    %c1_33 = arith.constant 1 : index
    %c0_34 = arith.constant 0 : index
    %c60_35 = arith.constant 60 : index
    %37 = vector.load %arg5[%c1_33, %c0_34, %c60_35] : memref<2x96x240xf32, #tpu.memory_space<vmem>>, vector<1x96x15xf32>
    %38 = vector.shape_cast %37 : vector<1x96x15xf32> to vector<96x15xf32>
    %39 = vector.shape_cast %36 : vector<96x15xf32> to vector<1x96x15xf32>
    tpu.vector_store %arg5[%c1_33, %c0_34, %c60_35], %39 {strides = array<i32>} : memref<2x96x240xf32, #tpu.memory_space<vmem>>, vector<1x96x15xf32>,
    %c0_36 = arith.constant 0 : index
    %c80 = arith.constant 80 : index
    %40 = vector.load %arg3[%c0_36, %c80] : memref<96x256xf32, #tpu.memory_space<vmem>>, vector<96x15xf32>
    %c0_37 = arith.constant 0 : index
    %c0_38 = arith.constant 0 : index
    %c75 = arith.constant 75 : index
    %41 = vector.load %arg5[%c0_37, %c0_38, %c75] : memref<2x96x240xf32, #tpu.memory_space<vmem>>, vector<1x96x15xf32>
    %42 = vector.shape_cast %41 : vector<1x96x15xf32> to vector<96x15xf32>
    %43 = vector.shape_cast %40 : vector<96x15xf32> to vector<1x96x15xf32>
    tpu.vector_store %arg5[%c0_37, %c0_38, %c75], %43 {strides = array<i32>} : memref<2x96x240xf32, #tpu.memory_space<vmem>>, vector<1x96x15xf32>,
    %c0_39 = arith.constant 0 : index
    %c81 = arith.constant 81 : index
    %44 = vector.load %arg3[%c0_39, %c81] : memref<96x256xf32, #tpu.memory_space<vmem>>, vector<96x15xf32>
    %c1_40 = arith.constant 1 : index
    %c0_41 = arith.constant 0 : index
    %c75_42 = arith.constant 75 : index
    %45 = vector.load %arg5[%c1_40, %c0_41, %c75_42] : memref<2x96x240xf32, #tpu.memory_space<vmem>>, vector<1x96x15xf32>
    %46 = vector.shape_cast %45 : vector<1x96x15xf32> to vector<96x15xf32>
    %47 = vector.shape_cast %44 : vector<96x15xf32> to vector<1x96x15xf32>
    tpu.vector_store %arg5[%c1_40, %c0_41, %c75_42], %47 {strides = array<i32>} : memref<2x96x240xf32, #tpu.memory_space<vmem>>, vector<1x96x15xf32>,
    %c0_43 = arith.constant 0 : index
    %c96 = arith.constant 96 : index
    %48 = vector.load %arg3[%c0_43, %c96] : memref<96x256xf32, #tpu.memory_space<vmem>>, vector<96x15xf32>
    %c0_44 = arith.constant 0 : index
    %c0_45 = arith.constant 0 : index
    %c90 = arith.constant 90 : index
    %49 = vector.load %arg5[%c0_44, %c0_45, %c90] : memref<2x96x240xf32, #tpu.memory_space<vmem>>, vector<1x96x15xf32>
    %50 = vector.shape_cast %49 : vector<1x96x15xf32> to vector<96x15xf32>
    %51 = vector.shape_cast %48 : vector<96x15xf32> to vector<1x96x15xf32>
    tpu.vector_store %arg5[%c0_44, %c0_45, %c90], %51 {strides = array<i32>} : memref<2x96x240xf32, #tpu.memory_space<vmem>>, vector<1x96x15xf32>,
    %c0_46 = arith.constant 0 : index
    %c97 = arith.constant 97 : index
    %52 = vector.load %arg3[%c0_46, %c97] : memref<96x256xf32, #tpu.memory_space<vmem>>, vector<96x15xf32>
    %c1_47 = arith.constant 1 : index
    %c0_48 = arith.constant 0 : index
    %c90_49 = arith.constant 90 : index
    %53 = vector.load %arg5[%c1_47, %c0_48, %c90_49] : memref<2x96x240xf32, #tpu.memory_space<vmem>>, vector<1x96x15xf32>
    %54 = vector.shape_cast %53 : vector<1x96x15xf32> to vector<96x15xf32>
    %55 = vector.shape_cast %52 : vector<96x15xf32> to vector<1x96x15xf32>
    tpu.vector_store %arg5[%c1_47, %c0_48, %c90_49], %55 {strides = array<i32>} : memref<2x96x240xf32, #tpu.memory_space<vmem>>, vector<1x96x15xf32>,
    %c0_50 = arith.constant 0 : index
    %c112 = arith.constant 112 : index
    %56 = vector.load %arg3[%c0_50, %c112] : memref<96x256xf32, #tpu.memory_space<vmem>>, vector<96x15xf32>
    %c0_51 = arith.constant 0 : index
    %c0_52 = arith.constant 0 : index
    %c105 = arith.constant 105 : index
    %57 = vector.load %arg5[%c0_51, %c0_52, %c105] : memref<2x96x240xf32, #tpu.memory_space<vmem>>, vector<1x96x15xf32>
    %58 = vector.shape_cast %57 : vector<1x96x15xf32> to vector<96x15xf32>
    %59 = vector.shape_cast %56 : vector<96x15xf32> to vector<1x96x15xf32>
    tpu.vector_store %arg5[%c0_51, %c0_52, %c105], %59 {strides = array<i32>} : memref<2x96x240xf32, #tpu.memory_space<vmem>>, vector<1x96x15xf32>,
    %c0_53 = arith.constant 0 : index
    %c113 = arith.constant 113 : index
    %60 = vector.load %arg3[%c0_53, %c113] : memref<96x256xf32, #tpu.memory_space<vmem>>, vector<96x15xf32>
    %c1_54 = arith.constant 1 : index
    %c0_55 = arith.constant 0 : index
    %c105_56 = arith.constant 105 : index
    %61 = vector.load %arg5[%c1_54, %c0_55, %c105_56] : memref<2x96x240xf32, #tpu.memory_space<vmem>>, vector<1x96x15xf32>
    %62 = vector.shape_cast %61 : vector<1x96x15xf32> to vector<96x15xf32>
    %63 = vector.shape_cast %60 : vector<96x15xf32> to vector<1x96x15xf32>
    tpu.vector_store %arg5[%c1_54, %c0_55, %c105_56], %63 {strides = array<i32>} : memref<2x96x240xf32, #tpu.memory_space<vmem>>, vector<1x96x15xf32>,
    %c0_57 = arith.constant 0 : index
    %c128 = arith.constant 128 : index
    %64 = vector.load %arg3[%c0_57, %c128] : memref<96x256xf32, #tpu.memory_space<vmem>>, vector<96x15xf32>
    %c0_58 = arith.constant 0 : index
    %c0_59 = arith.constant 0 : index
    %c120 = arith.constant 120 : index
    %65 = vector.load %arg5[%c0_58, %c0_59, %c120] : memref<2x96x240xf32, #tpu.memory_space<vmem>>, vector<1x96x15xf32>
    %66 = vector.shape_cast %65 : vector<1x96x15xf32> to vector<96x15xf32>
    %67 = vector.shape_cast %64 : vector<96x15xf32> to vector<1x96x15xf32>
    tpu.vector_store %arg5[%c0_58, %c0_59, %c120], %67 {strides = array<i32>} : memref<2x96x240xf32, #tpu.memory_space<vmem>>, vector<1x96x15xf32>,
    %c0_60 = arith.constant 0 : index
    %c129 = arith.constant 129 : index
    %68 = vector.load %arg3[%c0_60, %c129] : memref<96x256xf32, #tpu.memory_space<vmem>>, vector<96x15xf32>
    %c1_61 = arith.constant 1 : index
    %c0_62 = arith.constant 0 : index
    %c120_63 = arith.constant 120 : index
    %69 = vector.load %arg5[%c1_61, %c0_62, %c120_63] : memref<2x96x240xf32, #tpu.memory_space<vmem>>, vector<1x96x15xf32>
    %70 = vector.shape_cast %69 : vector<1x96x15xf32> to vector<96x15xf32>
    %71 = vector.shape_cast %68 : vector<96x15xf32> to vector<1x96x15xf32>
    tpu.vector_store %arg5[%c1_61, %c0_62, %c120_63], %71 {strides = array<i32>} : memref<2x96x240xf32, #tpu.memory_space<vmem>>, vector<1x96x15xf32>,
    %c0_64 = arith.constant 0 : index
    %c144 = arith.constant 144 : index
    %72 = vector.load %arg3[%c0_64, %c144] : memref<96x256xf32, #tpu.memory_space<vmem>>, vector<96x15xf32>
    %c0_65 = arith.constant 0 : index
    %c0_66 = arith.constant 0 : index
    %c135 = arith.constant 135 : index
    %73 = vector.load %arg5[%c0_65, %c0_66, %c135] : memref<2x96x240xf32, #tpu.memory_space<vmem>>, vector<1x96x15xf32>
    %74 = vector.shape_cast %73 : vector<1x96x15xf32> to vector<96x15xf32>
    %75 = vector.shape_cast %72 : vector<96x15xf32> to vector<1x96x15xf32>
    tpu.vector_store %arg5[%c0_65, %c0_66, %c135], %75 {strides = array<i32>} : memref<2x96x240xf32, #tpu.memory_space<vmem>>, vector<1x96x15xf32>,
    %c0_67 = arith.constant 0 : index
    %c145 = arith.constant 145 : index
    %76 = vector.load %arg3[%c0_67, %c145] : memref<96x256xf32, #tpu.memory_space<vmem>>, vector<96x15xf32>
    %c1_68 = arith.constant 1 : index
    %c0_69 = arith.constant 0 : index
    %c135_70 = arith.constant 135 : index
    %77 = vector.load %arg5[%c1_68, %c0_69, %c135_70] : memref<2x96x240xf32, #tpu.memory_space<vmem>>, vector<1x96x15xf32>
    %78 = vector.shape_cast %77 : vector<1x96x15xf32> to vector<96x15xf32>
    %79 = vector.shape_cast %76 : vector<96x15xf32> to vector<1x96x15xf32>
    tpu.vector_store %arg5[%c1_68, %c0_69, %c135_70], %79 {strides = array<i32>} : memref<2x96x240xf32, #tpu.memory_space<vmem>>, vector<1x96x15xf32>,
    %c0_71 = arith.constant 0 : index
    %c160 = arith.constant 160 : index
    %80 = vector.load %arg3[%c0_71, %c160] : memref<96x256xf32, #tpu.memory_space<vmem>>, vector<96x15xf32>
    %c0_72 = arith.constant 0 : index
    %c0_73 = arith.constant 0 : index
    %c150 = arith.constant 150 : index
    %81 = vector.load %arg5[%c0_72, %c0_73, %c150] : memref<2x96x240xf32, #tpu.memory_space<vmem>>, vector<1x96x15xf32>
    %82 = vector.shape_cast %81 : vector<1x96x15xf32> to vector<96x15xf32>
    %83 = vector.shape_cast %80 : vector<96x15xf32> to vector<1x96x15xf32>
    tpu.vector_store %arg5[%c0_72, %c0_73, %c150], %83 {strides = array<i32>} : memref<2x96x240xf32, #tpu.memory_space<vmem>>, vector<1x96x15xf32>,
    %c0_74 = arith.constant 0 : index
    %c161 = arith.constant 161 : index
    %84 = vector.load %arg3[%c0_74, %c161] : memref<96x256xf32, #tpu.memory_space<vmem>>, vector<96x15xf32>
    %c1_75 = arith.constant 1 : index
    %c0_76 = arith.constant 0 : index
    %c150_77 = arith.constant 150 : index
    %85 = vector.load %arg5[%c1_75, %c0_76, %c150_77] : memref<2x96x240xf32, #tpu.memory_space<vmem>>, vector<1x96x15xf32>
    %86 = vector.shape_cast %85 : vector<1x96x15xf32> to vector<96x15xf32>
    %87 = vector.shape_cast %84 : vector<96x15xf32> to vector<1x96x15xf32>
    tpu.vector_store %arg5[%c1_75, %c0_76, %c150_77], %87 {strides = array<i32>} : memref<2x96x240xf32, #tpu.memory_space<vmem>>, vector<1x96x15xf32>,
    %c0_78 = arith.constant 0 : index
    %c176 = arith.constant 176 : index
    %88 = vector.load %arg3[%c0_78, %c176] : memref<96x256xf32, #tpu.memory_space<vmem>>, vector<96x15xf32>
    %c0_79 = arith.constant 0 : index
    %c0_80 = arith.constant 0 : index
    %c165 = arith.constant 165 : index
    %89 = vector.load %arg5[%c0_79, %c0_80, %c165] : memref<2x96x240xf32, #tpu.memory_space<vmem>>, vector<1x96x15xf32>
    %90 = vector.shape_cast %89 : vector<1x96x15xf32> to vector<96x15xf32>
    %91 = vector.shape_cast %88 : vector<96x15xf32> to vector<1x96x15xf32>
    tpu.vector_store %arg5[%c0_79, %c0_80, %c165], %91 {strides = array<i32>} : memref<2x96x240xf32, #tpu.memory_space<vmem>>, vector<1x96x15xf32>,
    %c0_81 = arith.constant 0 : index
    %c177 = arith.constant 177 : index
    %92 = vector.load %arg3[%c0_81, %c177] : memref<96x256xf32, #tpu.memory_space<vmem>>, vector<96x15xf32>
    %c1_82 = arith.constant 1 : index
    %c0_83 = arith.constant 0 : index
    %c165_84 = arith.constant 165 : index
    %93 = vector.load %arg5[%c1_82, %c0_83, %c165_84] : memref<2x96x240xf32, #tpu.memory_space<vmem>>, vector<1x96x15xf32>
    %94 = vector.shape_cast %93 : vector<1x96x15xf32> to vector<96x15xf32>
    %95 = vector.shape_cast %92 : vector<96x15xf32> to vector<1x96x15xf32>
    tpu.vector_store %arg5[%c1_82, %c0_83, %c165_84], %95 {strides = array<i32>} : memref<2x96x240xf32, #tpu.memory_space<vmem>>, vector<1x96x15xf32>,
    %c0_85 = arith.constant 0 : index
    %c192 = arith.constant 192 : index
    %96 = vector.load %arg3[%c0_85, %c192] : memref<96x256xf32, #tpu.memory_space<vmem>>, vector<96x15xf32>
    %c0_86 = arith.constant 0 : index
    %c0_87 = arith.constant 0 : index
    %c180 = arith.constant 180 : index
    %97 = vector.load %arg5[%c0_86, %c0_87, %c180] : memref<2x96x240xf32, #tpu.memory_space<vmem>>, vector<1x96x15xf32>
    %98 = vector.shape_cast %97 : vector<1x96x15xf32> to vector<96x15xf32>
    %99 = vector.shape_cast %96 : vector<96x15xf32> to vector<1x96x15xf32>
    tpu.vector_store %arg5[%c0_86, %c0_87, %c180], %99 {strides = array<i32>} : memref<2x96x240xf32, #tpu.memory_space<vmem>>, vector<1x96x15xf32>,
    %c0_88 = arith.constant 0 : index
    %c193 = arith.constant 193 : index
    %100 = vector.load %arg3[%c0_88, %c193] : memref<96x256xf32, #tpu.memory_space<vmem>>, vector<96x15xf32>
    %c1_89 = arith.constant 1 : index
    %c0_90 = arith.constant 0 : index
    %c180_91 = arith.constant 180 : index
    %101 = vector.load %arg5[%c1_89, %c0_90, %c180_91] : memref<2x96x240xf32, #tpu.memory_space<vmem>>, vector<1x96x15xf32>
    %102 = vector.shape_cast %101 : vector<1x96x15xf32> to vector<96x15xf32>
    %103 = vector.shape_cast %100 : vector<96x15xf32> to vector<1x96x15xf32>
    tpu.vector_store %arg5[%c1_89, %c0_90, %c180_91], %103 {strides = array<i32>} : memref<2x96x240xf32, #tpu.memory_space<vmem>>, vector<1x96x15xf32>,
    %c0_92 = arith.constant 0 : index
    %c208 = arith.constant 208 : index
    %104 = vector.load %arg3[%c0_92, %c208] : memref<96x256xf32, #tpu.memory_space<vmem>>, vector<96x15xf32>
    %c0_93 = arith.constant 0 : index
    %c0_94 = arith.constant 0 : index
    %c195 = arith.constant 195 : index
    %105 = vector.load %arg5[%c0_93, %c0_94, %c195] : memref<2x96x240xf32, #tpu.memory_space<vmem>>, vector<1x96x15xf32>
    %106 = vector.shape_cast %105 : vector<1x96x15xf32> to vector<96x15xf32>
    %107 = vector.shape_cast %104 : vector<96x15xf32> to vector<1x96x15xf32>
    tpu.vector_store %arg5[%c0_93, %c0_94, %c195], %107 {strides = array<i32>} : memref<2x96x240xf32, #tpu.memory_space<vmem>>, vector<1x96x15xf32>,
    %c0_95 = arith.constant 0 : index
    %c209 = arith.constant 209 : index
    %108 = vector.load %arg3[%c0_95, %c209] : memref<96x256xf32, #tpu.memory_space<vmem>>, vector<96x15xf32>
    %c1_96 = arith.constant 1 : index
    %c0_97 = arith.constant 0 : index
    %c195_98 = arith.constant 195 : index
    %109 = vector.load %arg5[%c1_96, %c0_97, %c195_98] : memref<2x96x240xf32, #tpu.memory_space<vmem>>, vector<1x96x15xf32>
    %110 = vector.shape_cast %109 : vector<1x96x15xf32> to vector<96x15xf32>
    %111 = vector.shape_cast %108 : vector<96x15xf32> to vector<1x96x15xf32>
    tpu.vector_store %arg5[%c1_96, %c0_97, %c195_98], %111 {strides = array<i32>} : memref<2x96x240xf32, #tpu.memory_space<vmem>>, vector<1x96x15xf32>,
    %c0_99 = arith.constant 0 : index
    %c224 = arith.constant 224 : index
    %112 = vector.load %arg3[%c0_99, %c224] : memref<96x256xf32, #tpu.memory_space<vmem>>, vector<96x15xf32>
    %c0_100 = arith.constant 0 : index
    %c0_101 = arith.constant 0 : index
    %c210 = arith.constant 210 : index
    %113 = vector.load %arg5[%c0_100, %c0_101, %c210] : memref<2x96x240xf32, #tpu.memory_space<vmem>>, vector<1x96x15xf32>
    %114 = vector.shape_cast %113 : vector<1x96x15xf32> to vector<96x15xf32>
    %115 = vector.shape_cast %112 : vector<96x15xf32> to vector<1x96x15xf32>
    tpu.vector_store %arg5[%c0_100, %c0_101, %c210], %115 {strides = array<i32>} : memref<2x96x240xf32, #tpu.memory_space<vmem>>, vector<1x96x15xf32>,
    %c0_102 = arith.constant 0 : index
    %c225 = arith.constant 225 : index
    %116 = vector.load %arg3[%c0_102, %c225] : memref<96x256xf32, #tpu.memory_space<vmem>>, vector<96x15xf32>
    %c1_103 = arith.constant 1 : index
    %c0_104 = arith.constant 0 : index
    %c210_105 = arith.constant 210 : index
    %117 = vector.load %arg5[%c1_103, %c0_104, %c210_105] : memref<2x96x240xf32, #tpu.memory_space<vmem>>, vector<1x96x15xf32>
    %118 = vector.shape_cast %117 : vector<1x96x15xf32> to vector<96x15xf32>
    %119 = vector.shape_cast %116 : vector<96x15xf32> to vector<1x96x15xf32>
    tpu.vector_store %arg5[%c1_103, %c0_104, %c210_105], %119 {strides = array<i32>} : memref<2x96x240xf32, #tpu.memory_space<vmem>>, vector<1x96x15xf32>,
    %c0_106 = arith.constant 0 : index
    %c240 = arith.constant 240 : index
    %120 = vector.load %arg3[%c0_106, %c240] : memref<96x256xf32, #tpu.memory_space<vmem>>, vector<96x15xf32>
    %c0_107 = arith.constant 0 : index
    %c0_108 = arith.constant 0 : index
    %c225_109 = arith.constant 225 : index
    %121 = vector.load %arg5[%c0_107, %c0_108, %c225_109] : memref<2x96x240xf32, #tpu.memory_space<vmem>>, vector<1x96x15xf32>
    %122 = vector.shape_cast %121 : vector<1x96x15xf32> to vector<96x15xf32>
    %123 = vector.shape_cast %120 : vector<96x15xf32> to vector<1x96x15xf32>
    tpu.vector_store %arg5[%c0_107, %c0_108, %c225_109], %123 {strides = array<i32>} : memref<2x96x240xf32, #tpu.memory_space<vmem>>, vector<1x96x15xf32>,
    %c0_110 = arith.constant 0 : index
    %c241 = arith.constant 241 : index
    %124 = vector.load %arg3[%c0_110, %c241] : memref<96x256xf32, #tpu.memory_space<vmem>>, vector<96x15xf32>
    %c1_111 = arith.constant 1 : index
    %c0_112 = arith.constant 0 : index
    %c225_113 = arith.constant 225 : index
    %125 = vector.load %arg5[%c1_111, %c0_112, %c225_113] : memref<2x96x240xf32, #tpu.memory_space<vmem>>, vector<1x96x15xf32>
    %126 = vector.shape_cast %125 : vector<1x96x15xf32> to vector<96x15xf32>
    %127 = vector.shape_cast %124 : vector<96x15xf32> to vector<1x96x15xf32>
    tpu.vector_store %arg5[%c1_111, %c0_112, %c225_113], %127 {strides = array<i32>} : memref<2x96x240xf32, #tpu.memory_space<vmem>>, vector<1x96x15xf32>,
    %c0_114 = arith.constant 0 : index
    %128 = memref.load %arg1[%c0_114] : memref<24xf32, #tpu.memory_space<smem>>
    %c1_115 = arith.constant 1 : index
    %129 = memref.load %arg1[%c1_115] : memref<24xf32, #tpu.memory_space<smem>>
    %c2 = arith.constant 2 : index
    %130 = memref.load %arg1[%c2] : memref<24xf32, #tpu.memory_space<smem>>
    %c3 = arith.constant 3 : index
    %131 = memref.load %arg1[%c3] : memref<24xf32, #tpu.memory_space<smem>>
    %c4 = arith.constant 4 : index
    %132 = memref.load %arg1[%c4] : memref<24xf32, #tpu.memory_space<smem>>
    %c5 = arith.constant 5 : index
    %133 = memref.load %arg1[%c5] : memref<24xf32, #tpu.memory_space<smem>>
    %c6 = arith.constant 6 : index
    %134 = memref.load %arg1[%c6] : memref<24xf32, #tpu.memory_space<smem>>
    %c7 = arith.constant 7 : index
    %135 = memref.load %arg1[%c7] : memref<24xf32, #tpu.memory_space<smem>>
    %c8 = arith.constant 8 : index
    %136 = memref.load %arg1[%c8] : memref<24xf32, #tpu.memory_space<smem>>
    %c9 = arith.constant 9 : index
    %137 = memref.load %arg1[%c9] : memref<24xf32, #tpu.memory_space<smem>>
    %c10 = arith.constant 10 : index
    %138 = memref.load %arg1[%c10] : memref<24xf32, #tpu.memory_space<smem>>
    %c11 = arith.constant 11 : index
    %139 = memref.load %arg1[%c11] : memref<24xf32, #tpu.memory_space<smem>>
    %c12 = arith.constant 12 : index
    %140 = memref.load %arg1[%c12] : memref<24xf32, #tpu.memory_space<smem>>
    %c13 = arith.constant 13 : index
    %141 = memref.load %arg1[%c13] : memref<24xf32, #tpu.memory_space<smem>>
    %c14 = arith.constant 14 : index
    %142 = memref.load %arg1[%c14] : memref<24xf32, #tpu.memory_space<smem>>
    %c15_116 = arith.constant 15 : index
    %143 = memref.load %arg1[%c15_116] : memref<24xf32, #tpu.memory_space<smem>>
    %c16_117 = arith.constant 16 : index
    %144 = memref.load %arg1[%c16_117] : memref<24xf32, #tpu.memory_space<smem>>
    %c17_118 = arith.constant 17 : index
    %145 = memref.load %arg1[%c17_118] : memref<24xf32, #tpu.memory_space<smem>>
    %c18 = arith.constant 18 : index
    %146 = memref.load %arg1[%c18] : memref<24xf32, #tpu.memory_space<smem>>
    %c19 = arith.constant 19 : index
    %147 = memref.load %arg1[%c19] : memref<24xf32, #tpu.memory_space<smem>>
    %c20 = arith.constant 20 : index
    %148 = memref.load %arg1[%c20] : memref<24xf32, #tpu.memory_space<smem>>
    %c21 = arith.constant 21 : index
    %149 = memref.load %arg1[%c21] : memref<24xf32, #tpu.memory_space<smem>>
    %c22 = arith.constant 22 : index
    %150 = memref.load %arg1[%c22] : memref<24xf32, #tpu.memory_space<smem>>
    %c23 = arith.constant 23 : index
    %151 = memref.load %arg1[%c23] : memref<24xf32, #tpu.memory_space<smem>>
    %c0_119 = arith.constant 0 : index
    %152 = memref.load %arg2[%c0_119] : memref<6xf32, #tpu.memory_space<smem>>
    %c1_120 = arith.constant 1 : index
    %153 = memref.load %arg2[%c1_120] : memref<6xf32, #tpu.memory_space<smem>>
    %c2_121 = arith.constant 2 : index
    %154 = memref.load %arg2[%c2_121] : memref<6xf32, #tpu.memory_space<smem>>
    %c3_122 = arith.constant 3 : index
    %155 = memref.load %arg2[%c3_122] : memref<6xf32, #tpu.memory_space<smem>>
    %c4_123 = arith.constant 4 : index
    %156 = memref.load %arg2[%c4_123] : memref<6xf32, #tpu.memory_space<smem>>
    %c5_124 = arith.constant 5 : index
    %157 = memref.load %arg2[%c5_124] : memref<6xf32, #tpu.memory_space<smem>>
    %c0_125 = arith.constant 0 : index
    %c0_126 = arith.constant 0 : index
    %c0_127 = arith.constant 0 : index
    %158 = vector.load %arg5[%c0_125, %c0_126, %c0_127] : memref<2x96x240xf32, #tpu.memory_space<vmem>>, vector<1x96x225xf32>
    %159 = vector.shape_cast %158 : vector<1x96x225xf32> to vector<96x225xf32>
    %c1_128 = arith.constant 1 : index
    %c0_129 = arith.constant 0 : index
    %c0_130 = arith.constant 0 : index
    %160 = vector.load %arg5[%c1_128, %c0_129, %c0_130] : memref<2x96x240xf32, #tpu.memory_space<vmem>>, vector<1x96x225xf32>
    %161 = vector.shape_cast %160 : vector<1x96x225xf32> to vector<96x225xf32>
    %c0_131 = arith.constant 0 : index
    %c0_132 = arith.constant 0 : index
    %c15_133 = arith.constant 15 : index
    %162 = vector.load %arg5[%c0_131, %c0_132, %c15_133] : memref<2x96x240xf32, #tpu.memory_space<vmem>>, vector<1x96x225xf32>
    %163 = vector.shape_cast %162 : vector<1x96x225xf32> to vector<96x225xf32>
    %c1_134 = arith.constant 1 : index
    %c0_135 = arith.constant 0 : index
    %c15_136 = arith.constant 15 : index
    %164 = vector.load %arg5[%c1_134, %c0_135, %c15_136] : memref<2x96x240xf32, #tpu.memory_space<vmem>>, vector<1x96x225xf32>
    %165 = vector.shape_cast %164 : vector<1x96x225xf32> to vector<96x225xf32>
    %166 = vector.broadcast %128 : f32 to vector<96x225xf32>
    %167 = arith.mulf %166, %159 : vector<96x225xf32>
    %168 = vector.broadcast %129 : f32 to vector<96x225xf32>
    %169 = arith.mulf %168, %161 : vector<96x225xf32>
    %170 = arith.addf %167, %169 : vector<96x225xf32>
    %171 = vector.broadcast %130 : f32 to vector<96x225xf32>
    %172 = arith.mulf %171, %163 : vector<96x225xf32>
    %173 = arith.addf %170, %172 : vector<96x225xf32>
    %174 = vector.broadcast %131 : f32 to vector<96x225xf32>
    %175 = arith.mulf %174, %165 : vector<96x225xf32>
    %176 = arith.addf %173, %175 : vector<96x225xf32>
    %177 = vector.broadcast %152 : f32 to vector<96x225xf32>
    %178 = arith.addf %176, %177 : vector<96x225xf32>
    %cst = arith.constant 0.000000e+00 : f32
    %179 = vector.broadcast %cst : f32 to vector<96x225xf32>
    %180 = arith.maximumf %178, %179 : vector<96x225xf32>
    %c0_137 = arith.constant 0 : index
    %c0_138 = arith.constant 0 : index
    %181 = vector.load %arg4[%c0_137, %c0_138] : memref<96x1350xf32, #tpu.memory_space<vmem>>, vector<96x225xf32>
    tpu.vector_store %arg4[%c0_137, %c0_138], %180 {strides = array<i32>} : memref<96x1350xf32, #tpu.memory_space<vmem>>, vector<96x225xf32>,
    %182 = vector.broadcast %132 : f32 to vector<96x225xf32>
    %183 = arith.mulf %182, %159 : vector<96x225xf32>
    %184 = vector.broadcast %133 : f32 to vector<96x225xf32>
    %185 = arith.mulf %184, %161 : vector<96x225xf32>
    %186 = arith.addf %183, %185 : vector<96x225xf32>
    %187 = vector.broadcast %134 : f32 to vector<96x225xf32>
    %188 = arith.mulf %187, %163 : vector<96x225xf32>
    %189 = arith.addf %186, %188 : vector<96x225xf32>
    %190 = vector.broadcast %135 : f32 to vector<96x225xf32>
    %191 = arith.mulf %190, %165 : vector<96x225xf32>
    %192 = arith.addf %189, %191 : vector<96x225xf32>
    %193 = vector.broadcast %153 : f32 to vector<96x225xf32>
    %194 = arith.addf %192, %193 : vector<96x225xf32>
    %cst_139 = arith.constant 0.000000e+00 : f32
    %195 = vector.broadcast %cst_139 : f32 to vector<96x225xf32>
    %196 = arith.maximumf %194, %195 : vector<96x225xf32>
    %c0_140 = arith.constant 0 : index
    %c225_141 = arith.constant 225 : index
    %197 = vector.load %arg4[%c0_140, %c225_141] : memref<96x1350xf32, #tpu.memory_space<vmem>>, vector<96x225xf32>
    tpu.vector_store %arg4[%c0_140, %c225_141], %196 {strides = array<i32>} : memref<96x1350xf32, #tpu.memory_space<vmem>>, vector<96x225xf32>,
    %198 = vector.broadcast %136 : f32 to vector<96x225xf32>
    %199 = arith.mulf %198, %159 : vector<96x225xf32>
    %200 = vector.broadcast %137 : f32 to vector<96x225xf32>
    %201 = arith.mulf %200, %161 : vector<96x225xf32>
    %202 = arith.addf %199, %201 : vector<96x225xf32>
    %203 = vector.broadcast %138 : f32 to vector<96x225xf32>
    %204 = arith.mulf %203, %163 : vector<96x225xf32>
    %205 = arith.addf %202, %204 : vector<96x225xf32>
    %206 = vector.broadcast %139 : f32 to vector<96x225xf32>
    %207 = arith.mulf %206, %165 : vector<96x225xf32>
    %208 = arith.addf %205, %207 : vector<96x225xf32>
    %209 = vector.broadcast %154 : f32 to vector<96x225xf32>
    %210 = arith.addf %208, %209 : vector<96x225xf32>
    %cst_142 = arith.constant 0.000000e+00 : f32
    %211 = vector.broadcast %cst_142 : f32 to vector<96x225xf32>
    %212 = arith.maximumf %210, %211 : vector<96x225xf32>
    %c0_143 = arith.constant 0 : index
    %c450 = arith.constant 450 : index
    %213 = vector.load %arg4[%c0_143, %c450] : memref<96x1350xf32, #tpu.memory_space<vmem>>, vector<96x225xf32>
    tpu.vector_store %arg4[%c0_143, %c450], %212 {strides = array<i32>} : memref<96x1350xf32, #tpu.memory_space<vmem>>, vector<96x225xf32>,
    %214 = vector.broadcast %140 : f32 to vector<96x225xf32>
    %215 = arith.mulf %214, %159 : vector<96x225xf32>
    %216 = vector.broadcast %141 : f32 to vector<96x225xf32>
    %217 = arith.mulf %216, %161 : vector<96x225xf32>
    %218 = arith.addf %215, %217 : vector<96x225xf32>
    %219 = vector.broadcast %142 : f32 to vector<96x225xf32>
    %220 = arith.mulf %219, %163 : vector<96x225xf32>
    %221 = arith.addf %218, %220 : vector<96x225xf32>
    %222 = vector.broadcast %143 : f32 to vector<96x225xf32>
    %223 = arith.mulf %222, %165 : vector<96x225xf32>
    %224 = arith.addf %221, %223 : vector<96x225xf32>
    %225 = vector.broadcast %155 : f32 to vector<96x225xf32>
    %226 = arith.addf %224, %225 : vector<96x225xf32>
    %cst_144 = arith.constant 0.000000e+00 : f32
    %227 = vector.broadcast %cst_144 : f32 to vector<96x225xf32>
    %228 = arith.maximumf %226, %227 : vector<96x225xf32>
    %c0_145 = arith.constant 0 : index
    %c675 = arith.constant 675 : index
    %229 = vector.load %arg4[%c0_145, %c675] : memref<96x1350xf32, #tpu.memory_space<vmem>>, vector<96x225xf32>
    tpu.vector_store %arg4[%c0_145, %c675], %228 {strides = array<i32>} : memref<96x1350xf32, #tpu.memory_space<vmem>>, vector<96x225xf32>,
    %230 = vector.broadcast %144 : f32 to vector<96x225xf32>
    %231 = arith.mulf %230, %159 : vector<96x225xf32>
    %232 = vector.broadcast %145 : f32 to vector<96x225xf32>
    %233 = arith.mulf %232, %161 : vector<96x225xf32>
    %234 = arith.addf %231, %233 : vector<96x225xf32>
    %235 = vector.broadcast %146 : f32 to vector<96x225xf32>
    %236 = arith.mulf %235, %163 : vector<96x225xf32>
    %237 = arith.addf %234, %236 : vector<96x225xf32>
    %238 = vector.broadcast %147 : f32 to vector<96x225xf32>
    %239 = arith.mulf %238, %165 : vector<96x225xf32>
    %240 = arith.addf %237, %239 : vector<96x225xf32>
    %241 = vector.broadcast %156 : f32 to vector<96x225xf32>
    %242 = arith.addf %240, %241 : vector<96x225xf32>
    %cst_146 = arith.constant 0.000000e+00 : f32
    %243 = vector.broadcast %cst_146 : f32 to vector<96x225xf32>
    %244 = arith.maximumf %242, %243 : vector<96x225xf32>
    %c0_147 = arith.constant 0 : index
    %c900 = arith.constant 900 : index
    %245 = vector.load %arg4[%c0_147, %c900] : memref<96x1350xf32, #tpu.memory_space<vmem>>, vector<96x225xf32>
    tpu.vector_store %arg4[%c0_147, %c900], %244 {strides = array<i32>} : memref<96x1350xf32, #tpu.memory_space<vmem>>, vector<96x225xf32>,
    %246 = vector.broadcast %148 : f32 to vector<96x225xf32>
    %247 = arith.mulf %246, %159 : vector<96x225xf32>
    %248 = vector.broadcast %149 : f32 to vector<96x225xf32>
    %249 = arith.mulf %248, %161 : vector<96x225xf32>
    %250 = arith.addf %247, %249 : vector<96x225xf32>
    %251 = vector.broadcast %150 : f32 to vector<96x225xf32>
    %252 = arith.mulf %251, %163 : vector<96x225xf32>
    %253 = arith.addf %250, %252 : vector<96x225xf32>
    %254 = vector.broadcast %151 : f32 to vector<96x225xf32>
    %255 = arith.mulf %254, %165 : vector<96x225xf32>
    %256 = arith.addf %253, %255 : vector<96x225xf32>
    %257 = vector.broadcast %157 : f32 to vector<96x225xf32>
    %258 = arith.addf %256, %257 : vector<96x225xf32>
    %cst_148 = arith.constant 0.000000e+00 : f32
    %259 = vector.broadcast %cst_148 : f32 to vector<96x225xf32>
    %260 = arith.maximumf %258, %259 : vector<96x225xf32>
    %c0_149 = arith.constant 0 : index
    %c1125 = arith.constant 1125 : index
    %261 = vector.load %arg4[%c0_149, %c1125] : memref<96x1350xf32, #tpu.memory_space<vmem>>, vector<96x225xf32>
    tpu.vector_store %arg4[%c0_149, %c1125], %260 {strides = array<i32>} : memref<96x1350xf32, #tpu.memory_space<vmem>>, vector<96x225xf32>,
    return
  }
  func.func @transform_0(%arg0: i32) -> i32 {
    %c0_i32 = arith.constant 0 : i32
    %c0_i32_0 = arith.constant 0 : i32
    return %c0_i32 : i32
  }
  func.func @transform_1(%arg0: i32) -> i32 {
    %c0_i32 = arith.constant 0 : i32
    %c0_i32_0 = arith.constant 0 : i32
    return %c0_i32 : i32
  }
  func.func @transform_2(%arg0: i32) -> (i32, i32) {
    %c0_i32 = arith.constant 0 : i32
    %c0_i32_0 = arith.constant 0 : i32
    return %arg0, %c0_i32 : i32, i32
  }
  func.func @transform_3(%arg0: i32) -> (i32, i32) {
    %c0_i32 = arith.constant 0 : i32
    %c0_i32_0 = arith.constant 0 : i32
    return %arg0, %c0_i32 : i32, i32
  }
}

</mosaic_0001>

<bundles_post_ra>
// kernel: tpu_custom_call.1
= control target key start
LH: loop header
LB: loop body
LE: loop exit
PB: predicated region body
PF: predicated region fallthrough
CT: control target
= control target key end

     0   :  { %8 = vsyncpa [#allocation6], 0  ;;  %s11180_s0 = inlined_call_operand.hbm [shape: f32[24], index: 0, kind: input, shape index: {}]   ;;  %s11181_s1 = inlined_call_operand.hbm [shape: f32[6], index: 1, kind: input, shape index: {}]   ;;  %s11182_s2 = inlined_call_operand.hbm [shape: f32[192,256], index: 2, kind: input, shape index: {}]   ;;  %s11183_s3 = inlined_call_operand.hbm [shape: f32[192,1350], index: 3, kind: output, shape index: {}]  }
   0x1   :  { %9 = vsyncpa [#allocation8], 0 }
   0x2   :  { %10 = vsyncpa [#allocation4], 0 }
   0x3   :  { %12 = vsyncpa [#allocation4 + $0x1], 0 }
   0x4   :  { %13 = vsyncpa [#allocation5], 0 }
   0x5   :  { %15 = vsyncpa [#allocation5 + $0x1], 0  ;;  %s6583_s12 = smov 0   ;;  %s6585_s13 = smov 0  }
   0x6   :  { %s6587_s14 = smov 0   ;;  %s6589_s15 = smov 0  }
   0x7 LB: > { %s6604_s16 = sadd.s32 4294967295, %s6532_s15   ;;  %s6115_s17 = sadd.s32 4294967294, %s6532_s15   ;;  %s6532_s15 = sphi %s6589_s15, %s11545_s15   ;;  %s6528_s14 = sphi %s6587_s14, %s11544_s14   ;;  %s6524_s13 = sphi %s6585_s13, %s11543_s13   ;;  %s6520_s12 = sphi %s6583_s12, %s11542_s12  }
   0x8   : > { %s6608_s18 = sadd.s32 1, %s6532_s15   ;;  %s70_s19 = sadd.s32 1, %s6528_s14 }
   0x9   : > { %s67_s20 = ssub.s32 %s6532_s15, %s6608_s18  ;;  %p77_p0 = scmp.ne.s32.totalorder %s6528_s14, %s6524_s13 }
   0xa   : > { %p68_p1 = scmp.eq.s32.totalorder %s67_s20, 0  ;;  %p78_p2 = scmp.eq.s32.totalorder %s6532_s15, 0 }
   0xb   : > { %p83_p3 = scmp.ne.s32.totalorder %s6524_s13, %s6520_s12  ;;  %p11184_p4 = scmp.eq.s32.totalorder %s6604_s16, 0 }
   0xc   : > { %s6620_s21 = scalar_select %p68_p1, %s6528_s14, %s70_s19  }
   0xd   : > { %p6622_p5 = por %p78_p2, %p77_p0  ;;  %p6628_p6 = por %p11184_p4, %p83_p3 }
   0xe   : > { %p107_p7 = scmp.eq.s32.totalorder %s6604_s16, 1  ;;  %p113_p8 = scmp.eq.s32.totalorder %s6115_s17, 1 }
   0xf   : > { %s11301_s22 = scalar_select %p6622_p5, 1, 0 }
  0x10   : > { %s11302_s23 = scalar_select %p6628_p6, 1, 0 }
  0x11   : > { %p6116_p9 = scmp.ge.s32.totalorder %s6532_s15, 1  ;;  %p120_p10 = scmp.lt.s32.totalorder %s6532_s15, 3 }
  0x12   : > { %p6635_p11 = por %p107_p7, %p77_p0  ;;  %p6639_p12 = por %p113_p8, %p83_p3 }
  0x13   : > { %p6643_p13 = pnand %p6116_p9, %p120_p10  ;;  %p6192_p4 = scmp.lt.s32.totalorder %s6532_s15, 2 }
  0x14   : > { %s11303_s24 = scalar_select %p6635_p11, 1, 0 }
  0x15   : > { %s11304_s25 = scalar_select %p6639_p12, 1, 0 }
  0x16   : > { %p6175_p2 = pneg %p6643_p13  ;;  %s151_s27 = sand.u32 1, %s6528_s14  }
  0x17   : > { %p11306_p6 = scmp.eq.s32.totalorder %s6604_s16, 0  ;;  %p11308_p0 = scmp.ne.s32.totalorder %s11301_s22, 0 }
  0x18   : > { %s6159_s30 = smul.u32 192, %s151_s27  ;;  %s6402_s6 = scalar_lea.hbm %s11180_s0, 16 }
  0x19   : > { %p6654_p5 = pnand %p6175_p2, %p11306_p6  ;;  %p6660_p3 = pnand %p6192_p4, %p11308_p0 }
  0x1a   : > { %p6403_p7 = scmp.ne.s32.totalorder %s11180_s0, %s6402_s6  ;;  %p6409_p4 = scmp.lt.u32.totalorder %s6402_s6, %s11180_s0 }
  0x1b   : > { %p6404_p6 = pneg %p6654_p5 }
  0x1d   : > { %p6405_p8 = pnand %p6404_p6, %p6403_p7 }
  0x1f   : > { %p6406_p9 = pneg %p6405_p8 }
  0x21   : > { %p6411_p10 = pnand %p6409_p4, %p6406_p9 }
  0x23   : > { %6414 = shalt.err (!%p6411_p10)
}
  0x24   : > { %s6534_s11 = smov [#allocation3]   ;;  %s6415_s4 = scalar_lea.hbm %s11181_s1, 16 }
  0x25   : > { %6178 = dma.hbm_to_smem (!%p6654_p5), %s11180_s0, 16, %s6534_s11, [#allocation6]  }
  0x26   : > { %p6416_p2 = scmp.ne.s32.totalorder %s11181_s1, %s6415_s4  ;;  %p6422_p8 = scmp.lt.u32.totalorder %s6415_s4, %s11181_s1 }
  0x28   : > { %p6418_p0 = pnand %p6416_p2, %p6404_p6 }
  0x2a   : > { %p6419_p7 = pneg %p6418_p0 }
  0x2c   : > { %p6424_p9 = pnand %p6422_p8, %p6419_p7 }
  0x2e   : > { %6427 = shalt.err (!%p6424_p9)
}
  0x2f   : > { %s6535_s9 = smov [#allocation7]   ;;  %s6158_s17 = smul.u32 3072, %s6532_s15 }
  0x30   : > { %6181 = dma.hbm_to_smem (!%p6654_p5), %s11181_s1, 16, %s6535_s9, [#allocation8]  }
  0x31   : > { %s155_s19 = scalar_lea.vmem [#allocation9], %s6159_s30  ;;  %s6698_s7 = scalar_lea.hbm %s11182_s2, %s6158_s17 }
  0x32   : > { %s163_s20 = sshll.u32 %s155_s19, 4  ;;  %s6702_s28 = scalar_lea.sflag [#allocation4], %s151_s27  ;;  %s6700_s20 = int_to_ptr.vmem [resolvable:$true] %s163_s20 }
  0x33   : > { %s6428_s4 = scalar_lea.hbm %s6698_s7, 3072  ;;  %p6430_p5 = pneg %p6660_p3 }
  0x34   : > { %p6429_p6 = scmp.ne.s32.totalorder %s6698_s7, %s6428_s4  ;;  %s6433_s8 = scalar_lea.hbm %s11182_s2, 6144 }
  0x35   : > { %p6434_p2 = scmp.lt.u32.totalorder %s6698_s7, %s11182_s2  ;;  %p6435_p0 = scmp.lt.u32.totalorder %s6433_s8, %s6428_s4 }
  0x36   : > { %p6431_p4 = pnand %p6430_p5, %p6429_p6  ;;  %p6437_p8 = scmp.lt.u32.totalorder %s6428_s4, %s6698_s7 }
  0x37   : > { %p6436_p7 = por %p6435_p0, %p6434_p2 }
  0x38   : > { %p6432_p10 = pneg %p6431_p4 }
  0x39   : > { %p6438_p9 = por %p6437_p8, %p6436_p7 }
  0x3b   : > { %p6439_p1 = pnand %p6438_p9, %p6432_p10 }
  0x3d   : > { %6442 = shalt.err (!%p6439_p1)
}
  0x3e   : > { %s6443_s27 = scalar_lea.vmem %s6700_s20, 3072  ;;  %s6536_s11 = smov [#allocation9]  }
  0x3f   : > { %p6444_p6 = scmp.ne.s32.totalorder %s6700_s20, %s6443_s27  ;;  %s6448_s17 = sshll.u32 %s6536_s11, 4  ;;  %s6449_s17 = int_to_ptr.vmem [resolvable:$false] %s6448_s17 }
  0x40   : > { %s6450_s19 = scalar_lea.vmem %s6449_s17, 6144  ;;  %p6451_p11 = scmp.lt.s32.totalorder %s6700_s20, %s6449_s17 }
  0x41   : > { %p6446_p4 = pnand %p6444_p6, %p6430_p5  ;;  %p6452_p2 = scmp.lt.s32.totalorder %s6450_s19, %s6443_s27 }
  0x43   : > { %p6447_p12 = pneg %p6446_p4  ;;  %p6453_p0 = por %p6452_p2, %p6451_p11 }
  0x45   : > { %p6454_p7 = pnand %p6453_p0, %p6447_p12 }
  0x47   : > { %6457 = shalt.err (!%p6454_p7)
}
  0x48   : > { %s6537_s22 = smov 256   ;;  %s6538_s5 = smov 16  }
  0x49   : > { %6185 = dma.hbm_to_vmem [thread:$0]  (!%p6660_p3), %s6698_s7, 3072, %s6700_s20, %s6702_s28, %s6537_s22, %s6537_s22, %s6538_s5  }
  0x4a   : > { %175 = sbr.rel (%p6643_p13) target bundleno = 2230 (0x8b6), region = 32 }
  0x51   : > { %p11310_p1 = scmp.eq.s32.totalorder %s6604_s16, 0 }
  0x53   : > { %6503 = dma.done.wait (%p11310_p1), [#allocation6], 16   ;;  %p11311_p5 = pmov %p11310_p1 }
  0x54   : > { %p11312_p11 = pmov %p11310_p1 }
  0x55   : > { %6505 = vsyncadd (%p11311_p5), [#allocation6], 4294967280 }
  0x56   : > { %6507 = dma.done.wait (%p11312_p11), [#allocation8], 16   ;;  %p11313_p12 = pmov %p11310_p1 }
  0x57   : > { %s6741_s4 = sand.u32 1, %s6524_s13   ;;  %p11314_p13 = scmp.ne.s32.totalorder %s11302_s23, 0 }
  0x58   : > { %6509 = vsyncadd (%p11313_p12), [#allocation8], 4294967280  ;;  %s6160_s26 = smul.u32 192, %s6741_s4  ;;  %s186_s29 = scalar_lea.sflag [#allocation4], %s6741_s4 }
  0x5a   : > { %s6745_s20 = scalar_lea.vmem [#allocation9], %s6160_s26 }
  0x5b   : > { %6511 = dma.done.wait (%p11314_p13), %s186_s29, 3072  }
  0x5c   : > { %6513 = vsyncadd (%p11314_p13), %s186_s29, 4294964224 }
  0x5d   : > { %194 = sfence }
  0x5e   : > { %v6752_v0 = vld [vmem:[%s6745_s20 + $0x20] sm:$0xff]  ;;  %v6758_v2 = vld [vmem:[%s6745_s20 + $0x30] sm:$0xff]  ;;  %vm227_vm0 = vcmask 121856   ;;  %s6539_s23 = smov 127   ;;  %s6540_s7 = smov 126   ;;  %vm373_vm1 = vcmask 244856  }
  0x5f   : > { %v6755_v1 = vld [vmem:[%s6745_s20] sm:$0xff]  ;;  %268 = vrot.lane.b32.xlu1 %v6752_v0, %s6539_s23  ;;  %v6765_v3 = vld [vmem:[%s6745_s20 + $0x10] sm:$0xff]  ;;  %231 = vst.msk [vmem:[#allocation2 + $0x30] sm:$0xff] %vm227_vm0, %v6758_v2  ;;  %230 = vst.msk [vmem:[#allocation2 + $0x20] sm:$0xff] %vm227_vm0, %v6752_v0  ;;  %s6541_s28 = smov 125   ;;  %s6542_s30 = smov 124  }
  0x60   : > { %264 = vrot.lane.b32.xlu0 %v6755_v1, %s6539_s23  ;;  %v6768_v4 = vld [vmem:[%s6745_s20 + $0x50] sm:$0xff]  ;;  %228 = vst.msk [vmem:[#allocation2] sm:$0xff] %vm227_vm0, %v6755_v1  ;;  %v6777_v5 = vld [vmem:[%s6745_s20 + $0x40] sm:$0xff]  ;;  %229 = vst.msk [vmem:[#allocation2 + $0x10] sm:$0xff] %vm227_vm0, %v6765_v3  ;;  %vm518_vm2 = vcmask 367856   ;;  %s6543_s6 = smov 123  }
  0x61   : > { %v6780_v6 = vld [vmem:[%s6745_s20 + $0x70] sm:$0xff]  ;;  %v6783_v7 = vld [vmem:[%s6745_s20 + $0x60] sm:$0xff]  ;;  %233 = vst.msk [vmem:[#allocation2 + $0x50] sm:$0xff] %vm227_vm0, %v6768_v4  ;;  %232 = vst.msk [vmem:[#allocation2 + $0x40] sm:$0xff] %vm227_vm0, %v6777_v5  ;;  %vm663_vm3 = vcmask 490856   ;;  %s6544_s8 = smov 122  }
  0x62   : > { %v6790_v8 = vld [vmem:[%s6745_s20 + $0x90] sm:$0xff]  ;;  %v6793_v9 = vld [vmem:[%s6745_s20 + $0x80] sm:$0xff]  ;;  %235 = vst.msk [vmem:[#allocation2 + $0x70] sm:$0xff] %vm227_vm0, %v6780_v6  ;;  %234 = vst.msk [vmem:[#allocation2 + $0x60] sm:$0xff] %vm227_vm0, %v6783_v7  ;;  %vm808_vm4 = vcmask 613856   ;;  %s6545_s9 = smov 121  }
  0x63   : > { %v6796_v10 = vld [vmem:[%s6745_s20 + $0xb0] sm:$0xff]  ;;  %v6805_v11 = vld [vmem:[%s6745_s20 + $0xa0] sm:$0xff]  ;;  %237 = vst.msk [vmem:[#allocation2 + $0x90] sm:$0xff] %vm227_vm0, %v6790_v8  ;;  %236 = vst.msk [vmem:[#allocation2 + $0x80] sm:$0xff] %vm227_vm0, %v6793_v9  ;;  %270 = vrot.lane.b32.xlu1 %v6758_v2, %s6539_s23  ;;  %vm953_vm5 = vcmask 736856   ;;  %s6546_s10 = smov 120  }
  0x64   : > { %239 = vst.msk [vmem:[#allocation2 + $0xb0] sm:$0xff] %vm227_vm0, %v6796_v10  ;;  %266 = vrot.lane.b32.xlu0 %v6765_v3, %s6539_s23  ;;  %238 = vst.msk [vmem:[#allocation2 + $0xa0] sm:$0xff] %vm227_vm0, %v6805_v11  ;;  %vm1098_vm6 = vcmask 859856   ;;  %s6547_s27 = smov 119   ;;  %vm1243_vm7 = vcmask 982856   ;;  %s6548_s11 = smov 118  }
  0x65   : > { %vm1388_vm8 = vcmask 1048512   ;;  %vm1390_vm9 = vcmask 56320   ;;  %s6549_s17 = smov 117   ;;  %vm1558_vm10 = vcmask 179256   ;;  %s6550_s19 = smov 116   ;;  %vm1703_vm11 = vcmask 302256  }
  0x66   : > { %s6551_s22 = smov 115   ;;  %vm1848_vm12 = vcmask 425256   ;;  %s6552_s5 = smov 114   ;;  %vm1993_vm13 = vcmask 548256   ;;  %vm2138_vm14 = vcmask 671256   ;;  %vm2283_vm15 = vcmask 794256  }
  0x67   : > { %274 = vrot.lane.b32.xlu1 %v6768_v4, %s6539_s23  ;;  %s6553_s26 = smov 113   ;;  %s6554_s29 = smov 112  }
  0x68   : > { %272 = vrot.lane.b32.xlu0 %v6777_v5, %s6539_s23  ;;  %p11539_p10 = scmp.ne.s32.totalorder %s11303_s24, 0 }
  0x6b   : > { %278 = vrot.lane.b32.xlu1 %v6780_v6, %s6539_s23 }
  0x6c   : > { %276 = vrot.lane.b32.xlu0 %v6783_v7, %s6539_s23 }
  0x6f   : > { %282 = vrot.lane.b32.xlu1 %v6790_v8, %s6539_s23 }
  0x70   : > { %280 = vrot.lane.b32.xlu0 %v6793_v9, %s6539_s23 }
  0x73   : > { %286 = vrot.lane.b32.xlu1 %v6796_v10, %s6539_s23 }
  0x74   : > { %284 = vrot.lane.b32.xlu0 %v6805_v11, %s6539_s23 }
  0x77   : > { %339 = vrot.lane.b32.xlu1 %v6765_v3, %s6539_s23 }
  0x78   : > { %337 = vrot.lane.b32.xlu0 %v6755_v1, %s6539_s23 }
  0x7b   : > { %343 = vrot.lane.b32.xlu1 %v6758_v2, %s6539_s23 }
  0x7c   : > { %341 = vrot.lane.b32.xlu0 %v6752_v0, %s6539_s23 }
  0x7f   : > { %347 = vrot.lane.b32.xlu1 %v6768_v4, %s6539_s23 }
  0x80   : > { %345 = vrot.lane.b32.xlu0 %v6777_v5, %s6539_s23 }
  0x83   : > { %351 = vrot.lane.b32.xlu1 %v6780_v6, %s6539_s23 }
  0x84   : > { %349 = vrot.lane.b32.xlu0 %v6783_v7, %s6539_s23 }
  0x87   : > { %355 = vrot.lane.b32.xlu1 %v6790_v8, %s6539_s23 }
  0x88   : > { %353 = vrot.lane.b32.xlu0 %v6793_v9, %s6539_s23 }
  0x8b   : > { %359 = vrot.lane.b32.xlu1 %v6796_v10, %s6539_s23 }
  0x8c   : > { %357 = vrot.lane.b32.xlu0 %v6805_v11, %s6539_s23  ;;  %s6127_s23 = sld [smem:[#allocation3 + $0x3]] }
  0x8f   : > { %412 = vrot.lane.b32.xlu1 %v6765_v3, %s6540_s7 }
  0x90   : > { %410 = vrot.lane.b32.xlu0 %v6755_v1, %s6540_s7 }
  0x93   : > { %416 = vrot.lane.b32.xlu1 %v6758_v2, %s6540_s7 }
  0x94   : > { %414 = vrot.lane.b32.xlu0 %v6752_v0, %s6540_s7 }
  0x97   : > { %420 = vrot.lane.b32.xlu1 %v6768_v4, %s6540_s7 }
  0x98   : > { %418 = vrot.lane.b32.xlu0 %v6777_v5, %s6540_s7 }
  0x9b   : > { %424 = vrot.lane.b32.xlu1 %v6780_v6, %s6540_s7 }
  0x9c   : > { %422 = vrot.lane.b32.xlu0 %v6783_v7, %s6540_s7 }
  0x9f   : > { %428 = vrot.lane.b32.xlu1 %v6790_v8, %s6540_s7 }
  0xa0   : > { %426 = vrot.lane.b32.xlu0 %v6793_v9, %s6540_s7 }
  0xa3   : > { %432 = vrot.lane.b32.xlu1 %v6796_v10, %s6540_s7 }
  0xa4   : > { %430 = vrot.lane.b32.xlu0 %v6805_v11, %s6540_s7 }
  0xa7   : > { %484 = vrot.lane.b32.xlu1 %v6765_v3, %s6540_s7 }
  0xa8   : > { %482 = vrot.lane.b32.xlu0 %v6755_v1, %s6540_s7 }
  0xab   : > { %488 = vrot.lane.b32.xlu1 %v6758_v2, %s6540_s7 }
  0xac   : > { %486 = vrot.lane.b32.xlu0 %v6752_v0, %s6540_s7 }
  0xaf   : > { %492 = vrot.lane.b32.xlu1 %v6768_v4, %s6540_s7 }
  0xb0   : > { %490 = vrot.lane.b32.xlu0 %v6777_v5, %s6540_s7 }
  0xb3   : > { %496 = vrot.lane.b32.xlu1 %v6780_v6, %s6540_s7 }
  0xb4   : > { %494 = vrot.lane.b32.xlu0 %v6783_v7, %s6540_s7 }
  0xb7   : > { %500 = vrot.lane.b32.xlu1 %v6790_v8, %s6540_s7 }
  0xb8   : > { %498 = vrot.lane.b32.xlu0 %v6793_v9, %s6540_s7 }
  0xbb   : > { %504 = vrot.lane.b32.xlu1 %v6796_v10, %s6540_s7 }
  0xbc   : > { %502 = vrot.lane.b32.xlu0 %v6805_v11, %s6540_s7  ;;  %s6130_s7 = sld [smem:[#allocation3 + $0x6]] }
  0xbf   : > { %557 = vrot.lane.b32.xlu1 %v6765_v3, %s6541_s28 }
  0xc0   : > { %555 = vrot.lane.b32.xlu0 %v6755_v1, %s6541_s28 }
  0xc3   : > { %561 = vrot.lane.b32.xlu1 %v6758_v2, %s6541_s28 }
  0xc4   : > { %559 = vrot.lane.b32.xlu0 %v6752_v0, %s6541_s28 }
  0xc7   : > { %565 = vrot.lane.b32.xlu1 %v6768_v4, %s6541_s28 }
  0xc8   : > { %563 = vrot.lane.b32.xlu0 %v6777_v5, %s6541_s28 }
  0xcb   : > { %569 = vrot.lane.b32.xlu1 %v6780_v6, %s6541_s28 }
  0xcc   : > { %567 = vrot.lane.b32.xlu0 %v6783_v7, %s6541_s28 }
  0xcf   : > { %573 = vrot.lane.b32.xlu1 %v6790_v8, %s6541_s28 }
  0xd0   : > { %571 = vrot.lane.b32.xlu0 %v6793_v9, %s6541_s28 }
  0xd1   : > { %v269_v12 = vpop.permute.xlu1 %268 }
  0xd2   : > { %v265_v13 = vpop.permute.xlu0 %264  ;;  %303 = vst.msk [vmem:[#allocation2 + $0xe0] sm:$0xff] %vm227_vm0, %v269_v12 }
  0xd3   : > { %301 = vst.msk [vmem:[#allocation2 + $0xc0] sm:$0xff] %vm227_vm0, %v265_v13  ;;  %577 = vrot.lane.b32.xlu1 %v6796_v10, %s6541_s28 }
  0xd4   : > { %575 = vrot.lane.b32.xlu0 %v6805_v11, %s6541_s28 }
  0xd5   : > { %v271_v14 = vpop.permute.xlu1 %270 }
  0xd6   : > { %v267_v15 = vpop.permute.xlu0 %266  ;;  %304 = vst.msk [vmem:[#allocation2 + $0xf0] sm:$0xff] %vm227_vm0, %v271_v14 }
  0xd7   : > { %302 = vst.msk [vmem:[#allocation2 + $0xd0] sm:$0xff] %vm227_vm0, %v267_v15  ;;  %629 = vrot.lane.b32.xlu1 %v6765_v3, %s6541_s28 }
  0xd8   : > { %627 = vrot.lane.b32.xlu0 %v6755_v1, %s6541_s28 }
  0xd9   : > { %v275_v16 = vpop.permute.xlu1 %274 }
  0xda   : > { %v273_v17 = vpop.permute.xlu0 %272  ;;  %306 = vst.msk [vmem:[#allocation2 + $0x110] sm:$0xff] %vm227_vm0, %v275_v16 }
  0xdb   : > { %305 = vst.msk [vmem:[#allocation2 + $0x100] sm:$0xff] %vm227_vm0, %v273_v17  ;;  %633 = vrot.lane.b32.xlu1 %v6758_v2, %s6541_s28 }
  0xdc   : > { %631 = vrot.lane.b32.xlu0 %v6752_v0, %s6541_s28 }
  0xdd   : > { %v279_v18 = vpop.permute.xlu1 %278 }
  0xde   : > { %v277_v19 = vpop.permute.xlu0 %276  ;;  %308 = vst.msk [vmem:[#allocation2 + $0x130] sm:$0xff] %vm227_vm0, %v279_v18 }
  0xdf   : > { %307 = vst.msk [vmem:[#allocation2 + $0x120] sm:$0xff] %vm227_vm0, %v277_v19  ;;  %637 = vrot.lane.b32.xlu1 %v6768_v4, %s6541_s28 }
  0xe0   : > { %635 = vrot.lane.b32.xlu0 %v6777_v5, %s6541_s28 }
  0xe1   : > { %v283_v20 = vpop.permute.xlu1 %282 }
  0xe2   : > { %v281_v21 = vpop.permute.xlu0 %280  ;;  %310 = vst.msk [vmem:[#allocation2 + $0x150] sm:$0xff] %vm227_vm0, %v283_v20 }
  0xe3   : > { %309 = vst.msk [vmem:[#allocation2 + $0x140] sm:$0xff] %vm227_vm0, %v281_v21  ;;  %641 = vrot.lane.b32.xlu1 %v6780_v6, %s6541_s28 }
  0xe4   : > { %639 = vrot.lane.b32.xlu0 %v6783_v7, %s6541_s28 }
  0xe5   : > { %v287_v22 = vpop.permute.xlu1 %286 }
  0xe6   : > { %v285_v23 = vpop.permute.xlu0 %284  ;;  %312 = vst.msk [vmem:[#allocation2 + $0x170] sm:$0xff] %vm227_vm0, %v287_v22 }
  0xe7   : > { %311 = vst.msk [vmem:[#allocation2 + $0x160] sm:$0xff] %vm227_vm0, %v285_v23  ;;  %645 = vrot.lane.b32.xlu1 %v6790_v8, %s6541_s28  ;;  %vm2428_vm0 = vcmask 917256  }
  0xe8   : > { %643 = vrot.lane.b32.xlu0 %v6793_v9, %s6541_s28 }
  0xe9   : > { %v340_v24 = vpop.permute.xlu1 %339 }
  0xea   : > { %v338_v25 = vpop.permute.xlu0 %337  ;;  %375 = vst.msk [vmem:[#allocation2 + $0x10] sm:$0xff] %vm373_vm1, %v340_v24 }
  0xeb   : > { %374 = vst.msk [vmem:[#allocation2] sm:$0xff] %vm373_vm1, %v338_v25  ;;  %649 = vrot.lane.b32.xlu1 %v6796_v10, %s6541_s28 }
  0xec   : > { %647 = vrot.lane.b32.xlu0 %v6805_v11, %s6541_s28  ;;  %s6131_s28 = sld [smem:[#allocation3 + $0x7]] }
  0xed   : > { %v344_v26 = vpop.permute.xlu1 %343 }
  0xee   : > { %v342_v27 = vpop.permute.xlu0 %341  ;;  %377 = vst.msk [vmem:[#allocation2 + $0x30] sm:$0xff] %vm373_vm1, %v344_v26 }
  0xef   : > { %376 = vst.msk [vmem:[#allocation2 + $0x20] sm:$0xff] %vm373_vm1, %v342_v27  ;;  %702 = vrot.lane.b32.xlu1 %v6765_v3, %s6542_s30 }
  0xf0   : > { %700 = vrot.lane.b32.xlu0 %v6755_v1, %s6542_s30 }
  0xf1   : > { %v348_v28 = vpop.permute.xlu1 %347 }
  0xf2   : > { %v346_v29 = vpop.permute.xlu0 %345  ;;  %379 = vst.msk [vmem:[#allocation2 + $0x50] sm:$0xff] %vm373_vm1, %v348_v28 }
  0xf3   : > { %378 = vst.msk [vmem:[#allocation2 + $0x40] sm:$0xff] %vm373_vm1, %v346_v29  ;;  %706 = vrot.lane.b32.xlu1 %v6758_v2, %s6542_s30 }
  0xf4   : > { %704 = vrot.lane.b32.xlu0 %v6752_v0, %s6542_s30 }
  0xf5   : > { %v352_v30 = vpop.permute.xlu1 %351 }
  0xf6   : > { %v350_v31 = vpop.permute.xlu0 %349  ;;  %381 = vst.msk [vmem:[#allocation2 + $0x70] sm:$0xff] %vm373_vm1, %v352_v30 }
  0xf7   : > { %380 = vst.msk [vmem:[#allocation2 + $0x60] sm:$0xff] %vm373_vm1, %v350_v31  ;;  %710 = vrot.lane.b32.xlu1 %v6768_v4, %s6542_s30 }
  0xf8   : > { %708 = vrot.lane.b32.xlu0 %v6777_v5, %s6542_s30 }
  0xf9   : > { %v356_v32 = vpop.permute.xlu1 %355 }
  0xfa   : > { %v354_v33 = vpop.permute.xlu0 %353  ;;  %383 = vst.msk [vmem:[#allocation2 + $0x90] sm:$0xff] %vm373_vm1, %v356_v32 }
  0xfb   : > { %382 = vst.msk [vmem:[#allocation2 + $0x80] sm:$0xff] %vm373_vm1, %v354_v33  ;;  %714 = vrot.lane.b32.xlu1 %v6780_v6, %s6542_s30 }
  0xfc   : > { %712 = vrot.lane.b32.xlu0 %v6783_v7, %s6542_s30 }
  0xfd   : > { %v360_v34 = vpop.permute.xlu1 %359 }
  0xfe   : > { %v358_v35 = vpop.permute.xlu0 %357  ;;  %385 = vst.msk [vmem:[#allocation2 + $0xb0] sm:$0xff] %vm373_vm1, %v360_v34 }
  0xff   : > { %384 = vst.msk [vmem:[#allocation2 + $0xa0] sm:$0xff] %vm373_vm1, %v358_v35  ;;  %718 = vrot.lane.b32.xlu1 %v6790_v8, %s6542_s30 }
 0x100   : > { %716 = vrot.lane.b32.xlu0 %v6793_v9, %s6542_s30 }
 0x101   : > { %v413_v36 = vpop.permute.xlu1 %412 }
 0x102   : > { %v411_v37 = vpop.permute.xlu0 %410  ;;  %447 = vst.msk [vmem:[#allocation2 + $0xd0] sm:$0xff] %vm373_vm1, %v413_v36 }
 0x103   : > { %446 = vst.msk [vmem:[#allocation2 + $0xc0] sm:$0xff] %vm373_vm1, %v411_v37  ;;  %722 = vrot.lane.b32.xlu1 %v6796_v10, %s6542_s30 }
 0x104   : > { %720 = vrot.lane.b32.xlu0 %v6805_v11, %s6542_s30 }
 0x105   : > { %v417_v38 = vpop.permute.xlu1 %416 }
 0x106   : > { %v415_v39 = vpop.permute.xlu0 %414  ;;  %449 = vst.msk [vmem:[#allocation2 + $0xf0] sm:$0xff] %vm373_vm1, %v417_v38 }
 0x107   : > { %448 = vst.msk [vmem:[#allocation2 + $0xe0] sm:$0xff] %vm373_vm1, %v415_v39  ;;  %774 = vrot.lane.b32.xlu1 %v6765_v3, %s6542_s30 }
 0x108   : > { %772 = vrot.lane.b32.xlu0 %v6755_v1, %s6542_s30 }
 0x109   : > { %v421_v40 = vpop.permute.xlu1 %420 }
 0x10a   : > { %v419_v41 = vpop.permute.xlu0 %418  ;;  %451 = vst.msk [vmem:[#allocation2 + $0x110] sm:$0xff] %vm373_vm1, %v421_v40 }
 0x10b   : > { %450 = vst.msk [vmem:[#allocation2 + $0x100] sm:$0xff] %vm373_vm1, %v419_v41  ;;  %778 = vrot.lane.b32.xlu1 %v6758_v2, %s6542_s30 }
 0x10c   : > { %776 = vrot.lane.b32.xlu0 %v6752_v0, %s6542_s30 }
 0x10d   : > { %v425_v42 = vpop.permute.xlu1 %424 }
 0x10e   : > { %v423_v43 = vpop.permute.xlu0 %422  ;;  %453 = vst.msk [vmem:[#allocation2 + $0x130] sm:$0xff] %vm373_vm1, %v425_v42 }
 0x10f   : > { %452 = vst.msk [vmem:[#allocation2 + $0x120] sm:$0xff] %vm373_vm1, %v423_v43  ;;  %782 = vrot.lane.b32.xlu1 %v6768_v4, %s6542_s30 }
 0x110   : > { %780 = vrot.lane.b32.xlu0 %v6777_v5, %s6542_s30 }
 0x111   : > { %v429_v44 = vpop.permute.xlu1 %428 }
 0x112   : > { %v427_v45 = vpop.permute.xlu0 %426  ;;  %455 = vst.msk [vmem:[#allocation2 + $0x150] sm:$0xff] %vm373_vm1, %v429_v44 }
 0x113   : > { %454 = vst.msk [vmem:[#allocation2 + $0x140] sm:$0xff] %vm373_vm1, %v427_v45  ;;  %786 = vrot.lane.b32.xlu1 %v6780_v6, %s6542_s30 }
 0x114   : > { %784 = vrot.lane.b32.xlu0 %v6783_v7, %s6542_s30 }
 0x115   : > { %v433_v46 = vpop.permute.xlu1 %432 }
 0x116   : > { %v431_v47 = vpop.permute.xlu0 %430  ;;  %457 = vst.msk [vmem:[#allocation2 + $0x170] sm:$0xff] %vm373_vm1, %v433_v46 }
 0x117   : > { %456 = vst.msk [vmem:[#allocation2 + $0x160] sm:$0xff] %vm373_vm1, %v431_v47  ;;  %790 = vrot.lane.b32.xlu1 %v6790_v8, %s6542_s30  ;;  %vm2762_vm1 = vcmask 924672  }
 0x118   : > { %788 = vrot.lane.b32.xlu0 %v6793_v9, %s6542_s30 }
 0x119   : > { %v485_v48 = vpop.permute.xlu1 %484 }
 0x11a   : > { %v483_v49 = vpop.permute.xlu0 %482  ;;  %520 = vst.msk [vmem:[#allocation2 + $0x10] sm:$0xff] %vm518_vm2, %v485_v48 }
 0x11b   : > { %519 = vst.msk [vmem:[#allocation2] sm:$0xff] %vm518_vm2, %v483_v49  ;;  %794 = vrot.lane.b32.xlu1 %v6796_v10, %s6542_s30 }
 0x11c   : > { %792 = vrot.lane.b32.xlu0 %v6805_v11, %s6542_s30  ;;  %s6125_s30 = sld [smem:[#allocation3 + $0x1]] }
 0x11d   : > { %v489_v50 = vpop.permute.xlu1 %488 }
 0x11e   : > { %v487_v51 = vpop.permute.xlu0 %486  ;;  %522 = vst.msk [vmem:[#allocation2 + $0x30] sm:$0xff] %vm518_vm2, %v489_v50  ;;  %v1184_v50 = vld [vmem:[%s6745_s20 + $0x10] sm:$0xff] }
 0x11f   : > { %521 = vst.msk [vmem:[#allocation2 + $0x20] sm:$0xff] %vm518_vm2, %v487_v51  ;;  %847 = vrot.lane.b32.xlu1 %v6765_v3, %s6543_s6  ;;  %v1183_v51 = vld [vmem:[%s6745_s20] sm:$0xff] }
 0x120   : > { %845 = vrot.lane.b32.xlu0 %v6755_v1, %s6543_s6 }
 0x121   : > { %v493_v52 = vpop.permute.xlu1 %492 }
 0x122   : > { %v491_v53 = vpop.permute.xlu0 %490  ;;  %524 = vst.msk [vmem:[#allocation2 + $0x50] sm:$0xff] %vm518_vm2, %v493_v52 }
 0x123   : > { %523 = vst.msk [vmem:[#allocation2 + $0x40] sm:$0xff] %vm518_vm2, %v491_v53  ;;  %851 = vrot.lane.b32.xlu1 %v6758_v2, %s6543_s6 }
 0x124   : > { %849 = vrot.lane.b32.xlu0 %v6752_v0, %s6543_s6 }
 0x125   : > { %v497_v54 = vpop.permute.xlu1 %496 }
 0x126   : > { %v495_v55 = vpop.permute.xlu0 %494  ;;  %526 = vst.msk [vmem:[#allocation2 + $0x70] sm:$0xff] %vm518_vm2, %v497_v54  ;;  %v1186_v54 = vld [vmem:[%s6745_s20 + $0x30] sm:$0xff] }
 0x127   : > { %525 = vst.msk [vmem:[#allocation2 + $0x60] sm:$0xff] %vm518_vm2, %v495_v55  ;;  %855 = vrot.lane.b32.xlu1 %v6768_v4, %s6543_s6  ;;  %v1185_v55 = vld [vmem:[%s6745_s20 + $0x20] sm:$0xff] }
 0x128   : > { %853 = vrot.lane.b32.xlu0 %v6777_v5, %s6543_s6 }
 0x129   : > { %v501_v56 = vpop.permute.xlu1 %500 }
 0x12a   : > { %v499_v57 = vpop.permute.xlu0 %498  ;;  %528 = vst.msk [vmem:[#allocation2 + $0x90] sm:$0xff] %vm518_vm2, %v501_v56 }
 0x12b   : > { %527 = vst.msk [vmem:[#allocation2 + $0x80] sm:$0xff] %vm518_vm2, %v499_v57  ;;  %859 = vrot.lane.b32.xlu1 %v6780_v6, %s6543_s6 }
 0x12c   : > { %857 = vrot.lane.b32.xlu0 %v6783_v7, %s6543_s6 }
 0x12d   : > { %v505_v58 = vpop.permute.xlu1 %504 }
 0x12e   : > { %v503_v59 = vpop.permute.xlu0 %502  ;;  %530 = vst.msk [vmem:[#allocation2 + $0xb0] sm:$0xff] %vm518_vm2, %v505_v58  ;;  %v1188_v58 = vld [vmem:[%s6745_s20 + $0x50] sm:$0xff] }
 0x12f   : > { %529 = vst.msk [vmem:[#allocation2 + $0xa0] sm:$0xff] %vm518_vm2, %v503_v59  ;;  %863 = vrot.lane.b32.xlu1 %v6790_v8, %s6543_s6  ;;  %v1187_v59 = vld [vmem:[%s6745_s20 + $0x40] sm:$0xff] }
 0x130   : > { %861 = vrot.lane.b32.xlu0 %v6793_v9, %s6543_s6 }
 0x131   : > { %v558_v60 = vpop.permute.xlu1 %557 }
 0x132   : > { %v556_v61 = vpop.permute.xlu0 %555  ;;  %592 = vst.msk [vmem:[#allocation2 + $0xd0] sm:$0xff] %vm518_vm2, %v558_v60 }
 0x133   : > { %591 = vst.msk [vmem:[#allocation2 + $0xc0] sm:$0xff] %vm518_vm2, %v556_v61  ;;  %867 = vrot.lane.b32.xlu1 %v6796_v10, %s6543_s6 }
 0x134   : > { %865 = vrot.lane.b32.xlu0 %v6805_v11, %s6543_s6 }
 0x135   : > { %v562_v62 = vpop.permute.xlu1 %561 }
 0x136   : > { %v560_v63 = vpop.permute.xlu0 %559  ;;  %594 = vst.msk [vmem:[#allocation2 + $0xf0] sm:$0xff] %vm518_vm2, %v562_v62  ;;  %v1190_v62 = vld [vmem:[%s6745_s20 + $0x70] sm:$0xff] }
 0x137   : > { %593 = vst.msk [vmem:[#allocation2 + $0xe0] sm:$0xff] %vm518_vm2, %v560_v63  ;;  %919 = vrot.lane.b32.xlu1 %v6765_v3, %s6543_s6  ;;  %v1189_v63 = vld [vmem:[%s6745_s20 + $0x60] sm:$0xff] }
 0x138   : > { %917 = vrot.lane.b32.xlu0 %v6755_v1, %s6543_s6 }
 0x139   : > { %v566_v12 = vpop.permute.xlu1 %565 }
 0x13a   : > { %v564_v13 = vpop.permute.xlu0 %563  ;;  %596 = vst.msk [vmem:[#allocation2 + $0x110] sm:$0xff] %vm518_vm2, %v566_v12 }
 0x13b   : > { %595 = vst.msk [vmem:[#allocation2 + $0x100] sm:$0xff] %vm518_vm2, %v564_v13  ;;  %923 = vrot.lane.b32.xlu1 %v6758_v2, %s6543_s6 }
 0x13c   : > { %921 = vrot.lane.b32.xlu0 %v6752_v0, %s6543_s6 }
 0x13d   : > { %v570_v14 = vpop.permute.xlu1 %569 }
 0x13e   : > { %v568_v15 = vpop.permute.xlu0 %567  ;;  %598 = vst.msk [vmem:[#allocation2 + $0x130] sm:$0xff] %vm518_vm2, %v570_v14 }
 0x13f   : > { %597 = vst.msk [vmem:[#allocation2 + $0x120] sm:$0xff] %vm518_vm2, %v568_v15  ;;  %927 = vrot.lane.b32.xlu1 %v6768_v4, %s6543_s6 }
 0x140   : > { %925 = vrot.lane.b32.xlu0 %v6777_v5, %s6543_s6 }
 0x141   : > { %v574_v16 = vpop.permute.xlu1 %573 }
 0x142   : > { %v572_v17 = vpop.permute.xlu0 %571  ;;  %600 = vst.msk [vmem:[#allocation2 + $0x150] sm:$0xff] %vm518_vm2, %v574_v16 }
 0x143   : > { %599 = vst.msk [vmem:[#allocation2 + $0x140] sm:$0xff] %vm518_vm2, %v572_v17  ;;  %931 = vrot.lane.b32.xlu1 %v6780_v6, %s6543_s6 }
 0x144   : > { %929 = vrot.lane.b32.xlu0 %v6783_v7, %s6543_s6 }
 0x145   : > { %v578_v18 = vpop.permute.xlu1 %577 }
 0x146   : > { %v576_v19 = vpop.permute.xlu0 %575  ;;  %602 = vst.msk [vmem:[#allocation2 + $0x170] sm:$0xff] %vm518_vm2, %v578_v18 }
 0x147   : > { %601 = vst.msk [vmem:[#allocation2 + $0x160] sm:$0xff] %vm518_vm2, %v576_v19  ;;  %935 = vrot.lane.b32.xlu1 %v6790_v8, %s6543_s6  ;;  %vm3030_vm2 = vcmask 793600  }
 0x148   : > { %933 = vrot.lane.b32.xlu0 %v6793_v9, %s6543_s6 }
 0x149   : > { %v630_v20 = vpop.permute.xlu1 %629 }
 0x14a   : > { %v628_v21 = vpop.permute.xlu0 %627  ;;  %665 = vst.msk [vmem:[#allocation2 + $0x10] sm:$0xff] %vm663_vm3, %v630_v20 }
 0x14b   : > { %664 = vst.msk [vmem:[#allocation2] sm:$0xff] %vm663_vm3, %v628_v21  ;;  %939 = vrot.lane.b32.xlu1 %v6796_v10, %s6543_s6 }
 0x14c   : > { %937 = vrot.lane.b32.xlu0 %v6805_v11, %s6543_s6  ;;  %s2513_s6 = sld [smem:[#allocation3]] }
 0x14d   : > { %v634_v22 = vpop.permute.xlu1 %633 }
 0x14e   : > { %v632_v23 = vpop.permute.xlu0 %631  ;;  %667 = vst.msk [vmem:[#allocation2 + $0x30] sm:$0xff] %vm663_vm3, %v634_v22 }
 0x14f   : > { %666 = vst.msk [vmem:[#allocation2 + $0x20] sm:$0xff] %vm663_vm3, %v632_v23  ;;  %992 = vrot.lane.b32.xlu1 %v6765_v3, %s6544_s8 }
 0x150   : > { %990 = vrot.lane.b32.xlu0 %v6755_v1, %s6544_s8 }
 0x151   : > { %v638_v24 = vpop.permute.xlu1 %637 }
 0x152   : > { %v636_v25 = vpop.permute.xlu0 %635  ;;  %669 = vst.msk [vmem:[#allocation2 + $0x50] sm:$0xff] %vm663_vm3, %v638_v24 }
 0x153   : > { %668 = vst.msk [vmem:[#allocation2 + $0x40] sm:$0xff] %vm663_vm3, %v636_v25  ;;  %996 = vrot.lane.b32.xlu1 %v6758_v2, %s6544_s8 }
 0x154   : > { %994 = vrot.lane.b32.xlu0 %v6752_v0, %s6544_s8 }
 0x155   : > { %v642_v26 = vpop.permute.xlu1 %641 }
 0x156   : > { %v640_v27 = vpop.permute.xlu0 %639  ;;  %671 = vst.msk [vmem:[#allocation2 + $0x70] sm:$0xff] %vm663_vm3, %v642_v26 }
 0x157   : > { %670 = vst.msk [vmem:[#allocation2 + $0x60] sm:$0xff] %vm663_vm3, %v640_v27  ;;  %1000 = vrot.lane.b32.xlu1 %v6768_v4, %s6544_s8 }
 0x158   : > { %998 = vrot.lane.b32.xlu0 %v6777_v5, %s6544_s8 }
 0x159   : > { %v646_v28 = vpop.permute.xlu1 %645 }
 0x15a   : > { %v644_v29 = vpop.permute.xlu0 %643  ;;  %673 = vst.msk [vmem:[#allocation2 + $0x90] sm:$0xff] %vm663_vm3, %v646_v28 }
 0x15b   : > { %672 = vst.msk [vmem:[#allocation2 + $0x80] sm:$0xff] %vm663_vm3, %v644_v29  ;;  %1004 = vrot.lane.b32.xlu1 %v6780_v6, %s6544_s8 }
 0x15c   : > { %1002 = vrot.lane.b32.xlu0 %v6783_v7, %s6544_s8 }
 0x15d   : > { %v650_v30 = vpop.permute.xlu1 %649 }
 0x15e   : > { %v648_v31 = vpop.permute.xlu0 %647  ;;  %675 = vst.msk [vmem:[#allocation2 + $0xb0] sm:$0xff] %vm663_vm3, %v650_v30  ;;  %v7274_v30 = vld [vmem:[%s6745_s20 + $0x18] sm:$0xff] }
 0x15f   : > { %674 = vst.msk [vmem:[#allocation2 + $0xa0] sm:$0xff] %vm663_vm3, %v648_v31  ;;  %1008 = vrot.lane.b32.xlu1 %v6790_v8, %s6544_s8  ;;  %v7277_v31 = vld [vmem:[%s6745_s20 + $0x8] sm:$0xff] }
 0x160   : > { %1006 = vrot.lane.b32.xlu0 %v6793_v9, %s6544_s8 }
 0x161   : > { %v703_v32 = vpop.permute.xlu1 %702 }
 0x162   : > { %v701_v33 = vpop.permute.xlu0 %700  ;;  %737 = vst.msk [vmem:[#allocation2 + $0xd0] sm:$0xff] %vm663_vm3, %v703_v32 }
 0x163   : > { %736 = vst.msk [vmem:[#allocation2 + $0xc0] sm:$0xff] %vm663_vm3, %v701_v33  ;;  %1012 = vrot.lane.b32.xlu1 %v6796_v10, %s6544_s8 }
 0x164   : > { %1010 = vrot.lane.b32.xlu0 %v6805_v11, %s6544_s8 }
 0x165   : > { %v707_v34 = vpop.permute.xlu1 %706 }
 0x166   : > { %v705_v35 = vpop.permute.xlu0 %704  ;;  %739 = vst.msk [vmem:[#allocation2 + $0xf0] sm:$0xff] %vm663_vm3, %v707_v34  ;;  %v7286_v34 = vld [vmem:[%s6745_s20 + $0x38] sm:$0xff] }
 0x167   : > { %738 = vst.msk [vmem:[#allocation2 + $0xe0] sm:$0xff] %vm663_vm3, %v705_v35  ;;  %1064 = vrot.lane.b32.xlu1 %v6765_v3, %s6544_s8  ;;  %v7289_v35 = vld [vmem:[%s6745_s20 + $0x28] sm:$0xff] }
 0x168   : > { %1062 = vrot.lane.b32.xlu0 %v6755_v1, %s6544_s8 }
 0x169   : > { %v711_v36 = vpop.permute.xlu1 %710 }
 0x16a   : > { %v709_v37 = vpop.permute.xlu0 %708  ;;  %741 = vst.msk [vmem:[#allocation2 + $0x110] sm:$0xff] %vm663_vm3, %v711_v36 }
 0x16b   : > { %740 = vst.msk [vmem:[#allocation2 + $0x100] sm:$0xff] %vm663_vm3, %v709_v37  ;;  %1068 = vrot.lane.b32.xlu1 %v6758_v2, %s6544_s8 }
 0x16c   : > { %1066 = vrot.lane.b32.xlu0 %v6752_v0, %s6544_s8 }
 0x16d   : > { %v715_v38 = vpop.permute.xlu1 %714 }
 0x16e   : > { %v713_v39 = vpop.permute.xlu0 %712  ;;  %743 = vst.msk [vmem:[#allocation2 + $0x130] sm:$0xff] %vm663_vm3, %v715_v38  ;;  %v7298_v38 = vld [vmem:[%s6745_s20 + $0x58] sm:$0xff] }
 0x16f   : > { %742 = vst.msk [vmem:[#allocation2 + $0x120] sm:$0xff] %vm663_vm3, %v713_v39  ;;  %1072 = vrot.lane.b32.xlu1 %v6768_v4, %s6544_s8  ;;  %v7301_v39 = vld [vmem:[%s6745_s20 + $0x48] sm:$0xff] }
 0x170   : > { %1070 = vrot.lane.b32.xlu0 %v6777_v5, %s6544_s8 }
 0x171   : > { %v719_v40 = vpop.permute.xlu1 %718 }
 0x172   : > { %v717_v41 = vpop.permute.xlu0 %716  ;;  %745 = vst.msk [vmem:[#allocation2 + $0x150] sm:$0xff] %vm663_vm3, %v719_v40 }
 0x173   : > { %744 = vst.msk [vmem:[#allocation2 + $0x140] sm:$0xff] %vm663_vm3, %v717_v41  ;;  %1076 = vrot.lane.b32.xlu1 %v6780_v6, %s6544_s8 }
 0x174   : > { %1074 = vrot.lane.b32.xlu0 %v6783_v7, %s6544_s8 }
 0x175   : > { %v723_v42 = vpop.permute.xlu1 %722 }
 0x176   : > { %v721_v43 = vpop.permute.xlu0 %720  ;;  %747 = vst.msk [vmem:[#allocation2 + $0x170] sm:$0xff] %vm663_vm3, %v723_v42  ;;  %v7310_v42 = vld [vmem:[%s6745_s20 + $0x78] sm:$0xff] }
 0x177   : > { %746 = vst.msk [vmem:[#allocation2 + $0x160] sm:$0xff] %vm663_vm3, %v721_v43  ;;  %1080 = vrot.lane.b32.xlu1 %v6790_v8, %s6544_s8  ;;  %v7313_v43 = vld [vmem:[%s6745_s20 + $0x68] sm:$0xff]  ;;  %vm3614_vm3 = vcmask 539648  }
 0x178   : > { %1078 = vrot.lane.b32.xlu0 %v6793_v9, %s6544_s8 }
 0x179   : > { %v775_v44 = vpop.permute.xlu1 %774 }
 0x17a   : > { %v773_v45 = vpop.permute.xlu0 %772  ;;  %810 = vst.msk [vmem:[#allocation2 + $0x10] sm:$0xff] %vm808_vm4, %v775_v44 }
 0x17b   : > { %809 = vst.msk [vmem:[#allocation2] sm:$0xff] %vm808_vm4, %v773_v45  ;;  %1084 = vrot.lane.b32.xlu1 %v6796_v10, %s6544_s8 }
 0x17c   : > { %1082 = vrot.lane.b32.xlu0 %v6805_v11, %s6544_s8  ;;  %s2537_s8 = sld [smem:[#allocation7]] }
 0x17d   : > { %v779_v46 = vpop.permute.xlu1 %778 }
 0x17e   : > { %v777_v47 = vpop.permute.xlu0 %776  ;;  %812 = vst.msk [vmem:[#allocation2 + $0x30] sm:$0xff] %vm808_vm4, %v779_v46  ;;  %v7322_v46 = vld [vmem:[%s6745_s20 + $0x98] sm:$0xff] }
 0x17f   : > { %811 = vst.msk [vmem:[#allocation2 + $0x20] sm:$0xff] %vm808_vm4, %v777_v47  ;;  %1137 = vrot.lane.b32.xlu1 %v6765_v3, %s6545_s9  ;;  %v7325_v47 = vld [vmem:[%s6745_s20 + $0x88] sm:$0xff] }
 0x180   : > { %1135 = vrot.lane.b32.xlu0 %v6755_v1, %s6545_s9 }
 0x181   : > { %v783_v8 = vpop.permute.xlu1 %782 }
 0x182   : > { %v781_v9 = vpop.permute.xlu0 %780  ;;  %814 = vst.msk [vmem:[#allocation2 + $0x50] sm:$0xff] %vm808_vm4, %v783_v8 }
 0x183   : > { %813 = vst.msk [vmem:[#allocation2 + $0x40] sm:$0xff] %vm808_vm4, %v781_v9  ;;  %1141 = vrot.lane.b32.xlu1 %v6758_v2, %s6545_s9  ;;  %v7189_v2 = vld [vmem:[%s6745_s20 + $0x80] sm:$0xff] }
 0x184   : > { %1139 = vrot.lane.b32.xlu0 %v6752_v0, %s6545_s9  ;;  %v7186_v0 = vld [vmem:[%s6745_s20 + $0x90] sm:$0xff] }
 0x185   : > { %v787_v10 = vpop.permute.xlu1 %786 }
 0x186   : > { %v785_v11 = vpop.permute.xlu0 %784  ;;  %816 = vst.msk [vmem:[#allocation2 + $0x70] sm:$0xff] %vm808_vm4, %v787_v10  ;;  %v7334_v10 = vld [vmem:[%s6745_s20 + $0xb8] sm:$0xff] }
 0x187   : > { %815 = vst.msk [vmem:[#allocation2 + $0x60] sm:$0xff] %vm808_vm4, %v785_v11  ;;  %1145 = vrot.lane.b32.xlu1 %v6768_v4, %s6545_s9  ;;  %v7337_v11 = vld [vmem:[%s6745_s20 + $0xa8] sm:$0xff] }
 0x188   : > { %1143 = vrot.lane.b32.xlu0 %v6777_v5, %s6545_s9 }
 0x189   : > { %v791_v1 = vpop.permute.xlu1 %790 }
 0x18a   : > { %v789_v3 = vpop.permute.xlu0 %788  ;;  %818 = vst.msk [vmem:[#allocation2 + $0x90] sm:$0xff] %vm808_vm4, %v791_v1 }
 0x18b   : > { %817 = vst.msk [vmem:[#allocation2 + $0x80] sm:$0xff] %vm808_vm4, %v789_v3  ;;  %1149 = vrot.lane.b32.xlu1 %v6780_v6, %s6545_s9  ;;  %v7198_v6 = vld [vmem:[%s6745_s20 + $0xb0] sm:$0xff] }
 0x18c   : > { %1147 = vrot.lane.b32.xlu0 %v6783_v7, %s6545_s9  ;;  %v7201_v7 = vld [vmem:[%s6745_s20 + $0xa0] sm:$0xff] }
 0x18d   : > { %v795_v4 = vpop.permute.xlu1 %794 }
 0x18e   : > { %v793_v5 = vpop.permute.xlu0 %792  ;;  %820 = vst.msk [vmem:[#allocation2 + $0xb0] sm:$0xff] %vm808_vm4, %v795_v4 }
 0x18f   : > { %819 = vst.msk [vmem:[#allocation2 + $0xa0] sm:$0xff] %vm808_vm4, %v793_v5  ;;  %1153 = vrot.lane.b32.xlu1 %v7186_v0, %s6545_s9 }
 0x190   : > { %1151 = vrot.lane.b32.xlu0 %v7189_v2, %s6545_s9 }
 0x191   : > { %v848_v48 = vpop.permute.xlu1 %847 }
 0x192   : > { %v846_v49 = vpop.permute.xlu0 %845  ;;  %882 = vst.msk [vmem:[#allocation2 + $0xd0] sm:$0xff] %vm808_vm4, %v848_v48 }
 0x193   : > { %881 = vst.msk [vmem:[#allocation2 + $0xc0] sm:$0xff] %vm808_vm4, %v846_v49  ;;  %1157 = vrot.lane.b32.xlu1 %v7198_v6, %s6545_s9 }
 0x194   : > { %1155 = vrot.lane.b32.xlu0 %v7201_v7, %s6545_s9 }
 0x195   : > { %v852_v52 = vpop.permute.xlu1 %851 }
 0x196   : > { %v850_v53 = vpop.permute.xlu0 %849  ;;  %884 = vst.msk [vmem:[#allocation2 + $0xf0] sm:$0xff] %vm808_vm4, %v852_v52 }
 0x197   : > { %883 = vst.msk [vmem:[#allocation2 + $0xe0] sm:$0xff] %vm808_vm4, %v850_v53  ;;  %1209 = vrot.lane.b32.xlu1 %v1184_v50, %s6545_s9 }
 0x198   : > { %1207 = vrot.lane.b32.xlu0 %v1183_v51, %s6545_s9 }
 0x199   : > { %v856_v56 = vpop.permute.xlu1 %855 }
 0x19a   : > { %v854_v57 = vpop.permute.xlu0 %853  ;;  %886 = vst.msk [vmem:[#allocation2 + $0x110] sm:$0xff] %vm808_vm4, %v856_v56 }
 0x19b   : > { %885 = vst.msk [vmem:[#allocation2 + $0x100] sm:$0xff] %vm808_vm4, %v854_v57  ;;  %1213 = vrot.lane.b32.xlu1 %v1186_v54, %s6545_s9 }
 0x19c   : > { %1211 = vrot.lane.b32.xlu0 %v1185_v55, %s6545_s9 }
 0x19d   : > { %v860_v60 = vpop.permute.xlu1 %859 }
 0x19e   : > { %v858_v61 = vpop.permute.xlu0 %857  ;;  %888 = vst.msk [vmem:[#allocation2 + $0x130] sm:$0xff] %vm808_vm4, %v860_v60 }
 0x19f   : > { %887 = vst.msk [vmem:[#allocation2 + $0x120] sm:$0xff] %vm808_vm4, %v858_v61  ;;  %1217 = vrot.lane.b32.xlu1 %v1188_v58, %s6545_s9 }
 0x1a0   : > { %1215 = vrot.lane.b32.xlu0 %v1187_v59, %s6545_s9 }
 0x1a1   : > { %v864_v12 = vpop.permute.xlu1 %863 }
 0x1a2   : > { %v862_v13 = vpop.permute.xlu0 %861  ;;  %890 = vst.msk [vmem:[#allocation2 + $0x150] sm:$0xff] %vm808_vm4, %v864_v12 }
 0x1a3   : > { %889 = vst.msk [vmem:[#allocation2 + $0x140] sm:$0xff] %vm808_vm4, %v862_v13  ;;  %1221 = vrot.lane.b32.xlu1 %v1190_v62, %s6545_s9 }
 0x1a4   : > { %1219 = vrot.lane.b32.xlu0 %v1189_v63, %s6545_s9 }
 0x1a5   : > { %v868_v14 = vpop.permute.xlu1 %867 }
 0x1a6   : > { %v866_v15 = vpop.permute.xlu0 %865  ;;  %892 = vst.msk [vmem:[#allocation2 + $0x170] sm:$0xff] %vm808_vm4, %v868_v14 }
 0x1a7   : > { %891 = vst.msk [vmem:[#allocation2 + $0x160] sm:$0xff] %vm808_vm4, %v866_v15  ;;  %1225 = vrot.lane.b32.xlu1 %v7186_v0, %s6545_s9  ;;  %vm3611_vm4 = vcmask 1048328  }
 0x1a8   : > { %1223 = vrot.lane.b32.xlu0 %v7189_v2, %s6545_s9 }
 0x1a9   : > { %v920_v16 = vpop.permute.xlu1 %919 }
 0x1aa   : > { %v918_v17 = vpop.permute.xlu0 %917  ;;  %955 = vst.msk [vmem:[#allocation2 + $0x10] sm:$0xff] %vm953_vm5, %v920_v16 }
 0x1ab   : > { %954 = vst.msk [vmem:[#allocation2] sm:$0xff] %vm953_vm5, %v918_v17  ;;  %1229 = vrot.lane.b32.xlu1 %v7198_v6, %s6545_s9 }
 0x1ac   : > { %1227 = vrot.lane.b32.xlu0 %v7201_v7, %s6545_s9  ;;  %s6161_s9 = smul.u32 1056, %s6741_s4 }
 0x1ad   : > { %v924_v18 = vpop.permute.xlu1 %923 }
 0x1ae   : > { %v922_v19 = vpop.permute.xlu0 %921  ;;  %957 = vst.msk [vmem:[#allocation2 + $0x30] sm:$0xff] %vm953_vm5, %v924_v18 }
 0x1af   : > { %956 = vst.msk [vmem:[#allocation2 + $0x20] sm:$0xff] %vm953_vm5, %v922_v19  ;;  %1282 = vrot.lane.b32.xlu1 %v1184_v50, %s6546_s10 }
 0x1b0   : > { %1280 = vrot.lane.b32.xlu0 %v1183_v51, %s6546_s10 }
 0x1b1   : > { %v928_v20 = vpop.permute.xlu1 %927 }
 0x1b2   : > { %v926_v21 = vpop.permute.xlu0 %925  ;;  %959 = vst.msk [vmem:[#allocation2 + $0x50] sm:$0xff] %vm953_vm5, %v928_v20 }
 0x1b3   : > { %958 = vst.msk [vmem:[#allocation2 + $0x40] sm:$0xff] %vm953_vm5, %v926_v21  ;;  %1286 = vrot.lane.b32.xlu1 %v1186_v54, %s6546_s10 }
 0x1b4   : > { %1284 = vrot.lane.b32.xlu0 %v1185_v55, %s6546_s10 }
 0x1b5   : > { %v932_v22 = vpop.permute.xlu1 %931 }
 0x1b6   : > { %v930_v23 = vpop.permute.xlu0 %929  ;;  %961 = vst.msk [vmem:[#allocation2 + $0x70] sm:$0xff] %vm953_vm5, %v932_v22 }
 0x1b7   : > { %960 = vst.msk [vmem:[#allocation2 + $0x60] sm:$0xff] %vm953_vm5, %v930_v23  ;;  %1290 = vrot.lane.b32.xlu1 %v1188_v58, %s6546_s10 }
 0x1b8   : > { %1288 = vrot.lane.b32.xlu0 %v1187_v59, %s6546_s10 }
 0x1b9   : > { %v936_v24 = vpop.permute.xlu1 %935 }
 0x1ba   : > { %v934_v25 = vpop.permute.xlu0 %933  ;;  %963 = vst.msk [vmem:[#allocation2 + $0x90] sm:$0xff] %vm953_vm5, %v936_v24 }
 0x1bb   : > { %962 = vst.msk [vmem:[#allocation2 + $0x80] sm:$0xff] %vm953_vm5, %v934_v25  ;;  %1294 = vrot.lane.b32.xlu1 %v1190_v62, %s6546_s10 }
 0x1bc   : > { %1292 = vrot.lane.b32.xlu0 %v1189_v63, %s6546_s10 }
 0x1bd   : > { %v940_v26 = vpop.permute.xlu1 %939 }
 0x1be   : > { %v938_v27 = vpop.permute.xlu0 %937  ;;  %965 = vst.msk [vmem:[#allocation2 + $0xb0] sm:$0xff] %vm953_vm5, %v940_v26 }
 0x1bf   : > { %964 = vst.msk [vmem:[#allocation2 + $0xa0] sm:$0xff] %vm953_vm5, %v938_v27  ;;  %1298 = vrot.lane.b32.xlu1 %v7186_v0, %s6546_s10 }
 0x1c0   : > { %1296 = vrot.lane.b32.xlu0 %v7189_v2, %s6546_s10 }
 0x1c1   : > { %v993_v28 = vpop.permute.xlu1 %992 }
 0x1c2   : > { %v991_v29 = vpop.permute.xlu0 %990  ;;  %1027 = vst.msk [vmem:[#allocation2 + $0xd0] sm:$0xff] %vm953_vm5, %v993_v28 }
 0x1c3   : > { %1026 = vst.msk [vmem:[#allocation2 + $0xc0] sm:$0xff] %vm953_vm5, %v991_v29  ;;  %1302 = vrot.lane.b32.xlu1 %v7198_v6, %s6546_s10 }
 0x1c4   : > { %1300 = vrot.lane.b32.xlu0 %v7201_v7, %s6546_s10 }
 0x1c5   : > { %v997_v32 = vpop.permute.xlu1 %996 }
 0x1c6   : > { %v995_v33 = vpop.permute.xlu0 %994  ;;  %1029 = vst.msk [vmem:[#allocation2 + $0xf0] sm:$0xff] %vm953_vm5, %v997_v32 }
 0x1c7   : > { %1028 = vst.msk [vmem:[#allocation2 + $0xe0] sm:$0xff] %vm953_vm5, %v995_v33  ;;  %1354 = vrot.lane.b32.xlu1 %v7274_v30, %s6546_s10 }
 0x1c8   : > { %1352 = vrot.lane.b32.xlu0 %v7277_v31, %s6546_s10 }
 0x1c9   : > { %v1001_v36 = vpop.permute.xlu1 %1000 }
 0x1ca   : > { %v999_v37 = vpop.permute.xlu0 %998  ;;  %1031 = vst.msk [vmem:[#allocation2 + $0x110] sm:$0xff] %vm953_vm5, %v1001_v36 }
 0x1cb   : > { %1030 = vst.msk [vmem:[#allocation2 + $0x100] sm:$0xff] %vm953_vm5, %v999_v37  ;;  %1358 = vrot.lane.b32.xlu1 %v7286_v34, %s6546_s10 }
 0x1cc   : > { %1356 = vrot.lane.b32.xlu0 %v7289_v35, %s6546_s10 }
 0x1cd   : > { %v1005_v40 = vpop.permute.xlu1 %1004 }
 0x1ce   : > { %v1003_v41 = vpop.permute.xlu0 %1002  ;;  %1033 = vst.msk [vmem:[#allocation2 + $0x130] sm:$0xff] %vm953_vm5, %v1005_v40 }
 0x1cf   : > { %1032 = vst.msk [vmem:[#allocation2 + $0x120] sm:$0xff] %vm953_vm5, %v1003_v41  ;;  %1362 = vrot.lane.b32.xlu1 %v7298_v38, %s6546_s10 }
 0x1d0   : > { %1360 = vrot.lane.b32.xlu0 %v7301_v39, %s6546_s10 }
 0x1d1   : > { %v1009_v44 = vpop.permute.xlu1 %1008 }
 0x1d2   : > { %v1007_v45 = vpop.permute.xlu0 %1006  ;;  %1035 = vst.msk [vmem:[#allocation2 + $0x150] sm:$0xff] %vm953_vm5, %v1009_v44 }
 0x1d3   : > { %1034 = vst.msk [vmem:[#allocation2 + $0x140] sm:$0xff] %vm953_vm5, %v1007_v45  ;;  %1366 = vrot.lane.b32.xlu1 %v7310_v42, %s6546_s10 }
 0x1d4   : > { %1364 = vrot.lane.b32.xlu0 %v7313_v43, %s6546_s10 }
 0x1d5   : > { %v1013_v8 = vpop.permute.xlu1 %1012 }
 0x1d6   : > { %v1011_v9 = vpop.permute.xlu0 %1010  ;;  %1037 = vst.msk [vmem:[#allocation2 + $0x170] sm:$0xff] %vm953_vm5, %v1013_v8 }
 0x1d7   : > { %1036 = vst.msk [vmem:[#allocation2 + $0x160] sm:$0xff] %vm953_vm5, %v1011_v9  ;;  %1370 = vrot.lane.b32.xlu1 %v7322_v46, %s6546_s10  ;;  %vm4209_vm5 = vcmask 285696  }
 0x1d8   : > { %1368 = vrot.lane.b32.xlu0 %v7325_v47, %s6546_s10 }
 0x1d9   : > { %v1065_v1 = vpop.permute.xlu1 %1064 }
 0x1da   : > { %v1063_v3 = vpop.permute.xlu0 %1062  ;;  %1100 = vst.msk [vmem:[#allocation2 + $0x10] sm:$0xff] %vm1098_vm6, %v1065_v1 }
 0x1db   : > { %1099 = vst.msk [vmem:[#allocation2] sm:$0xff] %vm1098_vm6, %v1063_v3  ;;  %1374 = vrot.lane.b32.xlu1 %v7334_v10, %s6546_s10 }
 0x1dc   : > { %1372 = vrot.lane.b32.xlu0 %v7337_v11, %s6546_s10  ;;  %s8532_s10 = scalar_lea.vmem [#allocation10], %s6161_s9  ;;  %s6150_s9 = sld [smem:[#allocation7 + $0x3]] }
 0x1dd   : > { %v1069_v0 = vpop.permute.xlu1 %1068 }
 0x1de   : > { %v1067_v2 = vpop.permute.xlu0 %1066  ;;  %1102 = vst.msk [vmem:[#allocation2 + $0x30] sm:$0xff] %vm1098_vm6, %v1069_v0 }
 0x1df   : > { %1101 = vst.msk [vmem:[#allocation2 + $0x20] sm:$0xff] %vm1098_vm6, %v1067_v2  ;;  %1440 = vrot.lane.b32.xlu1 %v7274_v30, %s6547_s27 }
 0x1e0   : > { %1438 = vrot.lane.b32.xlu0 %v7277_v31, %s6547_s27 }
 0x1e1   : > { %v1073_v4 = vpop.permute.xlu1 %1072 }
 0x1e2   : > { %v1071_v5 = vpop.permute.xlu0 %1070  ;;  %1104 = vst.msk [vmem:[#allocation2 + $0x50] sm:$0xff] %vm1098_vm6, %v1073_v4 }
 0x1e3   : > { %1103 = vst.msk [vmem:[#allocation2 + $0x40] sm:$0xff] %vm1098_vm6, %v1071_v5  ;;  %1444 = vrot.lane.b32.xlu1 %v7286_v34, %s6547_s27 }
 0x1e4   : > { %1442 = vrot.lane.b32.xlu0 %v7289_v35, %s6547_s27 }
 0x1e5   : > { %v1077_v6 = vpop.permute.xlu1 %1076 }
 0x1e6   : > { %v1075_v7 = vpop.permute.xlu0 %1074  ;;  %1106 = vst.msk [vmem:[#allocation2 + $0x70] sm:$0xff] %vm1098_vm6, %v1077_v6 }
 0x1e7   : > { %1105 = vst.msk [vmem:[#allocation2 + $0x60] sm:$0xff] %vm1098_vm6, %v1075_v7  ;;  %1448 = vrot.lane.b32.xlu1 %v7298_v38, %s6547_s27 }
 0x1e8   : > { %1446 = vrot.lane.b32.xlu0 %v7301_v39, %s6547_s27 }
 0x1e9   : > { %v1081_v48 = vpop.permute.xlu1 %1080 }
 0x1ea   : > { %v1079_v49 = vpop.permute.xlu0 %1078  ;;  %1108 = vst.msk [vmem:[#allocation2 + $0x90] sm:$0xff] %vm1098_vm6, %v1081_v48 }
 0x1eb   : > { %1107 = vst.msk [vmem:[#allocation2 + $0x80] sm:$0xff] %vm1098_vm6, %v1079_v49  ;;  %1452 = vrot.lane.b32.xlu1 %v7310_v42, %s6547_s27 }
 0x1ec   : > { %1450 = vrot.lane.b32.xlu0 %v7313_v43, %s6547_s27 }
 0x1ed   : > { %v1085_v50 = vpop.permute.xlu1 %1084 }
 0x1ee   : > { %v1083_v51 = vpop.permute.xlu0 %1082  ;;  %1110 = vst.msk [vmem:[#allocation2 + $0xb0] sm:$0xff] %vm1098_vm6, %v1085_v50 }
 0x1ef   : > { %1109 = vst.msk [vmem:[#allocation2 + $0xa0] sm:$0xff] %vm1098_vm6, %v1083_v51  ;;  %1456 = vrot.lane.b32.xlu1 %v7322_v46, %s6547_s27 }
 0x1f0   : > { %1454 = vrot.lane.b32.xlu0 %v7325_v47, %s6547_s27 }
 0x1f1   : > { %v1138_v52 = vpop.permute.xlu1 %1137 }
 0x1f2   : > { %v1136_v53 = vpop.permute.xlu0 %1135  ;;  %1172 = vst.msk [vmem:[#allocation2 + $0xd0] sm:$0xff] %vm1098_vm6, %v1138_v52 }
 0x1f3   : > { %1171 = vst.msk [vmem:[#allocation2 + $0xc0] sm:$0xff] %vm1098_vm6, %v1136_v53  ;;  %1460 = vrot.lane.b32.xlu1 %v7334_v10, %s6547_s27 }
 0x1f4   : > { %1458 = vrot.lane.b32.xlu0 %v7337_v11, %s6547_s27 }
 0x1f5   : > { %v1142_v54 = vpop.permute.xlu1 %1141 }
 0x1f6   : > { %v1140_v55 = vpop.permute.xlu0 %1139  ;;  %1174 = vst.msk [vmem:[#allocation2 + $0xf0] sm:$0xff] %vm1098_vm6, %v1142_v54 }
 0x1f7   : > { %1173 = vst.msk [vmem:[#allocation2 + $0xe0] sm:$0xff] %vm1098_vm6, %v1140_v55  ;;  %1524 = vrot.lane.b32.xlu1 %v7274_v30, %s6547_s27 }
 0x1f8   : > { %1522 = vrot.lane.b32.xlu0 %v7277_v31, %s6547_s27 }
 0x1f9   : > { %v1146_v56 = vpop.permute.xlu1 %1145 }
 0x1fa   : > { %v1144_v57 = vpop.permute.xlu0 %1143  ;;  %1176 = vst.msk [vmem:[#allocation2 + $0x110] sm:$0xff] %vm1098_vm6, %v1146_v56 }
 0x1fb   : > { %1175 = vst.msk [vmem:[#allocation2 + $0x100] sm:$0xff] %vm1098_vm6, %v1144_v57  ;;  %1528 = vrot.lane.b32.xlu1 %v7286_v34, %s6547_s27 }
 0x1fc   : > { %1526 = vrot.lane.b32.xlu0 %v7289_v35, %s6547_s27 }
 0x1fd   : > { %v1150_v58 = vpop.permute.xlu1 %1149 }
 0x1fe   : > { %v1148_v59 = vpop.permute.xlu0 %1147  ;;  %1178 = vst.msk [vmem:[#allocation2 + $0x130] sm:$0xff] %vm1098_vm6, %v1150_v58 }
 0x1ff   : > { %1177 = vst.msk [vmem:[#allocation2 + $0x120] sm:$0xff] %vm1098_vm6, %v1148_v59  ;;  %1532 = vrot.lane.b32.xlu1 %v7298_v38, %s6547_s27 }
 0x200   : > { %1530 = vrot.lane.b32.xlu0 %v7301_v39, %s6547_s27 }
 0x201   : > { %v1154_v60 = vpop.permute.xlu1 %1153 }
 0x202   : > { %v1152_v61 = vpop.permute.xlu0 %1151  ;;  %1180 = vst.msk [vmem:[#allocation2 + $0x150] sm:$0xff] %vm1098_vm6, %v1154_v60 }
 0x203   : > { %1179 = vst.msk [vmem:[#allocation2 + $0x140] sm:$0xff] %vm1098_vm6, %v1152_v61  ;;  %1536 = vrot.lane.b32.xlu1 %v7310_v42, %s6547_s27 }
 0x204   : > { %1534 = vrot.lane.b32.xlu0 %v7313_v43, %s6547_s27 }
 0x205   : > { %v1158_v62 = vpop.permute.xlu1 %1157 }
 0x206   : > { %v1156_v63 = vpop.permute.xlu0 %1155  ;;  %1182 = vst.msk [vmem:[#allocation2 + $0x170] sm:$0xff] %vm1098_vm6, %v1158_v62 }
 0x207   : > { %1181 = vst.msk [vmem:[#allocation2 + $0x160] sm:$0xff] %vm1098_vm6, %v1156_v63  ;;  %1540 = vrot.lane.b32.xlu1 %v7322_v46, %s6547_s27  ;;  %vm4206_vm6 = vcmask 1048080  }
 0x208   : > { %1538 = vrot.lane.b32.xlu0 %v7325_v47, %s6547_s27 }
 0x209   : > { %v1210_v12 = vpop.permute.xlu1 %1209 }
 0x20a   : > { %v1208_v13 = vpop.permute.xlu0 %1207  ;;  %1245 = vst.msk [vmem:[#allocation2 + $0x10] sm:$0xff] %vm1243_vm7, %v1210_v12 }
 0x20b   : > { %1244 = vst.msk [vmem:[#allocation2] sm:$0xff] %vm1243_vm7, %v1208_v13  ;;  %1544 = vrot.lane.b32.xlu1 %v7334_v10, %s6547_s27 }
 0x20c   : > { %1542 = vrot.lane.b32.xlu0 %v7337_v11, %s6547_s27  ;;  %s6129_s27 = sld [smem:[#allocation3 + $0x5]] }
 0x20d   : > { %v1214_v14 = vpop.permute.xlu1 %1213 }
 0x20e   : > { %v1212_v15 = vpop.permute.xlu0 %1211  ;;  %1247 = vst.msk [vmem:[#allocation2 + $0x30] sm:$0xff] %vm1243_vm7, %v1214_v14 }
 0x20f   : > { %1246 = vst.msk [vmem:[#allocation2 + $0x20] sm:$0xff] %vm1243_vm7, %v1212_v15  ;;  %1597 = vrot.lane.b32.xlu1 %v7274_v30, %s6548_s11 }
 0x210   : > { %1595 = vrot.lane.b32.xlu0 %v7277_v31, %s6548_s11 }
 0x211   : > { %v1218_v16 = vpop.permute.xlu1 %1217 }
 0x212   : > { %v1216_v17 = vpop.permute.xlu0 %1215  ;;  %1249 = vst.msk [vmem:[#allocation2 + $0x50] sm:$0xff] %vm1243_vm7, %v1218_v16 }
 0x213   : > { %1248 = vst.msk [vmem:[#allocation2 + $0x40] sm:$0xff] %vm1243_vm7, %v1216_v17  ;;  %1601 = vrot.lane.b32.xlu1 %v7286_v34, %s6548_s11 }
 0x214   : > { %1599 = vrot.lane.b32.xlu0 %v7289_v35, %s6548_s11 }
 0x215   : > { %v1222_v18 = vpop.permute.xlu1 %1221 }
 0x216   : > { %v1220_v19 = vpop.permute.xlu0 %1219  ;;  %1251 = vst.msk [vmem:[#allocation2 + $0x70] sm:$0xff] %vm1243_vm7, %v1222_v18 }
 0x217   : > { %1250 = vst.msk [vmem:[#allocation2 + $0x60] sm:$0xff] %vm1243_vm7, %v1220_v19  ;;  %1605 = vrot.lane.b32.xlu1 %v7298_v38, %s6548_s11 }
 0x218   : > { %1603 = vrot.lane.b32.xlu0 %v7301_v39, %s6548_s11 }
 0x219   : > { %v1226_v20 = vpop.permute.xlu1 %1225 }
 0x21a   : > { %v1224_v21 = vpop.permute.xlu0 %1223  ;;  %1253 = vst.msk [vmem:[#allocation2 + $0x90] sm:$0xff] %vm1243_vm7, %v1226_v20 }
 0x21b   : > { %1252 = vst.msk [vmem:[#allocation2 + $0x80] sm:$0xff] %vm1243_vm7, %v1224_v21  ;;  %1609 = vrot.lane.b32.xlu1 %v7310_v42, %s6548_s11 }
 0x21c   : > { %1607 = vrot.lane.b32.xlu0 %v7313_v43, %s6548_s11 }
 0x21d   : > { %v1230_v22 = vpop.permute.xlu1 %1229 }
 0x21e   : > { %v1228_v23 = vpop.permute.xlu0 %1227  ;;  %1255 = vst.msk [vmem:[#allocation2 + $0xb0] sm:$0xff] %vm1243_vm7, %v1230_v22 }
 0x21f   : > { %1254 = vst.msk [vmem:[#allocation2 + $0xa0] sm:$0xff] %vm1243_vm7, %v1228_v23  ;;  %1613 = vrot.lane.b32.xlu1 %v7322_v46, %s6548_s11 }
 0x220   : > { %1611 = vrot.lane.b32.xlu0 %v7325_v47, %s6548_s11 }
 0x221   : > { %v1283_v24 = vpop.permute.xlu1 %1282 }
 0x222   : > { %v1281_v25 = vpop.permute.xlu0 %1280  ;;  %1317 = vst.msk [vmem:[#allocation2 + $0xd0] sm:$0xff] %vm1243_vm7, %v1283_v24 }
 0x223   : > { %1316 = vst.msk [vmem:[#allocation2 + $0xc0] sm:$0xff] %vm1243_vm7, %v1281_v25  ;;  %1617 = vrot.lane.b32.xlu1 %v7334_v10, %s6548_s11 }
 0x224   : > { %1615 = vrot.lane.b32.xlu0 %v7337_v11, %s6548_s11 }
 0x225   : > { %v1287_v26 = vpop.permute.xlu1 %1286 }
 0x226   : > { %v1285_v27 = vpop.permute.xlu0 %1284  ;;  %1319 = vst.msk [vmem:[#allocation2 + $0xf0] sm:$0xff] %vm1243_vm7, %v1287_v26 }
 0x227   : > { %1318 = vst.msk [vmem:[#allocation2 + $0xe0] sm:$0xff] %vm1243_vm7, %v1285_v27  ;;  %1669 = vrot.lane.b32.xlu1 %v7274_v30, %s6548_s11 }
 0x228   : > { %1667 = vrot.lane.b32.xlu0 %v7277_v31, %s6548_s11 }
 0x229   : > { %v1291_v28 = vpop.permute.xlu1 %1290 }
 0x22a   : > { %v1289_v29 = vpop.permute.xlu0 %1288  ;;  %1321 = vst.msk [vmem:[#allocation2 + $0x110] sm:$0xff] %vm1243_vm7, %v1291_v28 }
 0x22b   : > { %1320 = vst.msk [vmem:[#allocation2 + $0x100] sm:$0xff] %vm1243_vm7, %v1289_v29  ;;  %1673 = vrot.lane.b32.xlu1 %v7286_v34, %s6548_s11 }
 0x22c   : > { %1671 = vrot.lane.b32.xlu0 %v7289_v35, %s6548_s11 }
 0x22d   : > { %v1295_v32 = vpop.permute.xlu1 %1294 }
 0x22e   : > { %v1293_v33 = vpop.permute.xlu0 %1292  ;;  %1323 = vst.msk [vmem:[#allocation2 + $0x130] sm:$0xff] %vm1243_vm7, %v1295_v32 }
 0x22f   : > { %1322 = vst.msk [vmem:[#allocation2 + $0x120] sm:$0xff] %vm1243_vm7, %v1293_v33  ;;  %1677 = vrot.lane.b32.xlu1 %v7298_v38, %s6548_s11 }
 0x230   : > { %1675 = vrot.lane.b32.xlu0 %v7301_v39, %s6548_s11 }
 0x231   : > { %v1299_v36 = vpop.permute.xlu1 %1298 }
 0x232   : > { %v1297_v37 = vpop.permute.xlu0 %1296  ;;  %1325 = vst.msk [vmem:[#allocation2 + $0x150] sm:$0xff] %vm1243_vm7, %v1299_v36 }
 0x233   : > { %1324 = vst.msk [vmem:[#allocation2 + $0x140] sm:$0xff] %vm1243_vm7, %v1297_v37  ;;  %1681 = vrot.lane.b32.xlu1 %v7310_v42, %s6548_s11 }
 0x234   : > { %1679 = vrot.lane.b32.xlu0 %v7313_v43, %s6548_s11 }
 0x235   : > { %v1303_v40 = vpop.permute.xlu1 %1302 }
 0x236   : > { %v1301_v41 = vpop.permute.xlu0 %1300  ;;  %1327 = vst.msk [vmem:[#allocation2 + $0x170] sm:$0xff] %vm1243_vm7, %v1303_v40 }
 0x237   : > { %1326 = vst.msk [vmem:[#allocation2 + $0x160] sm:$0xff] %vm1243_vm7, %v1301_v41  ;;  %1685 = vrot.lane.b32.xlu1 %v7322_v46, %s6548_s11  ;;  %vm4804_vm7 = vcmask 31744  }
 0x238   : > { %1683 = vrot.lane.b32.xlu0 %v7325_v47, %s6548_s11 }
 0x239   : > { %v1355_v44 = vpop.permute.xlu1 %1354 }
 0x23a   : > { %v1353_v45 = vpop.permute.xlu0 %1352  ;;  %1392 = vst.msk [vmem:[#allocation2 + $0x10] sm:$0xff] %vm1388_vm8, %v1355_v44 }
 0x23b   : > { %1393 = vst.msk [vmem:[#allocation2 + $0x18] sm:$0xff] %vm1390_vm9, %v1355_v44  ;;  %1391 = vst.msk [vmem:[#allocation2 + $0x8] sm:$0xff] %vm1390_vm9, %v1353_v45  ;;  %1689 = vrot.lane.b32.xlu1 %v7334_v10, %s6548_s11 }
 0x23c   : > { %1389 = vst.msk [vmem:[#allocation2] sm:$0xff] %vm1388_vm8, %v1353_v45  ;;  %1687 = vrot.lane.b32.xlu0 %v7337_v11, %s6548_s11  ;;  %s6128_s11 = sld [smem:[#allocation3 + $0x4]] }
 0x23d   : > { %v1359_v8 = vpop.permute.xlu1 %1358 }
 0x23e   : > { %v1357_v9 = vpop.permute.xlu0 %1356  ;;  %1396 = vst.msk [vmem:[#allocation2 + $0x30] sm:$0xff] %vm1388_vm8, %v1359_v8 }
 0x23f   : > { %1397 = vst.msk [vmem:[#allocation2 + $0x38] sm:$0xff] %vm1390_vm9, %v1359_v8  ;;  %1395 = vst.msk [vmem:[#allocation2 + $0x28] sm:$0xff] %vm1390_vm9, %v1357_v9  ;;  %1742 = vrot.lane.b32.xlu1 %v7274_v30, %s6549_s17 }
 0x240   : > { %1394 = vst.msk [vmem:[#allocation2 + $0x20] sm:$0xff] %vm1388_vm8, %v1357_v9  ;;  %1740 = vrot.lane.b32.xlu0 %v7277_v31, %s6549_s17 }
 0x241   : > { %v1363_v1 = vpop.permute.xlu1 %1362 }
 0x242   : > { %v1361_v3 = vpop.permute.xlu0 %1360  ;;  %1400 = vst.msk [vmem:[#allocation2 + $0x50] sm:$0xff] %vm1388_vm8, %v1363_v1 }
 0x243   : > { %1401 = vst.msk [vmem:[#allocation2 + $0x58] sm:$0xff] %vm1390_vm9, %v1363_v1  ;;  %1399 = vst.msk [vmem:[#allocation2 + $0x48] sm:$0xff] %vm1390_vm9, %v1361_v3  ;;  %1746 = vrot.lane.b32.xlu1 %v7286_v34, %s6549_s17 }
 0x244   : > { %1398 = vst.msk [vmem:[#allocation2 + $0x40] sm:$0xff] %vm1388_vm8, %v1361_v3  ;;  %1744 = vrot.lane.b32.xlu0 %v7289_v35, %s6549_s17 }
 0x245   : > { %v1367_v0 = vpop.permute.xlu1 %1366 }
 0x246   : > { %v1365_v2 = vpop.permute.xlu0 %1364  ;;  %1404 = vst.msk [vmem:[#allocation2 + $0x70] sm:$0xff] %vm1388_vm8, %v1367_v0 }
 0x247   : > { %1405 = vst.msk [vmem:[#allocation2 + $0x78] sm:$0xff] %vm1390_vm9, %v1367_v0  ;;  %1403 = vst.msk [vmem:[#allocation2 + $0x68] sm:$0xff] %vm1390_vm9, %v1365_v2  ;;  %1750 = vrot.lane.b32.xlu1 %v7298_v38, %s6549_s17  ;;  %v7718_v0 = vld [vmem:[%s6745_s20 + $0x58] sm:$0xff] }
 0x248   : > { %1402 = vst.msk [vmem:[#allocation2 + $0x60] sm:$0xff] %vm1388_vm8, %v1365_v2  ;;  %1748 = vrot.lane.b32.xlu0 %v7301_v39, %s6549_s17  ;;  %v7721_v2 = vld [vmem:[%s6745_s20 + $0x48] sm:$0xff] }
 0x249   : > { %v1371_v4 = vpop.permute.xlu1 %1370 }
 0x24a   : > { %v1369_v5 = vpop.permute.xlu0 %1368  ;;  %1408 = vst.msk [vmem:[#allocation2 + $0x90] sm:$0xff] %vm1388_vm8, %v1371_v4 }
 0x24b   : > { %1409 = vst.msk [vmem:[#allocation2 + $0x98] sm:$0xff] %vm1390_vm9, %v1371_v4  ;;  %1407 = vst.msk [vmem:[#allocation2 + $0x88] sm:$0xff] %vm1390_vm9, %v1369_v5  ;;  %1754 = vrot.lane.b32.xlu1 %v7310_v42, %s6549_s17 }
 0x24c   : > { %1406 = vst.msk [vmem:[#allocation2 + $0x80] sm:$0xff] %vm1388_vm8, %v1369_v5  ;;  %1752 = vrot.lane.b32.xlu0 %v7313_v43, %s6549_s17 }
 0x24d   : > { %v1375_v6 = vpop.permute.xlu1 %1374 }
 0x24e   : > { %v1373_v7 = vpop.permute.xlu0 %1372  ;;  %1412 = vst.msk [vmem:[#allocation2 + $0xb0] sm:$0xff] %vm1388_vm8, %v1375_v6 }
 0x24f   : > { %1413 = vst.msk [vmem:[#allocation2 + $0xb8] sm:$0xff] %vm1390_vm9, %v1375_v6  ;;  %1411 = vst.msk [vmem:[#allocation2 + $0xa8] sm:$0xff] %vm1390_vm9, %v1373_v7  ;;  %1758 = vrot.lane.b32.xlu1 %v7322_v46, %s6549_s17  ;;  %v7730_v6 = vld [vmem:[%s6745_s20 + $0x78] sm:$0xff] }
 0x250   : > { %1410 = vst.msk [vmem:[#allocation2 + $0xa0] sm:$0xff] %vm1388_vm8, %v1373_v7  ;;  %1756 = vrot.lane.b32.xlu0 %v7325_v47, %s6549_s17  ;;  %v7733_v7 = vld [vmem:[%s6745_s20 + $0x68] sm:$0xff] }
 0x251   : > { %v1441_v48 = vpop.permute.xlu1 %1440 }
 0x252   : > { %v1439_v49 = vpop.permute.xlu0 %1438  ;;  %1476 = vst.msk [vmem:[#allocation2 + $0xd0] sm:$0xff] %vm1388_vm8, %v1441_v48 }
 0x253   : > { %1477 = vst.msk [vmem:[#allocation2 + $0xd8] sm:$0xff] %vm1390_vm9, %v1441_v48  ;;  %1475 = vst.msk [vmem:[#allocation2 + $0xc8] sm:$0xff] %vm1390_vm9, %v1439_v49  ;;  %1762 = vrot.lane.b32.xlu1 %v7334_v10, %s6549_s17 }
 0x254   : > { %1474 = vst.msk [vmem:[#allocation2 + $0xc0] sm:$0xff] %vm1388_vm8, %v1439_v49  ;;  %1760 = vrot.lane.b32.xlu0 %v7337_v11, %s6549_s17 }
 0x255   : > { %v1445_v50 = vpop.permute.xlu1 %1444 }
 0x256   : > { %v1443_v51 = vpop.permute.xlu0 %1442  ;;  %1480 = vst.msk [vmem:[#allocation2 + $0xf0] sm:$0xff] %vm1388_vm8, %v1445_v50 }
 0x257   : > { %1481 = vst.msk [vmem:[#allocation2 + $0xf8] sm:$0xff] %vm1390_vm9, %v1445_v50  ;;  %1479 = vst.msk [vmem:[#allocation2 + $0xe8] sm:$0xff] %vm1390_vm9, %v1443_v51  ;;  %1814 = vrot.lane.b32.xlu1 %v7274_v30, %s6549_s17  ;;  %v7742_v50 = vld [vmem:[%s6745_s20 + $0x98] sm:$0xff] }
 0x258   : > { %1478 = vst.msk [vmem:[#allocation2 + $0xe0] sm:$0xff] %vm1388_vm8, %v1443_v51  ;;  %1812 = vrot.lane.b32.xlu0 %v7277_v31, %s6549_s17  ;;  %v7745_v51 = vld [vmem:[%s6745_s20 + $0x88] sm:$0xff] }
 0x259   : > { %v1449_v52 = vpop.permute.xlu1 %1448 }
 0x25a   : > { %v1447_v53 = vpop.permute.xlu0 %1446  ;;  %1484 = vst.msk [vmem:[#allocation2 + $0x110] sm:$0xff] %vm1388_vm8, %v1449_v52 }
 0x25b   : > { %1485 = vst.msk [vmem:[#allocation2 + $0x118] sm:$0xff] %vm1390_vm9, %v1449_v52  ;;  %1483 = vst.msk [vmem:[#allocation2 + $0x108] sm:$0xff] %vm1390_vm9, %v1447_v53  ;;  %1818 = vrot.lane.b32.xlu1 %v7286_v34, %s6549_s17 }
 0x25c   : > { %1482 = vst.msk [vmem:[#allocation2 + $0x100] sm:$0xff] %vm1388_vm8, %v1447_v53  ;;  %1816 = vrot.lane.b32.xlu0 %v7289_v35, %s6549_s17 }
 0x25d   : > { %v1453_v54 = vpop.permute.xlu1 %1452 }
 0x25e   : > { %v1451_v55 = vpop.permute.xlu0 %1450  ;;  %1488 = vst.msk [vmem:[#allocation2 + $0x130] sm:$0xff] %vm1388_vm8, %v1453_v54 }
 0x25f   : > { %1489 = vst.msk [vmem:[#allocation2 + $0x138] sm:$0xff] %vm1390_vm9, %v1453_v54  ;;  %1487 = vst.msk [vmem:[#allocation2 + $0x128] sm:$0xff] %vm1390_vm9, %v1451_v55  ;;  %1822 = vrot.lane.b32.xlu1 %v7298_v38, %s6549_s17  ;;  %v7754_v54 = vld [vmem:[%s6745_s20 + $0xb8] sm:$0xff] }
 0x260   : > { %1486 = vst.msk [vmem:[#allocation2 + $0x120] sm:$0xff] %vm1388_vm8, %v1451_v55  ;;  %1820 = vrot.lane.b32.xlu0 %v7301_v39, %s6549_s17  ;;  %v7757_v55 = vld [vmem:[%s6745_s20 + $0xa8] sm:$0xff] }
 0x261   : > { %v1457_v56 = vpop.permute.xlu1 %1456 }
 0x262   : > { %v1455_v57 = vpop.permute.xlu0 %1454  ;;  %1492 = vst.msk [vmem:[#allocation2 + $0x150] sm:$0xff] %vm1388_vm8, %v1457_v56 }
 0x263   : > { %1493 = vst.msk [vmem:[#allocation2 + $0x158] sm:$0xff] %vm1390_vm9, %v1457_v56  ;;  %1491 = vst.msk [vmem:[#allocation2 + $0x148] sm:$0xff] %vm1390_vm9, %v1455_v57  ;;  %1826 = vrot.lane.b32.xlu1 %v7310_v42, %s6549_s17 }
 0x264   : > { %1490 = vst.msk [vmem:[#allocation2 + $0x140] sm:$0xff] %vm1388_vm8, %v1455_v57  ;;  %1824 = vrot.lane.b32.xlu0 %v7313_v43, %s6549_s17 }
 0x265   : > { %v1461_v58 = vpop.permute.xlu1 %1460 }
 0x266   : > { %v1459_v59 = vpop.permute.xlu0 %1458  ;;  %1496 = vst.msk [vmem:[#allocation2 + $0x170] sm:$0xff] %vm1388_vm8, %v1461_v58 }
 0x267   : > { %1497 = vst.msk [vmem:[#allocation2 + $0x178] sm:$0xff] %vm1390_vm9, %v1461_v58  ;;  %1495 = vst.msk [vmem:[#allocation2 + $0x168] sm:$0xff] %vm1390_vm9, %v1459_v59  ;;  %1830 = vrot.lane.b32.xlu1 %v7322_v46, %s6549_s17  ;;  %vm5384_vm9 = vcmask 1047584  }
 0x268   : > { %1494 = vst.msk [vmem:[#allocation2 + $0x160] sm:$0xff] %vm1388_vm8, %v1459_v59  ;;  %1828 = vrot.lane.b32.xlu0 %v7325_v47, %s6549_s17  ;;  %vm4801_vm8 = vcmask 1047832  }
 0x269   : > { %v1525_v60 = vpop.permute.xlu1 %1524 }
 0x26a   : > { %v1523_v61 = vpop.permute.xlu0 %1522  ;;  %1560 = vst.msk [vmem:[#allocation2 + $0x18] sm:$0xff] %vm1558_vm10, %v1525_v60 }
 0x26b   : > { %1559 = vst.msk [vmem:[#allocation2 + $0x8] sm:$0xff] %vm1558_vm10, %v1523_v61  ;;  %1834 = vrot.lane.b32.xlu1 %v7334_v10, %s6549_s17 }
 0x26c   : > { %1832 = vrot.lane.b32.xlu0 %v7337_v11, %s6549_s17  ;;  %s6148_s17 = sld [smem:[#allocation7 + $0x1]] }
 0x26d   : > { %v1529_v62 = vpop.permute.xlu1 %1528 }
 0x26e   : > { %v1527_v63 = vpop.permute.xlu0 %1526  ;;  %1562 = vst.msk [vmem:[#allocation2 + $0x38] sm:$0xff] %vm1558_vm10, %v1529_v62 }
 0x26f   : > { %1561 = vst.msk [vmem:[#allocation2 + $0x28] sm:$0xff] %vm1558_vm10, %v1527_v63  ;;  %1887 = vrot.lane.b32.xlu1 %v7274_v30, %s6550_s19 }
 0x270   : > { %1885 = vrot.lane.b32.xlu0 %v7277_v31, %s6550_s19 }
 0x271   : > { %v1533_v12 = vpop.permute.xlu1 %1532 }
 0x272   : > { %v1531_v13 = vpop.permute.xlu0 %1530  ;;  %1564 = vst.msk [vmem:[#allocation2 + $0x58] sm:$0xff] %vm1558_vm10, %v1533_v12 }
 0x273   : > { %1563 = vst.msk [vmem:[#allocation2 + $0x48] sm:$0xff] %vm1558_vm10, %v1531_v13  ;;  %1891 = vrot.lane.b32.xlu1 %v7286_v34, %s6550_s19 }
 0x274   : > { %1889 = vrot.lane.b32.xlu0 %v7289_v35, %s6550_s19 }
 0x275   : > { %v1537_v14 = vpop.permute.xlu1 %1536 }
 0x276   : > { %v1535_v15 = vpop.permute.xlu0 %1534  ;;  %1566 = vst.msk [vmem:[#allocation2 + $0x78] sm:$0xff] %vm1558_vm10, %v1537_v14 }
 0x277   : > { %1565 = vst.msk [vmem:[#allocation2 + $0x68] sm:$0xff] %vm1558_vm10, %v1535_v15  ;;  %1895 = vrot.lane.b32.xlu1 %v7298_v38, %s6550_s19 }
 0x278   : > { %1893 = vrot.lane.b32.xlu0 %v7301_v39, %s6550_s19 }
 0x279   : > { %v1541_v16 = vpop.permute.xlu1 %1540 }
 0x27a   : > { %v1539_v17 = vpop.permute.xlu0 %1538  ;;  %1568 = vst.msk [vmem:[#allocation2 + $0x98] sm:$0xff] %vm1558_vm10, %v1541_v16 }
 0x27b   : > { %1567 = vst.msk [vmem:[#allocation2 + $0x88] sm:$0xff] %vm1558_vm10, %v1539_v17  ;;  %1899 = vrot.lane.b32.xlu1 %v7310_v42, %s6550_s19 }
 0x27c   : > { %1897 = vrot.lane.b32.xlu0 %v7313_v43, %s6550_s19 }
 0x27d   : > { %v1545_v18 = vpop.permute.xlu1 %1544 }
 0x27e   : > { %v1543_v19 = vpop.permute.xlu0 %1542  ;;  %1570 = vst.msk [vmem:[#allocation2 + $0xb8] sm:$0xff] %vm1558_vm10, %v1545_v18 }
 0x27f   : > { %1569 = vst.msk [vmem:[#allocation2 + $0xa8] sm:$0xff] %vm1558_vm10, %v1543_v19  ;;  %1903 = vrot.lane.b32.xlu1 %v7322_v46, %s6550_s19 }
 0x280   : > { %1901 = vrot.lane.b32.xlu0 %v7325_v47, %s6550_s19 }
 0x281   : > { %v1598_v20 = vpop.permute.xlu1 %1597 }
 0x282   : > { %v1596_v21 = vpop.permute.xlu0 %1595  ;;  %1632 = vst.msk [vmem:[#allocation2 + $0xd8] sm:$0xff] %vm1558_vm10, %v1598_v20 }
 0x283   : > { %1631 = vst.msk [vmem:[#allocation2 + $0xc8] sm:$0xff] %vm1558_vm10, %v1596_v21  ;;  %1907 = vrot.lane.b32.xlu1 %v7334_v10, %s6550_s19 }
 0x284   : > { %1905 = vrot.lane.b32.xlu0 %v7337_v11, %s6550_s19 }
 0x285   : > { %v1602_v22 = vpop.permute.xlu1 %1601 }
 0x286   : > { %v1600_v23 = vpop.permute.xlu0 %1599  ;;  %1634 = vst.msk [vmem:[#allocation2 + $0xf8] sm:$0xff] %vm1558_vm10, %v1602_v22 }
 0x287   : > { %1633 = vst.msk [vmem:[#allocation2 + $0xe8] sm:$0xff] %vm1558_vm10, %v1600_v23  ;;  %1959 = vrot.lane.b32.xlu1 %v7274_v30, %s6550_s19 }
 0x288   : > { %1957 = vrot.lane.b32.xlu0 %v7277_v31, %s6550_s19 }
 0x289   : > { %v1606_v24 = vpop.permute.xlu1 %1605 }
 0x28a   : > { %v1604_v25 = vpop.permute.xlu0 %1603  ;;  %1636 = vst.msk [vmem:[#allocation2 + $0x118] sm:$0xff] %vm1558_vm10, %v1606_v24 }
 0x28b   : > { %1635 = vst.msk [vmem:[#allocation2 + $0x108] sm:$0xff] %vm1558_vm10, %v1604_v25  ;;  %1963 = vrot.lane.b32.xlu1 %v7286_v34, %s6550_s19 }
 0x28c   : > { %1961 = vrot.lane.b32.xlu0 %v7289_v35, %s6550_s19 }
 0x28d   : > { %v1610_v26 = vpop.permute.xlu1 %1609 }
 0x28e   : > { %v1608_v27 = vpop.permute.xlu0 %1607  ;;  %1638 = vst.msk [vmem:[#allocation2 + $0x138] sm:$0xff] %vm1558_vm10, %v1610_v26 }
 0x28f   : > { %1637 = vst.msk [vmem:[#allocation2 + $0x128] sm:$0xff] %vm1558_vm10, %v1608_v27  ;;  %1967 = vrot.lane.b32.xlu1 %v7298_v38, %s6550_s19 }
 0x290   : > { %1965 = vrot.lane.b32.xlu0 %v7301_v39, %s6550_s19 }
 0x291   : > { %v1614_v28 = vpop.permute.xlu1 %1613 }
 0x292   : > { %v1612_v29 = vpop.permute.xlu0 %1611  ;;  %1640 = vst.msk [vmem:[#allocation2 + $0x158] sm:$0xff] %vm1558_vm10, %v1614_v28 }
 0x293   : > { %1639 = vst.msk [vmem:[#allocation2 + $0x148] sm:$0xff] %vm1558_vm10, %v1612_v29  ;;  %1971 = vrot.lane.b32.xlu1 %v7310_v42, %s6550_s19 }
 0x294   : > { %1969 = vrot.lane.b32.xlu0 %v7313_v43, %s6550_s19 }
 0x295   : > { %v1618_v32 = vpop.permute.xlu1 %1617 }
 0x296   : > { %v1616_v33 = vpop.permute.xlu0 %1615  ;;  %1642 = vst.msk [vmem:[#allocation2 + $0x178] sm:$0xff] %vm1558_vm10, %v1618_v32 }
 0x297   : > { %1641 = vst.msk [vmem:[#allocation2 + $0x168] sm:$0xff] %vm1558_vm10, %v1616_v33  ;;  %1975 = vrot.lane.b32.xlu1 %v7322_v46, %s6550_s19  ;;  %vm5386_vm10 = vcmask 826368  }
 0x298   : > { %1973 = vrot.lane.b32.xlu0 %v7325_v47, %s6550_s19 }
 0x299   : > { %v1670_v36 = vpop.permute.xlu1 %1669 }
 0x29a   : > { %v1668_v37 = vpop.permute.xlu0 %1667  ;;  %1705 = vst.msk [vmem:[#allocation2 + $0x18] sm:$0xff] %vm1703_vm11, %v1670_v36 }
 0x29b   : > { %1704 = vst.msk [vmem:[#allocation2 + $0x8] sm:$0xff] %vm1703_vm11, %v1668_v37  ;;  %1979 = vrot.lane.b32.xlu1 %v7334_v10, %s6550_s19 }
 0x29c   : > { %1977 = vrot.lane.b32.xlu0 %v7337_v11, %s6550_s19  ;;  %s6555_s19 = smov 97  }
 0x29d   : > { %v1674_v40 = vpop.permute.xlu1 %1673 }
 0x29e   : > { %v1672_v41 = vpop.permute.xlu0 %1671  ;;  %1707 = vst.msk [vmem:[#allocation2 + $0x38] sm:$0xff] %vm1703_vm11, %v1674_v40 }
 0x29f   : > { %1706 = vst.msk [vmem:[#allocation2 + $0x28] sm:$0xff] %vm1703_vm11, %v1672_v41  ;;  %2032 = vrot.lane.b32.xlu1 %v7274_v30, %s6551_s22 }
 0x2a0   : > { %2030 = vrot.lane.b32.xlu0 %v7277_v31, %s6551_s22 }
 0x2a1   : > { %v1678_v44 = vpop.permute.xlu1 %1677 }
 0x2a2   : > { %v1676_v45 = vpop.permute.xlu0 %1675  ;;  %1709 = vst.msk [vmem:[#allocation2 + $0x58] sm:$0xff] %vm1703_vm11, %v1678_v44 }
 0x2a3   : > { %1708 = vst.msk [vmem:[#allocation2 + $0x48] sm:$0xff] %vm1703_vm11, %v1676_v45  ;;  %2036 = vrot.lane.b32.xlu1 %v7286_v34, %s6551_s22 }
 0x2a4   : > { %2034 = vrot.lane.b32.xlu0 %v7289_v35, %s6551_s22 }
 0x2a5   : > { %v1682_v8 = vpop.permute.xlu1 %1681 }
 0x2a6   : > { %v1680_v9 = vpop.permute.xlu0 %1679  ;;  %1711 = vst.msk [vmem:[#allocation2 + $0x78] sm:$0xff] %vm1703_vm11, %v1682_v8 }
 0x2a7   : > { %1710 = vst.msk [vmem:[#allocation2 + $0x68] sm:$0xff] %vm1703_vm11, %v1680_v9  ;;  %2040 = vrot.lane.b32.xlu1 %v7298_v38, %s6551_s22 }
 0x2a8   : > { %2038 = vrot.lane.b32.xlu0 %v7301_v39, %s6551_s22 }
 0x2a9   : > { %v1686_v30 = vpop.permute.xlu1 %1685 }
 0x2aa   : > { %v1684_v31 = vpop.permute.xlu0 %1683  ;;  %1713 = vst.msk [vmem:[#allocation2 + $0x98] sm:$0xff] %vm1703_vm11, %v1686_v30 }
 0x2ab   : > { %1712 = vst.msk [vmem:[#allocation2 + $0x88] sm:$0xff] %vm1703_vm11, %v1684_v31  ;;  %2044 = vrot.lane.b32.xlu1 %v7310_v42, %s6551_s22  ;;  %v7694_v42 = vld [vmem:[%s6745_s20 + $0x18] sm:$0xff] }
 0x2ac   : > { %2042 = vrot.lane.b32.xlu0 %v7313_v43, %s6551_s22  ;;  %v7697_v43 = vld [vmem:[%s6745_s20 + $0x8] sm:$0xff] }
 0x2ad   : > { %v1690_v34 = vpop.permute.xlu1 %1689 }
 0x2ae   : > { %v1688_v35 = vpop.permute.xlu0 %1687  ;;  %1715 = vst.msk [vmem:[#allocation2 + $0xb8] sm:$0xff] %vm1703_vm11, %v1690_v34 }
 0x2af   : > { %1714 = vst.msk [vmem:[#allocation2 + $0xa8] sm:$0xff] %vm1703_vm11, %v1688_v35  ;;  %2048 = vrot.lane.b32.xlu1 %v7322_v46, %s6551_s22 }
 0x2b0   : > { %2046 = vrot.lane.b32.xlu0 %v7325_v47, %s6551_s22 }
 0x2b1   : > { %v1743_v38 = vpop.permute.xlu1 %1742 }
 0x2b2   : > { %v1741_v39 = vpop.permute.xlu0 %1740  ;;  %1777 = vst.msk [vmem:[#allocation2 + $0xd8] sm:$0xff] %vm1703_vm11, %v1743_v38 }
 0x2b3   : > { %1776 = vst.msk [vmem:[#allocation2 + $0xc8] sm:$0xff] %vm1703_vm11, %v1741_v39  ;;  %2052 = vrot.lane.b32.xlu1 %v7334_v10, %s6551_s22  ;;  %v7706_v10 = vld [vmem:[%s6745_s20 + $0x38] sm:$0xff] }
 0x2b4   : > { %2050 = vrot.lane.b32.xlu0 %v7337_v11, %s6551_s22  ;;  %v7709_v11 = vld [vmem:[%s6745_s20 + $0x28] sm:$0xff]  ;;  %s6126_s20 = sld [smem:[#allocation3 + $0x2]] }
 0x2b5   : > { %v1747_v46 = vpop.permute.xlu1 %1746 }
 0x2b6   : > { %v1745_v47 = vpop.permute.xlu0 %1744  ;;  %1779 = vst.msk [vmem:[#allocation2 + $0xf8] sm:$0xff] %vm1703_vm11, %v1747_v46 }
 0x2b7   : > { %1778 = vst.msk [vmem:[#allocation2 + $0xe8] sm:$0xff] %vm1703_vm11, %v1745_v47  ;;  %2104 = vrot.lane.b32.xlu1 %v7694_v42, %s6551_s22 }
 0x2b8   : > { %2102 = vrot.lane.b32.xlu0 %v7697_v43, %s6551_s22 }
 0x2b9   : > { %v1751_v1 = vpop.permute.xlu1 %1750 }
 0x2ba   : > { %v1749_v3 = vpop.permute.xlu0 %1748  ;;  %1781 = vst.msk [vmem:[#allocation2 + $0x118] sm:$0xff] %vm1703_vm11, %v1751_v1 }
 0x2bb   : > { %1780 = vst.msk [vmem:[#allocation2 + $0x108] sm:$0xff] %vm1703_vm11, %v1749_v3  ;;  %2108 = vrot.lane.b32.xlu1 %v7706_v10, %s6551_s22 }
 0x2bc   : > { %2106 = vrot.lane.b32.xlu0 %v7709_v11, %s6551_s22 }
 0x2bd   : > { %v1755_v4 = vpop.permute.xlu1 %1754 }
 0x2be   : > { %v1753_v5 = vpop.permute.xlu0 %1752  ;;  %1783 = vst.msk [vmem:[#allocation2 + $0x138] sm:$0xff] %vm1703_vm11, %v1755_v4 }
 0x2bf   : > { %1782 = vst.msk [vmem:[#allocation2 + $0x128] sm:$0xff] %vm1703_vm11, %v1753_v5  ;;  %2112 = vrot.lane.b32.xlu1 %v7718_v0, %s6551_s22 }
 0x2c0   : > { %2110 = vrot.lane.b32.xlu0 %v7721_v2, %s6551_s22 }
 0x2c1   : > { %v1759_v48 = vpop.permute.xlu1 %1758 }
 0x2c2   : > { %v1757_v49 = vpop.permute.xlu0 %1756  ;;  %1785 = vst.msk [vmem:[#allocation2 + $0x158] sm:$0xff] %vm1703_vm11, %v1759_v48 }
 0x2c3   : > { %1784 = vst.msk [vmem:[#allocation2 + $0x148] sm:$0xff] %vm1703_vm11, %v1757_v49  ;;  %2116 = vrot.lane.b32.xlu1 %v7730_v6, %s6551_s22 }
 0x2c4   : > { %2114 = vrot.lane.b32.xlu0 %v7733_v7, %s6551_s22 }
 0x2c5   : > { %v1763_v52 = vpop.permute.xlu1 %1762 }
 0x2c6   : > { %v1761_v53 = vpop.permute.xlu0 %1760  ;;  %1787 = vst.msk [vmem:[#allocation2 + $0x178] sm:$0xff] %vm1703_vm11, %v1763_v52 }
 0x2c7   : > { %1786 = vst.msk [vmem:[#allocation2 + $0x168] sm:$0xff] %vm1703_vm11, %v1761_v53  ;;  %2120 = vrot.lane.b32.xlu1 %v7742_v50, %s6551_s22  ;;  %vm5970_vm11 = vcmask 572416  }
 0x2c8   : > { %2118 = vrot.lane.b32.xlu0 %v7745_v51, %s6551_s22 }
 0x2c9   : > { %v1815_v56 = vpop.permute.xlu1 %1814 }
 0x2ca   : > { %v1813_v57 = vpop.permute.xlu0 %1812  ;;  %1850 = vst.msk [vmem:[#allocation2 + $0x18] sm:$0xff] %vm1848_vm12, %v1815_v56 }
 0x2cb   : > { %1849 = vst.msk [vmem:[#allocation2 + $0x8] sm:$0xff] %vm1848_vm12, %v1813_v57  ;;  %2124 = vrot.lane.b32.xlu1 %v7754_v54, %s6551_s22 }
 0x2cc   : > { %2122 = vrot.lane.b32.xlu0 %v7757_v55, %s6551_s22  ;;  %s6134_s22 = sld [smem:[#allocation3 + $0xa]] }
 0x2cd   : > { %v1819_v58 = vpop.permute.xlu1 %1818 }
 0x2ce   : > { %v1817_v59 = vpop.permute.xlu0 %1816  ;;  %1852 = vst.msk [vmem:[#allocation2 + $0x38] sm:$0xff] %vm1848_vm12, %v1819_v58 }
 0x2cf   : > { %1851 = vst.msk [vmem:[#allocation2 + $0x28] sm:$0xff] %vm1848_vm12, %v1817_v59  ;;  %2177 = vrot.lane.b32.xlu1 %v7694_v42, %s6552_s5 }
 0x2d0   : > { %2175 = vrot.lane.b32.xlu0 %v7697_v43, %s6552_s5 }
 0x2d1   : > { %v1823_v60 = vpop.permute.xlu1 %1822 }
 0x2d2   : > { %v1821_v61 = vpop.permute.xlu0 %1820  ;;  %1854 = vst.msk [vmem:[#allocation2 + $0x58] sm:$0xff] %vm1848_vm12, %v1823_v60  ;;  %v7939_v60 = vld [vmem:[#allocation2] sm:$0xff] }
 0x2d3   : > { %1853 = vst.msk [vmem:[#allocation2 + $0x48] sm:$0xff] %vm1848_vm12, %v1821_v61  ;;  %2181 = vrot.lane.b32.xlu1 %v7706_v10, %s6552_s5  ;;  %v7951_v61 = vld [vmem:[#allocation2 + $0x10] sm:$0xff] }
 0x2d4   : > { %2179 = vrot.lane.b32.xlu0 %v7709_v11, %s6552_s5 }
 0x2d5   : > { %v1827_v62 = vpop.permute.xlu1 %1826 }
 0x2d6   : > { %v1825_v63 = vpop.permute.xlu0 %1824  ;;  %1856 = vst.msk [vmem:[#allocation2 + $0x78] sm:$0xff] %vm1848_vm12, %v1827_v62 }
 0x2d7   : > { %1855 = vst.msk [vmem:[#allocation2 + $0x68] sm:$0xff] %vm1848_vm12, %v1825_v63  ;;  %2185 = vrot.lane.b32.xlu1 %v7718_v0, %s6552_s5 }
 0x2d8   : > { %2183 = vrot.lane.b32.xlu0 %v7721_v2, %s6552_s5 }
 0x2d9   : > { %v1831_v12 = vpop.permute.xlu1 %1830 }
 0x2da   : > { %v1829_v13 = vpop.permute.xlu0 %1828  ;;  %1858 = vst.msk [vmem:[#allocation2 + $0x98] sm:$0xff] %vm1848_vm12, %v1831_v12  ;;  %v7958_v12 = vld [vmem:[#allocation2 + $0x20] sm:$0xff] }
 0x2db   : > { %1857 = vst.msk [vmem:[#allocation2 + $0x88] sm:$0xff] %vm1848_vm12, %v1829_v13  ;;  %2189 = vrot.lane.b32.xlu1 %v7730_v6, %s6552_s5 }
 0x2dc   : > { %2187 = vrot.lane.b32.xlu0 %v7733_v7, %s6552_s5 }
 0x2dd   : > { %v1835_v14 = vpop.permute.xlu1 %1834 }
 0x2de   : > { %v1833_v15 = vpop.permute.xlu0 %1832  ;;  %1860 = vst.msk [vmem:[#allocation2 + $0xb8] sm:$0xff] %vm1848_vm12, %v1835_v14 }
 0x2df   : > { %1859 = vst.msk [vmem:[#allocation2 + $0xa8] sm:$0xff] %vm1848_vm12, %v1833_v15  ;;  %2193 = vrot.lane.b32.xlu1 %v7742_v50, %s6552_s5  ;;  %v7965_v15 = vld [vmem:[#allocation2 + $0x30] sm:$0xff] }
 0x2e0   : > { %2191 = vrot.lane.b32.xlu0 %v7745_v51, %s6552_s5 }
 0x2e1   : > { %v1888_v16 = vpop.permute.xlu1 %1887 }
 0x2e2   : > { %v1886_v17 = vpop.permute.xlu0 %1885  ;;  %1922 = vst.msk [vmem:[#allocation2 + $0xd8] sm:$0xff] %vm1848_vm12, %v1888_v16 }
 0x2e3   : > { %1921 = vst.msk [vmem:[#allocation2 + $0xc8] sm:$0xff] %vm1848_vm12, %v1886_v17  ;;  %2197 = vrot.lane.b32.xlu1 %v7754_v54, %s6552_s5 }
 0x2e4   : > { %2195 = vrot.lane.b32.xlu0 %v7757_v55, %s6552_s5 }
 0x2e5   : > { %v1892_v18 = vpop.permute.xlu1 %1891 }
 0x2e6   : > { %v1890_v19 = vpop.permute.xlu0 %1889  ;;  %1924 = vst.msk [vmem:[#allocation2 + $0xf8] sm:$0xff] %vm1848_vm12, %v1892_v18 }
 0x2e7   : > { %1923 = vst.msk [vmem:[#allocation2 + $0xe8] sm:$0xff] %vm1848_vm12, %v1890_v19  ;;  %2249 = vrot.lane.b32.xlu1 %v7694_v42, %s6552_s5  ;;  %v7972_v19 = vld [vmem:[#allocation2 + $0x40] sm:$0xff] }
 0x2e8   : > { %2247 = vrot.lane.b32.xlu0 %v7697_v43, %s6552_s5 }
 0x2e9   : > { %v1896_v20 = vpop.permute.xlu1 %1895 }
 0x2ea   : > { %v1894_v21 = vpop.permute.xlu0 %1893  ;;  %1926 = vst.msk [vmem:[#allocation2 + $0x118] sm:$0xff] %vm1848_vm12, %v1896_v20 }
 0x2eb   : > { %1925 = vst.msk [vmem:[#allocation2 + $0x108] sm:$0xff] %vm1848_vm12, %v1894_v21  ;;  %2253 = vrot.lane.b32.xlu1 %v7706_v10, %s6552_s5 }
 0x2ec   : > { %2251 = vrot.lane.b32.xlu0 %v7709_v11, %s6552_s5 }
 0x2ed   : > { %v1900_v22 = vpop.permute.xlu1 %1899 }
 0x2ee   : > { %v1898_v23 = vpop.permute.xlu0 %1897  ;;  %1928 = vst.msk [vmem:[#allocation2 + $0x138] sm:$0xff] %vm1848_vm12, %v1900_v22 }
 0x2ef   : > { %1927 = vst.msk [vmem:[#allocation2 + $0x128] sm:$0xff] %vm1848_vm12, %v1898_v23  ;;  %2257 = vrot.lane.b32.xlu1 %v7718_v0, %s6552_s5  ;;  %v7979_v23 = vld [vmem:[#allocation2 + $0x50] sm:$0xff] }
 0x2f0   : > { %2255 = vrot.lane.b32.xlu0 %v7721_v2, %s6552_s5 }
 0x2f1   : > { %v1904_v24 = vpop.permute.xlu1 %1903 }
 0x2f2   : > { %v1902_v25 = vpop.permute.xlu0 %1901  ;;  %1930 = vst.msk [vmem:[#allocation2 + $0x158] sm:$0xff] %vm1848_vm12, %v1904_v24 }
 0x2f3   : > { %1929 = vst.msk [vmem:[#allocation2 + $0x148] sm:$0xff] %vm1848_vm12, %v1902_v25  ;;  %2261 = vrot.lane.b32.xlu1 %v7730_v6, %s6552_s5 }
 0x2f4   : > { %2259 = vrot.lane.b32.xlu0 %v7733_v7, %s6552_s5 }
 0x2f5   : > { %v1908_v26 = vpop.permute.xlu1 %1907 }
 0x2f6   : > { %v1906_v27 = vpop.permute.xlu0 %1905  ;;  %1932 = vst.msk [vmem:[#allocation2 + $0x178] sm:$0xff] %vm1848_vm12, %v1908_v26 }
 0x2f7   : > { %1931 = vst.msk [vmem:[#allocation2 + $0x168] sm:$0xff] %vm1848_vm12, %v1906_v27  ;;  %2265 = vrot.lane.b32.xlu1 %v7742_v50, %s6552_s5  ;;  %v7986_v27 = vld [vmem:[#allocation2 + $0x60] sm:$0xff]  ;;  %vm5967_vm12 = vcmask 1048360  }
 0x2f8   : > { %2263 = vrot.lane.b32.xlu0 %v7745_v51, %s6552_s5 }
 0x2f9   : > { %v1960_v28 = vpop.permute.xlu1 %1959 }
 0x2fa   : > { %v1958_v29 = vpop.permute.xlu0 %1957  ;;  %1995 = vst.msk [vmem:[#allocation2 + $0x18] sm:$0xff] %vm1993_vm13, %v1960_v28 }
 0x2fb   : > { %1994 = vst.msk [vmem:[#allocation2 + $0x8] sm:$0xff] %vm1993_vm13, %v1958_v29  ;;  %2269 = vrot.lane.b32.xlu1 %v7754_v54, %s6552_s5 }
 0x2fc   : > { %2267 = vrot.lane.b32.xlu0 %v7757_v55, %s6552_s5  ;;  %s6135_s5 = sld [smem:[#allocation3 + $0xb]] }
 0x2fd   : > { %v1964_v32 = vpop.permute.xlu1 %1963 }
 0x2fe   : > { %v1962_v33 = vpop.permute.xlu0 %1961  ;;  %1997 = vst.msk [vmem:[#allocation2 + $0x38] sm:$0xff] %vm1993_vm13, %v1964_v32 }
 0x2ff   : > { %1996 = vst.msk [vmem:[#allocation2 + $0x28] sm:$0xff] %vm1993_vm13, %v1962_v33  ;;  %2322 = vrot.lane.b32.xlu1 %v7694_v42, %s6553_s26  ;;  %v7993_v33 = vld [vmem:[#allocation2 + $0x70] sm:$0xff] }
 0x300   : > { %2320 = vrot.lane.b32.xlu0 %v7697_v43, %s6553_s26 }
 0x301   : > { %v1968_v36 = vpop.permute.xlu1 %1967 }
 0x302   : > { %v1966_v37 = vpop.permute.xlu0 %1965  ;;  %1999 = vst.msk [vmem:[#allocation2 + $0x58] sm:$0xff] %vm1993_vm13, %v1968_v36 }
 0x303   : > { %1998 = vst.msk [vmem:[#allocation2 + $0x48] sm:$0xff] %vm1993_vm13, %v1966_v37  ;;  %2326 = vrot.lane.b32.xlu1 %v7706_v10, %s6553_s26 }
 0x304   : > { %2324 = vrot.lane.b32.xlu0 %v7709_v11, %s6553_s26 }
 0x305   : > { %v1972_v40 = vpop.permute.xlu1 %1971 }
 0x306   : > { %v1970_v41 = vpop.permute.xlu0 %1969  ;;  %2001 = vst.msk [vmem:[#allocation2 + $0x78] sm:$0xff] %vm1993_vm13, %v1972_v40 }
 0x307   : > { %2000 = vst.msk [vmem:[#allocation2 + $0x68] sm:$0xff] %vm1993_vm13, %v1970_v41  ;;  %2330 = vrot.lane.b32.xlu1 %v7718_v0, %s6553_s26  ;;  %v8000_v41 = vld [vmem:[#allocation2 + $0x80] sm:$0xff] }
 0x308   : > { %2328 = vrot.lane.b32.xlu0 %v7721_v2, %s6553_s26  ;;  %11315 = vst [vmem:[#allocation15_spill] sm:$0xff] %v8000_v41 }
 0x309   : > { %v1976_v44 = vpop.permute.xlu1 %1975 }
 0x30a   : > { %v1974_v45 = vpop.permute.xlu0 %1973  ;;  %2003 = vst.msk [vmem:[#allocation2 + $0x98] sm:$0xff] %vm1993_vm13, %v1976_v44 }
 0x30b   : > { %2002 = vst.msk [vmem:[#allocation2 + $0x88] sm:$0xff] %vm1993_vm13, %v1974_v45  ;;  %2334 = vrot.lane.b32.xlu1 %v7730_v6, %s6553_s26 }
 0x30c   : > { %2332 = vrot.lane.b32.xlu0 %v7733_v7, %s6553_s26 }
 0x30d   : > { %v1980_v8 = vpop.permute.xlu1 %1979 }
 0x30e   : > { %v1978_v9 = vpop.permute.xlu0 %1977  ;;  %2005 = vst.msk [vmem:[#allocation2 + $0xb8] sm:$0xff] %vm1993_vm13, %v1980_v8 }
 0x30f   : > { %2004 = vst.msk [vmem:[#allocation2 + $0xa8] sm:$0xff] %vm1993_vm13, %v1978_v9  ;;  %2338 = vrot.lane.b32.xlu1 %v7742_v50, %s6553_s26  ;;  %v8007_v9 = vld [vmem:[#allocation2 + $0x90] sm:$0xff] }
 0x310   : > { %2336 = vrot.lane.b32.xlu0 %v7745_v51, %s6553_s26  ;;  %11316 = vst [vmem:[#allocation16_spill] sm:$0xff] %v8007_v9 }
 0x311   : > { %v2033_v30 = vpop.permute.xlu1 %2032 }
 0x312   : > { %v2031_v31 = vpop.permute.xlu0 %2030  ;;  %2067 = vst.msk [vmem:[#allocation2 + $0xd8] sm:$0xff] %vm1993_vm13, %v2033_v30 }
 0x313   : > { %2066 = vst.msk [vmem:[#allocation2 + $0xc8] sm:$0xff] %vm1993_vm13, %v2031_v31  ;;  %2342 = vrot.lane.b32.xlu1 %v7754_v54, %s6553_s26 }
 0x314   : > { %2340 = vrot.lane.b32.xlu0 %v7757_v55, %s6553_s26 }
 0x315   : > { %v2037_v34 = vpop.permute.xlu1 %2036 }
 0x316   : > { %v2035_v35 = vpop.permute.xlu0 %2034  ;;  %2069 = vst.msk [vmem:[#allocation2 + $0xf8] sm:$0xff] %vm1993_vm13, %v2037_v34 }
 0x317   : > { %2068 = vst.msk [vmem:[#allocation2 + $0xe8] sm:$0xff] %vm1993_vm13, %v2035_v35  ;;  %2394 = vrot.lane.b32.xlu1 %v7694_v42, %s6553_s26  ;;  %v8014_v35 = vld [vmem:[#allocation2 + $0xa0] sm:$0xff] }
 0x318   : > { %2392 = vrot.lane.b32.xlu0 %v7697_v43, %s6553_s26 }
 0x319   : > { %v2041_v38 = vpop.permute.xlu1 %2040 }
 0x31a   : > { %v2039_v39 = vpop.permute.xlu0 %2038  ;;  %2071 = vst.msk [vmem:[#allocation2 + $0x118] sm:$0xff] %vm1993_vm13, %v2041_v38 }
 0x31b   : > { %2070 = vst.msk [vmem:[#allocation2 + $0x108] sm:$0xff] %vm1993_vm13, %v2039_v39  ;;  %2398 = vrot.lane.b32.xlu1 %v7706_v10, %s6553_s26 }
 0x31c   : > { %2396 = vrot.lane.b32.xlu0 %v7709_v11, %s6553_s26 }
 0x31d   : > { %v2045_v46 = vpop.permute.xlu1 %2044 }
 0x31e   : > { %v2043_v47 = vpop.permute.xlu0 %2042  ;;  %2073 = vst.msk [vmem:[#allocation2 + $0x138] sm:$0xff] %vm1993_vm13, %v2045_v46 }
 0x31f   : > { %2072 = vst.msk [vmem:[#allocation2 + $0x128] sm:$0xff] %vm1993_vm13, %v2043_v47  ;;  %2402 = vrot.lane.b32.xlu1 %v7718_v0, %s6553_s26  ;;  %v8021_v47 = vld [vmem:[#allocation2 + $0xb0] sm:$0xff] }
 0x320   : > { %2400 = vrot.lane.b32.xlu0 %v7721_v2, %s6553_s26 }
 0x321   : > { %v2049_v1 = vpop.permute.xlu1 %2048 }
 0x322   : > { %v2047_v3 = vpop.permute.xlu0 %2046  ;;  %2075 = vst.msk [vmem:[#allocation2 + $0x158] sm:$0xff] %vm1993_vm13, %v2049_v1 }
 0x323   : > { %2074 = vst.msk [vmem:[#allocation2 + $0x148] sm:$0xff] %vm1993_vm13, %v2047_v3  ;;  %2406 = vrot.lane.b32.xlu1 %v7730_v6, %s6553_s26 }
 0x324   : > { %2404 = vrot.lane.b32.xlu0 %v7733_v7, %s6553_s26 }
 0x325   : > { %v2053_v4 = vpop.permute.xlu1 %2052 }
 0x326   : > { %v2051_v5 = vpop.permute.xlu0 %2050  ;;  %2077 = vst.msk [vmem:[#allocation2 + $0x178] sm:$0xff] %vm1993_vm13, %v2053_v4 }
 0x327   : > { %2076 = vst.msk [vmem:[#allocation2 + $0x168] sm:$0xff] %vm1993_vm13, %v2051_v5  ;;  %2410 = vrot.lane.b32.xlu1 %v7742_v50, %s6553_s26  ;;  %v8028_v5 = vld [vmem:[#allocation2 + $0xc0] sm:$0xff] }
 0x328   : > { %2408 = vrot.lane.b32.xlu0 %v7745_v51, %s6553_s26 }
 0x329   : > { %v2105_v48 = vpop.permute.xlu1 %2104 }
 0x32a   : > { %v2103_v49 = vpop.permute.xlu0 %2102  ;;  %2140 = vst.msk [vmem:[#allocation2 + $0x18] sm:$0xff] %vm2138_vm14, %v2105_v48  ;;  %v8032_v48 = vstv %s6127_s23  ;;  %s6149_s23 = sld [smem:[#allocation7 + $0x2]] }
 0x32b   : > { %2139 = vst.msk [vmem:[#allocation2 + $0x8] sm:$0xff] %vm2138_vm14, %v2103_v49  ;;  %2414 = vrot.lane.b32.xlu1 %v7754_v54, %s6553_s26 }
 0x32c   : > { %2412 = vrot.lane.b32.xlu0 %v7757_v55, %s6553_s26 }
 0x32d   : > { %v2109_v52 = vpop.permute.xlu1 %2108 }
 0x32e   : > { %v2107_v53 = vpop.permute.xlu0 %2106  ;;  %2142 = vst.msk [vmem:[#allocation2 + $0x38] sm:$0xff] %vm2138_vm14, %v2109_v52 }
 0x32f   : > { %2141 = vst.msk [vmem:[#allocation2 + $0x28] sm:$0xff] %vm2138_vm14, %v2107_v53  ;;  %2467 = vrot.lane.b32.xlu1 %v7694_v42, %s6554_s29  ;;  %v2824_v53 = vmul.f32 %v8032_v48, %v8028_v5 }
 0x330   : > { %2465 = vrot.lane.b32.xlu0 %v7697_v43, %s6554_s29 }
 0x331   : > { %v2113_v56 = vpop.permute.xlu1 %2112 }
 0x332   : > { %v2111_v57 = vpop.permute.xlu0 %2110  ;;  %2144 = vst.msk [vmem:[#allocation2 + $0x58] sm:$0xff] %vm2138_vm14, %v2113_v56  ;;  %v8040_v56 = vld [vmem:[#allocation2 + $0xd0] sm:$0xff] }
 0x333   : > { %2143 = vst.msk [vmem:[#allocation2 + $0x48] sm:$0xff] %vm2138_vm14, %v2111_v57  ;;  %2471 = vrot.lane.b32.xlu1 %v7706_v10, %s6554_s29 }
 0x334   : > { %2469 = vrot.lane.b32.xlu0 %v7709_v11, %s6554_s29 }
 0x335   : > { %v2117_v58 = vpop.permute.xlu1 %2116 }
 0x336   : > { %v2115_v59 = vpop.permute.xlu0 %2114  ;;  %2146 = vst.msk [vmem:[#allocation2 + $0x78] sm:$0xff] %vm2138_vm14, %v2117_v58 }
 0x337   : > { %2145 = vst.msk [vmem:[#allocation2 + $0x68] sm:$0xff] %vm2138_vm14, %v2115_v59  ;;  %2475 = vrot.lane.b32.xlu1 %v7718_v0, %s6554_s29  ;;  %v2826_v59 = vmul.f32 %v8032_v48, %v8040_v56 }
 0x338   : > { %2473 = vrot.lane.b32.xlu0 %v7721_v2, %s6554_s29 }
 0x339   : > { %v2121_v42 = vpop.permute.xlu1 %2120 }
 0x33a   : > { %v2119_v43 = vpop.permute.xlu0 %2118  ;;  %2148 = vst.msk [vmem:[#allocation2 + $0x98] sm:$0xff] %vm2138_vm14, %v2121_v42  ;;  %v8044_v42 = vld [vmem:[#allocation2 + $0xe0] sm:$0xff] }
 0x33b   : > { %2147 = vst.msk [vmem:[#allocation2 + $0x88] sm:$0xff] %vm2138_vm14, %v2119_v43  ;;  %2479 = vrot.lane.b32.xlu1 %v7730_v6, %s6554_s29  ;;  %v7943_v6 = vstv %s6126_s20  ;;  %s6132_s20 = sld [smem:[#allocation3 + $0x8]] }
 0x33c   : > { %2477 = vrot.lane.b32.xlu0 %v7733_v7, %s6554_s29  ;;  %v2670_v14 = vmul.f32 %v7943_v6, %v7958_v12  ;;  %v2672_v18 = vmul.f32 %v7943_v6, %v7965_v15  ;;  %v2674_v22 = vmul.f32 %v7943_v6, %v7972_v19  ;;  %v2676_v26 = vmul.f32 %v7943_v6, %v7979_v23 }
 0x33d   : > { %v2125_v10 = vpop.permute.xlu1 %2124  ;;  %v2678_v32 = vmul.f32 %v7943_v6, %v7986_v27  ;;  %v2680_v40 = vmul.f32 %v7943_v6, %v7993_v33  ;;  %v2682_v8 = vmul.f32 %v7943_v6, %v8000_v41  ;;  %v2684_v34 = vmul.f32 %v7943_v6, %v8007_v9 }
 0x33e   : > { %v2123_v11 = vpop.permute.xlu0 %2122  ;;  %2150 = vst.msk [vmem:[#allocation2 + $0xb8] sm:$0xff] %vm2138_vm14, %v2125_v10  ;;  %v2686_v46 = vmul.f32 %v7943_v6, %v8014_v35  ;;  %v2688_v4 = vmul.f32 %v7943_v6, %v8021_v47 }
 0x33f   : > { %2149 = vst.msk [vmem:[#allocation2 + $0xa8] sm:$0xff] %vm2138_vm14, %v2123_v11  ;;  %2483 = vrot.lane.b32.xlu1 %v7742_v50, %s6554_s29  ;;  %v2828_v11 = vmul.f32 %v8032_v48, %v8044_v42 }
 0x340   : > { %2481 = vrot.lane.b32.xlu0 %v7745_v51, %s6554_s29  ;;  %v2666_v51 = vmul.f32 %v7943_v6, %v7939_v60 }
 0x341   : > { %v2178_v0 = vpop.permute.xlu1 %2177 }
 0x342   : > { %v2176_v2 = vpop.permute.xlu0 %2175  ;;  %2212 = vst.msk [vmem:[#allocation2 + $0xd8] sm:$0xff] %vm2138_vm14, %v2178_v0  ;;  %v8054_v0 = vld [vmem:[#allocation2 + $0xf0] sm:$0xff] }
 0x343   : > { %2211 = vst.msk [vmem:[#allocation2 + $0xc8] sm:$0xff] %vm2138_vm14, %v2176_v2  ;;  %2487 = vrot.lane.b32.xlu1 %v7754_v54, %s6554_s29  ;;  %v2668_v54 = vmul.f32 %v7943_v6, %v7951_v61 }
 0x344   : > { %2485 = vrot.lane.b32.xlu0 %v7757_v55, %s6554_s29  ;;  %s6133_s29 = sld [smem:[#allocation3 + $0x9]] }
 0x345   : > { %v2182_v7 = vpop.permute.xlu1 %2181 }
 0x346   : > { %v2180_v50 = vpop.permute.xlu0 %2179  ;;  %2214 = vst.msk [vmem:[#allocation2 + $0xf8] sm:$0xff] %vm2138_vm14, %v2182_v7 }
 0x347   : > { %2213 = vst.msk [vmem:[#allocation2 + $0xe8] sm:$0xff] %vm2138_vm14, %v2180_v50  ;;  %v2830_v50 = vmul.f32 %v8032_v48, %v8054_v0 }
 0x348   : > { %2714 = vrot.lane.b32.xlu0 %v2666_v51, %s6553_s26  ;;  %v8058_v51 = vld [vmem:[#allocation2 + $0x100] sm:$0xff] }
 0x349   : > { %v2186_v62 = vpop.permute.xlu1 %2185 }
 0x34a   : > { %v2184_v63 = vpop.permute.xlu0 %2183  ;;  %2216 = vst.msk [vmem:[#allocation2 + $0x118] sm:$0xff] %vm2138_vm14, %v2186_v62 }
 0x34b   : > { %2215 = vst.msk [vmem:[#allocation2 + $0x108] sm:$0xff] %vm2138_vm14, %v2184_v63 }
 0x34c   : > { %2718 = vrot.lane.b32.xlu0 %v2668_v54, %s6553_s26  ;;  %v2832_v54 = vmul.f32 %v8032_v48, %v8058_v51 }
 0x34d   : > { %v2190_v55 = vpop.permute.xlu1 %2189 }
 0x34e   : > { %v2188_v13 = vpop.permute.xlu0 %2187  ;;  %2218 = vst.msk [vmem:[#allocation2 + $0x138] sm:$0xff] %vm2138_vm14, %v2190_v55  ;;  %v8068_v55 = vld [vmem:[#allocation2 + $0x110] sm:$0xff] }
 0x34f   : > { %2217 = vst.msk [vmem:[#allocation2 + $0x128] sm:$0xff] %vm2138_vm14, %v2188_v13 }
 0x350   : > { %2722 = vrot.lane.b32.xlu0 %v2670_v14, %s6553_s26 }
 0x351   : > { %v2194_v16 = vpop.permute.xlu1 %2193 }
 0x352   : > { %v2192_v17 = vpop.permute.xlu0 %2191  ;;  %2220 = vst.msk [vmem:[#allocation2 + $0x158] sm:$0xff] %vm2138_vm14, %v2194_v16  ;;  %v2834_v16 = vmul.f32 %v8032_v48, %v8068_v55 }
 0x353   : > { %2219 = vst.msk [vmem:[#allocation2 + $0x148] sm:$0xff] %vm2138_vm14, %v2192_v17  ;;  %v8072_v17 = vld [vmem:[#allocation2 + $0x120] sm:$0xff] }
 0x354   : > { %2726 = vrot.lane.b32.xlu0 %v2672_v18, %s6553_s26 }
 0x355   : > { %v2198_v20 = vpop.permute.xlu1 %2197 }
 0x356   : > { %v2196_v21 = vpop.permute.xlu0 %2195  ;;  %2222 = vst.msk [vmem:[#allocation2 + $0x178] sm:$0xff] %vm2138_vm14, %v2198_v20 }
 0x357   : > { %2221 = vst.msk [vmem:[#allocation2 + $0x168] sm:$0xff] %vm2138_vm14, %v2196_v21  ;;  %v2836_v21 = vmul.f32 %v8032_v48, %v8072_v17 }
 0x358   : > { %2730 = vrot.lane.b32.xlu0 %v2674_v22, %s6553_s26  ;;  %v8082_v22 = vld [vmem:[#allocation2 + $0x130] sm:$0xff] }
 0x359   : > { %v2250_v24 = vpop.permute.xlu1 %2249 }
 0x35a   : > { %v2248_v25 = vpop.permute.xlu0 %2247  ;;  %2285 = vst.msk [vmem:[#allocation2 + $0x18] sm:$0xff] %vm2283_vm15, %v2250_v24 }
 0x35b   : > { %2284 = vst.msk [vmem:[#allocation2 + $0x8] sm:$0xff] %vm2283_vm15, %v2248_v25 }
 0x35c   : > { %2734 = vrot.lane.b32.xlu0 %v2676_v26, %s6553_s26 }
 0x35d   : > { %v2254_v28 = vpop.permute.xlu1 %2253 }
 0x35e   : > { %v2252_v29 = vpop.permute.xlu0 %2251  ;;  %2287 = vst.msk [vmem:[#allocation2 + $0x38] sm:$0xff] %vm2283_vm15, %v2254_v28 }
 0x35f   : > { %2286 = vst.msk [vmem:[#allocation2 + $0x28] sm:$0xff] %vm2283_vm15, %v2252_v29  ;;  %v2838_v29 = vmul.f32 %v8032_v48, %v8082_v22 }
 0x360   : > { %2738 = vrot.lane.b32.xlu0 %v2678_v32, %s6553_s26  ;;  %v8090_v32 = vld [vmem:[#allocation2 + $0x140] sm:$0xff] }
 0x361   : > { %v2258_v36 = vpop.permute.xlu1 %2257  ;;  %11317 = vst [vmem:[#allocation17_spill] sm:$0xff] %v8090_v32 }
 0x362   : > { %v2256_v37 = vpop.permute.xlu0 %2255  ;;  %2289 = vst.msk [vmem:[#allocation2 + $0x58] sm:$0xff] %vm2283_vm15, %v2258_v36 }
 0x363   : > { %2288 = vst.msk [vmem:[#allocation2 + $0x48] sm:$0xff] %vm2283_vm15, %v2256_v37 }
 0x364   : > { %2742 = vrot.lane.b32.xlu0 %v2680_v40, %s6553_s26 }
 0x365   : > { %v2262_v44 = vpop.permute.xlu1 %2261 }
 0x366   : > { %v2260_v45 = vpop.permute.xlu0 %2259  ;;  %2291 = vst.msk [vmem:[#allocation2 + $0x78] sm:$0xff] %vm2283_vm15, %v2262_v44 }
 0x367   : > { %2290 = vst.msk [vmem:[#allocation2 + $0x68] sm:$0xff] %vm2283_vm15, %v2260_v45 }
 0x368   : > { %2746 = vrot.lane.b32.xlu0 %v2682_v8, %s6553_s26  ;;  %v2840_v8 = vmul.f32 %v8032_v48, %v8090_v32 }
 0x369   : > { %v2266_v30 = vpop.permute.xlu1 %2265 }
 0x36a   : > { %v2264_v31 = vpop.permute.xlu0 %2263  ;;  %2293 = vst.msk [vmem:[#allocation2 + $0x98] sm:$0xff] %vm2283_vm15, %v2266_v30  ;;  %v8107_v30 = vld [vmem:[#allocation2 + $0x150] sm:$0xff] }
 0x36b   : > { %2292 = vst.msk [vmem:[#allocation2 + $0x88] sm:$0xff] %vm2283_vm15, %v2264_v31  ;;  %11318 = vst [vmem:[#allocation18_spill] sm:$0xff] %v8107_v30 }
 0x36c   : > { %2750 = vrot.lane.b32.xlu0 %v2684_v34, %s6553_s26 }
 0x36d   : > { %v2270_v38 = vpop.permute.xlu1 %2269 }
 0x36e   : > { %v2268_v39 = vpop.permute.xlu0 %2267  ;;  %2295 = vst.msk [vmem:[#allocation2 + $0xb8] sm:$0xff] %vm2283_vm15, %v2270_v38 }
 0x36f   : > { %2294 = vst.msk [vmem:[#allocation2 + $0xa8] sm:$0xff] %vm2283_vm15, %v2268_v39 }
 0x370   : > { %2754 = vrot.lane.b32.xlu0 %v2686_v46, %s6553_s26  ;;  %v2842_v46 = vmul.f32 %v8032_v48, %v8107_v30 }
 0x371   : > { %v2323_v1 = vpop.permute.xlu1 %2322 }
 0x372   : > { %v2321_v3 = vpop.permute.xlu0 %2320  ;;  %2357 = vst.msk [vmem:[#allocation2 + $0xd8] sm:$0xff] %vm2283_vm15, %v2323_v1  ;;  %v8116_v1 = vld [vmem:[#allocation2 + $0x160] sm:$0xff] }
 0x373   : > { %2356 = vst.msk [vmem:[#allocation2 + $0xc8] sm:$0xff] %vm2283_vm15, %v2321_v3  ;;  %11319 = vst [vmem:[#allocation19_spill] sm:$0xff] %v8116_v1 }
 0x374   : > { %2758 = vrot.lane.b32.xlu0 %v2688_v4, %s6553_s26 }
 0x375   : > { %v2327_v49 = vpop.permute.xlu1 %2326 }
 0x376   : > { %v2325_v52 = vpop.permute.xlu0 %2324  ;;  %2359 = vst.msk [vmem:[#allocation2 + $0xf8] sm:$0xff] %vm2283_vm15, %v2327_v49 }
 0x377   : > { %2358 = vst.msk [vmem:[#allocation2 + $0xe8] sm:$0xff] %vm2283_vm15, %v2325_v52 }
 0x378   : > { %2872 = vrot.lane.b32.xlu0 %v2824_v53, %s6553_s26  ;;  %v2844_v53 = vmul.f32 %v8032_v48, %v8116_v1 }
 0x379   : > { %v2331_v57 = vpop.permute.xlu1 %2330 }
 0x37a   : > { %v2329_v58 = vpop.permute.xlu0 %2328  ;;  %2361 = vst.msk [vmem:[#allocation2 + $0x118] sm:$0xff] %vm2283_vm15, %v2331_v57  ;;  %v8131_v57 = vld [vmem:[#allocation2 + $0x170] sm:$0xff] }
 0x37b   : > { %2360 = vst.msk [vmem:[#allocation2 + $0x108] sm:$0xff] %vm2283_vm15, %v2329_v58  ;;  %11320 = vst [vmem:[#allocation20_spill] sm:$0xff] %v8131_v57 }
 0x37c   : > { %2876 = vrot.lane.b32.xlu0 %v2826_v59, %s6553_s26 }
 0x37d   : > { %v2335_v43 = vpop.permute.xlu1 %2334 }
 0x37e   : > { %v2333_v10 = vpop.permute.xlu0 %2332  ;;  %2363 = vst.msk [vmem:[#allocation2 + $0x138] sm:$0xff] %vm2283_vm15, %v2335_v43 }
 0x37f   : > { %2362 = vst.msk [vmem:[#allocation2 + $0x128] sm:$0xff] %vm2283_vm15, %v2333_v10 }
 0x380   : > { %2880 = vrot.lane.b32.xlu0 %v2828_v11, %s6553_s26  ;;  %v2846_v11 = vmul.f32 %v8032_v48, %v8131_v57 }
 0x381   : > { %v2339_v2 = vpop.permute.xlu1 %2338 }
 0x382   : > { %v2337_v7 = vpop.permute.xlu0 %2336  ;;  %2365 = vst.msk [vmem:[#allocation2 + $0x158] sm:$0xff] %vm2283_vm15, %v2339_v2  ;;  %v8142_v2 = vstv %s6130_s7  ;;  %s6556_s7 = smov 66  }
 0x383   : > { %2364 = vst.msk [vmem:[#allocation2 + $0x148] sm:$0xff] %vm2283_vm15, %v2337_v7 }
 0x384   : > { %2884 = vrot.lane.b32.xlu0 %v2830_v50, %s6553_s26 }
 0x385   : > { %v2343_v62 = vpop.permute.xlu1 %2342 }
 0x386   : > { %v2341_v63 = vpop.permute.xlu0 %2340  ;;  %2367 = vst.msk [vmem:[#allocation2 + $0x178] sm:$0xff] %vm2283_vm15, %v2343_v62 }
 0x387   : > { %2366 = vst.msk [vmem:[#allocation2 + $0x168] sm:$0xff] %vm2283_vm15, %v2341_v63 }
 0x388   : > { %2888 = vrot.lane.b32.xlu0 %v2832_v54, %s6553_s26  ;;  %v3129_v54 = vmul.f32 %v8142_v2, %v7939_v60 }
 0x389   : > { %v2395_v13 = vpop.permute.xlu1 %2394 }
 0x38a   : > { %v2393_v14 = vpop.permute.xlu0 %2392  ;;  %2430 = vst.msk [vmem:[#allocation2 + $0x18] sm:$0xff] %vm2428_vm0, %v2395_v13 }
 0x38b   : > { %2429 = vst.msk [vmem:[#allocation2 + $0x8] sm:$0xff] %vm2428_vm0, %v2393_v14 }
 0x38c   : > { %2892 = vrot.lane.b32.xlu0 %v2834_v16, %s6553_s26 }
 0x38d   : > { %v2399_v18 = vpop.permute.xlu1 %2398 }
 0x38e   : > { %v2397_v20 = vpop.permute.xlu0 %2396  ;;  %2432 = vst.msk [vmem:[#allocation2 + $0x38] sm:$0xff] %vm2428_vm0, %v2399_v18 }
 0x38f   : > { %2431 = vst.msk [vmem:[#allocation2 + $0x28] sm:$0xff] %vm2428_vm0, %v2397_v20  ;;  %v3131_v20 = vmul.f32 %v8142_v2, %v7951_v61 }
 0x390   : > { %2896 = vrot.lane.b32.xlu0 %v2836_v21, %s6553_s26 }
 0x391   : > { %v8084_v24 = vld [vmem:[#allocation2 + $0x18] sm:$0xff]  ;;  %v2403_v26 = vpop.permute.xlu1 %2402 }
 0x392   : > { %v8086_v25 = vld [vmem:[#allocation2 + $0x8] sm:$0xff]  ;;  %v2401_v28 = vpop.permute.xlu0 %2400  ;;  %2434 = vst.msk [vmem:[#allocation2 + $0x58] sm:$0xff] %vm2428_vm0, %v2403_v26  ;;  %v2669_v37 = vmul.f32 %v7943_v6, %v8084_v24 }
 0x393   : > { %2433 = vst.msk [vmem:[#allocation2 + $0x48] sm:$0xff] %vm2428_vm0, %v2401_v28  ;;  %v2667_v36 = vmul.f32 %v7943_v6, %v8086_v25 }
 0x394   : > { %2900 = vrot.lane.b32.xlu0 %v2838_v29, %s6553_s26 }
 0x395   : > { %2716 = vrot.lane.b32.xlu1 %v2667_v36, %s6553_s26  ;;  %v2407_v44 = vpop.permute.xlu1 %2406  ;;  %v8112_v34 = vld [vmem:[#allocation2 + $0x38] sm:$0xff]  ;;  %v3133_v36 = vmul.f32 %v8142_v2, %v7958_v12 }
 0x396   : > { %v8100_v40 = vld [vmem:[#allocation2 + $0x28] sm:$0xff]  ;;  %v2405_v45 = vpop.permute.xlu0 %2404  ;;  %2436 = vst.msk [vmem:[#allocation2 + $0x78] sm:$0xff] %vm2428_vm0, %v2407_v44  ;;  %v2673_v3 = vmul.f32 %v7943_v6, %v8112_v34 }
 0x397   : > { %2435 = vst.msk [vmem:[#allocation2 + $0x68] sm:$0xff] %vm2428_vm0, %v2405_v45  ;;  %v2671_v31 = vmul.f32 %v7943_v6, %v8100_v40 }
 0x398   : > { %2904 = vrot.lane.b32.xlu0 %v2840_v8, %s6553_s26 }
 0x399   : > { %2720 = vrot.lane.b32.xlu1 %v2669_v37, %s6553_s26  ;;  %v2411_v38 = vpop.permute.xlu1 %2410  ;;  %v8136_v59 = vld [vmem:[#allocation2 + $0x58] sm:$0xff] }
 0x39a   : > { %v2409_v39 = vpop.permute.xlu0 %2408  ;;  %2438 = vst.msk [vmem:[#allocation2 + $0x98] sm:$0xff] %vm2428_vm0, %v2411_v38  ;;  %v8124_v4 = vld [vmem:[#allocation2 + $0x48] sm:$0xff]  ;;  %v2677_v7 = vmul.f32 %v7943_v6, %v8136_v59 }
 0x39b   : > { %2437 = vst.msk [vmem:[#allocation2 + $0x88] sm:$0xff] %vm2428_vm0, %v2409_v39  ;;  %v2675_v58 = vmul.f32 %v7943_v6, %v8124_v4 }
 0x39c   : > { %2908 = vrot.lane.b32.xlu0 %v2842_v46, %s6553_s26 }
 0x39d   : > { %2724 = vrot.lane.b32.xlu1 %v2671_v31, %s6553_s26  ;;  %v2415_v49 = vpop.permute.xlu1 %2414  ;;  %v8158_v14 = vld [vmem:[#allocation2 + $0x78] sm:$0xff]  ;;  %v3135_v31 = vmul.f32 %v8142_v2, %v7965_v15 }
 0x39e   : > { %v2413_v52 = vpop.permute.xlu0 %2412  ;;  %2440 = vst.msk [vmem:[#allocation2 + $0xb8] sm:$0xff] %vm2428_vm0, %v2415_v49  ;;  %v8148_v50 = vld [vmem:[#allocation2 + $0x68] sm:$0xff]  ;;  %v2681_v21 = vmul.f32 %v7943_v6, %v8158_v14  ;;  %v3137_v49 = vmul.f32 %v8142_v2, %v7972_v19 }
 0x39f   : > { %2439 = vst.msk [vmem:[#allocation2 + $0xa8] sm:$0xff] %vm2428_vm0, %v2413_v52  ;;  %v2679_v13 = vmul.f32 %v7943_v6, %v8148_v50 }
 0x3a0   : > { %2912 = vrot.lane.b32.xlu0 %v2844_v53, %s6553_s26 }
 0x3a1   : > { %2728 = vrot.lane.b32.xlu1 %v2673_v3, %s6553_s26  ;;  %v2468_v43 = vpop.permute.xlu1 %2467  ;;  %v8178_v44 = vld [vmem:[#allocation2 + $0x98] sm:$0xff] }
 0x3a2   : > { %v2466_v10 = vpop.permute.xlu0 %2465  ;;  %2502 = vst.msk [vmem:[#allocation2 + $0xd8] sm:$0xff] %vm2428_vm0, %v2468_v43  ;;  %v8168_v26 = vld [vmem:[#allocation2 + $0x88] sm:$0xff]  ;;  %11322 = vst [vmem:[#allocation22_spill] sm:$0xff] %v8178_v44  ;;  %v2685_v38 = vmul.f32 %v7943_v6, %v8178_v44  ;;  %v3139_v43 = vmul.f32 %v8142_v2, %v7979_v23 }
 0x3a3   : > { %2501 = vst.msk [vmem:[#allocation2 + $0xc8] sm:$0xff] %vm2428_vm0, %v2466_v10  ;;  %11321 = vst [vmem:[#allocation21_spill] sm:$0xff] %v8168_v26  ;;  %v2683_v37 = vmul.f32 %v7943_v6, %v8168_v26 }
 0x3a4   : > { %2916 = vrot.lane.b32.xlu0 %v2846_v11, %s6553_s26 }
 0x3a5   : > { %2732 = vrot.lane.b32.xlu1 %v2675_v58, %s6553_s26  ;;  %v2472_v62 = vpop.permute.xlu1 %2471  ;;  %v8198_v53 = vld [vmem:[#allocation2 + $0xb8] sm:$0xff] }
 0x3a6   : > { %v2470_v63 = vpop.permute.xlu0 %2469  ;;  %2504 = vst.msk [vmem:[#allocation2 + $0xf8] sm:$0xff] %vm2428_vm0, %v2472_v62  ;;  %v8188_v39 = vld [vmem:[#allocation2 + $0xa8] sm:$0xff]  ;;  %11324 = vst [vmem:[#allocation24_spill] sm:$0xff] %v8198_v53  ;;  %v2689_v10 = vmul.f32 %v7943_v6, %v8198_v53 }
 0x3a7   : > { %2503 = vst.msk [vmem:[#allocation2 + $0xe8] sm:$0xff] %vm2428_vm0, %v2470_v63  ;;  %11323 = vst [vmem:[#allocation23_spill] sm:$0xff] %v8188_v39  ;;  %v2687_v52 = vmul.f32 %v7943_v6, %v8188_v39 }
 0x3a8   : > { %3177 = vrot.lane.b32.xlu0 %v3129_v54, %s6553_s26 }
 0x3a9   : > { %2736 = vrot.lane.b32.xlu1 %v2677_v7, %s6553_s26  ;;  %v2476_v16 = vpop.permute.xlu1 %2475  ;;  %v3141_v7 = vmul.f32 %v8142_v2, %v7986_v27  ;;  %v8222_v6 = vld [vmem:[#allocation2 + $0xd8] sm:$0xff] }
 0x3aa   : > { %v2474_v18 = vpop.permute.xlu0 %2473  ;;  %2506 = vst.msk [vmem:[#allocation2 + $0x118] sm:$0xff] %vm2428_vm0, %v2476_v16  ;;  %v8212_v62 = vld [vmem:[#allocation2 + $0xc8] sm:$0xff]  ;;  %11326 = vst [vmem:[#allocation26_spill] sm:$0xff] %v8222_v6  ;;  %v2827_v16 = vmul.f32 %v8032_v48, %v8222_v6 }
 0x3ab   : > { %2505 = vst.msk [vmem:[#allocation2 + $0x108] sm:$0xff] %vm2428_vm0, %v2474_v18  ;;  %11325 = vst [vmem:[#allocation25_spill] sm:$0xff] %v8212_v62  ;;  %v2825_v63 = vmul.f32 %v8032_v48, %v8212_v62 }
 0x3ac   : > { %3181 = vrot.lane.b32.xlu0 %v3131_v20, %s6553_s26  ;;  %v3145_v20 = vmul.f32 %v8142_v2, %v8000_v41 }
 0x3ad   : > { %2740 = vrot.lane.b32.xlu1 %v2679_v13, %s6553_s26  ;;  %v2480_v28 = vpop.permute.xlu1 %2479  ;;  %v3143_v13 = vmul.f32 %v8142_v2, %v7993_v33 }
 0x3ae   : > { %v2478_v29 = vpop.permute.xlu0 %2477  ;;  %2508 = vst.msk [vmem:[#allocation2 + $0x138] sm:$0xff] %vm2428_vm0, %v2480_v28 }
 0x3af   : > { %2507 = vst.msk [vmem:[#allocation2 + $0x128] sm:$0xff] %vm2428_vm0, %v2478_v29 }
 0x3b0   : > { %3185 = vrot.lane.b32.xlu0 %v3133_v36, %s6553_s26  ;;  %v3147_v36 = vmul.f32 %v8142_v2, %v8007_v9 }
 0x3b1   : > { %2744 = vrot.lane.b32.xlu1 %v2681_v21, %s6553_s26  ;;  %v2484_v45 = vpop.permute.xlu1 %2483  ;;  %v8232_v21 = vld [vmem:[#allocation2 + $0xe8] sm:$0xff] }
 0x3b2   : > { %v2482_v8 = vpop.permute.xlu0 %2481  ;;  %2510 = vst.msk [vmem:[#allocation2 + $0x158] sm:$0xff] %vm2428_vm0, %v2484_v45  ;;  %v2829_v28 = vmul.f32 %v8032_v48, %v8232_v21 }
 0x3b3   : > { %2509 = vst.msk [vmem:[#allocation2 + $0x148] sm:$0xff] %vm2428_vm0, %v2482_v8 }
 0x3b4   : > { %3189 = vrot.lane.b32.xlu0 %v3135_v31, %s6553_s26  ;;  %v3149_v31 = vmul.f32 %v8142_v2, %v8014_v35 }
 0x3b5   : > { %2748 = vrot.lane.b32.xlu1 %v2683_v37, %s6553_s26  ;;  %v2488_v46 = vpop.permute.xlu1 %2487  ;;  %v8242_v37 = vld [vmem:[#allocation2 + $0xf8] sm:$0xff] }
 0x3b6   : > { %v2486_v3 = vpop.permute.xlu0 %2485  ;;  %2512 = vst.msk [vmem:[#allocation2 + $0x178] sm:$0xff] %vm2428_vm0, %v2488_v46  ;;  %v2831_v45 = vmul.f32 %v8032_v48, %v8242_v37 }
 0x3b7   : > { %2511 = vst.msk [vmem:[#allocation2 + $0x168] sm:$0xff] %vm2428_vm0, %v2486_v3 }
 0x3b8   : > { %3193 = vrot.lane.b32.xlu0 %v3137_v49, %s6553_s26  ;;  %v3151_v49 = vmul.f32 %v8142_v2, %v8021_v47 }
 0x3b9   : > { %2752 = vrot.lane.b32.xlu1 %v2685_v38, %s6553_s26  ;;  %v8252_v38 = vld [vmem:[#allocation2 + $0x108] sm:$0xff] }
 0x3ba   : > { %v8200_v58 = vpop.permute.xlu0 %2714  ;;  %v2833_v46 = vmul.f32 %v8032_v48, %v8252_v38 }
 0x3bc   : > { %3197 = vrot.lane.b32.xlu0 %v3139_v43, %s6553_s26  ;;  %v8264_v43 = vld [vmem:[#allocation2 + $0x118] sm:$0xff] }
 0x3bd   : > { %2756 = vrot.lane.b32.xlu1 %v2687_v52, %s6553_s26  ;;  %v8262_v52 = vstv %s6131_s28  ;;  %v2835_v35 = vmul.f32 %v8032_v48, %v8264_v43  ;;  %s6138_s28 = sld [smem:[#allocation3 + $0xe]] }
 0x3be   : > { %v8208_v11 = vpop.permute.xlu0 %2718 }
 0x3c0   : > { %3201 = vrot.lane.b32.xlu0 %v3141_v7, %s6553_s26  ;;  %v3286_v7 = vmul.f32 %v8262_v52, %v8028_v5 }
 0x3c1   : > { %2760 = vrot.lane.b32.xlu1 %v2689_v10, %s6553_s26 }
 0x3c2   : > { %v8218_v54 = vpop.permute.xlu0 %2722 }
 0x3c4   : > { %3205 = vrot.lane.b32.xlu0 %v3143_v13, %s6553_s26 }
 0x3c5   : > { %2874 = vrot.lane.b32.xlu1 %v2825_v63, %s6553_s26  ;;  %v8274_v63 = vld [vmem:[#allocation2 + $0x128] sm:$0xff] }
 0x3c6   : > { %v8228_v18 = vpop.permute.xlu0 %2726  ;;  %v2837_v47 = vmul.f32 %v8032_v48, %v8274_v63 }
 0x3c8   : > { %3209 = vrot.lane.b32.xlu0 %v3145_v20, %s6553_s26  ;;  %v8284_v20 = vld [vmem:[#allocation2 + $0x138] sm:$0xff] }
 0x3c9   : > { %2878 = vrot.lane.b32.xlu1 %v2827_v16, %s6553_s26  ;;  %v3288_v16 = vmul.f32 %v8262_v52, %v8040_v56 }
 0x3ca   : > { %v8238_v29 = vpop.permute.xlu0 %2730 }
 0x3cc   : > { %3213 = vrot.lane.b32.xlu0 %v3147_v36, %s6553_s26  ;;  %v3290_v36 = vmul.f32 %v8262_v52, %v8044_v42 }
 0x3cd   : > { %2882 = vrot.lane.b32.xlu1 %v2829_v28, %s6553_s26  ;;  %v2839_v28 = vmul.f32 %v8032_v48, %v8284_v20 }
 0x3ce   : > { %v8248_v8 = vpop.permute.xlu0 %2734 }
 0x3d0   : > { %3217 = vrot.lane.b32.xlu0 %v3149_v31, %s6553_s26  ;;  %v8294_v31 = vld [vmem:[#allocation2 + $0x148] sm:$0xff] }
 0x3d1   : > { %2886 = vrot.lane.b32.xlu1 %v2831_v45, %s6553_s26 }
 0x3d2   : > { %v8258_v3 = vpop.permute.xlu0 %2738 }
 0x3d3   : > { %11327 = vst [vmem:[#allocation27_spill] sm:$0xff] %v8258_v3 }
 0x3d4   : > { %3221 = vrot.lane.b32.xlu0 %v3151_v49, %s6553_s26  ;;  %v3292_v49 = vmul.f32 %v8262_v52, %v8054_v0 }
 0x3d5   : > { %2890 = vrot.lane.b32.xlu1 %v2833_v46, %s6553_s26  ;;  %v2841_v46 = vmul.f32 %v8032_v48, %v8294_v31 }
 0x3d6   : > { %v8270_v10 = vpop.permute.xlu0 %2742 }
 0x3d7   : > { %11328 = vst [vmem:[#allocation28_spill] sm:$0xff] %v8270_v10 }
 0x3d8   : > { %3334 = vrot.lane.b32.xlu0 %v3286_v7, %s6553_s26 }
 0x3d9   : > { %2894 = vrot.lane.b32.xlu1 %v2835_v35, %s6553_s26  ;;  %v8302_v35 = vld [vmem:[#allocation2 + $0x158] sm:$0xff] }
 0x3da   : > { %v8280_v13 = vpop.permute.xlu0 %2746 }
 0x3db   : > { %11329 = vst [vmem:[#allocation29_spill] sm:$0xff] %v8280_v13  ;;  %v3306_v13 = vmul.f32 %v8262_v52, %v8116_v1  ;;  %v3140_v1 = vmul.f32 %v8142_v2, %v8136_v59 }
 0x3dc   : > { %3338 = vrot.lane.b32.xlu0 %v3288_v16, %s6553_s26  ;;  %v3294_v16 = vmul.f32 %v8262_v52, %v8058_v51 }
 0x3dd   : > { %2898 = vrot.lane.b32.xlu1 %v2837_v47, %s6553_s26  ;;  %v2843_v47 = vmul.f32 %v8032_v48, %v8302_v35 }
 0x3de   : > { %v8292_v45 = vpop.permute.xlu0 %2750 }
 0x3df   : > { %11330 = vst [vmem:[#allocation30_spill] sm:$0xff] %v8292_v45 }
 0x3e0   : > { %3342 = vrot.lane.b32.xlu0 %v3290_v36, %s6553_s26 }
 0x3e1   : > { %2902 = vrot.lane.b32.xlu1 %v2839_v28, %s6553_s26  ;;  %v8312_v28 = vld [vmem:[#allocation2 + $0x168] sm:$0xff] }
 0x3e2   : > { %v8305_v7 = vpop.permute.xlu0 %2754  ;;  %v2845_v36 = vmul.f32 %v8032_v48, %v8312_v28 }
 0x3e3   : > { %11331 = vst [vmem:[#allocation31_spill] sm:$0xff] %v8305_v7 }
 0x3e4   : > { %3346 = vrot.lane.b32.xlu0 %v3292_v49, %s6553_s26  ;;  %v3296_v49 = vmul.f32 %v8262_v52, %v8068_v55 }
 0x3e5   : > { %2906 = vrot.lane.b32.xlu1 %v2841_v46, %s6553_s26  ;;  %v8322_v46 = vld [vmem:[#allocation2 + $0x178] sm:$0xff] }
 0x3e6   : > { %v8320_v7 = vpop.permute.xlu0 %2758  ;;  %11333 = vst [vmem:[#allocation33_spill] sm:$0xff] %v8322_v46  ;;  %v2847_v45 = vmul.f32 %v8032_v48, %v8322_v46  ;;  %v3302_v48 = vmul.f32 %v8262_v52, %v8090_v32 }
 0x3e7   : > { %11332 = vst [vmem:[#allocation32_spill] sm:$0xff] %v8320_v7  ;;  %v3300_v7 = vmul.f32 %v8262_v52, %v8082_v22 }
 0x3e8   : > { %3350 = vrot.lane.b32.xlu0 %v3294_v16, %s6553_s26 }
 0x3e9   : > { %2910 = vrot.lane.b32.xlu1 %v2843_v47, %s6553_s26  ;;  %v3298_v47 = vmul.f32 %v8262_v52, %v8072_v17 }
 0x3ea   : > { %v8331_v16 = vpop.permute.xlu0 %2872 }
 0x3ec   : > { %3354 = vrot.lane.b32.xlu0 %v3296_v49, %s6553_s26  ;;  %v3130_v49 = vmul.f32 %v8142_v2, %v8086_v25 }
 0x3ed   : > { %2914 = vrot.lane.b32.xlu1 %v2845_v36, %s6553_s26 }
 0x3ee   : > { %v8342_v36 = vpop.permute.xlu0 %2876 }
 0x3f0   : > { %3358 = vrot.lane.b32.xlu0 %v3298_v47, %s6553_s26  ;;  %v3132_v47 = vmul.f32 %v8142_v2, %v8084_v24 }
 0x3f1   : > { %2918 = vrot.lane.b32.xlu1 %v2847_v45, %s6553_s26  ;;  %v3304_v45 = vmul.f32 %v8262_v52, %v8107_v30 }
 0x3f4   : > { %3362 = vrot.lane.b32.xlu0 %v3300_v7, %s6553_s26  ;;  %v3134_v7 = vmul.f32 %v8142_v2, %v8100_v40 }
 0x3f5   : > { %3179 = vrot.lane.b32.xlu1 %v3130_v49, %s6553_s26  ;;  %v8353_v49 = vpop.permute.xlu0 %2880 }
 0x3f8   : > { %3366 = vrot.lane.b32.xlu0 %v3302_v48, %s6553_s26  ;;  %v3136_v48 = vmul.f32 %v8142_v2, %v8112_v34 }
 0x3f9   : > { %3183 = vrot.lane.b32.xlu1 %v3132_v47, %s6553_s26  ;;  %v3308_v47 = vmul.f32 %v8262_v52, %v8131_v57  ;;  %v8364_v30 = vpop.permute.xlu0 %2884  ;;  %v3142_v57 = vmul.f32 %v8142_v2, %v8148_v50 }
 0x3fc   : > { %3370 = vrot.lane.b32.xlu0 %v3304_v45, %s6553_s26  ;;  %v3138_v45 = vmul.f32 %v8142_v2, %v8124_v4 }
 0x3fd   : > { %3187 = vrot.lane.b32.xlu1 %v3134_v7, %s6553_s26 }
 0x400   : > { %3374 = vrot.lane.b32.xlu0 %v3306_v13, %s6553_s26  ;;  %v8374_v13 = vpop.permute.xlu0 %2888 }
 0x401   : > { %3191 = vrot.lane.b32.xlu1 %v3136_v48, %s6553_s26 }
 0x404   : > { %3378 = vrot.lane.b32.xlu0 %v3308_v47, %s6553_s26  ;;  %v8382_v9 = vpop.permute.xlu0 %2892 }
 0x405   : > { %3195 = vrot.lane.b32.xlu1 %v3138_v45, %s6553_s26  ;;  %11334 = vst [vmem:[#allocation34_spill] sm:$0xff] %v8382_v9  ;;  %v3144_v45 = vmul.f32 %v8142_v2, %v8158_v14 }
 0x407   : > { %v8370_v7 = vpop.permute.xlu1 %2716 }
 0x408   : > { %v8393_v10 = vpop.permute.xlu0 %2896 }
 0x409   : > { %3199 = vrot.lane.b32.xlu1 %v3140_v1, %s6553_s26  ;;  %v3146_v1 = vmul.f32 %v8142_v2, %v8168_v26  ;;  %11335 = vst [vmem:[#allocation35_spill] sm:$0xff] %v8393_v10 }
 0x40b   : > { %v8377_v48 = vpop.permute.xlu1 %2720 }
 0x40c   : > { %v8401_v41 = vpop.permute.xlu0 %2900 }
 0x40d   : > { %3203 = vrot.lane.b32.xlu1 %v3142_v57, %s6553_s26  ;;  %v3148_v57 = vmul.f32 %v8142_v2, %v8178_v44  ;;  %11336 = vst [vmem:[#allocation36_spill] sm:$0xff] %v8401_v41  ;;  %v8436_v41 = vstv %s2513_s6  ;;  %s6137_s6 = sld [smem:[#allocation3 + $0xd]] }
 0x40f   : > { %v8384_v47 = vpop.permute.xlu1 %2724 }
 0x410   : > { %v8412_v10 = vpop.permute.xlu0 %2904 }
 0x411   : > { %3207 = vrot.lane.b32.xlu1 %v3144_v45, %s6553_s26  ;;  %v3150_v45 = vmul.f32 %v8142_v2, %v8188_v39  ;;  %11337 = vst [vmem:[#allocation37_spill] sm:$0xff] %v8412_v10 }
 0x413   : > { %v8389_v32 = vpop.permute.xlu1 %2728 }
 0x414   : > { %v8420_v39 = vpop.permute.xlu0 %2908 }
 0x415   : > { %3211 = vrot.lane.b32.xlu1 %v3146_v1, %s6553_s26  ;;  %v3152_v1 = vmul.f32 %v8142_v2, %v8198_v53  ;;  %11339 = vst [vmem:[#allocation39_spill] sm:$0xff] %v8420_v39  ;;  %v3289_v2 = vmul.f32 %v8262_v52, %v8222_v6 }
 0x417   : > { %v8396_v46 = vpop.permute.xlu1 %2732 }
 0x418   : > { %v8431_v10 = vpop.permute.xlu0 %2912 }
 0x419   : > { %3215 = vrot.lane.b32.xlu1 %v3148_v57, %s6553_s26  ;;  %v3287_v57 = vmul.f32 %v8262_v52, %v8212_v62  ;;  %11342 = vst [vmem:[#allocation42_spill] sm:$0xff] %v8431_v10  ;;  %v2593_v10 = vmul.f32 %v8436_v41, %v8086_v25 }
 0x41b   : > { %v8403_v9 = vpop.permute.xlu1 %2736 }
 0x41c   : > { %v8459_v3 = vpop.permute.xlu0 %2916 }
 0x41d   : > { %3219 = vrot.lane.b32.xlu1 %v3150_v45, %s6553_s26  ;;  %11344 = vst [vmem:[#allocation44_spill] sm:$0xff] %v8459_v3  ;;  %v8476_v3 = vmul.f32 %v8436_v41, %v7979_v23 }
 0x41f   : > { %v8408_v26 = vpop.permute.xlu1 %2740 }
 0x421   : > { %3223 = vrot.lane.b32.xlu1 %v3152_v1, %s6553_s26  ;;  %v3291_v1 = vmul.f32 %v8262_v52, %v8232_v21 }
 0x423   : > { %v8415_v44 = vpop.permute.xlu1 %2744 }
 0x424   : > { %11338 = vst [vmem:[#allocation38_spill] sm:$0xff] %v8415_v44  ;;  %v2594_v44 = vmul.f32 %v8436_v41, %v7951_v61 }
 0x425   : > { %3336 = vrot.lane.b32.xlu1 %v3287_v57, %s6553_s26  ;;  %v8434_v57 = vstv %s6125_s30  ;;  %s6139_s30 = sld [smem:[#allocation3 + $0xf]] }
 0x426   : > { %v2620_v61 = vmul.f32 %v8434_v57, %v8222_v6  ;;  %v2622_v23 = vmul.f32 %v8434_v57, %v8232_v21  ;;  %v8494_v6 = vstv %s2537_s8  ;;  %s6136_s8 = sld [smem:[#allocation3 + $0xc]] }
 0x427   : > { %v8422_v45 = vpop.permute.xlu1 %2748 }
 0x428   : > { %11340 = vst [vmem:[#allocation40_spill] sm:$0xff] %v8422_v45  ;;  %v3293_v45 = vmul.f32 %v8262_v52, %v8242_v37 }
 0x429   : > { %3340 = vrot.lane.b32.xlu1 %v3289_v2, %s6553_s26  ;;  %v2618_v2 = vmul.f32 %v8434_v57, %v8212_v62  ;;  %v2596_v62 = vmul.f32 %v8436_v41, %v7958_v12  ;;  %v8472_v12 = vmul.f32 %v8436_v41, %v7972_v19  ;;  %v2595_v19 = vmul.f32 %v8436_v41, %v8084_v24 }
 0x42a   : > { %v2764_v24 = vsel %vm2762_vm1, %v8208_v11, %v8377_v48 }
 0x42b   : > { %v8427_v53 = vpop.permute.xlu1 %2752  ;;  %v2642_v25 = vadd.f32 %v2618_v2, %v2593_v10  ;;  %v8480_v10 = vmul.f32 %v8436_v41, %v7986_v27  ;;  %v2597_v27 = vmul.f32 %v8436_v41, %v8100_v40  ;;  %v2599_v40 = vmul.f32 %v8436_v41, %v8112_v34 }
 0x42c   : > { %11341 = vst [vmem:[#allocation41_spill] sm:$0xff] %v8427_v53  ;;  %v2617_v53 = vmul.f32 %v8434_v57, %v8028_v5  ;;  %v2598_v5 = vmul.f32 %v8436_v41, %v7965_v15 }
 0x42d   : > { %3344 = vrot.lane.b32.xlu1 %v3291_v1, %s6553_s26  ;;  %v2592_v1 = vmul.f32 %v8436_v41, %v7939_v60  ;;  %v3295_v60 = vmul.f32 %v8262_v52, %v8252_v38  ;;  %v2800_v2 = vadd.f32 %v8370_v7, %v2642_v25  ;;  %v2623_v25 = vmul.f32 %v8434_v57, %v8054_v0 }
 0x42e   : > { %v3299_v0 = vmul.f32 %v8262_v52, %v8274_v63 }
 0x42f   : > { %v8438_v39 = vpop.permute.xlu1 %2756  ;;  %v2641_v15 = vadd.f32 %v2617_v53, %v2592_v1 }
 0x430   : > { %11343 = vst [vmem:[#allocation43_spill] sm:$0xff] %v8438_v39  ;;  %v2619_v39 = vmul.f32 %v8434_v57, %v8040_v56  ;;  %v2763_v56 = vsel %vm2762_vm1, %v8200_v58, %v8370_v7  ;;  %v8484_v58 = vmul.f32 %v8436_v41, %v7993_v33  ;;  %v3297_v33 = vmul.f32 %v8262_v52, %v8264_v43 }
 0x431   : > { %3348 = vrot.lane.b32.xlu1 %v3293_v45, %s6553_s26  ;;  %v2799_v1 = vadd.f32 %v2763_v56, %v2641_v15  ;;  %v2621_v7 = vmul.f32 %v8434_v57, %v8044_v42  ;;  %v8510_v56 = vpop.permute.xlu0 %3177  ;;  %v2646_v15 = vadd.f32 %v2622_v23, %v2597_v27 }
 0x432   : > { %v2643_v53 = vadd.f32 %v2619_v39, %v2594_v44 }
 0x433   : > { %v8461_v45 = vpop.permute.xlu1 %2760  ;;  %v2645_v27 = vadd.f32 %v2621_v7, %v2596_v62  ;;  %v2766_v7 = vsel %vm2762_vm1, %v8228_v18, %v8389_v32  ;;  %v2603_v18 = vmul.f32 %v8436_v41, %v8136_v59  ;;  %v2767_v59 = vsel %vm2762_vm1, %v8238_v29, %v8396_v46 }
 0x434   : > { %11345 = vst [vmem:[#allocation45_spill] sm:$0xff] %v8461_v45  ;;  %v2801_v42 = vadd.f32 %v2764_v24, %v2643_v53  ;;  %v2804_v24 = vadd.f32 %v8384_v47, %v2646_v15  ;;  %v2601_v15 = vmul.f32 %v8436_v41, %v8124_v4  ;;  %v2629_v29 = vmul.f32 %v8434_v57, %v8072_v17 }
 0x435   : > { %3352 = vrot.lane.b32.xlu1 %v3295_v60, %s6553_s26  ;;  %v2644_v60 = vadd.f32 %v2620_v61, %v2595_v19  ;;  %v2765_v19 = vsel %vm2762_vm1, %v8218_v54, %v8384_v47  ;;  %v2626_v54 = vmul.f32 %v8434_v57, %v8252_v38  ;;  %v2768_v17 = vsel %vm2762_vm1, %v8248_v8, %v8403_v9 }
 0x436   : > { %v2803_v62 = vadd.f32 %v2765_v19, %v2645_v27  ;;  %v2607_v8 = vmul.f32 %v8436_v41, %v8158_v14  ;;  %v11346_v14 = vld [vmem:[#allocation27_spill] sm:$0xff] }
 0x437   : > { %v2875_v45 = vpop.permute.xlu1 %2874  ;;  %v2802_v11 = vadd.f32 %v8377_v48, %v2644_v60 }
 0x438   : > { %v2920_v44 = vsel %vm2762_vm1, %v8331_v16, %v2875_v45  ;;  %v2957_v39 = vadd.f32 %v2875_v45, %v2800_v2  ;;  %v2624_v16 = vmul.f32 %v8434_v57, %v8242_v37 }
 0x439   : > { %v2956_v61 = vadd.f32 %v2920_v44, %v2799_v1  ;;  %3356 = vrot.lane.b32.xlu1 %v3297_v33, %s6553_s26  ;;  %v2647_v33 = vadd.f32 %v2623_v25, %v2598_v5  ;;  %v3301_v5 = vmul.f32 %v8262_v52, %v8284_v20 }
 0x43a   : > { %v2982_v45 = vadd.f32 %v8494_v6, %v2957_v39  ;;  %v2648_v44 = vadd.f32 %v2624_v16, %v2599_v40  ;;  %v2625_v39 = vmul.f32 %v8434_v57, %v8058_v51  ;;  %v2627_v16 = vmul.f32 %v8434_v57, %v8068_v55 }
 0x43b   : > { %v2981_v2 = vadd.f32 %v8494_v6, %v2956_v61  ;;  %v2879_v34 = vpop.permute.xlu1 %2878  ;;  %v2805_v4 = vadd.f32 %v2766_v7, %v2647_v33  ;;  %v2631_v7 = vmul.f32 %v8434_v57, %v8082_v22 }
 0x43c   : > { %v3006_v48 = vmax.f32 %v2982_v45, 0.0  ;;  %v2921_v23 = vsel %vm2762_vm1, %v8342_v36, %v2879_v34  ;;  %v2959_v1 = vadd.f32 %v2879_v34, %v2802_v11  ;;  %v8538_v36 = vpop.permute.xlu0 %3181  ;;  %v2628_v34 = vmul.f32 %v8434_v57, %v8264_v43 }
 0x43d   : > { %v3005_v53 = vmax.f32 %v2981_v2, 0.0  ;;  %v2958_v60 = vadd.f32 %v2921_v23, %v2801_v42  ;;  %3360 = vrot.lane.b32.xlu1 %v3299_v0, %s6553_s26  ;;  %v2806_v2 = vadd.f32 %v8389_v32, %v2648_v44  ;;  %v2650_v0 = vadd.f32 %v2626_v54, %v2601_v15 }
 0x43e   : > { %v2984_v61 = vadd.f32 %v8494_v6, %v2959_v1  ;;  %3031 = vst.msk [vmem:[%s8532_s10 + $0x8] sm:$0xff] %vm3030_vm2, %v3006_v48  ;;  %v3303_v32 = vmul.f32 %v8262_v52, %v8294_v31  ;;  %v2649_v27 = vadd.f32 %v2625_v39, %v8472_v12  ;;  %v2651_v33 = vadd.f32 %v2627_v16, %v8476_v3 }
 0x43f   : > { %3029 = vst [vmem:[%s8532_s10] sm:$0xff] %v3005_v53  ;;  %v2983_v47 = vadd.f32 %v8494_v6, %v2958_v60  ;;  %v2883_v51 = vpop.permute.xlu1 %2882  ;;  %v2808_v44 = vadd.f32 %v8396_v46, %v2650_v0  ;;  %v2630_v3 = vmul.f32 %v8434_v57, %v8274_v63  ;;  %v3305_v46 = vmul.f32 %v8262_v52, %v8302_v35 }
 0x440   : > { %v3008_v40 = vmax.f32 %v2984_v61, 0.0  ;;  %v2922_v25 = vsel %vm2762_vm1, %v8353_v49, %v2883_v51  ;;  %v2961_v11 = vadd.f32 %v2883_v51, %v2804_v24  ;;  %v8573_v53 = vpop.permute.xlu0 %3185  ;;  %v2652_v61 = vadd.f32 %v2628_v34, %v2603_v18  ;;  %v11347_v34 = vld [vmem:[#allocation34_spill] sm:$0xff] }
 0x441   : > { %v3007_v45 = vmax.f32 %v2983_v47, 0.0  ;;  %v2960_v42 = vadd.f32 %v2922_v25, %v2803_v62  ;;  %3364 = vrot.lane.b32.xlu1 %v3301_v5, %s6553_s26  ;;  %v2605_v5 = vmul.f32 %v8436_v41, %v8148_v50  ;;  %v2632_v15 = vmul.f32 %v8434_v57, %v8284_v20 }
 0x442   : > { %v2986_v49 = vadd.f32 %v8494_v6, %v2961_v11  ;;  %3033 = vst.msk [vmem:[%s8532_s10 + $0x60] sm:$0xff] %vm3030_vm2, %v3008_v40  ;;  %v2810_v11 = vadd.f32 %v8403_v9, %v2652_v61  ;;  %v2809_v50 = vadd.f32 %v2768_v17, %v2651_v33  ;;  %v3307_v9 = vmul.f32 %v8262_v52, %v8312_v28  ;;  %v11354_v17 = vld [vmem:[#allocation17_spill] sm:$0xff] }
 0x443   : > { %3032 = vst [vmem:[%s8532_s10 + $0x58] sm:$0xff] %v3007_v45  ;;  %v2985_v55 = vadd.f32 %v8494_v6, %v2960_v42  ;;  %v2887_v19 = vpop.permute.xlu1 %2886  ;;  %v2654_v16 = vadd.f32 %v2630_v3, %v2605_v5  ;;  %v2653_v0 = vadd.f32 %v2629_v29, %v8480_v10  ;;  %v2634_v10 = vmul.f32 %v8434_v57, %v8294_v31  ;;  %v11351_v29 = vld [vmem:[#allocation28_spill] sm:$0xff] }
 0x444   : > { %v3010_v48 = vmax.f32 %v2986_v49, 0.0  ;;  %v2923_v23 = vsel %vm2762_vm1, %v8364_v30, %v2887_v19  ;;  %v2963_v1 = vadd.f32 %v2887_v19, %v2806_v2  ;;  %v2807_v30 = vadd.f32 %v2767_v59, %v2649_v27  ;;  %v8606_v45 = vpop.permute.xlu0 %3189 }
 0x445   : > { %v3009_v60 = vmax.f32 %v2985_v55, 0.0  ;;  %v2962_v24 = vadd.f32 %v2923_v23, %v2805_v4  ;;  %3368 = vrot.lane.b32.xlu1 %v3303_v32, %s6553_s26  ;;  %v2769_v2 = vsel %vm2762_vm1, %v11346_v14, %v8408_v26  ;;  %v11348_v55 = vld [vmem:[#allocation15_spill] sm:$0xff]  ;;  %v2656_v23 = vadd.f32 %v2632_v15, %v2607_v8 }
 0x446   : > { %v2988_v62 = vadd.f32 %v8494_v6, %v2963_v1  ;;  %3035 = vst.msk [vmem:[%s8532_s10 + $0xb8] sm:$0xff] %vm3030_vm2, %v3010_v48  ;;  %v2608_v19 = vmul.f32 %v8436_v41, %v11348_v55  ;;  %v2812_v48 = vadd.f32 %v8408_v26, %v2654_v16  ;;  %v2655_v1 = vadd.f32 %v2631_v7, %v8484_v58  ;;  %v11350_v26 = vld [vmem:[#allocation38_spill] sm:$0xff]  ;;  %v11355_v7 = vld [vmem:[#allocation16_spill] sm:$0xff] }
 0x447   : > { %3034 = vst [vmem:[%s8532_s10 + $0xb0] sm:$0xff] %v3009_v60  ;;  %v2987_v12 = vadd.f32 %v8494_v6, %v2962_v24  ;;  %v2891_v39 = vpop.permute.xlu1 %2890  ;;  %v2811_v33 = vadd.f32 %v2769_v2, %v2653_v0  ;;  %v2770_v58 = vsel %vm2762_vm1, %v11351_v29, %v11350_v26  ;;  %v2814_v5 = vadd.f32 %v11350_v26, %v2656_v23  ;;  %v11360_v0 = vld [vmem:[#allocation22_spill] sm:$0xff] }
 0x448   : > { %v3012_v54 = vmax.f32 %v2988_v62, 0.0  ;;  %v2924_v47 = vsel %vm2762_vm1, %v8374_v13, %v2891_v39  ;;  %v2965_v51 = vadd.f32 %v2891_v39, %v2808_v44  ;;  %v11349_v44 = vld [vmem:[#allocation33_spill] sm:$0xff]  ;;  %v2813_v15 = vadd.f32 %v2770_v58, %v2655_v1 }
 0x449   : > { %v3011_v40 = vmax.f32 %v2987_v12, 0.0  ;;  %v2964_v25 = vadd.f32 %v2924_v47, %v2807_v30  ;;  %3372 = vrot.lane.b32.xlu1 %v3305_v46, %s6553_s26  ;;  %v3309_v61 = vmul.f32 %v8262_v52, %v11349_v44  ;;  %v11352_v30 = vld [vmem:[#allocation35_spill] sm:$0xff]  ;;  %v11353_v39 = vld [vmem:[#allocation21_spill] sm:$0xff]  ;;  %v8641_v47 = vpop.permute.xlu0 %3193  ;;  %v2611_v55 = vmul.f32 %v8436_v41, %v11360_v0 }
 0x44a   : > { %v2990_v13 = vadd.f32 %v8494_v6, %v2965_v51  ;;  %3037 = vst.msk [vmem:[%s8532_s10 + $0x110] sm:$0xff] %vm3030_vm2, %v3012_v54  ;;  %v2609_v46 = vmul.f32 %v8436_v41, %v11353_v39  ;;  %v2633_v54 = vmul.f32 %v8434_v57, %v11354_v17  ;;  %v11363_v58 = vld [vmem:[#allocation37_spill] sm:$0xff]  ;;  %v11365_v39 = vld [vmem:[#allocation19_spill] sm:$0xff] }
 0x44b   : > { %3036 = vst [vmem:[%s8532_s10 + $0x108] sm:$0xff] %v3011_v40  ;;  %v2989_v22 = vadd.f32 %v8494_v6, %v2964_v25  ;;  %v2895_v42 = vpop.permute.xlu1 %2894  ;;  %v2610_v40 = vmul.f32 %v8436_v41, %v11355_v7  ;;  %v11356_v25 = vld [vmem:[#allocation18_spill] sm:$0xff] }
 0x44c   : > { %v3014_v18 = vmax.f32 %v2990_v13, 0.0  ;;  %v2925_v49 = vsel %vm2762_vm1, %v11347_v34, %v2895_v42  ;;  %v2967_v4 = vadd.f32 %v2895_v42, %v2810_v11  ;;  %v2635_v11 = vmul.f32 %v8434_v57, %v11356_v25  ;;  %v11357_v42 = vld [vmem:[#allocation40_spill] sm:$0xff] }
 0x44d   : > { %v3013_v32 = vmax.f32 %v2989_v22, 0.0  ;;  %v2966_v59 = vadd.f32 %v2925_v49, %v2809_v50  ;;  %3376 = vrot.lane.b32.xlu1 %v3307_v9, %s6553_s26  ;;  %v2658_v13 = vadd.f32 %v2634_v10, %v2609_v46  ;;  %v2636_v50 = vmul.f32 %v8434_v57, %v8302_v35  ;;  %v11358_v9 = vld [vmem:[#allocation29_spill] sm:$0xff] }
 0x44e   : > { %v2992_v27 = vadd.f32 %v8494_v6, %v2967_v4  ;;  %3039 = vst.msk [vmem:[%s8532_s10 + $0x168] sm:$0xff] %vm3030_vm2, %v3014_v18  ;;  %v2771_v14 = vsel %vm2762_vm1, %v11358_v9, %v11357_v42  ;;  %v11359_v18 = vld [vmem:[#allocation36_spill] sm:$0xff]  ;;  %v2657_v4 = vadd.f32 %v2633_v54, %v2608_v19  ;;  %v2638_v10 = vmul.f32 %v8434_v57, %v8312_v28  ;;  %v11369_v9 = vld [vmem:[#allocation39_spill] sm:$0xff] }
 0x44f   : > { %3038 = vst [vmem:[%s8532_s10 + $0x160] sm:$0xff] %v3013_v32  ;;  %v2991_v60 = vadd.f32 %v8494_v6, %v2966_v59  ;;  %v2899_v24 = vpop.permute.xlu1 %2898  ;;  %v2816_v59 = vadd.f32 %v11357_v42, %v2658_v13  ;;  %v2637_v28 = vmul.f32 %v8434_v57, %v11365_v39 }
 0x450   : > { %v3016_v62 = vmax.f32 %v2992_v27, 0.0  ;;  %v2926_v3 = vsel %vm2762_vm1, %v11352_v30, %v2899_v24  ;;  %v2969_v12 = vadd.f32 %v2899_v24, %v2812_v48  ;;  %v2659_v48 = vadd.f32 %v2635_v11, %v2610_v40  ;;  %v11361_v24 = vld [vmem:[#allocation41_spill] sm:$0xff] }
 0x451   : > { %v3015_v51 = vmax.f32 %v2991_v60, 0.0  ;;  %v2968_v52 = vadd.f32 %v2926_v3, %v2811_v33  ;;  %3380 = vrot.lane.b32.xlu1 %v3309_v61, %s6553_s26  ;;  %v2815_v1 = vadd.f32 %v2771_v14, %v2657_v4  ;;  %v2660_v27 = vadd.f32 %v2636_v50, %v2611_v55  ;;  %v8667_v33 = vpop.permute.xlu0 %3197  ;;  %v11362_v61 = vld [vmem:[#allocation30_spill] sm:$0xff]  ;;  %v11364_v3 = vld [vmem:[#allocation23_spill] sm:$0xff] }
 0x452   : > { %v2994_v8 = vadd.f32 %v8494_v6, %v2969_v12  ;;  %3041 = vst.msk [vmem:[%s8532_s10 + $0x1c0] sm:$0xff] %vm3030_vm2, %v3016_v62  ;;  %v2772_v26 = vsel %vm2762_vm1, %v11362_v61, %v11361_v24  ;;  %v2613_v12 = vmul.f32 %v8436_v41, %v11364_v3  ;;  %v11367_v50 = vld [vmem:[#allocation43_spill] sm:$0xff] }
 0x453   : > { %3040 = vst [vmem:[%s8532_s10 + $0x1b8] sm:$0xff] %v3015_v51  ;;  %v2993_v16 = vadd.f32 %v8494_v6, %v2968_v52  ;;  %v2903_v22 = vpop.permute.xlu1 %2902  ;;  %v2818_v54 = vadd.f32 %v11361_v24, %v2660_v27  ;;  %v8683_v51 = vld [vmem:[#allocation2 + $0xa0] sm:$0xff]  ;;  %v2817_v25 = vadd.f32 %v2772_v26, %v2659_v48  ;;  %v8709_v48 = vld [vmem:[#allocation2 + $0xb0] sm:$0xff]  ;;  %v11373_v24 = vld [vmem:[#allocation42_spill] sm:$0xff] }
 0x454   : > { %v3018_v2 = vmax.f32 %v2994_v8, 0.0  ;;  %v2927_v34 = vsel %vm2762_vm1, %v11359_v18, %v2903_v22  ;;  %v2971_v49 = vadd.f32 %v2903_v22, %v2814_v5  ;;  %v2612_v52 = vmul.f32 %v8683_v51, %v8436_v41  ;;  %v11366_v5 = vld [vmem:[#allocation24_spill] sm:$0xff]  ;;  %v11371_v27 = vld [vmem:[#allocation45_spill] sm:$0xff] }
 0x455   : > { %v3017_v32 = vmax.f32 %v2993_v16, 0.0  ;;  %v2970_v35 = vadd.f32 %v2927_v34, %v2813_v15  ;;  %v2615_v7 = vmul.f32 %v8436_v41, %v11366_v5  ;;  %v2662_v11 = vadd.f32 %v2638_v10, %v2613_v12  ;;  %v11368_v16 = vld [vmem:[#allocation31_spill] sm:$0xff]  ;;  %v8701_v34 = vpop.permute.xlu0 %3201  ;;  %v11372_v10 = vld [vmem:[#allocation32_spill] sm:$0xff] }
 0x456   : > { %v2996_v23 = vadd.f32 %v8494_v6, %v2971_v49  ;;  %3043 = vst.msk [vmem:[%s8532_s10 + $0x218] sm:$0xff] %vm3030_vm2, %v3018_v2  ;;  %v2640_v8 = vmul.f32 %v8434_v57, %v11349_v44  ;;  %v2773_v22 = vsel %vm2762_vm1, %v11368_v16, %v11367_v50  ;;  %v2661_v18 = vadd.f32 %v2637_v28, %v2612_v52  ;;  %v11370_v49 = vld [vmem:[#allocation20_spill] sm:$0xff] }
 0x457   : > { %3042 = vst [vmem:[%s8532_s10 + $0x210] sm:$0xff] %v3017_v32  ;;  %v2995_v19 = vadd.f32 %v8494_v6, %v2970_v35  ;;  %v2907_v60 = vpop.permute.xlu1 %2906  ;;  %v2639_v44 = vmul.f32 %v8434_v57, %v11370_v49  ;;  %v2820_v55 = vadd.f32 %v11367_v50, %v2662_v11 }
 0x458   : > { %v3020_v29 = vmax.f32 %v2996_v23, 0.0  ;;  %v2928_v62 = vsel %vm2762_vm1, %v11363_v58, %v2907_v60  ;;  %v2973_v30 = vadd.f32 %v2907_v60, %v2816_v59  ;;  %v2819_v35 = vadd.f32 %v2773_v22, %v2661_v18 }
 0x459   : > { %v3019_v46 = vmax.f32 %v2995_v19, 0.0  ;;  %v2972_v17 = vadd.f32 %v2928_v62, %v2815_v1  ;;  %v2664_v59 = vadd.f32 %v2640_v8, %v2615_v7  ;;  %v2614_v23 = vmul.f32 %v8709_v48, %v8436_v41  ;;  %v8724_v12 = vpop.permute.xlu0 %3205 }
 0x45a   : > { %v2998_v40 = vadd.f32 %v8494_v6, %v2973_v30  ;;  %3045 = vst.msk [vmem:[%s8532_s10 + $0x270] sm:$0xff] %vm3030_vm2, %v3020_v29  ;;  %v2774_v19 = vsel %vm2762_vm1, %v11372_v10, %v11371_v27 }
 0x45b   : > { %3044 = vst [vmem:[%s8532_s10 + $0x268] sm:$0xff] %v3019_v46  ;;  %v2997_v15 = vadd.f32 %v8494_v6, %v2972_v17  ;;  %v2911_v13 = vpop.permute.xlu1 %2910  ;;  %v2663_v29 = vadd.f32 %v2639_v44, %v2614_v23  ;;  %v2822_v41 = vadd.f32 %v11371_v27, %v2664_v59  ;;  %v11374_v17 = vld [vmem:[#allocation44_spill] sm:$0xff]  ;;  %v8768_v23 = vstv %s6128_s11  ;;  %v8772_v27 = vld [vmem:[#allocation2 + $0xc0] sm:$0xff]  ;;  %s6142_s11 = sld [smem:[#allocation3 + $0x12]] }
 0x45c   : > { %v3022_v42 = vmax.f32 %v2998_v40, 0.0  ;;  %v2929_v14 = vsel %vm2762_vm1, %v11369_v9, %v2911_v13  ;;  %v2975_v2 = vadd.f32 %v2911_v13, %v2818_v54  ;;  %11376 = vst [vmem:[#allocation27_spill] sm:$0xff] %v8772_v27 }
 0x45d   : > { %v3021_v4 = vmax.f32 %v2997_v15, 0.0  ;;  %v2974_v0 = vadd.f32 %v2929_v14, %v2817_v25  ;;  %v2821_v3 = vadd.f32 %v2774_v19, %v2663_v29  ;;  %v8735_v15 = vpop.permute.xlu0 %3209  ;;  %v8776_v19 = vld [vmem:[#allocation2 + $0x8] sm:$0xff] }
 0x45e   : > { %v3000_v32 = vadd.f32 %v8494_v6, %v2975_v2  ;;  %3047 = vst.msk [vmem:[%s8532_s10 + $0x2c8] sm:$0xff] %vm3030_vm2, %v3022_v42 }
 0x45f   : > { %3046 = vst [vmem:[%s8532_s10 + $0x2c0] sm:$0xff] %v3021_v4  ;;  %v2999_v57 = vadd.f32 %v8494_v6, %v2974_v0  ;;  %v2915_v1 = vpop.permute.xlu1 %2914 }
 0x460   : > { %v3024_v60 = vmax.f32 %v3000_v32, 0.0  ;;  %v2930_v61 = vsel %vm2762_vm1, %v11373_v24, %v2915_v1  ;;  %v2977_v26 = vadd.f32 %v2915_v1, %v2820_v55 }
 0x461   : > { %v3023_v58 = vmax.f32 %v2999_v57, 0.0  ;;  %v2976_v62 = vadd.f32 %v2930_v61, %v2819_v35  ;;  %v8740_v16 = vpop.permute.xlu0 %3213  ;;  %v8764_v35 = vstv %s6129_s27  ;;  %v11375_v57 = vld [vmem:[#allocation25_spill] sm:$0xff]  ;;  %v8782_v61 = vld [vmem:[#allocation2] sm:$0xff]  ;;  %s6557_s27 = smov 35  }
 0x462   : > { %v3002_v30 = vadd.f32 %v8494_v6, %v2977_v26  ;;  %3049 = vst.msk [vmem:[%s8532_s10 + $0x320] sm:$0xff] %vm3030_vm2, %v3024_v60  ;;  %v3081_v1 = vmul.f32 %v8764_v35, %v11375_v57  ;;  %v3080_v10 = vmul.f32 %v8772_v27, %v8764_v35  ;;  %v3056_v60 = vmul.f32 %v8776_v19, %v8768_v23 }
 0x463   : > { %3048 = vst [vmem:[%s8532_s10 + $0x318] sm:$0xff] %v3023_v58  ;;  %v3001_v39 = vadd.f32 %v8494_v6, %v2976_v62  ;;  %v2919_v28 = vpop.permute.xlu1 %2918  ;;  %v3055_v26 = vmul.f32 %v8782_v61, %v8768_v23 }
 0x464   : > { %v3026_v46 = vmax.f32 %v3002_v30, 0.0  ;;  %v2931_v54 = vsel %vm2762_vm1, %v11374_v17, %v2919_v28  ;;  %v2979_v52 = vadd.f32 %v2919_v28, %v2822_v41  ;;  %v3105_v58 = vadd.f32 %v3081_v1, %v3056_v60  ;;  %v11377_v41 = vld [vmem:[#allocation26_spill] sm:$0xff] }
 0x465   : > { %v3025_v5 = vmax.f32 %v3001_v39, 0.0  ;;  %v2978_v7 = vadd.f32 %v2931_v54, %v2821_v3  ;;  %v8746_v9 = vpop.permute.xlu0 %3217  ;;  %v3083_v30 = vmul.f32 %v8764_v35, %v11377_v41  ;;  %v3104_v3 = vadd.f32 %v3080_v10, %v3055_v26  ;;  %v8792_v39 = vld [vmem:[#allocation2 + $0xd0] sm:$0xff]  ;;  %v8796_v17 = vld [vmem:[#allocation2 + $0x18] sm:$0xff] }
 0x466   : > { %v3004_v40 = vadd.f32 %v8494_v6, %v2979_v52  ;;  %3051 = vst.msk [vmem:[%s8532_s10 + $0x378] sm:$0xff] %vm3030_vm2, %v3026_v46  ;;  %11378 = vst [vmem:[#allocation34_spill] sm:$0xff] %v8792_v39  ;;  %v3082_v28 = vmul.f32 %v8792_v39, %v8764_v35  ;;  %v3058_v54 = vmul.f32 %v8796_v17, %v8768_v23  ;;  %v8800_v52 = vld [vmem:[#allocation2 + $0x10] sm:$0xff] }
 0x467   : > { %3050 = vst [vmem:[%s8532_s10 + $0x370] sm:$0xff] %v3025_v5  ;;  %v3003_v25 = vadd.f32 %v8494_v6, %v2978_v7  ;;  %v3180_v11 = vpop.permute.xlu1 %3179  ;;  %v3085_v7 = vmul.f32 %v8764_v35, %v8232_v21  ;;  %v3087_v39 = vmul.f32 %v8764_v35, %v8242_v37 }
 0x468   : > { %v3028_v8 = vmax.f32 %v3004_v40, 0.0  ;;  %v3225_v62 = vsel %vm2762_vm1, %v8510_v56, %v3180_v11  ;;  %v3262_v46 = vadd.f32 %v3180_v11, %v3105_v58  ;;  %v3057_v56 = vmul.f32 %v8800_v52, %v8768_v23  ;;  %v8806_v40 = vld [vmem:[#allocation2 + $0x20] sm:$0xff]  ;;  %v8817_v58 = vld [vmem:[#allocation2 + $0x28] sm:$0xff] }
 0x469   : > { %v3027_v13 = vmax.f32 %v3003_v25, 0.0  ;;  %v8750_v6 = vpop.permute.xlu0 %3221  ;;  %v3261_v5 = vadd.f32 %v3225_v62, %v3104_v3  ;;  %v3059_v25 = vmul.f32 %v8806_v40, %v8768_v23  ;;  %v8810_v11 = vstv %s6148_s17  ;;  %v8821_v62 = vld [vmem:[#allocation2 + $0xe0] sm:$0xff]  ;;  %s6143_s17 = sld [smem:[#allocation3 + $0x13]] }
 0x46a   : > { %3053 = vst.msk [vmem:[%s8532_s10 + $0x3d0] sm:$0xff] %vm3030_vm2, %v3028_v8  ;;  %v3106_v26 = vadd.f32 %v3082_v28, %v3057_v56  ;;  %v3060_v21 = vmul.f32 %v8817_v58, %v8768_v23  ;;  %11379 = vst [vmem:[#allocation15_spill] sm:$0xff] %v8821_v62  ;;  %v3084_v41 = vmul.f32 %v8821_v62, %v8764_v35 }
 0x46b   : > { %3052 = vst [vmem:[%s8532_s10 + $0x3c8] sm:$0xff] %v3027_v13  ;;  %v3184_v50 = vpop.permute.xlu1 %3183  ;;  %v3107_v13 = vadd.f32 %v3083_v30, %v3058_v54  ;;  %v8825_v54 = vld [vmem:[#allocation2 + $0x30] sm:$0xff] }
 0x46c   : > { %v3226_v57 = vsel %vm2762_vm1, %v8538_v36, %v3184_v50  ;;  %11380 = vst [vmem:[#allocation33_spill] sm:$0xff] %v8825_v54  ;;  %v3061_v36 = vmul.f32 %v8825_v54, %v8768_v23  ;;  %v3108_v54 = vadd.f32 %v3084_v41, %v3059_v25 }
 0x46d   : > { %v3335_v49 = vpop.permute.xlu0 %3334  ;;  %v3264_v3 = vadd.f32 %v3184_v50, %v3107_v13  ;;  %v3263_v56 = vadd.f32 %v3226_v57, %v3106_v26 }
 0x46f   : > { %v8742_v22 = vpop.permute.xlu1 %3187 }
 0x470   : > { %v3227_v13 = vsel %vm2762_vm1, %v8573_v53, %v8742_v22 }
 0x471   : > { %v3339_v4 = vpop.permute.xlu0 %3338  ;;  %v3265_v25 = vadd.f32 %v3227_v13, %v3108_v54  ;;  %v8876_v13 = vld [vmem:[#allocation2 + $0x110] sm:$0xff] }
 0x473   : > { %v8744_v42 = vpop.permute.xlu1 %3191 }
 0x475   : > { %v8762_v32 = vpop.permute.xlu0 %3342 }
 0x477   : > { %v8748_v14 = vpop.permute.xlu1 %3195 }
 0x479   : > { %v8780_v24 = vpop.permute.xlu0 %3346 }
 0x47b   : > { %v8752_v2 = vpop.permute.xlu1 %3199 }
 0x47d   : > { %v8815_v60 = vpop.permute.xlu0 %3350 }
 0x47f   : > { %v8754_v18 = vpop.permute.xlu1 %3203 }
 0x483   : > { %v8756_v44 = vpop.permute.xlu1 %3207 }
 0x487   : > { %v8758_v0 = vpop.permute.xlu1 %3211 }
 0x48b   : > { %v8760_v55 = vpop.permute.xlu1 %3215 }
 0x48f   : > { %v8766_v59 = vpop.permute.xlu1 %3219 }
 0x493   : > { %v8786_v29 = vpop.permute.xlu1 %3223 }
 0x497   : > { %v3337_v8 = vpop.permute.xlu1 %3336 }
 0x498   : > { %v3382_v1 = vsel %vm2762_vm1, %v3335_v49, %v3337_v8  ;;  %v3419_v10 = vadd.f32 %v3337_v8, %v3262_v46  ;;  %v8829_v49 = vld [vmem:[#allocation2 + $0xf0] sm:$0xff]  ;;  %v3109_v8 = vadd.f32 %v3085_v7, %v3060_v21  ;;  %v8846_v21 = vld [vmem:[#allocation2 + $0x40] sm:$0xff] }
 0x499   : > { %v3418_v30 = vadd.f32 %v3382_v1, %v3261_v5  ;;  %11381 = vst [vmem:[#allocation38_spill] sm:$0xff] %v8829_v49  ;;  %v3086_v28 = vmul.f32 %v8829_v49, %v8764_v35  ;;  %v8841_v49 = vld [vmem:[#allocation2 + $0x38] sm:$0xff]  ;;  %v3063_v53 = vmul.f32 %v8846_v21, %v8768_v23 }
 0x49a   : > { %v3444_v46 = vadd.f32 %v8810_v11, %v3419_v10  ;;  %v3062_v7 = vmul.f32 %v8841_v49, %v8768_v23  ;;  %v3266_v37 = vadd.f32 %v8742_v22, %v3109_v8 }
 0x49b   : > { %v3443_v5 = vadd.f32 %v8810_v11, %v3418_v30  ;;  %v3341_v50 = vpop.permute.xlu1 %3340  ;;  %v3110_v26 = vadd.f32 %v3086_v28, %v3061_v36  ;;  %v3228_v36 = vsel %vm2762_vm1, %v8606_v45, %v8744_v42  ;;  %v8872_v45 = vld [vmem:[#allocation2 + $0x50] sm:$0xff] }
 0x49c   : > { %v3468_v1 = vmax.f32 %v3444_v46, 0.0  ;;  %v3383_v62 = vsel %vm2762_vm1, %v3339_v4, %v3341_v50  ;;  %v3421_v27 = vadd.f32 %v3341_v50, %v3264_v3  ;;  %v8852_v4 = vpop.permute.xlu0 %3354  ;;  %v3111_v41 = vadd.f32 %v3087_v39, %v3062_v7 }
 0x49d   : > { %v3467_v57 = vmax.f32 %v3443_v5, 0.0  ;;  %v3420_v10 = vadd.f32 %v3383_v62, %v3263_v56  ;;  %v3089_v62 = vmul.f32 %v8764_v35, %v8252_v38  ;;  %v8863_v56 = vld [vmem:[#allocation2 + $0x48] sm:$0xff]  ;;  %v8867_v38 = vld [vmem:[#allocation2 + $0x100] sm:$0xff] }
 0x49e   : > { %v3446_v30 = vadd.f32 %v8810_v11, %v3421_v27  ;;  %3517 = vrot.lane.b32.xlu1 %v3468_v1, %s6555_s19  ;;  %v3064_v39 = vmul.f32 %v8863_v56, %v8768_v23  ;;  %v3088_v54 = vmul.f32 %v8867_v38, %v8764_v35  ;;  %v3268_v50 = vadd.f32 %v8744_v42, %v3111_v41 }
 0x49f   : > { %v3445_v22 = vadd.f32 %v8810_v11, %v3420_v10  ;;  %v3345_v3 = vpop.permute.xlu1 %3344  ;;  %3515 = vrot.lane.b32.xlu0 %v3467_v57, %s6555_s19  ;;  %v3090_v1 = vmul.f32 %v8876_v13, %v8764_v35  ;;  %v3267_v57 = vadd.f32 %v3228_v36, %v3110_v26 }
 0x4a0   : > { %v3470_v27 = vmax.f32 %v3446_v30, 0.0  ;;  %v3384_v28 = vsel %vm2762_vm1, %v8762_v32, %v3345_v3  ;;  %v3423_v46 = vadd.f32 %v3345_v3, %v3266_v37  ;;  %v3065_v32 = vmul.f32 %v8872_v45, %v8768_v23 }
 0x4a1   : > { %v3469_v8 = vmax.f32 %v3445_v22, 0.0  ;;  %v3422_v5 = vadd.f32 %v3384_v28, %v3265_v25  ;;  %v3113_v10 = vadd.f32 %v3089_v62, %v3064_v39  ;;  %v3091_v37 = vmul.f32 %v8764_v35, %v8264_v43  ;;  %v8893_v62 = vld [vmem:[#allocation2 + $0x58] sm:$0xff] }
 0x4a2   : > { %v3448_v7 = vadd.f32 %v8810_v11, %v3423_v46  ;;  %3521 = vrot.lane.b32.xlu1 %v3470_v27, %s6555_s19  ;;  %v3229_v25 = vsel %vm2762_vm1, %v8641_v47, %v8748_v14  ;;  %v8891_v27 = vpop.permute.xlu0 %3358  ;;  %v3112_v26 = vadd.f32 %v3088_v54, %v3063_v53  ;;  %v3066_v43 = vmul.f32 %v8893_v62, %v8768_v23 }
 0x4a3   : > { %v3447_v42 = vadd.f32 %v8810_v11, %v3422_v5  ;;  %v3349_v30 = vpop.permute.xlu1 %3348  ;;  %3519 = vrot.lane.b32.xlu0 %v3469_v8, %s6555_s19  ;;  %v3270_v46 = vadd.f32 %v8748_v14, %v3113_v10  ;;  %v3114_v39 = vadd.f32 %v3090_v1, %v3065_v32  ;;  %v8898_v8 = vld [vmem:[#allocation2 + $0x60] sm:$0xff]  ;;  %v3093_v5 = vmul.f32 %v8764_v35, %v8274_v63  ;;  %v8913_v10 = vld [vmem:[#allocation2 + $0x68] sm:$0xff] }
 0x4a4   : > { %v3472_v41 = vmax.f32 %v3448_v7, 0.0  ;;  %v3385_v22 = vsel %vm2762_vm1, %v8780_v24, %v3349_v30  ;;  %v3425_v3 = vadd.f32 %v3349_v30, %v3268_v50  ;;  %v3067_v47 = vmul.f32 %v8898_v8, %v8768_v23  ;;  %v8917_v63 = vld [vmem:[#allocation2 + $0x120] sm:$0xff] }
 0x4a5   : > { %v3471_v36 = vmax.f32 %v3447_v42, 0.0  ;;  %v3424_v28 = vadd.f32 %v3385_v22, %v3267_v57  ;;  %v3269_v53 = vadd.f32 %v3229_v25, %v3112_v26  ;;  %v3115_v54 = vadd.f32 %v3091_v37, %v3066_v43  ;;  %v8926_v22 = vld [vmem:[#allocation2 + $0x130] sm:$0xff] }
 0x4a6   : > { %v3450_v24 = vadd.f32 %v8810_v11, %v3425_v3  ;;  %3525 = vrot.lane.b32.xlu1 %v3472_v41, %s6555_s19  ;;  %v3230_v14 = vsel %vm2762_vm1, %v8667_v33, %v8752_v2  ;;  %v3068_v37 = vmul.f32 %v8913_v10, %v8768_v23  ;;  %v3092_v42 = vmul.f32 %v8917_v63, %v8764_v35  ;;  %v8922_v33 = vld [vmem:[#allocation2 + $0x70] sm:$0xff]  ;;  %v3363_v43 = vpop.permute.xlu0 %3362 }
 0x4a7   : > { %v3449_v50 = vadd.f32 %v8810_v11, %v3424_v28  ;;  %v3353_v7 = vpop.permute.xlu1 %3352  ;;  %3523 = vrot.lane.b32.xlu0 %v3471_v36, %s6555_s19  ;;  %v3272_v41 = vadd.f32 %v8752_v2, %v3115_v54  ;;  %v3094_v3 = vmul.f32 %v8926_v22, %v8764_v35  ;;  %v3271_v36 = vadd.f32 %v3230_v14, %v3114_v39  ;;  %v8941_v39 = vld [vmem:[#allocation2 + $0x78] sm:$0xff] }
 0x4a8   : > { %v3474_v32 = vmax.f32 %v3450_v24, 0.0  ;;  %v3386_v1 = vsel %vm2762_vm1, %v8815_v60, %v3353_v7  ;;  %v3427_v57 = vadd.f32 %v3353_v7, %v3270_v46  ;;  %v3069_v60 = vmul.f32 %v8922_v33, %v8768_v23 }
 0x4a9   : > { %v3473_v30 = vmax.f32 %v3449_v50, 0.0  ;;  %v3426_v25 = vadd.f32 %v3386_v1, %v3269_v53  ;;  %v3117_v28 = vadd.f32 %v3093_v5, %v3068_v37  ;;  %v3095_v2 = vmul.f32 %v8764_v35, %v8284_v20  ;;  %v8946_v37 = vld [vmem:[#allocation2 + $0x80] sm:$0xff] }
 0x4aa   : > { %v3452_v26 = vadd.f32 %v8810_v11, %v3427_v57  ;;  %3529 = vrot.lane.b32.xlu1 %v3474_v32, %s6555_s19  ;;  %v3231_v53 = vsel %vm2762_vm1, %v8701_v34, %v8754_v18  ;;  %v3116_v32 = vadd.f32 %v3092_v42, %v3067_v47  ;;  %v3070_v20 = vmul.f32 %v8941_v39, %v8768_v23 }
 0x4ab   : > { %v3451_v46 = vadd.f32 %v8810_v11, %v3426_v25  ;;  %v3357_v24 = vpop.permute.xlu1 %3356  ;;  %3527 = vrot.lane.b32.xlu0 %v3473_v30, %s6555_s19  ;;  %v3274_v1 = vadd.f32 %v8754_v18, %v3117_v28  ;;  %v3118_v57 = vadd.f32 %v3094_v3, %v3069_v60  ;;  %v3071_v34 = vmul.f32 %v8946_v37, %v8768_v23  ;;  %v8961_v28 = vld [vmem:[#allocation2 + $0x88] sm:$0xff] }
 0x4ac   : > { %v3476_v54 = vmax.f32 %v3452_v26, 0.0  ;;  %v3387_v50 = vsel %vm2762_vm1, %v8852_v4, %v3357_v24  ;;  %v3429_v7 = vadd.f32 %v3357_v24, %v3272_v41  ;;  %v3273_v4 = vadd.f32 %v3231_v53, %v3116_v32 }
 0x4ad   : > { %v3475_v5 = vmax.f32 %v3451_v46, 0.0  ;;  %v3428_v14 = vadd.f32 %v3387_v50, %v3271_v36  ;;  %v3119_v47 = vadd.f32 %v3095_v2, %v3070_v20  ;;  %v3097_v42 = vmul.f32 %v8764_v35, %v8294_v31  ;;  %v3367_v36 = vpop.permute.xlu0 %3366  ;;  %v8965_v2 = vld [vmem:[#allocation2 + $0x140] sm:$0xff]  ;;  %v8974_v50 = vld [vmem:[#allocation2 + $0x150] sm:$0xff] }
 0x4ae   : > { %v3454_v30 = vadd.f32 %v8810_v11, %v3429_v7  ;;  %3533 = vrot.lane.b32.xlu1 %v3476_v54, %s6555_s19  ;;  %v3232_v18 = vsel %vm2762_vm1, %v8724_v12, %v8756_v44  ;;  %v3072_v31 = vmul.f32 %v8961_v28, %v8768_v23  ;;  %v3096_v46 = vmul.f32 %v8965_v2, %v8764_v35  ;;  %v8970_v54 = vld [vmem:[#allocation2 + $0x90] sm:$0xff] }
 0x4af   : > { %v3453_v25 = vadd.f32 %v8810_v11, %v3428_v14  ;;  %v3361_v41 = vpop.permute.xlu1 %3360  ;;  %3531 = vrot.lane.b32.xlu0 %v3475_v5, %s6555_s19  ;;  %v3276_v12 = vadd.f32 %v8756_v44, %v3119_v47  ;;  %11382 = vst [vmem:[#allocation28_spill] sm:$0xff] %v8970_v54  ;;  %11383 = vst [vmem:[#allocation35_spill] sm:$0xff] %v8974_v50  ;;  %v3098_v7 = vmul.f32 %v8974_v50, %v8764_v35  ;;  %v8980_v14 = vld [vmem:[#allocation2 + $0x158] sm:$0xff] }
 0x4b0   : > { %v3478_v60 = vmax.f32 %v3454_v30, 0.0  ;;  %v3388_v3 = vsel %vm2762_vm1, %v8891_v27, %v3361_v41  ;;  %v3431_v26 = vadd.f32 %v3361_v41, %v3274_v1  ;;  %v3073_v27 = vmul.f32 %v8970_v54, %v8768_v23  ;;  %11384 = vst [vmem:[#allocation21_spill] sm:$0xff] %v8980_v14 }
 0x4b1   : > { %v3477_v24 = vmax.f32 %v3453_v25, 0.0  ;;  %v3430_v53 = vadd.f32 %v3388_v3, %v3273_v4  ;;  %v3275_v20 = vadd.f32 %v3232_v18, %v3118_v57  ;;  %v3121_v5 = vadd.f32 %v3097_v42, %v3072_v31  ;;  %v8990_v42 = vld [vmem:[#allocation2 + $0x98] sm:$0xff] }
 0x4b2   : > { %v3456_v32 = vadd.f32 %v8810_v11, %v3431_v26  ;;  %3537 = vrot.lane.b32.xlu1 %v3478_v60, %s6555_s19  ;;  %v3099_v44 = vmul.f32 %v8980_v14, %v8764_v35  ;;  %v3233_v4 = vsel %vm2762_vm1, %v8735_v15, %v8758_v0  ;;  %v3120_v57 = vadd.f32 %v3096_v46, %v3071_v34  ;;  %v3371_v15 = vpop.permute.xlu0 %3370 }
 0x4b3   : > { %v3455_v1 = vadd.f32 %v8810_v11, %v3430_v53  ;;  %v3365_v30 = vpop.permute.xlu1 %3364  ;;  %3535 = vrot.lane.b32.xlu0 %v3477_v24, %s6555_s19  ;;  %11385 = vst [vmem:[#allocation17_spill] sm:$0xff] %v8990_v42  ;;  %v3074_v18 = vmul.f32 %v8990_v42, %v8768_v23  ;;  %v3278_v26 = vadd.f32 %v8758_v0, %v3121_v5  ;;  %v9007_v5 = vld [vmem:[#allocation2 + $0xa8] sm:$0xff] }
 0x4b4   : > { %v3480_v47 = vmax.f32 %v3456_v32, 0.0  ;;  %v3389_v25 = vsel %vm2762_vm1, %v3363_v43, %v3365_v30  ;;  %v3433_v41 = vadd.f32 %v3365_v30, %v3276_v12  ;;  %v3122_v31 = vadd.f32 %v3098_v7, %v3073_v27  ;;  %v8997_v43 = vld [vmem:[#allocation2 + $0x168] sm:$0xff]  ;;  %11387 = vst [vmem:[#allocation18_spill] sm:$0xff] %v9007_v5 }
 0x4b5   : > { %v3479_v60 = vmax.f32 %v3455_v1, 0.0  ;;  %v3432_v3 = vadd.f32 %v3389_v25, %v3275_v20  ;;  %v3277_v53 = vadd.f32 %v3233_v4, %v3120_v57  ;;  %v3123_v32 = vadd.f32 %v3099_v44, %v3074_v18  ;;  %11386 = vst [vmem:[#allocation16_spill] sm:$0xff] %v8997_v43  ;;  %v9011_v1 = vld [vmem:[#allocation2 + $0x160] sm:$0xff] }
 0x4b6   : > { %v3458_v24 = vadd.f32 %v8810_v11, %v3433_v41  ;;  %3541 = vrot.lane.b32.xlu1 %v3480_v47, %s6555_s19  ;;  %v3101_v34 = vmul.f32 %v8997_v43, %v8764_v35  ;;  %v3234_v0 = vsel %vm2762_vm1, %v8740_v16, %v8760_v55  ;;  %v3076_v44 = vmul.f32 %v9007_v5, %v8768_v23  ;;  %v9018_v41 = vld [vmem:[#allocation2 + $0xb8] sm:$0xff] }
 0x4b7   : > { %v3457_v46 = vadd.f32 %v8810_v11, %v3432_v3  ;;  %v3369_v12 = vpop.permute.xlu1 %3368  ;;  %3539 = vrot.lane.b32.xlu0 %v3479_v60, %s6555_s19  ;;  %11388 = vst [vmem:[#allocation40_spill] sm:$0xff] %v9011_v1  ;;  %v3100_v30 = vmul.f32 %v9011_v1, %v8764_v35  ;;  %v3280_v25 = vadd.f32 %v8760_v55, %v3123_v32  ;;  %11389 = vst [vmem:[#allocation29_spill] sm:$0xff] %v9018_v41  ;;  %v9024_v3 = vld [vmem:[#allocation2 + $0x178] sm:$0xff] }
 0x4b8   : > { %v3482_v27 = vmax.f32 %v3458_v24, 0.0  ;;  %v3390_v7 = vsel %vm2762_vm1, %v3367_v36, %v3369_v12  ;;  %v3435_v20 = vadd.f32 %v3369_v12, %v3278_v26  ;;  %v3075_v16 = vmul.f32 %v8683_v51, %v8768_v23  ;;  %11390 = vst [vmem:[#allocation36_spill] sm:$0xff] %v9024_v3 }
 0x4b9   : > { %v3481_v4 = vmax.f32 %v3457_v46, 0.0  ;;  %v3434_v47 = vadd.f32 %v3390_v7, %v3277_v53  ;;  %v3078_v36 = vmul.f32 %v9018_v41, %v8768_v23  ;;  %v3279_v18 = vadd.f32 %v3234_v0, %v3122_v31  ;;  %v3375_v31 = vpop.permute.xlu0 %3374  ;;  %v9034_v0 = vld [vmem:[#allocation2 + $0x170] sm:$0xff] }
 0x4ba   : > { %v3460_v57 = vadd.f32 %v8810_v11, %v3435_v20  ;;  %3545 = vrot.lane.b32.xlu1 %v3482_v27, %s6555_s19  ;;  %v3125_v60 = vadd.f32 %v3101_v34, %v3076_v44  ;;  %v3103_v26 = vmul.f32 %v9024_v3, %v8764_v35  ;;  %v3235_v53 = vsel %vm2762_vm1, %v8746_v9, %v8766_v59 }
 0x4bb   : > { %v3459_v55 = vadd.f32 %v8810_v11, %v3434_v47  ;;  %v3373_v24 = vpop.permute.xlu1 %3372  ;;  %3543 = vrot.lane.b32.xlu0 %v3481_v4, %s6555_s19  ;;  %v3124_v34 = vadd.f32 %v3100_v30, %v3075_v16  ;;  %11391 = vst [vmem:[#allocation22_spill] sm:$0xff] %v9034_v0  ;;  %v3102_v27 = vmul.f32 %v9034_v0, %v8764_v35 }
 0x4bc   : > { %v3484_v32 = vmax.f32 %v3460_v57, 0.0  ;;  %v3391_v46 = vsel %vm2762_vm1, %v3371_v15, %v3373_v24  ;;  %v3437_v12 = vadd.f32 %v3373_v24, %v3280_v25  ;;  %v3282_v44 = vadd.f32 %v8766_v59, %v3125_v60 }
 0x4bd   : > { %v3483_v7 = vmax.f32 %v3459_v55, 0.0  ;;  %v3436_v20 = vadd.f32 %v3391_v46, %v3279_v18  ;;  %v3281_v9 = vadd.f32 %v3235_v53, %v3124_v34  ;;  %v3127_v47 = vadd.f32 %v3103_v26, %v3078_v36  ;;  %v3379_v26 = vpop.permute.xlu0 %3378 }
 0x4be   : > { %v3462_v4 = vadd.f32 %v8810_v11, %v3437_v12  ;;  %3549 = vrot.lane.b32.xlu1 %v3484_v32, %s6555_s19  ;;  %v3077_v15 = vmul.f32 %v8709_v48, %v8768_v23  ;;  %v3236_v35 = vsel %vm2762_vm1, %v8750_v6, %v8786_v29 }
 0x4bf   : > { %v3461_v30 = vadd.f32 %v8810_v11, %v3436_v20  ;;  %v3377_v25 = vpop.permute.xlu1 %3376  ;;  %3547 = vrot.lane.b32.xlu0 %v3483_v7, %s6555_s19  ;;  %v3284_v36 = vadd.f32 %v8786_v29, %v3127_v47 }
 0x4c0   : > { %v3486_v16 = vmax.f32 %v3462_v4, 0.0  ;;  %v3392_v59 = vsel %vm2762_vm1, %v3375_v31, %v3377_v25  ;;  %v3439_v57 = vadd.f32 %v3377_v25, %v3282_v44  ;;  %v3126_v18 = vadd.f32 %v3102_v27, %v3077_v15 }
 0x4c1   : > { %v3485_v60 = vmax.f32 %v3461_v30, 0.0  ;;  %v3438_v55 = vadd.f32 %v3392_v59, %v3281_v9  ;;  %v3723_v44 = vstv %s6134_s22  ;;  %s6140_s22 = sld [smem:[#allocation3 + $0x10]] }
 0x4c2   : > { %v3464_v23 = vadd.f32 %v8810_v11, %v3439_v57  ;;  %3553 = vrot.lane.b32.xlu1 %v3486_v16, %s6555_s19  ;;  %v3283_v24 = vadd.f32 %v3236_v35, %v3126_v18  ;;  %v3725_v4 = vmul.f32 %v8776_v19, %v3723_v44  ;;  %v3724_v9 = vmul.f32 %v8782_v61, %v3723_v44  ;;  %v11392_v35 = vld [vmem:[#allocation33_spill] sm:$0xff] }
 0x4c3   : > { %v3463_v53 = vadd.f32 %v8810_v11, %v3438_v55  ;;  %v3381_v32 = vpop.permute.xlu1 %3380  ;;  %3551 = vrot.lane.b32.xlu0 %v3485_v60, %s6555_s19  ;;  %v3727_v47 = vmul.f32 %v8796_v17, %v3723_v44  ;;  %v3729_v15 = vmul.f32 %v8817_v58, %v3723_v44  ;;  %v3728_v30 = vmul.f32 %v8806_v40, %v3723_v44 }
 0x4c4   : > { %v3488_v6 = vmax.f32 %v3464_v23, 0.0  ;;  %v3393_v46 = vsel %vm2762_vm1, %v3379_v26, %v3381_v32  ;;  %v3441_v12 = vadd.f32 %v3381_v32, %v3284_v36  ;;  %v3731_v25 = vmul.f32 %v8841_v49, %v3723_v44 }
 0x4c5   : > { %v3487_v31 = vmax.f32 %v3463_v53, 0.0  ;;  %v3440_v34 = vadd.f32 %v3393_v46, %v3283_v24  ;;  %v3730_v16 = vmul.f32 %v11392_v35, %v3723_v44  ;;  %v3733_v59 = vmul.f32 %v8863_v56, %v3723_v44 }
 0x4c6   : > { %v3466_v29 = vadd.f32 %v8810_v11, %v3441_v12  ;;  %3557 = vrot.lane.b32.xlu1 %v3488_v6, %s6555_s19  ;;  %v3732_v57 = vmul.f32 %v8846_v21, %v3723_v44  ;;  %v3735_v18 = vmul.f32 %v8893_v62, %v3723_v44  ;;  %v3734_v60 = vmul.f32 %v8872_v45, %v3723_v44 }
 0x4c7   : > { %v3465_v27 = vadd.f32 %v8810_v11, %v3440_v34  ;;  %3555 = vrot.lane.b32.xlu0 %v3487_v31, %s6555_s19  ;;  %v3726_v11 = vmul.f32 %v8800_v52, %v3723_v44  ;;  %v3737_v55 = vmul.f32 %v8913_v10, %v3723_v44  ;;  %v3736_v36 = vmul.f32 %v8898_v8, %v3723_v44 }
 0x4c8   : > { %v3490_v7 = vmax.f32 %v3466_v29, 0.0  ;;  %v3739_v23 = vmul.f32 %v8941_v39, %v3723_v44  ;;  %v3738_v26 = vmul.f32 %v8922_v33, %v3723_v44  ;;  %v3741_v24 = vmul.f32 %v8961_v28, %v3723_v44 }
 0x4c9   : > { %v3489_v20 = vmax.f32 %v3465_v27, 0.0  ;;  %v3740_v53 = vmul.f32 %v8946_v37, %v3723_v44  ;;  %v3743_v32 = vmul.f32 %v8990_v42, %v3723_v44  ;;  %v3742_v6 = vmul.f32 %v8970_v54, %v3723_v44  ;;  %v9111_v27 = vld [vmem:[#allocation2 + $0xc8] sm:$0xff] }
 0x4ca   : > { %3561 = vrot.lane.b32.xlu1 %v3490_v7, %s6555_s19  ;;  %v3745_v46 = vmul.f32 %v9007_v5, %v3723_v44  ;;  %v3744_v12 = vmul.f32 %v8683_v51, %v3723_v44  ;;  %v3747_v31 = vmul.f32 %v9018_v41, %v3723_v44  ;;  %v3746_v34 = vmul.f32 %v8709_v48, %v3723_v44  ;;  %v11394_v51 = vld [vmem:[#allocation27_spill] sm:$0xff]  ;;  %v11396_v44 = vld [vmem:[#allocation34_spill] sm:$0xff] }
 0x4cb   : > { %3559 = vrot.lane.b32.xlu0 %v3489_v20, %s6555_s19  ;;  %v9108_v29 = vstv %s6135_s5  ;;  %11393 = vst [vmem:[#allocation41_spill] sm:$0xff] %v9111_v27  ;;  %v9305_v41 = vstv %s6133_s29  ;;  %v9313_v54 = vstv %s6132_s20  ;;  %s6141_s19 = sld [smem:[#allocation3 + $0x11]]  ;;  %s10315_s5 = sld [smem:[#allocation7 + $0x4]] }
 0x4cc   : > { %v3882_v7 = vmul.f32 %v9111_v27, %v9108_v29  ;;  %v3881_v20 = vmul.f32 %v11394_v51, %v9108_v29  ;;  %v3651_v42 = vmul.f32 %v8776_v19, %v9313_v54  ;;  %v3653_v19 = vmul.f32 %v8796_v17, %v9313_v54  ;;  %s6558_s29 = smov 4   ;;  %s6146_s20 = sld [smem:[#allocation3 + $0x16]] }
 0x4ce   : > { %3774 = vrot.lane.b32.xlu1 %v3725_v4, %s6553_s26  ;;  %v9119_v4 = vld [vmem:[#allocation2 + $0xd8] sm:$0xff] }
 0x4cf   : > { %3772 = vrot.lane.b32.xlu0 %v3724_v9, %s6553_s26  ;;  %11395 = vst [vmem:[#allocation30_spill] sm:$0xff] %v9119_v4  ;;  %v3884_v48 = vmul.f32 %v9119_v4, %v9108_v29  ;;  %v3883_v9 = vmul.f32 %v11396_v44, %v9108_v29 }
 0x4d2   : > { %3778 = vrot.lane.b32.xlu1 %v3727_v47, %s6553_s26  ;;  %v9127_v47 = vld [vmem:[#allocation2 + $0xe8] sm:$0xff] }
 0x4d3   : > { %3776 = vrot.lane.b32.xlu0 %v3726_v11, %s6553_s26  ;;  %11397 = vst [vmem:[#allocation37_spill] sm:$0xff] %v9127_v47  ;;  %v3886_v11 = vmul.f32 %v9127_v47, %v9108_v29 }
 0x4d6   : > { %3782 = vrot.lane.b32.xlu1 %v3729_v15, %s6553_s26  ;;  %v11398_v15 = vld [vmem:[#allocation15_spill] sm:$0xff] }
 0x4d7   : > { %3780 = vrot.lane.b32.xlu0 %v3728_v30, %s6553_s26  ;;  %v3885_v30 = vmul.f32 %v11398_v15, %v9108_v29 }
 0x4da   : > { %3786 = vrot.lane.b32.xlu1 %v3731_v25, %s6553_s26  ;;  %v9135_v25 = vld [vmem:[#allocation2 + $0xf8] sm:$0xff] }
 0x4db   : > { %3784 = vrot.lane.b32.xlu0 %v3730_v16, %s6553_s26  ;;  %v3888_v16 = vmul.f32 %v9135_v25, %v9108_v29 }
 0x4de   : > { %3790 = vrot.lane.b32.xlu1 %v3733_v59, %s6553_s26  ;;  %v11399_v59 = vld [vmem:[#allocation38_spill] sm:$0xff] }
 0x4df   : > { %3788 = vrot.lane.b32.xlu0 %v3732_v57, %s6553_s26  ;;  %v3887_v57 = vmul.f32 %v11399_v59, %v9108_v29 }
 0x4e2   : > { %3794 = vrot.lane.b32.xlu1 %v3735_v18, %s6553_s26  ;;  %v9143_v18 = vld [vmem:[#allocation2 + $0x108] sm:$0xff] }
 0x4e3   : > { %3792 = vrot.lane.b32.xlu0 %v3734_v60, %s6553_s26  ;;  %v3890_v60 = vmul.f32 %v9143_v18, %v9108_v29 }
 0x4e6   : > { %3798 = vrot.lane.b32.xlu1 %v3737_v55, %s6553_s26  ;;  %v3889_v55 = vmul.f32 %v8867_v38, %v9108_v29 }
 0x4e7   : > { %3796 = vrot.lane.b32.xlu0 %v3736_v36, %s6553_s26 }
 0x4ea   : > { %3802 = vrot.lane.b32.xlu1 %v3739_v23, %s6553_s26  ;;  %v9151_v23 = vld [vmem:[#allocation2 + $0x118] sm:$0xff] }
 0x4eb   : > { %3800 = vrot.lane.b32.xlu0 %v3738_v26, %s6553_s26  ;;  %v3892_v26 = vmul.f32 %v9151_v23, %v9108_v29 }
 0x4ee   : > { %3806 = vrot.lane.b32.xlu1 %v3741_v24, %s6553_s26 }
 0x4ef   : > { %3804 = vrot.lane.b32.xlu0 %v3740_v53, %s6553_s26  ;;  %v3891_v53 = vmul.f32 %v8876_v13, %v9108_v29 }
 0x4f2   : > { %3810 = vrot.lane.b32.xlu1 %v3743_v32, %s6553_s26 }
 0x4f3   : > { %3808 = vrot.lane.b32.xlu0 %v3742_v6, %s6553_s26 }
 0x4f6   : > { %3814 = vrot.lane.b32.xlu1 %v3745_v46, %s6553_s26  ;;  %v9165_v46 = vld [vmem:[#allocation2 + $0x128] sm:$0xff] }
 0x4f7   : > { %3812 = vrot.lane.b32.xlu0 %v3744_v12, %s6553_s26  ;;  %v3894_v12 = vmul.f32 %v9165_v46, %v9108_v29 }
 0x4fa   : > { %3818 = vrot.lane.b32.xlu1 %v3747_v31, %s6553_s26 }
 0x4fb   : > { %3816 = vrot.lane.b32.xlu0 %v3746_v34, %s6553_s26  ;;  %v3893_v34 = vmul.f32 %v8917_v63, %v9108_v29 }
 0x4fe   : > { %3931 = vrot.lane.b32.xlu1 %v3882_v7, %s6553_s26 }
 0x4ff   : > { %3929 = vrot.lane.b32.xlu0 %v3881_v20, %s6553_s26 }
 0x502   : > { %3935 = vrot.lane.b32.xlu1 %v3884_v48, %s6553_s26  ;;  %v9179_v48 = vld [vmem:[#allocation2 + $0x138] sm:$0xff] }
 0x503   : > { %3933 = vrot.lane.b32.xlu0 %v3883_v9, %s6553_s26  ;;  %v3896_v9 = vmul.f32 %v9179_v48, %v9108_v29 }
 0x506   : > { %3939 = vrot.lane.b32.xlu1 %v3886_v11, %s6553_s26 }
 0x507   : > { %3937 = vrot.lane.b32.xlu0 %v3885_v30, %s6553_s26  ;;  %v3895_v30 = vmul.f32 %v8926_v22, %v9108_v29 }
 0x50a   : > { %3943 = vrot.lane.b32.xlu1 %v3888_v16, %s6553_s26 }
 0x50b   : > { %3941 = vrot.lane.b32.xlu0 %v3887_v57, %s6553_s26 }
 0x50e   : > { %3947 = vrot.lane.b32.xlu1 %v3890_v60, %s6553_s26  ;;  %v9193_v60 = vld [vmem:[#allocation2 + $0x148] sm:$0xff] }
 0x50f   : > { %3945 = vrot.lane.b32.xlu0 %v3889_v55, %s6553_s26  ;;  %v3898_v55 = vmul.f32 %v9193_v60, %v9108_v29 }
 0x510   : > { %v3518_v36 = vpop.permute.xlu1 %3517 }
 0x511   : > { %3615 = vst.msk [vmem:[%s8532_s10 + $0x18] sm:$0xff] %vm3614_vm3, %v3518_v36  ;;  %v3516_v24 = vpop.permute.xlu0 %3515 }
 0x512   : > { %v3563_v32 = vsel %vm3030_vm2, %v3516_v24, %v3518_v36  ;;  %3612 = vst.msk [vmem:[%s8532_s10 + $0x8] sm:$0xff] %vm3611_vm4, %v3516_v24  ;;  %3951 = vrot.lane.b32.xlu1 %v3892_v26, %s6553_s26  ;;  %v3897_v26 = vmul.f32 %v8965_v2, %v9108_v29 }
 0x513   : > { %3613 = vst [vmem:[%s8532_s10 + $0x10] sm:$0xff] %v3563_v32  ;;  %3949 = vrot.lane.b32.xlu0 %v3891_v53, %s6553_s26  ;;  %v3900_v32 = vmul.f32 %v8980_v14, %v9108_v29 }
 0x514   : > { %v3522_v6 = vpop.permute.xlu1 %3521 }
 0x515   : > { %3618 = vst.msk [vmem:[%s8532_s10 + $0x70] sm:$0xff] %vm3614_vm3, %v3522_v6  ;;  %v3520_v31 = vpop.permute.xlu0 %3519 }
 0x516   : > { %v3564_v7 = vsel %vm3030_vm2, %v3520_v31, %v3522_v6  ;;  %3616 = vst.msk [vmem:[%s8532_s10 + $0x60] sm:$0xff] %vm3611_vm4, %v3520_v31  ;;  %3955 = vrot.lane.b32.xlu1 %v3894_v12, %s6553_s26  ;;  %v3899_v12 = vmul.f32 %v8974_v50, %v9108_v29 }
 0x517   : > { %3617 = vst [vmem:[%s8532_s10 + $0x68] sm:$0xff] %v3564_v7  ;;  %3953 = vrot.lane.b32.xlu0 %v3893_v34, %s6553_s26  ;;  %v3902_v7 = vmul.f32 %v8997_v43, %v9108_v29 }
 0x518   : > { %v3526_v20 = vpop.permute.xlu1 %3525 }
 0x519   : > { %3621 = vst.msk [vmem:[%s8532_s10 + $0xc8] sm:$0xff] %vm3614_vm3, %v3526_v20  ;;  %v3524_v11 = vpop.permute.xlu0 %3523 }
 0x51a   : > { %v3565_v16 = vsel %vm3030_vm2, %v3524_v11, %v3526_v20  ;;  %3619 = vst.msk [vmem:[%s8532_s10 + $0xb8] sm:$0xff] %vm3611_vm4, %v3524_v11  ;;  %3959 = vrot.lane.b32.xlu1 %v3896_v9, %s6553_s26  ;;  %v3901_v9 = vmul.f32 %v9011_v1, %v9108_v29  ;;  %v3676_v1 = vmul.f32 %v9111_v27, %v9305_v41 }
 0x51b   : > { %3620 = vst [vmem:[%s8532_s10 + $0xc0] sm:$0xff] %v3565_v16  ;;  %3957 = vrot.lane.b32.xlu0 %v3895_v30, %s6553_s26  ;;  %v3904_v16 = vmul.f32 %v9024_v3, %v9108_v29 }
 0x51c   : > { %v3530_v57 = vpop.permute.xlu1 %3529 }
 0x51d   : > { %3624 = vst.msk [vmem:[%s8532_s10 + $0x120] sm:$0xff] %vm3614_vm3, %v3530_v57  ;;  %v3528_v36 = vpop.permute.xlu0 %3527 }
 0x51e   : > { %v3566_v24 = vsel %vm3030_vm2, %v3528_v36, %v3530_v57  ;;  %3622 = vst.msk [vmem:[%s8532_s10 + $0x110] sm:$0xff] %vm3611_vm4, %v3528_v36  ;;  %3963 = vrot.lane.b32.xlu1 %v3898_v55, %s6553_s26  ;;  %v3903_v55 = vmul.f32 %v9034_v0, %v9108_v29 }
 0x51f   : > { %3623 = vst [vmem:[%s8532_s10 + $0x118] sm:$0xff] %v3566_v24  ;;  %3961 = vrot.lane.b32.xlu0 %v3897_v26, %s6553_s26 }
 0x520   : > { %v3534_v53 = vpop.permute.xlu1 %3533 }
 0x521   : > { %3627 = vst.msk [vmem:[%s8532_s10 + $0x178] sm:$0xff] %vm3614_vm3, %v3534_v53  ;;  %v3532_v6 = vpop.permute.xlu0 %3531 }
 0x522   : > { %v3567_v31 = vsel %vm3030_vm2, %v3532_v6, %v3534_v53  ;;  %3625 = vst.msk [vmem:[%s8532_s10 + $0x168] sm:$0xff] %vm3611_vm4, %v3532_v6  ;;  %3967 = vrot.lane.b32.xlu1 %v3900_v32, %s6553_s26 }
 0x523   : > { %3626 = vst [vmem:[%s8532_s10 + $0x170] sm:$0xff] %v3567_v31  ;;  %3965 = vrot.lane.b32.xlu0 %v3899_v12, %s6553_s26 }
 0x524   : > { %v3538_v34 = vpop.permute.xlu1 %3537 }
 0x525   : > { %3630 = vst.msk [vmem:[%s8532_s10 + $0x1d0] sm:$0xff] %vm3614_vm3, %v3538_v34  ;;  %v3536_v20 = vpop.permute.xlu0 %3535 }
 0x526   : > { %v3568_v11 = vsel %vm3030_vm2, %v3536_v20, %v3538_v34  ;;  %3628 = vst.msk [vmem:[%s8532_s10 + $0x1c0] sm:$0xff] %vm3611_vm4, %v3536_v20  ;;  %3971 = vrot.lane.b32.xlu1 %v3902_v7, %s6553_s26 }
 0x527   : > { %3629 = vst [vmem:[%s8532_s10 + $0x1c8] sm:$0xff] %v3568_v11  ;;  %3969 = vrot.lane.b32.xlu0 %v3901_v9, %s6553_s26 }
 0x528   : > { %v3542_v30 = vpop.permute.xlu1 %3541 }
 0x529   : > { %3633 = vst.msk [vmem:[%s8532_s10 + $0x228] sm:$0xff] %vm3614_vm3, %v3542_v30  ;;  %v3540_v57 = vpop.permute.xlu0 %3539 }
 0x52a   : > { %v3569_v36 = vsel %vm3030_vm2, %v3540_v57, %v3542_v30  ;;  %3631 = vst.msk [vmem:[%s8532_s10 + $0x218] sm:$0xff] %vm3611_vm4, %v3540_v57  ;;  %3975 = vrot.lane.b32.xlu1 %v3904_v16, %s6553_s26 }
 0x52b   : > { %3632 = vst [vmem:[%s8532_s10 + $0x220] sm:$0xff] %v3569_v36  ;;  %3973 = vrot.lane.b32.xlu0 %v3903_v55, %s6553_s26 }
 0x52c   : > { %v3546_v26 = vpop.permute.xlu1 %3545 }
 0x52d   : > { %3636 = vst.msk [vmem:[%s8532_s10 + $0x280] sm:$0xff] %vm3614_vm3, %v3546_v26  ;;  %v3544_v24 = vpop.permute.xlu0 %3543 }
 0x52e   : > { %v3570_v29 = vsel %vm3030_vm2, %v3544_v24, %v3546_v26  ;;  %3634 = vst.msk [vmem:[%s8532_s10 + $0x270] sm:$0xff] %vm3611_vm4, %v3544_v24 }
 0x52f   : > { %3635 = vst [vmem:[%s8532_s10 + $0x278] sm:$0xff] %v3570_v29 }
 0x530   : > { %v3550_v53 = vpop.permute.xlu1 %3549 }
 0x531   : > { %3639 = vst.msk [vmem:[%s8532_s10 + $0x2d8] sm:$0xff] %vm3614_vm3, %v3550_v53  ;;  %v3548_v32 = vpop.permute.xlu0 %3547 }
 0x532   : > { %v3571_v6 = vsel %vm3030_vm2, %v3548_v32, %v3550_v53  ;;  %3637 = vst.msk [vmem:[%s8532_s10 + $0x2c8] sm:$0xff] %vm3611_vm4, %v3548_v32 }
 0x533   : > { %3638 = vst [vmem:[%s8532_s10 + $0x2d0] sm:$0xff] %v3571_v6 }
 0x534   : > { %v3554_v12 = vpop.permute.xlu1 %3553 }
 0x535   : > { %3642 = vst.msk [vmem:[%s8532_s10 + $0x330] sm:$0xff] %vm3614_vm3, %v3554_v12  ;;  %v3552_v31 = vpop.permute.xlu0 %3551 }
 0x536   : > { %v3572_v34 = vsel %vm3030_vm2, %v3552_v31, %v3554_v12  ;;  %3640 = vst.msk [vmem:[%s8532_s10 + $0x320] sm:$0xff] %vm3611_vm4, %v3552_v31 }
 0x537   : > { %3641 = vst [vmem:[%s8532_s10 + $0x328] sm:$0xff] %v3572_v34 }
 0x538   : > { %v3558_v7 = vpop.permute.xlu1 %3557 }
 0x539   : > { %3645 = vst.msk [vmem:[%s8532_s10 + $0x388] sm:$0xff] %vm3614_vm3, %v3558_v7  ;;  %v3556_v20 = vpop.permute.xlu0 %3555 }
 0x53a   : > { %v3573_v9 = vsel %vm3030_vm2, %v3556_v20, %v3558_v7  ;;  %3643 = vst.msk [vmem:[%s8532_s10 + $0x378] sm:$0xff] %vm3611_vm4, %v3556_v20 }
 0x53b   : > { %3644 = vst [vmem:[%s8532_s10 + $0x380] sm:$0xff] %v3573_v9 }
 0x53c   : > { %v3562_v11 = vpop.permute.xlu1 %3561 }
 0x53d   : > { %3648 = vst.msk [vmem:[%s8532_s10 + $0x3e0] sm:$0xff] %vm3614_vm3, %v3562_v11  ;;  %v3560_v30 = vpop.permute.xlu0 %3559 }
 0x53e   : > { %v3574_v16 = vsel %vm3030_vm2, %v3560_v30, %v3562_v11  ;;  %3646 = vst.msk [vmem:[%s8532_s10 + $0x3d0] sm:$0xff] %vm3611_vm4, %v3560_v30 }
 0x53f   : > { %3647 = vst [vmem:[%s8532_s10 + $0x3d8] sm:$0xff] %v3574_v16 }
 0x540   : > { %v3775_v57 = vpop.permute.xlu1 %3774 }
 0x541   : > { %v3773_v55 = vpop.permute.xlu0 %3772 }
 0x544   : > { %v3779_v36 = vpop.permute.xlu1 %3778 }
 0x545   : > { %v3777_v26 = vpop.permute.xlu0 %3776 }
 0x546   : > { %v3821_v17 = vsel %vm2762_vm1, %v3777_v26, %v3779_v36 }
 0x548   : > { %v9273_v24 = vpop.permute.xlu1 %3782 }
 0x549   : > { %v9275_v29 = vpop.permute.xlu0 %3780 }
 0x54c   : > { %v9277_v53 = vpop.permute.xlu1 %3786 }
 0x54d   : > { %v9279_v32 = vpop.permute.xlu0 %3784 }
 0x550   : > { %v9281_v6 = vpop.permute.xlu1 %3790 }
 0x551   : > { %v9283_v12 = vpop.permute.xlu0 %3788 }
 0x554   : > { %v9285_v31 = vpop.permute.xlu1 %3794 }
 0x555   : > { %v9287_v34 = vpop.permute.xlu0 %3792 }
 0x558   : > { %v9289_v7 = vpop.permute.xlu1 %3798 }
 0x559   : > { %v9291_v20 = vpop.permute.xlu0 %3796 }
 0x55c   : > { %v9293_v9 = vpop.permute.xlu1 %3802 }
 0x55d   : > { %v9295_v11 = vpop.permute.xlu0 %3800 }
 0x560   : > { %v9297_v30 = vpop.permute.xlu1 %3806 }
 0x561   : > { %11400 = vst [vmem:[#allocation23_spill] sm:$0xff] %v9297_v30  ;;  %v9299_v16 = vpop.permute.xlu0 %3804  ;;  %v3678_v30 = vmul.f32 %v9119_v4, %v9305_v41 }
 0x562   : > { %11401 = vst [vmem:[#allocation19_spill] sm:$0xff] %v9299_v16 }
 0x564   : > { %v9301_v0 = vpop.permute.xlu1 %3810 }
 0x565   : > { %11402 = vst [vmem:[#allocation24_spill] sm:$0xff] %v9301_v0  ;;  %v9303_v3 = vpop.permute.xlu0 %3808  ;;  %v3675_v0 = vmul.f32 %v11394_v51, %v9305_v41  ;;  %v3677_v51 = vmul.f32 %v11396_v44, %v9305_v41  ;;  %v3655_v44 = vmul.f32 %v8817_v58, %v9313_v54  ;;  %v3681_v58 = vmul.f32 %v11399_v59, %v9305_v41 }
 0x566   : > { %11403 = vst [vmem:[#allocation43_spill] sm:$0xff] %v9303_v3  ;;  %v3700_v3 = vadd.f32 %v3676_v1, %v3651_v42  ;;  %v3652_v42 = vmul.f32 %v8800_v52, %v9313_v54  ;;  %v9336_v1 = vstv %s6149_s23  ;;  %v3679_v52 = vmul.f32 %v11398_v15, %v9305_v41  ;;  %s6147_s23 = sld [smem:[#allocation3 + $0x17]] }
 0x568   : > { %v9307_v5 = vpop.permute.xlu1 %3814  ;;  %v3857_v50 = vadd.f32 %v3775_v57, %v3700_v3 }
 0x569   : > { %11404 = vst [vmem:[#allocation31_spill] sm:$0xff] %v9307_v5  ;;  %v9311_v43 = vpop.permute.xlu0 %3812  ;;  %v3650_v5 = vmul.f32 %v8782_v61, %v9313_v54  ;;  %v3680_v61 = vmul.f32 %v9127_v47, %v9305_v41  ;;  %v3701_v47 = vadd.f32 %v3677_v51, %v3652_v42  ;;  %v3657_v42 = vmul.f32 %v8841_v49, %v9313_v54 }
 0x56a   : > { %11405 = vst [vmem:[#allocation39_spill] sm:$0xff] %v9311_v43  ;;  %v3820_v43 = vsel %vm2762_vm1, %v3773_v55, %v3775_v57 }
 0x56b   : > { %v3699_v14 = vadd.f32 %v3675_v0, %v3650_v5  ;;  %v3654_v5 = vmul.f32 %v8806_v40, %v9313_v54  ;;  %v3682_v40 = vmul.f32 %v9135_v25, %v9305_v41 }
 0x56c   : > { %v9319_v16 = vpop.permute.xlu1 %3818 }
 0x56d   : > { %11406 = vst [vmem:[#allocation20_spill] sm:$0xff] %v9319_v16  ;;  %v9325_v27 = vpop.permute.xlu0 %3816  ;;  %v3702_v16 = vadd.f32 %v3678_v30, %v3653_v19  ;;  %v3704_v30 = vadd.f32 %v3680_v61, %v3655_v44  ;;  %v3858_v19 = vadd.f32 %v3821_v17, %v3701_v47  ;;  %v3703_v51 = vadd.f32 %v3679_v52, %v3654_v5 }
 0x56e   : > { %11407 = vst [vmem:[#allocation45_spill] sm:$0xff] %v9325_v27  ;;  %v3856_v27 = vadd.f32 %v3820_v43, %v3699_v14  ;;  %v3684_v17 = vmul.f32 %v9143_v18, %v9305_v41 }
 0x56f   : > { %v3859_v55 = vadd.f32 %v3779_v36, %v3702_v16  ;;  %v3861_v61 = vadd.f32 %v9273_v24, %v3704_v30 }
 0x570   : > { %v3932_v4 = vpop.permute.xlu1 %3931 }
 0x571   : > { %v4014_v3 = vadd.f32 %v3932_v4, %v3857_v50  ;;  %v3930_v0 = vpop.permute.xlu0 %3929  ;;  %v3656_v50 = vmul.f32 %v11392_v35, %v9313_v54 }
 0x572   : > { %v3977_v57 = vsel %vm2762_vm1, %v3930_v0, %v3932_v4  ;;  %v3706_v0 = vadd.f32 %v3682_v40, %v3657_v42  ;;  %v3661_v42 = vmul.f32 %v8893_v62, %v9313_v54  ;;  %v3687_v62 = vmul.f32 %v8917_v63, %v9305_v41 }
 0x573   : > { %v4039_v14 = vadd.f32 %v9336_v1, %v4014_v3  ;;  %v4013_v43 = vadd.f32 %v3977_v57, %v3856_v27  ;;  %v3822_v27 = vsel %vm2762_vm1, %v9275_v29, %v9273_v24  ;;  %v3705_v5 = vadd.f32 %v3681_v58, %v3656_v50 }
 0x574   : > { %v3936_v26 = vpop.permute.xlu1 %3935  ;;  %v3860_v44 = vadd.f32 %v3822_v27, %v3703_v51  ;;  %v3863_v40 = vadd.f32 %v9277_v53, %v3706_v0  ;;  %v3660_v0 = vmul.f32 %v8872_v45, %v9313_v54  ;;  %v3825_v45 = vsel %vm2762_vm1, %v9287_v34, %v9285_v31 }
 0x575   : > { %v4063_v15 = vmax.f32 %v4039_v14, 0.0  ;;  %v4038_v4 = vadd.f32 %v9336_v1, %v4013_v43  ;;  %v4016_v36 = vadd.f32 %v3936_v26, %v3859_v55  ;;  %v3934_v16 = vpop.permute.xlu0 %3933  ;;  %v3823_v55 = vsel %vm2762_vm1, %v9279_v32, %v9277_v53 }
 0x576   : > { %v3978_v35 = vsel %vm2762_vm1, %v3934_v16, %v3936_v26  ;;  %v3659_v14 = vmul.f32 %v8863_v56, %v9313_v54  ;;  %v3683_v43 = vmul.f32 %v8867_v38, %v9305_v41  ;;  %v3658_v32 = vmul.f32 %v8846_v21, %v9313_v54 }
 0x577   : > { %v4062_v59 = vmax.f32 %v4038_v4, 0.0  ;;  %v4041_v47 = vadd.f32 %v9336_v1, %v4016_v36  ;;  %v4015_v3 = vadd.f32 %v3978_v35, %v3858_v19  ;;  %4112 = vrot.lane.b32.xlu1 %v4063_v15, %s6556_s7  ;;  %v3686_v56 = vmul.f32 %v9151_v23, %v9305_v41 }
 0x578   : > { %v3940_v29 = vpop.permute.xlu1 %3939  ;;  %v3708_v19 = vadd.f32 %v3684_v17, %v3659_v14  ;;  %v3685_v38 = vmul.f32 %v8876_v13, %v9305_v41  ;;  %v3862_v4 = vadd.f32 %v3823_v55, %v3705_v5  ;;  %v3707_v27 = vadd.f32 %v3683_v43, %v3658_v32 }
 0x579   : > { %v4065_v52 = vmax.f32 %v4041_v47, 0.0  ;;  %v4040_v49 = vadd.f32 %v9336_v1, %v4015_v3  ;;  %v4018_v57 = vadd.f32 %v3940_v29, %v3861_v61  ;;  %4110 = vrot.lane.b32.xlu0 %v4062_v59, %s6556_s7  ;;  %v3938_v24 = vpop.permute.xlu0 %3937  ;;  %v3824_v21 = vsel %vm2762_vm1, %v9283_v12, %v9281_v6 }
 0x57a   : > { %v3979_v30 = vsel %vm2762_vm1, %v3938_v24, %v3940_v29  ;;  %v3865_v13 = vadd.f32 %v9281_v6, %v3708_v19  ;;  %v3710_v3 = vadd.f32 %v3686_v56, %v3661_v42  ;;  %v3688_v12 = vmul.f32 %v9165_v46, %v9305_v41 }
 0x57b   : > { %v4064_v50 = vmax.f32 %v4040_v49, 0.0  ;;  %v4043_v58 = vadd.f32 %v9336_v1, %v4018_v57  ;;  %v4017_v26 = vadd.f32 %v3979_v30, %v3860_v44  ;;  %4116 = vrot.lane.b32.xlu1 %v4065_v52, %s6556_s7  ;;  %v3864_v17 = vadd.f32 %v3824_v21, %v3707_v27 }
 0x57c   : > { %v3944_v15 = vpop.permute.xlu1 %3943  ;;  %v3709_v49 = vadd.f32 %v3685_v38, %v3660_v0  ;;  %v3663_v57 = vmul.f32 %v8913_v10, %v9313_v54  ;;  %v3867_v63 = vadd.f32 %v9285_v31, %v3710_v3  ;;  %v3690_v34 = vmul.f32 %v9179_v48, %v9305_v41 }
 0x57d   : > { %v4067_v36 = vmax.f32 %v4043_v58, 0.0  ;;  %v4042_v53 = vadd.f32 %v9336_v1, %v4017_v26  ;;  %v4020_v16 = vadd.f32 %v3944_v15, %v3863_v40  ;;  %4114 = vrot.lane.b32.xlu0 %v4064_v50, %s6556_s7  ;;  %v3942_v51 = vpop.permute.xlu0 %3941  ;;  %v3662_v40 = vmul.f32 %v8898_v8, %v9313_v54 }
 0x57e   : > { %v3980_v35 = vsel %vm2762_vm1, %v3942_v51, %v3944_v15  ;;  %v3712_v30 = vadd.f32 %v3688_v12, %v3663_v57  ;;  %v3689_v10 = vmul.f32 %v8926_v22, %v9305_v41  ;;  %v3866_v58 = vadd.f32 %v3825_v45, %v3709_v49 }
 0x57f   : > { %v4066_v61 = vmax.f32 %v4042_v53, 0.0  ;;  %v4045_v59 = vadd.f32 %v9336_v1, %v4020_v16  ;;  %v4019_v47 = vadd.f32 %v3980_v35, %v3862_v4  ;;  %4120 = vrot.lane.b32.xlu1 %v4067_v36, %s6556_s7  ;;  %v3711_v56 = vadd.f32 %v3687_v62, %v3662_v40 }
 0x580   : > { %v3948_v5 = vpop.permute.xlu1 %3947  ;;  %v3826_v8 = vsel %vm2762_vm1, %v9291_v20, %v9289_v7  ;;  %v3665_v38 = vmul.f32 %v8941_v39, %v9313_v54  ;;  %v3869_v22 = vadd.f32 %v9289_v7, %v3712_v30  ;;  %v3664_v51 = vmul.f32 %v8922_v33, %v9313_v54 }
 0x581   : > { %v4069_v29 = vmax.f32 %v4045_v59, 0.0  ;;  %v4044_v6 = vadd.f32 %v9336_v1, %v4019_v47  ;;  %v4022_v44 = vadd.f32 %v3948_v5, %v3865_v13  ;;  %4118 = vrot.lane.b32.xlu0 %v4066_v61, %s6556_s7  ;;  %v3946_v52 = vpop.permute.xlu0 %3945  ;;  %v3692_v20 = vmul.f32 %v9193_v60, %v9305_v41 }
 0x582   : > { %v3981_v24 = vsel %vm2762_vm1, %v3946_v52, %v3948_v5  ;;  %v3714_v16 = vadd.f32 %v3690_v34, %v3665_v38  ;;  %v3691_v39 = vmul.f32 %v8965_v2, %v9305_v41  ;;  %v3868_v21 = vadd.f32 %v3826_v8, %v3711_v56 }
 0x583   : > { %v4068_v55 = vmax.f32 %v4044_v6, 0.0  ;;  %v4047_v14 = vadd.f32 %v9336_v1, %v4022_v44  ;;  %v4021_v43 = vadd.f32 %v3981_v24, %v3864_v17  ;;  %4124 = vrot.lane.b32.xlu1 %v4069_v29, %s6556_s7  ;;  %v3713_v61 = vadd.f32 %v3689_v10, %v3664_v51  ;;  %v11408_v17 = vld [vmem:[#allocation21_spill] sm:$0xff]  ;;  %v11409_v29 = vld [vmem:[#allocation35_spill] sm:$0xff] }
 0x584   : > { %v3952_v50 = vpop.permute.xlu1 %3951  ;;  %v3827_v33 = vsel %vm2762_vm1, %v9295_v11, %v9293_v9  ;;  %v3667_v59 = vmul.f32 %v8961_v28, %v9313_v54  ;;  %v3871_v2 = vadd.f32 %v9293_v9, %v3714_v16  ;;  %v3666_v5 = vmul.f32 %v8946_v37, %v9313_v54  ;;  %v11410_v24 = vld [vmem:[#allocation23_spill] sm:$0xff]  ;;  %v11416_v16 = vld [vmem:[#allocation24_spill] sm:$0xff] }
 0x585   : > { %v4071_v26 = vmax.f32 %v4047_v14, 0.0  ;;  %v4046_v31 = vadd.f32 %v9336_v1, %v4021_v43  ;;  %v4024_v19 = vadd.f32 %v3952_v50, %v3867_v63  ;;  %4122 = vrot.lane.b32.xlu0 %v4068_v55, %s6556_s7  ;;  %v3950_v32 = vpop.permute.xlu0 %3949  ;;  %v3694_v11 = vmul.f32 %v11408_v17, %v9305_v41  ;;  %v11411_v63 = vld [vmem:[#allocation19_spill] sm:$0xff]  ;;  %v11412_v55 = vld [vmem:[#allocation17_spill] sm:$0xff] }
 0x586   : > { %v3982_v15 = vsel %vm2762_vm1, %v3950_v32, %v3952_v50  ;;  %v3716_v62 = vadd.f32 %v3692_v20, %v3667_v59  ;;  %v3693_v28 = vmul.f32 %v11409_v29, %v9305_v41  ;;  %v3870_v44 = vadd.f32 %v3827_v33, %v3713_v61  ;;  %v11415_v32 = vld [vmem:[#allocation40_spill] sm:$0xff]  ;;  %v11417_v51 = vld [vmem:[#allocation43_spill] sm:$0xff] }
 0x587   : > { %v4070_v4 = vmax.f32 %v4046_v31, 0.0  ;;  %v4049_v36 = vadd.f32 %v9336_v1, %v4024_v19  ;;  %v4023_v53 = vadd.f32 %v3982_v15, %v3866_v58  ;;  %4128 = vrot.lane.b32.xlu1 %v4071_v26, %s6556_s7  ;;  %v3715_v57 = vadd.f32 %v3691_v39, %v3666_v5  ;;  %v11413_v58 = vld [vmem:[#allocation28_spill] sm:$0xff]  ;;  %v11418_v39 = vld [vmem:[#allocation18_spill] sm:$0xff]  ;;  %v9480_v33 = vld [vmem:[#allocation2 + $0xa0] sm:$0xff] }
 0x588   : > { %v3956_v27 = vpop.permute.xlu1 %3955  ;;  %v3828_v37 = vsel %vm2762_vm1, %v11411_v63, %v11410_v24  ;;  %v3669_v14 = vmul.f32 %v11412_v55, %v9313_v54  ;;  %v3873_v30 = vadd.f32 %v11410_v24, %v3716_v62  ;;  %v3668_v26 = vmul.f32 %v11413_v58, %v9313_v54  ;;  %v11414_v31 = vld [vmem:[#allocation16_spill] sm:$0xff]  ;;  %11419 = vst [vmem:[#allocation32_spill] sm:$0xff] %v9480_v33 }
 0x589   : > { %v4073_v42 = vmax.f32 %v4049_v36, 0.0  ;;  %v4048_v7 = vadd.f32 %v9336_v1, %v4023_v53  ;;  %v4026_v35 = vadd.f32 %v3956_v27, %v3869_v22  ;;  %4126 = vrot.lane.b32.xlu0 %v4070_v4, %s6556_s7  ;;  %v3954_v13 = vpop.permute.xlu0 %3953  ;;  %v3696_v19 = vmul.f32 %v11414_v31, %v9305_v41  ;;  %v11427_v31 = vld [vmem:[#allocation45_spill] sm:$0xff] }
 0x58a   : > { %v3983_v47 = vsel %vm2762_vm1, %v3954_v13, %v3956_v27  ;;  %v3718_v50 = vadd.f32 %v3694_v11, %v3669_v14  ;;  %v3695_v56 = vmul.f32 %v11415_v32, %v9305_v41  ;;  %v3872_v38 = vadd.f32 %v3828_v37, %v3715_v57  ;;  %v9499_v14 = vld [vmem:[#allocation2 + $0xb0] sm:$0xff] }
 0x58b   : > { %v4072_v3 = vmax.f32 %v4048_v7, 0.0  ;;  %v4051_v0 = vadd.f32 %v9336_v1, %v4026_v35  ;;  %v4025_v12 = vadd.f32 %v3983_v47, %v3868_v21  ;;  %4132 = vrot.lane.b32.xlu1 %v4073_v42, %s6556_s7  ;;  %v3717_v53 = vadd.f32 %v3693_v28, %v3668_v26  ;;  %v11420_v47 = vld [vmem:[#allocation29_spill] sm:$0xff]  ;;  %11425 = vst [vmem:[#allocation42_spill] sm:$0xff] %v9499_v14  ;;  %v11426_v26 = vld [vmem:[#allocation20_spill] sm:$0xff] }
 0x58c   : > { %v3960_v6 = vpop.permute.xlu1 %3959  ;;  %v3829_v20 = vsel %vm2762_vm1, %v11417_v51, %v11416_v16  ;;  %v3671_v27 = vmul.f32 %v11418_v39, %v9313_v54  ;;  %v3875_v42 = vadd.f32 %v11416_v16, %v3718_v50  ;;  %v3670_v59 = vmul.f32 %v9480_v33, %v9313_v54 }
 0x58d   : > { %v4075_v52 = vmax.f32 %v4051_v0, 0.0  ;;  %v4050_v9 = vadd.f32 %v9336_v1, %v4025_v12  ;;  %v4028_v49 = vadd.f32 %v3960_v6, %v3871_v2  ;;  %4130 = vrot.lane.b32.xlu0 %v4072_v3, %s6556_s7  ;;  %v3958_v45 = vpop.permute.xlu0 %3957  ;;  %v3673_v2 = vmul.f32 %v11420_v47, %v9313_v54  ;;  %v11421_v3 = vld [vmem:[#allocation36_spill] sm:$0xff]  ;;  %v9533_v47 = vld [vmem:[#allocation2 + $0x18] sm:$0xff] }
 0x58e   : > { %v3984_v43 = vsel %vm2762_vm1, %v3958_v45, %v3960_v6  ;;  %v3720_v61 = vadd.f32 %v3696_v19, %v3671_v27  ;;  %v3698_v0 = vmul.f32 %v11421_v3, %v9305_v41  ;;  %v3874_v62 = vadd.f32 %v3829_v20, %v3717_v53  ;;  %v11422_v6 = vld [vmem:[#allocation31_spill] sm:$0xff]  ;;  %11430 = vst [vmem:[#allocation26_spill] sm:$0xff] %v9533_v47  ;;  %v9538_v3 = vld [vmem:[#allocation2 + $0x10] sm:$0xff] }
 0x58f   : > { %v4074_v40 = vmax.f32 %v4050_v9, 0.0  ;;  %v4053_v34 = vadd.f32 %v9336_v1, %v4028_v49  ;;  %v4027_v10 = vadd.f32 %v3984_v43, %v3870_v44  ;;  %4136 = vrot.lane.b32.xlu1 %v4075_v52, %s6556_s7  ;;  %v3719_v28 = vadd.f32 %v3695_v56, %v3670_v59  ;;  %v11423_v44 = vld [vmem:[#allocation39_spill] sm:$0xff]  ;;  %v11424_v9 = vld [vmem:[#allocation22_spill] sm:$0xff]  ;;  %11431 = vst [vmem:[#allocation33_spill] sm:$0xff] %v9538_v3 }
 0x590   : > { %v3964_v8 = vpop.permute.xlu1 %3963  ;;  %v3830_v52 = vsel %vm2762_vm1, %v11423_v44, %v11422_v6  ;;  %v3697_v49 = vmul.f32 %v11424_v9, %v9305_v41  ;;  %v3877_v57 = vadd.f32 %v11422_v6, %v3720_v61  ;;  %v3722_v55 = vadd.f32 %v3698_v0, %v3673_v2  ;;  %v9528_v59 = vld [vmem:[#allocation2] sm:$0xff]  ;;  %v9563_v44 = vld [vmem:[#allocation2 + $0x48] sm:$0xff] }
 0x591   : > { %v4077_v15 = vmax.f32 %v4053_v34, 0.0  ;;  %v4052_v22 = vadd.f32 %v9336_v1, %v4027_v10  ;;  %v4030_v4 = vadd.f32 %v3964_v8, %v3873_v30  ;;  %4134 = vrot.lane.b32.xlu0 %v4074_v40, %s6556_s7  ;;  %v3962_v36 = vpop.permute.xlu0 %3961  ;;  %v3672_v43 = vmul.f32 %v9499_v14, %v9313_v54  ;;  %11429 = vst [vmem:[#allocation25_spill] sm:$0xff] %v9528_v59  ;;  %v9568_v9 = vld [vmem:[#allocation2 + $0x40] sm:$0xff] }
 0x592   : > { %v3985_v21 = vsel %vm2762_vm1, %v3962_v36, %v3964_v8  ;;  %v3876_v40 = vadd.f32 %v3830_v52, %v3719_v28  ;;  %v3831_v19 = vsel %vm2762_vm1, %v11427_v31, %v11426_v26  ;;  %v3879_v56 = vadd.f32 %v11426_v26, %v3722_v55  ;;  %v9558_v28 = vld [vmem:[#allocation2 + $0x30] sm:$0xff]  ;;  %v9608_v26 = vld [vmem:[#allocation2 + $0x80] sm:$0xff] }
 0x593   : > { %v4076_v7 = vmax.f32 %v4052_v22, 0.0  ;;  %v4055_v35 = vadd.f32 %v9336_v1, %v4030_v4  ;;  %v4029_v13 = vadd.f32 %v3985_v21, %v3872_v38  ;;  %4140 = vrot.lane.b32.xlu1 %v4077_v15, %s6556_s7  ;;  %v3721_v58 = vadd.f32 %v3697_v49, %v3672_v43  ;;  %v9588_v43 = vld [vmem:[#allocation2 + $0x60] sm:$0xff] }
 0x594   : > { %v3968_v12 = vpop.permute.xlu1 %3967 }
 0x595   : > { %v4079_v5 = vmax.f32 %v4055_v35, 0.0  ;;  %v4054_v17 = vadd.f32 %v9336_v1, %v4029_v13  ;;  %v4032_v11 = vadd.f32 %v3968_v12, %v3875_v42  ;;  %4138 = vrot.lane.b32.xlu0 %v4076_v7, %s6556_s7  ;;  %v3966_v29 = vpop.permute.xlu0 %3965  ;;  %v3878_v22 = vadd.f32 %v3831_v19, %v3721_v58  ;;  %v9523_v13 = vld [vmem:[#allocation2 + $0x8] sm:$0xff]  ;;  %v9613_v19 = vld [vmem:[#allocation2 + $0x98] sm:$0xff] }
 0x596   : > { %v3986_v45 = vsel %vm2762_vm1, %v3966_v29, %v3968_v12  ;;  %v9520_v35 = vstv %s6138_s28  ;;  %11428 = vst [vmem:[#allocation44_spill] sm:$0xff] %v9523_v13  ;;  %v9543_v12 = vld [vmem:[#allocation2 + $0x28] sm:$0xff]  ;;  %s6152_s28 = sld [smem:[#allocation7 + $0x5]] }
 0x597   : > { %v4078_v24 = vmax.f32 %v4054_v17, 0.0  ;;  %v4057_v63 = vadd.f32 %v9336_v1, %v4032_v11  ;;  %v4031_v37 = vadd.f32 %v3986_v45, %v3874_v62  ;;  %4144 = vrot.lane.b32.xlu1 %v4079_v5, %s6556_s7  ;;  %v4320_v61 = vmul.f32 %v9523_v13, %v9520_v35  ;;  %v9548_v5 = vld [vmem:[#allocation2 + $0x20] sm:$0xff]  ;;  %v9553_v11 = vld [vmem:[#allocation2 + $0x38] sm:$0xff] }
 0x598   : > { %v3972_v30 = vpop.permute.xlu1 %3971  ;;  %v4322_v2 = vmul.f32 %v9533_v47, %v9520_v35  ;;  %v4321_v0 = vmul.f32 %v9538_v3, %v9520_v35  ;;  %v4324_v62 = vmul.f32 %v9543_v12, %v9520_v35  ;;  %v4323_v17 = vmul.f32 %v9548_v5, %v9520_v35  ;;  %v9573_v45 = vld [vmem:[#allocation2 + $0x58] sm:$0xff] }
 0x599   : > { %v4081_v34 = vmax.f32 %v4057_v63, 0.0  ;;  %v4056_v41 = vadd.f32 %v9336_v1, %v4031_v37  ;;  %v4034_v10 = vadd.f32 %v3972_v30, %v3877_v57  ;;  %4142 = vrot.lane.b32.xlu0 %v4078_v24, %s6556_s7  ;;  %v3970_v50 = vpop.permute.xlu0 %3969  ;;  %v4326_v29 = vmul.f32 %v9553_v11, %v9520_v35  ;;  %v9578_v24 = vld [vmem:[#allocation2 + $0x50] sm:$0xff]  ;;  %v9583_v37 = vld [vmem:[#allocation2 + $0x68] sm:$0xff] }
 0x59a   : > { %v3987_v32 = vsel %vm2762_vm1, %v3970_v50, %v3972_v30  ;;  %v4325_v6 = vmul.f32 %v9558_v28, %v9520_v35  ;;  %v4328_v52 = vmul.f32 %v9563_v44, %v9520_v35  ;;  %v4327_v49 = vmul.f32 %v9568_v9, %v9520_v35  ;;  %v9603_v50 = vld [vmem:[#allocation2 + $0x88] sm:$0xff] }
 0x59b   : > { %v4080_v8 = vmax.f32 %v4056_v41, 0.0  ;;  %v4059_v54 = vadd.f32 %v9336_v1, %v4034_v10  ;;  %v4033_v38 = vadd.f32 %v3987_v32, %v3876_v40  ;;  %4148 = vrot.lane.b32.xlu1 %v4081_v34, %s6556_s7  ;;  %v4330_v57 = vmul.f32 %v9573_v45, %v9520_v35  ;;  %v9593_v40 = vld [vmem:[#allocation2 + $0x78] sm:$0xff]  ;;  %v9598_v41 = vld [vmem:[#allocation2 + $0x70] sm:$0xff] }
 0x59c   : > { %v3976_v15 = vpop.permute.xlu1 %3975  ;;  %v4329_v63 = vmul.f32 %v9578_v24, %v9520_v35  ;;  %v4332_v55 = vmul.f32 %v9583_v37, %v9520_v35  ;;  %v4331_v30 = vmul.f32 %v9588_v43, %v9520_v35  ;;  %v4334_v34 = vmul.f32 %v9593_v40, %v9520_v35 }
 0x59d   : > { %v4083_v4 = vmax.f32 %v4059_v54, 0.0  ;;  %v4058_v36 = vadd.f32 %v9336_v1, %v4033_v38  ;;  %v4036_v53 = vadd.f32 %v3976_v15, %v3879_v56  ;;  %4146 = vrot.lane.b32.xlu0 %v4080_v8, %s6556_s7  ;;  %v3974_v16 = vpop.permute.xlu0 %3973  ;;  %v4333_v10 = vmul.f32 %v9598_v41, %v9520_v35  ;;  %v9618_v56 = vld [vmem:[#allocation2 + $0x90] sm:$0xff]  ;;  %v9623_v54 = vld [vmem:[#allocation2 + $0xa8] sm:$0xff] }
 0x59e   : > { %v3988_v51 = vsel %vm2762_vm1, %v3974_v16, %v3976_v15  ;;  %v4336_v58 = vmul.f32 %v9603_v50, %v9520_v35  ;;  %v4335_v31 = vmul.f32 %v9608_v26, %v9520_v35  ;;  %v4338_v32 = vmul.f32 %v9613_v19, %v9520_v35  ;;  %11432 = vst [vmem:[#allocation27_spill] sm:$0xff] %v9623_v54  ;;  %v11434_v16 = vld [vmem:[#allocation41_spill] sm:$0xff] }
 0x59f   : > { %v4082_v20 = vmax.f32 %v4058_v36, 0.0  ;;  %v4061_v39 = vadd.f32 %v9336_v1, %v4036_v53  ;;  %v4035_v27 = vadd.f32 %v3988_v51, %v3878_v22  ;;  %4152 = vrot.lane.b32.xlu1 %v4083_v4, %s6556_s7  ;;  %v4337_v8 = vmul.f32 %v9618_v56, %v9520_v35  ;;  %v9631_v22 = vld [vmem:[#allocation2 + $0xb8] sm:$0xff] }
 0x5a0   : > { %v4340_v38 = vmul.f32 %v9623_v54, %v9520_v35  ;;  %v4339_v15 = vmul.f32 %v9480_v33, %v9520_v35  ;;  %11433 = vst [vmem:[#allocation34_spill] sm:$0xff] %v9631_v22  ;;  %v4342_v4 = vmul.f32 %v9631_v22, %v9520_v35  ;;  %v4341_v36 = vmul.f32 %v9499_v14, %v9520_v35 }
 0x5a1   : > { %v4085_v21 = vmax.f32 %v4061_v39, 0.0  ;;  %v4060_v42 = vadd.f32 %v9336_v1, %v4035_v27  ;;  %4150 = vrot.lane.b32.xlu0 %v4082_v20, %s6556_s7  ;;  %v4319_v1 = vmul.f32 %v9528_v59, %v9520_v35  ;;  %v9638_v53 = vstv %s6139_s30  ;;  %v9644_v20 = vld [vmem:[#allocation2 + $0xc0] sm:$0xff]  ;;  %v11436_v27 = vld [vmem:[#allocation30_spill] sm:$0xff]  ;;  %v11438_v35 = vld [vmem:[#allocation37_spill] sm:$0xff]  ;;  %s6559_s30 = smov 101  }
 0x5a2   : > { %v4477_v51 = vmul.f32 %v11434_v16, %v9638_v53  ;;  %11435 = vst [vmem:[#allocation15_spill] sm:$0xff] %v9644_v20  ;;  %v4476_v39 = vmul.f32 %v9644_v20, %v9638_v53 }
 0x5a3   : > { %v4084_v7 = vmax.f32 %v4060_v42, 0.0  ;;  %4156 = vrot.lane.b32.xlu1 %v4085_v21, %s6556_s7  ;;  %v4479_v21 = vmul.f32 %v11436_v27, %v9638_v53  ;;  %v9652_v42 = vld [vmem:[#allocation2 + $0xd0] sm:$0xff] }
 0x5a4   : > { %11437 = vst [vmem:[#allocation38_spill] sm:$0xff] %v9652_v42 }
 0x5a5   : > { %4154 = vrot.lane.b32.xlu0 %v4084_v7, %s6556_s7  ;;  %v4478_v7 = vmul.f32 %v9652_v42, %v9638_v53  ;;  %s6144_s7 = sld [smem:[#allocation3 + $0x14]] }
 0x5a7   : > { %4369 = vrot.lane.b32.xlu1 %v4320_v61, %s6553_s26  ;;  %v4481_v61 = vmul.f32 %v11438_v35, %v9638_v53 }
 0x5a9   : > { %4367 = vrot.lane.b32.xlu0 %v4319_v1, %s6553_s26  ;;  %v9660_v1 = vld [vmem:[#allocation2 + $0xe0] sm:$0xff] }
 0x5aa   : > { %11439 = vst [vmem:[#allocation21_spill] sm:$0xff] %v9660_v1 }
 0x5ab   : > { %4373 = vrot.lane.b32.xlu1 %v4322_v2, %s6553_s26  ;;  %v4480_v2 = vmul.f32 %v9660_v1, %v9638_v53 }
 0x5ad   : > { %4371 = vrot.lane.b32.xlu0 %v4321_v0, %s6553_s26  ;;  %v4483_v0 = vmul.f32 %v9135_v25, %v9638_v53 }
 0x5af   : > { %4377 = vrot.lane.b32.xlu1 %v4324_v62, %s6553_s26  ;;  %v9668_v62 = vld [vmem:[#allocation2 + $0xf0] sm:$0xff] }
 0x5b1   : > { %4375 = vrot.lane.b32.xlu0 %v4323_v17, %s6553_s26  ;;  %v4482_v17 = vmul.f32 %v9668_v62, %v9638_v53 }
 0x5b3   : > { %4381 = vrot.lane.b32.xlu1 %v4326_v29, %s6553_s26  ;;  %v4485_v29 = vmul.f32 %v9143_v18, %v9638_v53 }
 0x5b5   : > { %4379 = vrot.lane.b32.xlu0 %v4325_v6, %s6553_s26  ;;  %v9676_v6 = vld [vmem:[#allocation2 + $0x100] sm:$0xff] }
 0x5b6   : > { %v4484_v25 = vmul.f32 %v9676_v6, %v9638_v53 }
 0x5b7   : > { %4385 = vrot.lane.b32.xlu1 %v4328_v52, %s6553_s26 }
 0x5b9   : > { %4383 = vrot.lane.b32.xlu0 %v4327_v49, %s6553_s26  ;;  %v4487_v49 = vmul.f32 %v9151_v23, %v9638_v53 }
 0x5bb   : > { %4389 = vrot.lane.b32.xlu1 %v4330_v57, %s6553_s26  ;;  %v9686_v57 = vld [vmem:[#allocation2 + $0x110] sm:$0xff] }
 0x5bd   : > { %4387 = vrot.lane.b32.xlu0 %v4329_v63, %s6553_s26  ;;  %v4486_v63 = vmul.f32 %v9686_v57, %v9638_v53 }
 0x5bf   : > { %4393 = vrot.lane.b32.xlu1 %v4332_v55, %s6553_s26 }
 0x5c1   : > { %4391 = vrot.lane.b32.xlu0 %v4331_v30, %s6553_s26  ;;  %v4489_v30 = vmul.f32 %v9165_v46, %v9638_v53  ;;  %v4491_v46 = vmul.f32 %v9179_v48, %v9638_v53  ;;  %v4493_v48 = vmul.f32 %v9193_v60, %v9638_v53  ;;  %v9737_v60 = vld [vmem:[#allocation2 + $0x158] sm:$0xff] }
 0x5c3   : > { %4397 = vrot.lane.b32.xlu1 %v4334_v34, %s6553_s26 }
 0x5c5   : > { %4395 = vrot.lane.b32.xlu0 %v4333_v10, %s6553_s26  ;;  %v9700_v10 = vld [vmem:[#allocation2 + $0x120] sm:$0xff] }
 0x5c7   : > { %4401 = vrot.lane.b32.xlu1 %v4336_v58, %s6553_s26  ;;  %v4488_v58 = vmul.f32 %v9700_v10, %v9638_v53 }
 0x5c9   : > { %4399 = vrot.lane.b32.xlu0 %v4335_v31, %s6553_s26 }
 0x5cb   : > { %4405 = vrot.lane.b32.xlu1 %v4338_v32, %s6553_s26 }
 0x5cd   : > { %4403 = vrot.lane.b32.xlu0 %v4337_v8, %s6553_s26 }
 0x5cf   : > { %4409 = vrot.lane.b32.xlu1 %v4340_v38, %s6553_s26  ;;  %v9714_v38 = vld [vmem:[#allocation2 + $0x130] sm:$0xff] }
 0x5d1   : > { %4407 = vrot.lane.b32.xlu0 %v4339_v15, %s6553_s26  ;;  %v4490_v15 = vmul.f32 %v9714_v38, %v9638_v53 }
 0x5d3   : > { %4413 = vrot.lane.b32.xlu1 %v4342_v4, %s6553_s26 }
 0x5d5   : > { %4411 = vrot.lane.b32.xlu0 %v4341_v36, %s6553_s26 }
 0x5d7   : > { %4526 = vrot.lane.b32.xlu1 %v4477_v51, %s6553_s26  ;;  %v9728_v51 = vld [vmem:[#allocation2 + $0x140] sm:$0xff] }
 0x5d9   : > { %4524 = vrot.lane.b32.xlu0 %v4476_v39, %s6553_s26  ;;  %v4492_v39 = vmul.f32 %v9728_v51, %v9638_v53 }
 0x5db   : > { %4530 = vrot.lane.b32.xlu1 %v4479_v21, %s6553_s26 }
 0x5dd   : > { %4528 = vrot.lane.b32.xlu0 %v4478_v7, %s6553_s26  ;;  %v4495_v7 = vmul.f32 %v9737_v60, %v9638_v53 }
 0x5df   : > { %4534 = vrot.lane.b32.xlu1 %v4481_v61, %s6553_s26  ;;  %v9744_v61 = vld [vmem:[#allocation2 + $0x150] sm:$0xff] }
 0x5e1   : > { %4532 = vrot.lane.b32.xlu0 %v4480_v2, %s6553_s26  ;;  %v4494_v2 = vmul.f32 %v9744_v61, %v9638_v53 }
 0x5e3   : > { %4538 = vrot.lane.b32.xlu1 %v4483_v0, %s6553_s26 }
 0x5e5   : > { %4536 = vrot.lane.b32.xlu0 %v4482_v17, %s6553_s26 }
 0x5e7   : > { %4542 = vrot.lane.b32.xlu1 %v4485_v29, %s6553_s26  ;;  %v9753_v29 = vld [vmem:[#allocation2 + $0x168] sm:$0xff] }
 0x5e8   : > { %11440 = vst [vmem:[#allocation35_spill] sm:$0xff] %v9753_v29 }
 0x5e9   : > { %v4113_v52 = vpop.permute.xlu1 %4112  ;;  %4540 = vrot.lane.b32.xlu0 %v4484_v25, %s6553_s26  ;;  %v4497_v25 = vmul.f32 %v9753_v29, %v9638_v53  ;;  %v9895_v29 = vld [vmem:[#allocation2 + $0xf8] sm:$0xff] }
 0x5ea   : > { %4210 = vst.msk [vmem:[%s8532_s10 + $0x28] sm:$0xff] %vm4209_vm5, %v4113_v52  ;;  %11453 = vst [vmem:[#allocation39_spill] sm:$0xff] %v9895_v29 }
 0x5eb   : > { %4546 = vrot.lane.b32.xlu1 %v4487_v49, %s6553_s26  ;;  %v4111_v18 = vpop.permute.xlu0 %4110  ;;  %v9760_v49 = vld [vmem:[#allocation2 + $0x160] sm:$0xff] }
 0x5ec   : > { %v4158_v55 = vsel %vm3614_vm3, %v4111_v18, %v4113_v52  ;;  %4207 = vst.msk [vmem:[%s8532_s10 + $0x18] sm:$0xff] %vm4206_vm6, %v4111_v18  ;;  %11441 = vst [vmem:[#allocation23_spill] sm:$0xff] %v9760_v49  ;;  %v4496_v18 = vmul.f32 %v9760_v49, %v9638_v53 }
 0x5ed   : > { %4208 = vst [vmem:[%s8532_s10 + $0x20] sm:$0xff] %v4158_v55  ;;  %v4117_v23 = vpop.permute.xlu1 %4116  ;;  %4544 = vrot.lane.b32.xlu0 %v4486_v63, %s6553_s26 }
 0x5ee   : > { %4213 = vst.msk [vmem:[%s8532_s10 + $0x80] sm:$0xff] %vm4209_vm5, %v4117_v23 }
 0x5ef   : > { %4550 = vrot.lane.b32.xlu1 %v4489_v30, %s6553_s26  ;;  %v4115_v34 = vpop.permute.xlu0 %4114 }
 0x5f0   : > { %v4159_v31 = vsel %vm3614_vm3, %v4115_v34, %v4117_v23  ;;  %4211 = vst.msk [vmem:[%s8532_s10 + $0x70] sm:$0xff] %vm4206_vm6, %v4115_v34  ;;  %v9769_v23 = vld [vmem:[#allocation2 + $0x178] sm:$0xff] }
 0x5f1   : > { %4212 = vst [vmem:[%s8532_s10 + $0x78] sm:$0xff] %v4159_v31  ;;  %v4121_v32 = vpop.permute.xlu1 %4120  ;;  %4548 = vrot.lane.b32.xlu0 %v4488_v58, %s6553_s26  ;;  %11442 = vst [vmem:[#allocation19_spill] sm:$0xff] %v9769_v23  ;;  %v4499_v30 = vmul.f32 %v9769_v23, %v9638_v53  ;;  %v9776_v58 = vld [vmem:[#allocation2 + $0x170] sm:$0xff] }
 0x5f2   : > { %4216 = vst.msk [vmem:[%s8532_s10 + $0xd8] sm:$0xff] %vm4209_vm5, %v4121_v32  ;;  %11443 = vst [vmem:[#allocation17_spill] sm:$0xff] %v9776_v58  ;;  %v4498_v31 = vmul.f32 %v9776_v58, %v9638_v53 }
 0x5f3   : > { %4554 = vrot.lane.b32.xlu1 %v4491_v46, %s6553_s26  ;;  %v4119_v8 = vpop.permute.xlu0 %4118 }
 0x5f4   : > { %v4160_v4 = vsel %vm3614_vm3, %v4119_v8, %v4121_v32  ;;  %4214 = vst.msk [vmem:[%s8532_s10 + $0xc8] sm:$0xff] %vm4206_vm6, %v4119_v8 }
 0x5f5   : > { %4215 = vst [vmem:[%s8532_s10 + $0xd0] sm:$0xff] %v4160_v4  ;;  %v4125_v36 = vpop.permute.xlu1 %4124  ;;  %4552 = vrot.lane.b32.xlu0 %v4490_v15, %s6553_s26 }
 0x5f6   : > { %4219 = vst.msk [vmem:[%s8532_s10 + $0x130] sm:$0xff] %vm4209_vm5, %v4125_v36 }
 0x5f7   : > { %4558 = vrot.lane.b32.xlu1 %v4493_v48, %s6553_s26  ;;  %v4123_v16 = vpop.permute.xlu0 %4122 }
 0x5f8   : > { %v4161_v27 = vsel %vm3614_vm3, %v4123_v16, %v4125_v36  ;;  %4217 = vst.msk [vmem:[%s8532_s10 + $0x120] sm:$0xff] %vm4206_vm6, %v4123_v16 }
 0x5f9   : > { %4218 = vst [vmem:[%s8532_s10 + $0x128] sm:$0xff] %v4161_v27  ;;  %v4129_v21 = vpop.permute.xlu1 %4128  ;;  %4556 = vrot.lane.b32.xlu0 %v4492_v39, %s6553_s26 }
 0x5fa   : > { %4222 = vst.msk [vmem:[%s8532_s10 + $0x188] sm:$0xff] %vm4209_vm5, %v4129_v21 }
 0x5fb   : > { %4562 = vrot.lane.b32.xlu1 %v4495_v7, %s6553_s26  ;;  %v4127_v35 = vpop.permute.xlu0 %4126 }
 0x5fc   : > { %v4162_v0 = vsel %vm3614_vm3, %v4127_v35, %v4129_v21  ;;  %4220 = vst.msk [vmem:[%s8532_s10 + $0x178] sm:$0xff] %vm4206_vm6, %v4127_v35 }
 0x5fd   : > { %4221 = vst [vmem:[%s8532_s10 + $0x180] sm:$0xff] %v4162_v0  ;;  %v4133_v17 = vpop.permute.xlu1 %4132  ;;  %4560 = vrot.lane.b32.xlu0 %v4494_v2, %s6553_s26 }
 0x5fe   : > { %4225 = vst.msk [vmem:[%s8532_s10 + $0x1e0] sm:$0xff] %vm4209_vm5, %v4133_v17 }
 0x5ff   : > { %4566 = vrot.lane.b32.xlu1 %v4497_v25, %s6553_s26  ;;  %v4131_v52 = vpop.permute.xlu0 %4130 }
 0x600   : > { %v4163_v63 = vsel %vm3614_vm3, %v4131_v52, %v4133_v17  ;;  %4223 = vst.msk [vmem:[%s8532_s10 + $0x1d0] sm:$0xff] %vm4206_vm6, %v4131_v52 }
 0x601   : > { %4224 = vst [vmem:[%s8532_s10 + $0x1d8] sm:$0xff] %v4163_v63  ;;  %v4137_v55 = vpop.permute.xlu1 %4136  ;;  %4564 = vrot.lane.b32.xlu0 %v4496_v18, %s6553_s26 }
 0x602   : > { %4228 = vst.msk [vmem:[%s8532_s10 + $0x238] sm:$0xff] %vm4209_vm5, %v4137_v55 }
 0x603   : > { %4570 = vrot.lane.b32.xlu1 %v4499_v30, %s6553_s26  ;;  %v4135_v34 = vpop.permute.xlu0 %4134 }
 0x604   : > { %v4164_v32 = vsel %vm3614_vm3, %v4135_v34, %v4137_v55  ;;  %4226 = vst.msk [vmem:[%s8532_s10 + $0x228] sm:$0xff] %vm4206_vm6, %v4135_v34 }
 0x605   : > { %4227 = vst [vmem:[%s8532_s10 + $0x230] sm:$0xff] %v4164_v32  ;;  %v4141_v46 = vpop.permute.xlu1 %4140  ;;  %4568 = vrot.lane.b32.xlu0 %v4498_v31, %s6553_s26 }
 0x606   : > { %4231 = vst.msk [vmem:[%s8532_s10 + $0x290] sm:$0xff] %vm4209_vm5, %v4141_v46 }
 0x607   : > { %v4139_v8 = vpop.permute.xlu0 %4138 }
 0x608   : > { %v4165_v15 = vsel %vm3614_vm3, %v4139_v8, %v4141_v46  ;;  %4229 = vst.msk [vmem:[%s8532_s10 + $0x280] sm:$0xff] %vm4206_vm6, %v4139_v8 }
 0x609   : > { %4230 = vst [vmem:[%s8532_s10 + $0x288] sm:$0xff] %v4165_v15  ;;  %v4145_v53 = vpop.permute.xlu1 %4144 }
 0x60a   : > { %4234 = vst.msk [vmem:[%s8532_s10 + $0x2e8] sm:$0xff] %vm4209_vm5, %v4145_v53 }
 0x60b   : > { %v4143_v4 = vpop.permute.xlu0 %4142 }
 0x60c   : > { %v4166_v36 = vsel %vm3614_vm3, %v4143_v4, %v4145_v53  ;;  %4232 = vst.msk [vmem:[%s8532_s10 + $0x2d8] sm:$0xff] %vm4206_vm6, %v4143_v4 }
 0x60d   : > { %4233 = vst [vmem:[%s8532_s10 + $0x2e0] sm:$0xff] %v4166_v36  ;;  %v4149_v48 = vpop.permute.xlu1 %4148 }
 0x60e   : > { %4237 = vst.msk [vmem:[%s8532_s10 + $0x340] sm:$0xff] %vm4209_vm5, %v4149_v48 }
 0x60f   : > { %v4147_v16 = vpop.permute.xlu0 %4146 }
 0x610   : > { %v4167_v39 = vsel %vm3614_vm3, %v4147_v16, %v4149_v48  ;;  %4235 = vst.msk [vmem:[%s8532_s10 + $0x330] sm:$0xff] %vm4206_vm6, %v4147_v16 }
 0x611   : > { %4236 = vst [vmem:[%s8532_s10 + $0x338] sm:$0xff] %v4167_v39  ;;  %v4153_v27 = vpop.permute.xlu1 %4152 }
 0x612   : > { %4240 = vst.msk [vmem:[%s8532_s10 + $0x398] sm:$0xff] %vm4209_vm5, %v4153_v27 }
 0x613   : > { %v4151_v21 = vpop.permute.xlu0 %4150 }
 0x614   : > { %v4168_v7 = vsel %vm3614_vm3, %v4151_v21, %v4153_v27  ;;  %4238 = vst.msk [vmem:[%s8532_s10 + $0x388] sm:$0xff] %vm4206_vm6, %v4151_v21  ;;  %v9847_v21 = vstv %s6137_s6  ;;  %s6195_s6 = smul.u32 16896, %s6604_s16  ;;  %s6006_s16 = scalar_lea.sflag [#allocation5], %s6741_s4 }
 0x615   : > { %4239 = vst [vmem:[%s8532_s10 + $0x390] sm:$0xff] %v4168_v7  ;;  %v4157_v35 = vpop.permute.xlu1 %4156  ;;  %v4270_v33 = vmul.f32 %v9644_v20, %v9847_v21 }
 0x616   : > { %4243 = vst.msk [vmem:[%s8532_s10 + $0x3f0] sm:$0xff] %vm4209_vm5, %v4157_v35 }
 0x617   : > { %v4155_v2 = vpop.permute.xlu0 %4154 }
 0x618   : > { %v4169_v0 = vsel %vm3614_vm3, %v4155_v2, %v4157_v35  ;;  %4241 = vst.msk [vmem:[%s8532_s10 + $0x3e0] sm:$0xff] %vm4206_vm6, %v4155_v2  ;;  %v9851_v35 = vld [vmem:[#allocation2 + $0xc8] sm:$0xff] }
 0x619   : > { %4242 = vst [vmem:[%s8532_s10 + $0x3e8] sm:$0xff] %v4169_v0  ;;  %v4370_v17 = vpop.permute.xlu1 %4369  ;;  %11447 = vst [vmem:[#allocation24_spill] sm:$0xff] %v9851_v35  ;;  %v4271_v2 = vmul.f32 %v9851_v35, %v9847_v21  ;;  %v9855_v0 = vstv %s6136_s8  ;;  %s6020_s8 = sshll.u32 %s8532_s10, 4  ;;  %s11132_s8 = int_to_ptr.vmem [resolvable:$true] %s6020_s8 }
 0x61a   : > { %v4246_v58 = vmul.f32 %v9523_v13, %v9855_v0  ;;  %v4245_v35 = vmul.f32 %v9528_v59, %v9855_v0  ;;  %v4248_v13 = vmul.f32 %v9533_v47, %v9855_v0 }
 0x61b   : > { %v4368_v25 = vpop.permute.xlu0 %4367 }
 0x61c   : > { %v4295_v22 = vadd.f32 %v4271_v2, %v4246_v58  ;;  %v4415_v49 = vsel %vm2762_vm1, %v4368_v25, %v4370_v17  ;;  %v4294_v20 = vadd.f32 %v4270_v33, %v4245_v35  ;;  %v4272_v58 = vmul.f32 %v9652_v42, %v9847_v21 }
 0x61d   : > { %v4374_v52 = vpop.permute.xlu1 %4373  ;;  %v9878_v2 = vstv %s6150_s9  ;;  %v4250_v33 = vmul.f32 %v9543_v12, %v9855_v0 }
 0x61f   : > { %v4372_v18 = vpop.permute.xlu0 %4371 }
 0x620   : > { %v4416_v42 = vsel %vm2762_vm1, %v4372_v18, %v4374_v52 }
 0x621   : > { %v9815_v63 = vpop.permute.xlu1 %4377 }
 0x623   : > { %v9817_v55 = vpop.permute.xlu0 %4375 }
 0x625   : > { %v9819_v30 = vpop.permute.xlu1 %4381 }
 0x627   : > { %v9821_v34 = vpop.permute.xlu0 %4379 }
 0x629   : > { %v9823_v31 = vpop.permute.xlu1 %4385 }
 0x62b   : > { %v9825_v32 = vpop.permute.xlu0 %4383 }
 0x62d   : > { %v9827_v46 = vpop.permute.xlu1 %4389 }
 0x62f   : > { %v9829_v8 = vpop.permute.xlu0 %4387 }
 0x631   : > { %v9831_v15 = vpop.permute.xlu1 %4393 }
 0x633   : > { %v9833_v53 = vpop.permute.xlu0 %4391 }
 0x635   : > { %v9835_v4 = vpop.permute.xlu1 %4397 }
 0x637   : > { %v9837_v36 = vpop.permute.xlu0 %4395 }
 0x639   : > { %v9839_v48 = vpop.permute.xlu1 %4401 }
 0x63b   : > { %v9841_v16 = vpop.permute.xlu0 %4399 }
 0x63d   : > { %v9843_v39 = vpop.permute.xlu1 %4405 }
 0x63e   : > { %11444 = vst [vmem:[#allocation28_spill] sm:$0xff] %v9843_v39 }
 0x63f   : > { %v9845_v27 = vpop.permute.xlu0 %4403 }
 0x640   : > { %11445 = vst [vmem:[#allocation16_spill] sm:$0xff] %v9845_v27 }
 0x641   : > { %v9849_v7 = vpop.permute.xlu1 %4409 }
 0x642   : > { %11446 = vst [vmem:[#allocation40_spill] sm:$0xff] %v9849_v7  ;;  %v9865_v7 = vld [vmem:[#allocation2 + $0xd8] sm:$0xff] }
 0x643   : > { %v9857_v14 = vpop.permute.xlu0 %4407  ;;  %11450 = vst [vmem:[#allocation29_spill] sm:$0xff] %v9865_v7  ;;  %v4273_v27 = vmul.f32 %v9865_v7, %v9847_v21  ;;  %v9880_v7 = vld [vmem:[#allocation2 + $0xe8] sm:$0xff] }
 0x644   : > { %11448 = vst [vmem:[#allocation43_spill] sm:$0xff] %v9857_v14  ;;  %v4452_v14 = vadd.f32 %v4370_v17, %v4295_v22  ;;  %11452 = vst [vmem:[#allocation31_spill] sm:$0xff] %v9880_v7  ;;  %v4275_v59 = vmul.f32 %v9880_v7, %v9847_v21  ;;  %v4451_v22 = vadd.f32 %v4415_v49, %v4294_v20 }
 0x645   : > { %v9863_v23 = vpop.permute.xlu1 %4413  ;;  %v4297_v54 = vadd.f32 %v4273_v27, %v4248_v13  ;;  %v4247_v17 = vmul.f32 %v9538_v3, %v9855_v0  ;;  %v4249_v7 = vmul.f32 %v9548_v5, %v9855_v0 }
 0x646   : > { %11449 = vst [vmem:[#allocation18_spill] sm:$0xff] %v9863_v23  ;;  %v4299_v3 = vadd.f32 %v4275_v59, %v4250_v33  ;;  %v4417_v59 = vsel %vm2762_vm1, %v9817_v55, %v9815_v63 }
 0x647   : > { %v9871_v39 = vpop.permute.xlu0 %4411  ;;  %v4454_v35 = vadd.f32 %v4374_v52, %v4297_v54  ;;  %v4296_v27 = vadd.f32 %v4272_v58, %v4247_v17  ;;  %v4277_v54 = vmul.f32 %v9895_v29, %v9847_v21  ;;  %v4251_v58 = vmul.f32 %v9558_v28, %v9855_v0 }
 0x648   : > { %11451 = vst [vmem:[#allocation36_spill] sm:$0xff] %v9871_v39 }
 0x649   : > { %v4527_v23 = vpop.permute.xlu1 %4526 }
 0x64a   : > { %v4609_v39 = vadd.f32 %v4527_v23, %v4452_v14  ;;  %v4274_v14 = vmul.f32 %v9660_v1, %v9847_v21 }
 0x64b   : > { %v4525_v25 = vpop.permute.xlu0 %4524 }
 0x64c   : > { %v4634_v47 = vadd.f32 %v9878_v2, %v4609_v39  ;;  %v4572_v13 = vsel %vm2762_vm1, %v4525_v25, %v4527_v23  ;;  %v4453_v39 = vadd.f32 %v4416_v42, %v4296_v27  ;;  %v4252_v23 = vmul.f32 %v9553_v11, %v9855_v0 }
 0x64d   : > { %v4608_v20 = vadd.f32 %v4572_v13, %v4451_v22  ;;  %v4531_v49 = vpop.permute.xlu1 %4530  ;;  %v4456_v22 = vadd.f32 %v9815_v63, %v4299_v3  ;;  %v4298_v42 = vadd.f32 %v4274_v14, %v4249_v7  ;;  %v9913_v3 = vld [vmem:[#allocation2 + $0x108] sm:$0xff]  ;;  %v4253_v7 = vmul.f32 %v9568_v9, %v9855_v0 }
 0x64e   : > { %v4658_v52 = vmax.f32 %v4634_v47, 0.0  ;;  %v4611_v18 = vadd.f32 %v4531_v49, %v4454_v35  ;;  %v4276_v35 = vmul.f32 %v9668_v62, %v9847_v21  ;;  %v4301_v29 = vadd.f32 %v4277_v54, %v4252_v23 }
 0x64f   : > { %v4633_v17 = vadd.f32 %v9878_v2, %v4608_v20  ;;  %v4529_v25 = vpop.permute.xlu0 %4528  ;;  %v4279_v63 = vmul.f32 %v9913_v3, %v9847_v21  ;;  %v4455_v1 = vadd.f32 %v4417_v59, %v4298_v42 }
 0x650   : > { %v4636_v33 = vadd.f32 %v9878_v2, %v4611_v18  ;;  %v4573_v47 = vsel %vm2762_vm1, %v4529_v25, %v4531_v49  ;;  %4707 = vrot.lane.b32.xlu1 %v4658_v52, %s6557_s27  ;;  %v4254_v49 = vmul.f32 %v9563_v44, %v9855_v0  ;;  %v4458_v54 = vadd.f32 %v9819_v30, %v4301_v29 }
 0x651   : > { %v4657_v13 = vmax.f32 %v4633_v17, 0.0  ;;  %v4610_v27 = vadd.f32 %v4573_v47, %v4453_v39  ;;  %v4535_v20 = vpop.permute.xlu1 %4534  ;;  %v4418_v39 = vsel %vm2762_vm1, %v9821_v34, %v9819_v30  ;;  %v4300_v25 = vadd.f32 %v4276_v35, %v4251_v58 }
 0x652   : > { %v4660_v55 = vmax.f32 %v4636_v33, 0.0  ;;  %v4613_v18 = vadd.f32 %v4535_v20, %v4456_v22  ;;  %v4278_v22 = vmul.f32 %v9676_v6, %v9847_v21  ;;  %v4303_v42 = vadd.f32 %v4279_v63, %v4254_v49 }
 0x653   : > { %v4635_v14 = vadd.f32 %v9878_v2, %v4610_v27  ;;  %4705 = vrot.lane.b32.xlu0 %v4657_v13, %s6557_s27  ;;  %v4533_v52 = vpop.permute.xlu0 %4532  ;;  %v9932_v13 = vld [vmem:[#allocation2 + $0x118] sm:$0xff]  ;;  %v4457_v27 = vadd.f32 %v4418_v39, %v4300_v25  ;;  %v4255_v58 = vmul.f32 %v9578_v24, %v9855_v0  ;;  %v9951_v25 = vld [vmem:[#allocation2 + $0x128] sm:$0xff] }
 0x654   : > { %v4638_v23 = vadd.f32 %v9878_v2, %v4613_v18  ;;  %v4574_v17 = vsel %vm2762_vm1, %v4533_v52, %v4535_v20  ;;  %4711 = vrot.lane.b32.xlu1 %v4660_v55, %s6557_s27  ;;  %v4281_v29 = vmul.f32 %v9932_v13, %v9847_v21  ;;  %v4256_v20 = vmul.f32 %v9573_v45, %v9855_v0 }
 0x655   : > { %v4659_v59 = vmax.f32 %v4635_v14, 0.0  ;;  %v4612_v33 = vadd.f32 %v4574_v17, %v4455_v1  ;;  %v4539_v47 = vpop.permute.xlu1 %4538  ;;  %v4460_v63 = vadd.f32 %v9823_v31, %v4303_v42  ;;  %v4419_v55 = vsel %vm2762_vm1, %v9825_v32, %v9823_v31 }
 0x656   : > { %v4662_v30 = vmax.f32 %v4638_v23, 0.0  ;;  %v4615_v34 = vadd.f32 %v4539_v47, %v4458_v54  ;;  %v4302_v14 = vadd.f32 %v4278_v22, %v4253_v7  ;;  %v4280_v52 = vmul.f32 %v9686_v57, %v9847_v21 }
 0x657   : > { %v4637_v35 = vadd.f32 %v9878_v2, %v4612_v33  ;;  %4709 = vrot.lane.b32.xlu0 %v4659_v59, %s6557_s27  ;;  %v4537_v1 = vpop.permute.xlu0 %4536  ;;  %v4305_v17 = vadd.f32 %v4281_v29, %v4256_v20  ;;  %v4283_v59 = vmul.f32 %v9951_v25, %v9847_v21  ;;  %v4257_v7 = vmul.f32 %v9588_v43, %v9855_v0 }
 0x658   : > { %v4640_v18 = vadd.f32 %v9878_v2, %v4615_v34  ;;  %v4575_v49 = vsel %vm2762_vm1, %v4537_v1, %v4539_v47  ;;  %4715 = vrot.lane.b32.xlu1 %v4662_v30, %s6557_s27  ;;  %v4459_v33 = vadd.f32 %v4419_v55, %v4302_v14  ;;  %v4258_v47 = vmul.f32 %v9583_v37, %v9855_v0 }
 0x659   : > { %v4661_v54 = vmax.f32 %v4637_v35, 0.0  ;;  %v4614_v39 = vadd.f32 %v4575_v49, %v4457_v27  ;;  %v4543_v23 = vpop.permute.xlu1 %4542  ;;  %v4462_v29 = vadd.f32 %v9827_v46, %v4305_v17  ;;  %v4420_v30 = vsel %vm2762_vm1, %v9829_v8, %v9827_v46  ;;  %v9970_v49 = vld [vmem:[#allocation2 + $0x138] sm:$0xff] }
 0x65a   : > { %v4664_v31 = vmax.f32 %v4640_v18, 0.0  ;;  %v4617_v32 = vadd.f32 %v4543_v23, %v4460_v63  ;;  %v4304_v20 = vadd.f32 %v4280_v52, %v4255_v58  ;;  %v4282_v35 = vmul.f32 %v9700_v10, %v9847_v21 }
 0x65b   : > { %v4639_v22 = vadd.f32 %v9878_v2, %v4614_v39  ;;  %4713 = vrot.lane.b32.xlu0 %v4661_v54, %s6557_s27  ;;  %v4541_v42 = vpop.permute.xlu0 %4540  ;;  %v4307_v18 = vadd.f32 %v4283_v59, %v4258_v47  ;;  %v4285_v14 = vmul.f32 %v9970_v49, %v9847_v21  ;;  %v4260_v39 = vmul.f32 %v9593_v40, %v9855_v0 }
 0x65c   : > { %v4642_v34 = vadd.f32 %v9878_v2, %v4617_v32  ;;  %v4576_v27 = vsel %vm2762_vm1, %v4541_v42, %v4543_v23  ;;  %4719 = vrot.lane.b32.xlu1 %v4664_v31, %s6557_s27  ;;  %v4461_v54 = vadd.f32 %v4420_v30, %v4304_v20  ;;  %v4259_v58 = vmul.f32 %v9598_v41, %v9855_v0 }
 0x65d   : > { %v4663_v1 = vmax.f32 %v4639_v22, 0.0  ;;  %v4616_v63 = vadd.f32 %v4576_v27, %v4459_v33  ;;  %v4547_v55 = vpop.permute.xlu1 %4546  ;;  %v4464_v17 = vadd.f32 %v9831_v15, %v4307_v18  ;;  %v4421_v59 = vsel %vm2762_vm1, %v9833_v53, %v9831_v15 }
 0x65e   : > { %v4666_v46 = vmax.f32 %v4642_v34, 0.0  ;;  %v4619_v8 = vadd.f32 %v4547_v55, %v4462_v29  ;;  %v4306_v33 = vadd.f32 %v4282_v35, %v4257_v7  ;;  %v4284_v47 = vmul.f32 %v9714_v38, %v9847_v21  ;;  %v9989_v34 = vld [vmem:[#allocation2 + $0x148] sm:$0xff] }
 0x65f   : > { %v4641_v52 = vadd.f32 %v9878_v2, %v4616_v63  ;;  %4717 = vrot.lane.b32.xlu0 %v4663_v1, %s6557_s27  ;;  %v4545_v23 = vpop.permute.xlu0 %4544  ;;  %v4309_v30 = vadd.f32 %v4285_v14, %v4260_v39  ;;  %v4287_v27 = vmul.f32 %v9989_v34, %v9847_v21  ;;  %v4262_v1 = vmul.f32 %v9603_v50, %v9855_v0 }
 0x660   : > { %v4644_v31 = vadd.f32 %v9878_v2, %v4619_v8  ;;  %v4577_v32 = vsel %vm2762_vm1, %v4545_v23, %v4547_v55  ;;  %4723 = vrot.lane.b32.xlu1 %v4666_v46, %s6557_s27  ;;  %v4463_v20 = vadd.f32 %v4421_v59, %v4306_v33  ;;  %v4261_v7 = vmul.f32 %v9608_v26, %v9855_v0 }
 0x661   : > { %v4665_v22 = vmax.f32 %v4641_v52, 0.0  ;;  %v4618_v42 = vadd.f32 %v4577_v32, %v4461_v54  ;;  %v4551_v29 = vpop.permute.xlu1 %4550  ;;  %v4466_v55 = vadd.f32 %v9835_v4, %v4309_v30  ;;  %v4422_v18 = vsel %vm2762_vm1, %v9837_v36, %v9835_v4 }
 0x662   : > { %v4668_v15 = vmax.f32 %v4644_v31, 0.0  ;;  %v4621_v53 = vadd.f32 %v4551_v29, %v4464_v17  ;;  %v4308_v8 = vadd.f32 %v4284_v47, %v4259_v58  ;;  %v4286_v54 = vmul.f32 %v9728_v51, %v9847_v21 }
 0x663   : > { %v4643_v35 = vadd.f32 %v9878_v2, %v4618_v42  ;;  %4721 = vrot.lane.b32.xlu0 %v4665_v22, %s6557_s27  ;;  %v4549_v63 = vpop.permute.xlu0 %4548  ;;  %v4311_v17 = vadd.f32 %v4287_v27, %v4262_v1  ;;  %v4289_v59 = vmul.f32 %v9737_v60, %v9847_v21  ;;  %v4264_v36 = vmul.f32 %v9613_v19, %v9855_v0 }
 0x664   : > { %v4646_v14 = vadd.f32 %v9878_v2, %v4621_v53  ;;  %v4578_v46 = vsel %vm2762_vm1, %v4549_v63, %v4551_v29  ;;  %4727 = vrot.lane.b32.xlu1 %v4668_v15, %s6557_s27  ;;  %v4465_v4 = vadd.f32 %v4422_v18, %v4308_v8  ;;  %v4263_v33 = vmul.f32 %v9618_v56, %v9855_v0  ;;  %v11454_v63 = vld [vmem:[#allocation35_spill] sm:$0xff] }
 0x665   : > { %v4667_v39 = vmax.f32 %v4643_v35, 0.0  ;;  %v4620_v52 = vadd.f32 %v4578_v46, %v4463_v20  ;;  %v4555_v23 = vpop.permute.xlu1 %4554  ;;  %v4468_v22 = vadd.f32 %v9839_v48, %v4311_v17  ;;  %v4423_v42 = vsel %vm2762_vm1, %v9841_v16, %v9839_v48  ;;  %v11455_v16 = vld [vmem:[#allocation27_spill] sm:$0xff]  ;;  %v11458_v17 = vld [vmem:[#allocation16_spill] sm:$0xff] }
 0x666   : > { %v4670_v31 = vmax.f32 %v4646_v14, 0.0  ;;  %v4623_v32 = vadd.f32 %v4555_v23, %v4466_v55  ;;  %v4310_v27 = vadd.f32 %v4286_v54, %v4261_v7  ;;  %v4288_v15 = vmul.f32 %v9744_v61, %v9847_v21  ;;  %v11456_v8 = vld [vmem:[#allocation23_spill] sm:$0xff] }
 0x667   : > { %v4645_v58 = vadd.f32 %v9878_v2, %v4620_v52  ;;  %4725 = vrot.lane.b32.xlu0 %v4667_v39, %s6557_s27  ;;  %v4553_v47 = vpop.permute.xlu0 %4552  ;;  %v4313_v35 = vadd.f32 %v4289_v59, %v4264_v36  ;;  %v4291_v55 = vmul.f32 %v11454_v63, %v9847_v21  ;;  %v4266_v46 = vmul.f32 %v11455_v16, %v9855_v0  ;;  %v11457_v52 = vld [vmem:[#allocation28_spill] sm:$0xff]  ;;  %v11459_v36 = vld [vmem:[#allocation34_spill] sm:$0xff] }
 0x668   : > { %v4648_v29 = vadd.f32 %v9878_v2, %v4623_v32  ;;  %v4579_v30 = vsel %vm2762_vm1, %v4553_v47, %v4555_v23  ;;  %4731 = vrot.lane.b32.xlu1 %v4670_v31, %s6557_s27  ;;  %v4467_v48 = vadd.f32 %v4423_v42, %v4310_v27  ;;  %v4290_v39 = vmul.f32 %v11456_v8, %v9847_v21 }
 0x669   : > { %v4669_v53 = vmax.f32 %v4645_v58, 0.0  ;;  %v4622_v20 = vadd.f32 %v4579_v30, %v4465_v4  ;;  %v4559_v1 = vpop.permute.xlu1 %4558  ;;  %v4470_v23 = vadd.f32 %v11457_v52, %v4313_v35  ;;  %v4424_v59 = vsel %vm2762_vm1, %v11458_v17, %v11457_v52  ;;  %v11460_v30 = vld [vmem:[#allocation19_spill] sm:$0xff] }
 0x66a   : > { %v4672_v18 = vmax.f32 %v4648_v29, 0.0  ;;  %v4625_v14 = vadd.f32 %v4559_v1, %v4468_v22  ;;  %v4312_v4 = vadd.f32 %v4288_v15, %v4263_v33  ;;  %v4268_v58 = vmul.f32 %v11459_v36, %v9855_v0  ;;  %v11462_v15 = vld [vmem:[#allocation40_spill] sm:$0xff] }
 0x66b   : > { %v4647_v7 = vadd.f32 %v9878_v2, %v4622_v20  ;;  %4729 = vrot.lane.b32.xlu0 %v4669_v53, %s6557_s27  ;;  %v4557_v54 = vpop.permute.xlu0 %4556  ;;  %v4315_v29 = vadd.f32 %v4291_v55, %v4266_v46  ;;  %v4293_v27 = vmul.f32 %v11460_v30, %v9847_v21 }
 0x66c   : > { %v4650_v31 = vadd.f32 %v9878_v2, %v4625_v14  ;;  %v4580_v32 = vsel %vm2762_vm1, %v4557_v54, %v4559_v1  ;;  %4735 = vrot.lane.b32.xlu1 %v4672_v18, %s6557_s27  ;;  %v4469_v35 = vadd.f32 %v4424_v59, %v4312_v4  ;;  %v11461_v14 = vld [vmem:[#allocation32_spill] sm:$0xff] }
 0x66d   : > { %v4671_v47 = vmax.f32 %v4647_v7, 0.0  ;;  %v4624_v22 = vadd.f32 %v4580_v32, %v4467_v48  ;;  %v4563_v42 = vpop.permute.xlu1 %4562  ;;  %v4265_v52 = vmul.f32 %v11461_v14, %v9855_v0  ;;  %v4472_v18 = vadd.f32 %v11462_v15, %v4315_v29  ;;  %v11463_v48 = vld [vmem:[#allocation43_spill] sm:$0xff]  ;;  %v11465_v14 = vld [vmem:[#allocation42_spill] sm:$0xff] }
 0x66e   : > { %v4674_v53 = vmax.f32 %v4650_v31, 0.0  ;;  %v4627_v20 = vadd.f32 %v4563_v42, %v4470_v23  ;;  %v4425_v55 = vsel %vm2762_vm1, %v11463_v48, %v11462_v15  ;;  %v11464_v23 = vld [vmem:[#allocation17_spill] sm:$0xff]  ;;  %v4317_v4 = vadd.f32 %v4293_v27, %v4268_v58 }
 0x66f   : > { %v4649_v1 = vadd.f32 %v9878_v2, %v4624_v22  ;;  %4733 = vrot.lane.b32.xlu0 %v4671_v47, %s6557_s27  ;;  %v4561_v33 = vpop.permute.xlu0 %4560  ;;  %v4314_v54 = vadd.f32 %v4290_v39, %v4265_v52  ;;  %v4292_v17 = vmul.f32 %v11464_v23, %v9847_v21  ;;  %v4267_v15 = vmul.f32 %v11465_v14, %v9855_v0  ;;  %v11467_v52 = vld [vmem:[#allocation36_spill] sm:$0xff] }
 0x670   : > { %v4652_v46 = vadd.f32 %v9878_v2, %v4627_v20  ;;  %v4581_v7 = vsel %vm2762_vm1, %v4561_v33, %v4563_v42  ;;  %4739 = vrot.lane.b32.xlu1 %v4674_v53, %s6557_s27  ;;  %v11466_v53 = vld [vmem:[#allocation18_spill] sm:$0xff] }
 0x671   : > { %v4673_v59 = vmax.f32 %v4649_v1, 0.0  ;;  %v4626_v31 = vadd.f32 %v4581_v7, %v4469_v35  ;;  %v4567_v32 = vpop.permute.xlu1 %4566  ;;  %v4471_v29 = vadd.f32 %v4425_v55, %v4314_v54  ;;  %v4474_v39 = vadd.f32 %v11466_v53, %v4317_v4 }
 0x672   : > { %v4676_v47 = vmax.f32 %v4652_v46, 0.0  ;;  %v4629_v22 = vadd.f32 %v4567_v32, %v4472_v18  ;;  %v4426_v21 = vsel %vm2762_vm1, %v11467_v52, %v11466_v53  ;;  %v4316_v27 = vadd.f32 %v4292_v17, %v4267_v15  ;;  %v11469_v15 = vld [vmem:[#allocation25_spill] sm:$0xff] }
 0x673   : > { %v4651_v20 = vadd.f32 %v9878_v2, %v4626_v31  ;;  %4737 = vrot.lane.b32.xlu0 %v4673_v59, %s6557_s27  ;;  %v4565_v42 = vpop.permute.xlu0 %4564 }
 0x674   : > { %v4654_v35 = vadd.f32 %v9878_v2, %v4629_v22  ;;  %v4582_v58 = vsel %vm2762_vm1, %v4565_v42, %v4567_v32  ;;  %4743 = vrot.lane.b32.xlu1 %v4676_v47, %s6557_s27  ;;  %v4473_v55 = vadd.f32 %v4426_v21, %v4316_v27  ;;  %v4913_v22 = vstv %s6142_s11  ;;  %v11470_v42 = vld [vmem:[#allocation26_spill] sm:$0xff]  ;;  %s11130_s11 = scalar_lea.hbm %s11183_s3, %s6195_s6 }
 0x675   : > { %v4675_v1 = vmax.f32 %v4651_v20, 0.0  ;;  %v4628_v0 = vadd.f32 %v4582_v58, %v4471_v29  ;;  %v4571_v33 = vpop.permute.xlu1 %4570  ;;  %v11468_v29 = vld [vmem:[#allocation44_spill] sm:$0xff]  ;;  %v4914_v20 = vmul.f32 %v11469_v15, %v4913_v22  ;;  %v4917_v53 = vmul.f32 %v11470_v42, %v4913_v22 }
 0x676   : > { %v4678_v18 = vmax.f32 %v4654_v35, 0.0  ;;  %v4631_v48 = vadd.f32 %v4571_v33, %v4474_v39  ;;  %v4915_v14 = vmul.f32 %v11468_v29, %v4913_v22  ;;  %v4919_v52 = vmul.f32 %v9543_v12, %v4913_v22 }
 0x677   : > { %v4653_v46 = vadd.f32 %v9878_v2, %v4628_v0  ;;  %4741 = vrot.lane.b32.xlu0 %v4675_v1, %s6557_s27  ;;  %v4569_v7 = vpop.permute.xlu0 %4568  ;;  %v4918_v21 = vmul.f32 %v9548_v5, %v4913_v22  ;;  %v4921_v35 = vmul.f32 %v9553_v11, %v4913_v22  ;;  %v4920_v58 = vmul.f32 %v9558_v28, %v4913_v22 }
 0x678   : > { %v4656_v54 = vadd.f32 %v9878_v2, %v4631_v48  ;;  %v4583_v59 = vsel %vm2762_vm1, %v4569_v7, %v4571_v33  ;;  %4747 = vrot.lane.b32.xlu1 %v4678_v18, %s6557_s27  ;;  %v4923_v27 = vmul.f32 %v9563_v44, %v4913_v22  ;;  %v4922_v12 = vmul.f32 %v9568_v9, %v4913_v22  ;;  %v11473_v18 = vld [vmem:[#allocation15_spill] sm:$0xff]  ;;  %v11474_v48 = vld [vmem:[#allocation29_spill] sm:$0xff] }
 0x679   : > { %v4677_v31 = vmax.f32 %v4653_v46, 0.0  ;;  %v4630_v17 = vadd.f32 %v4583_v59, %v4473_v55  ;;  %v4925_v1 = vmul.f32 %v9573_v45, %v4913_v22  ;;  %v4924_v5 = vmul.f32 %v9578_v24, %v4913_v22  ;;  %v11475_v46 = vld [vmem:[#allocation38_spill] sm:$0xff] }
 0x67a   : > { %v4680_v32 = vmax.f32 %v4656_v54, 0.0  ;;  %v4927_v11 = vmul.f32 %v9583_v37, %v4913_v22  ;;  %v4926_v28 = vmul.f32 %v9588_v43, %v4913_v22  ;;  %v4929_v44 = vmul.f32 %v9593_v40, %v4913_v22  ;;  %v11476_v54 = vld [vmem:[#allocation31_spill] sm:$0xff] }
 0x67b   : > { %v4655_v4 = vadd.f32 %v9878_v2, %v4630_v17  ;;  %4745 = vrot.lane.b32.xlu0 %v4677_v31, %s6557_s27  ;;  %v11471_v2 = vld [vmem:[#allocation33_spill] sm:$0xff]  ;;  %v4928_v9 = vmul.f32 %v9598_v41, %v4913_v22  ;;  %v4931_v45 = vmul.f32 %v9603_v50, %v4913_v22  ;;  %v4930_v24 = vmul.f32 %v9608_v26, %v4913_v22  ;;  %v10119_v41 = vld [vmem:[#allocation2 + $0xa0] sm:$0xff] }
 0x67c   : > { %4751 = vrot.lane.b32.xlu1 %v4680_v32, %s6557_s27  ;;  %v4916_v39 = vmul.f32 %v11471_v2, %v4913_v22  ;;  %v4933_v37 = vmul.f32 %v9613_v19, %v4913_v22  ;;  %v4932_v43 = vmul.f32 %v9618_v56, %v4913_v22  ;;  %v4935_v40 = vmul.f32 %v11455_v16, %v4913_v22  ;;  %v10125_v19 = vld [vmem:[#allocation2 + $0xb0] sm:$0xff]  ;;  %v11472_v16 = vld [vmem:[#allocation24_spill] sm:$0xff]  ;;  %v11478_v32 = vld [vmem:[#allocation39_spill] sm:$0xff] }
 0x67d   : > { %v4679_v47 = vmax.f32 %v4655_v4, 0.0  ;;  %v4934_v50 = vmul.f32 %v10119_v41, %v4913_v22  ;;  %v4937_v26 = vmul.f32 %v11459_v36, %v4913_v22  ;;  %v4936_v56 = vmul.f32 %v10125_v19, %v4913_v22  ;;  %v11477_v31 = vld [vmem:[#allocation21_spill] sm:$0xff] }
 0x67e   : > { %v10128_v0 = vstv %s6143_s17  ;;  %s6458_s17 = scalar_lea.vmem %s11132_s8, 16896 }
 0x67f   : > { %4749 = vrot.lane.b32.xlu0 %v4679_v47, %s6557_s27  ;;  %v5072_v33 = vmul.f32 %v11472_v16, %v10128_v0  ;;  %v5071_v36 = vmul.f32 %v11473_v18, %v10128_v0  ;;  %v5074_v55 = vmul.f32 %v11474_v48, %v10128_v0  ;;  %v5073_v7 = vmul.f32 %v11475_v46, %v10128_v0  ;;  %p6459_p3 = scmp.ne.s32.totalorder %s11132_s8, %s6458_s17 }
 0x680   : > { %4964 = vrot.lane.b32.xlu1 %v4915_v14, %s6553_s26  ;;  %v5076_v59 = vmul.f32 %v11476_v54, %v10128_v0  ;;  %v5075_v17 = vmul.f32 %v11477_v31, %v10128_v0  ;;  %v5078_v4 = vmul.f32 %v11478_v32, %v10128_v0  ;;  %v5077_v47 = vmul.f32 %v9668_v62, %v10128_v0 }
 0x681   : > { %v5080_v22 = vmul.f32 %v9913_v3, %v10128_v0  ;;  %v5079_v29 = vmul.f32 %v9676_v6, %v10128_v0  ;;  %v5082_v15 = vmul.f32 %v9932_v13, %v10128_v0  ;;  %p6460_p8 = pnand %p6459_p3, %p11539_p10 }
 0x683   : > { %4962 = vrot.lane.b32.xlu0 %v4914_v20, %s6553_s26  ;;  %v5081_v20 = vmul.f32 %v9686_v57, %v10128_v0  ;;  %v5083_v57 = vmul.f32 %v9700_v10, %v10128_v0  ;;  %v5085_v10 = vmul.f32 %v9714_v38, %v10128_v0  ;;  %v5087_v38 = vmul.f32 %v9728_v51, %v10128_v0  ;;  %p6461_p9 = pneg %p6460_p8 }
 0x684   : > { %4968 = vrot.lane.b32.xlu1 %v4917_v53, %s6553_s26  ;;  %v5084_v53 = vmul.f32 %v9951_v25, %v10128_v0  ;;  %v5089_v51 = vmul.f32 %v9744_v61, %v10128_v0  ;;  %v5091_v61 = vmul.f32 %v11456_v8, %v10128_v0  ;;  %v5093_v8 = vmul.f32 %v11464_v23, %v10128_v0 }
 0x687   : > { %4966 = vrot.lane.b32.xlu0 %v4916_v39, %s6553_s26 }
 0x688   : > { %4972 = vrot.lane.b32.xlu1 %v4919_v52, %s6553_s26 }
 0x68b   : > { %4970 = vrot.lane.b32.xlu0 %v4918_v21, %s6553_s26  ;;  %v5086_v21 = vmul.f32 %v9970_v49, %v10128_v0 }
 0x68c   : > { %4976 = vrot.lane.b32.xlu1 %v4921_v35, %s6553_s26 }
 0x68f   : > { %4974 = vrot.lane.b32.xlu0 %v4920_v58, %s6553_s26 }
 0x690   : > { %4980 = vrot.lane.b32.xlu1 %v4923_v27, %s6553_s26 }
 0x693   : > { %4978 = vrot.lane.b32.xlu0 %v4922_v12, %s6553_s26  ;;  %v5088_v12 = vmul.f32 %v9989_v34, %v10128_v0 }
 0x694   : > { %4984 = vrot.lane.b32.xlu1 %v4925_v1, %s6553_s26 }
 0x697   : > { %4982 = vrot.lane.b32.xlu0 %v4924_v5, %s6553_s26 }
 0x698   : > { %4988 = vrot.lane.b32.xlu1 %v4927_v11, %s6553_s26 }
 0x69b   : > { %4986 = vrot.lane.b32.xlu0 %v4926_v28, %s6553_s26  ;;  %v5090_v28 = vmul.f32 %v9737_v60, %v10128_v0  ;;  %v5092_v60 = vmul.f32 %v11454_v63, %v10128_v0  ;;  %v5094_v63 = vmul.f32 %v11460_v30, %v10128_v0 }
 0x69c   : > { %4992 = vrot.lane.b32.xlu1 %v4929_v44, %s6553_s26 }
 0x69f   : > { %4990 = vrot.lane.b32.xlu0 %v4928_v9, %s6553_s26 }
 0x6a0   : > { %4996 = vrot.lane.b32.xlu1 %v4931_v45, %s6553_s26 }
 0x6a3   : > { %4994 = vrot.lane.b32.xlu0 %v4930_v24, %s6553_s26 }
 0x6a4   : > { %5000 = vrot.lane.b32.xlu1 %v4933_v37, %s6553_s26 }
 0x6a7   : > { %4998 = vrot.lane.b32.xlu0 %v4932_v43, %s6553_s26 }
 0x6a8   : > { %5004 = vrot.lane.b32.xlu1 %v4935_v40, %s6553_s26 }
 0x6ab   : > { %5002 = vrot.lane.b32.xlu0 %v4934_v50, %s6553_s26 }
 0x6ac   : > { %5008 = vrot.lane.b32.xlu1 %v4937_v26, %s6553_s26 }
 0x6af   : > { %5006 = vrot.lane.b32.xlu0 %v4936_v56, %s6553_s26 }
 0x6b0   : > { %5121 = vrot.lane.b32.xlu1 %v5072_v33, %s6553_s26 }
 0x6b3   : > { %5119 = vrot.lane.b32.xlu0 %v5071_v36, %s6553_s26 }
 0x6b4   : > { %5125 = vrot.lane.b32.xlu1 %v5074_v55, %s6553_s26 }
 0x6b7   : > { %5123 = vrot.lane.b32.xlu0 %v5073_v7, %s6553_s26 }
 0x6b8   : > { %5129 = vrot.lane.b32.xlu1 %v5076_v59, %s6553_s26 }
 0x6bb   : > { %5127 = vrot.lane.b32.xlu0 %v5075_v17, %s6553_s26 }
 0x6bc   : > { %5133 = vrot.lane.b32.xlu1 %v5078_v4, %s6553_s26 }
 0x6bf   : > { %5131 = vrot.lane.b32.xlu0 %v5077_v47, %s6553_s26 }
 0x6c0   : > { %5137 = vrot.lane.b32.xlu1 %v5080_v22, %s6553_s26 }
 0x6c2   : > { %v4708_v14 = vpop.permute.xlu1 %4707 }
 0x6c3   : > { %4805 = vst.msk [vmem:[%s8532_s10 + $0x38] sm:$0xff] %vm4804_vm7, %v4708_v14  ;;  %5135 = vrot.lane.b32.xlu0 %v5079_v29, %s6553_s26 }
 0x6c4   : > { %5141 = vrot.lane.b32.xlu1 %v5082_v15, %s6553_s26 }
 0x6c5   : > { %v4706_v62 = vpop.permute.xlu0 %4705 }
 0x6c6   : > { %v4753_v6 = vsel %vm4209_vm5, %v4706_v62, %v4708_v14  ;;  %4802 = vst.msk [vmem:[%s8532_s10 + $0x28] sm:$0xff] %vm4801_vm8, %v4706_v62  ;;  %v4712_v42 = vpop.permute.xlu1 %4711 }
 0x6c7   : > { %4803 = vst [vmem:[%s8532_s10 + $0x30] sm:$0xff] %v4753_v6  ;;  %4808 = vst.msk [vmem:[%s8532_s10 + $0x90] sm:$0xff] %vm4804_vm7, %v4712_v42  ;;  %5139 = vrot.lane.b32.xlu0 %v5081_v20, %s6553_s26 }
 0x6c8   : > { %5145 = vrot.lane.b32.xlu1 %v5084_v53, %s6553_s26 }
 0x6c9   : > { %v4710_v2 = vpop.permute.xlu0 %4709 }
 0x6ca   : > { %v4754_v39 = vsel %vm4209_vm5, %v4710_v2, %v4712_v42  ;;  %4806 = vst.msk [vmem:[%s8532_s10 + $0x80] sm:$0xff] %vm4801_vm8, %v4710_v2  ;;  %v4716_v52 = vpop.permute.xlu1 %4715 }
 0x6cb   : > { %4807 = vst [vmem:[%s8532_s10 + $0x88] sm:$0xff] %v4754_v39  ;;  %4811 = vst.msk [vmem:[%s8532_s10 + $0xe8] sm:$0xff] %vm4804_vm7, %v4716_v52  ;;  %5143 = vrot.lane.b32.xlu0 %v5083_v57, %s6553_s26 }
 0x6cc   : > { %5149 = vrot.lane.b32.xlu1 %v5086_v21, %s6553_s26 }
 0x6cd   : > { %v4714_v35 = vpop.permute.xlu0 %4713 }
 0x6ce   : > { %v4755_v58 = vsel %vm4209_vm5, %v4714_v35, %v4716_v52  ;;  %4809 = vst.msk [vmem:[%s8532_s10 + $0xd8] sm:$0xff] %vm4801_vm8, %v4714_v35  ;;  %v4720_v27 = vpop.permute.xlu1 %4719 }
 0x6cf   : > { %4810 = vst [vmem:[%s8532_s10 + $0xe0] sm:$0xff] %v4755_v58  ;;  %4814 = vst.msk [vmem:[%s8532_s10 + $0x140] sm:$0xff] %vm4804_vm7, %v4720_v27  ;;  %5147 = vrot.lane.b32.xlu0 %v5085_v10, %s6553_s26 }
 0x6d0   : > { %5153 = vrot.lane.b32.xlu1 %v5088_v12, %s6553_s26 }
 0x6d1   : > { %v4718_v1 = vpop.permute.xlu0 %4717 }
 0x6d2   : > { %v4756_v5 = vsel %vm4209_vm5, %v4718_v1, %v4720_v27  ;;  %4812 = vst.msk [vmem:[%s8532_s10 + $0x130] sm:$0xff] %vm4801_vm8, %v4718_v1  ;;  %v4724_v11 = vpop.permute.xlu1 %4723  ;;  %v10311_v1 = vstv %s6141_s19  ;;  %s6560_s19 = smov [#allocation10]  }
 0x6d3   : > { %4813 = vst [vmem:[%s8532_s10 + $0x138] sm:$0xff] %v4756_v5  ;;  %4817 = vst.msk [vmem:[%s8532_s10 + $0x198] sm:$0xff] %vm4804_vm7, %v4724_v11  ;;  %5151 = vrot.lane.b32.xlu0 %v5087_v38, %s6553_s26  ;;  %v4866_v5 = vmul.f32 %v11472_v16, %v10311_v1 }
 0x6d4   : > { %5157 = vrot.lane.b32.xlu1 %v5090_v28, %s6553_s26  ;;  %v10321_v28 = vld [vmem:[#allocation2 + $0x8] sm:$0xff] }
 0x6d5   : > { %v4722_v44 = vpop.permute.xlu0 %4721 }
 0x6d6   : > { %v4757_v9 = vsel %vm4209_vm5, %v4722_v44, %v4724_v11  ;;  %4815 = vst.msk [vmem:[%s8532_s10 + $0x188] sm:$0xff] %vm4801_vm8, %v4722_v44  ;;  %v4728_v45 = vpop.permute.xlu1 %4727  ;;  %v10319_v11 = vstv %s6140_s22  ;;  %s6462_s22 = sshll.u32 %s6560_s19, 4  ;;  %s6463_s22 = int_to_ptr.vmem [resolvable:$false] %s6462_s22 }
 0x6d7   : > { %4816 = vst [vmem:[%s8532_s10 + $0x190] sm:$0xff] %v4757_v9  ;;  %4820 = vst.msk [vmem:[%s8532_s10 + $0x1f0] sm:$0xff] %vm4804_vm7, %v4728_v45  ;;  %5155 = vrot.lane.b32.xlu0 %v5089_v51, %s6553_s26  ;;  %v4841_v44 = vmul.f32 %v10321_v28, %v10319_v11  ;;  %v10325_v51 = vld [vmem:[#allocation2 + $0xc0] sm:$0xff]  ;;  %p6465_p6 = scmp.lt.s32.totalorder %s11132_s8, %s6463_s22 }
 0x6d8   : > { %5161 = vrot.lane.b32.xlu1 %v5092_v60, %s6553_s26  ;;  %11479 = vst [vmem:[#allocation22_spill] sm:$0xff] %v10325_v51  ;;  %v4865_v9 = vmul.f32 %v10325_v51, %v10311_v1 }
 0x6d9   : > { %v4726_v24 = vpop.permute.xlu0 %4725 }
 0x6da   : > { %v4758_v37 = vsel %vm4209_vm5, %v4726_v24, %v4728_v45  ;;  %4818 = vst.msk [vmem:[%s8532_s10 + $0x1e0] sm:$0xff] %vm4801_vm8, %v4726_v24  ;;  %v4732_v43 = vpop.permute.xlu1 %4731  ;;  %v4890_v24 = vadd.f32 %v4866_v5, %v4841_v44  ;;  %v4870_v5 = vmul.f32 %v11476_v54, %v10311_v1  ;;  %v10375_v44 = vld [vmem:[#allocation2 + $0x40] sm:$0xff] }
 0x6db   : > { %4819 = vst [vmem:[%s8532_s10 + $0x1e8] sm:$0xff] %v4758_v37  ;;  %4823 = vst.msk [vmem:[%s8532_s10 + $0x248] sm:$0xff] %vm4804_vm7, %v4732_v43  ;;  %5159 = vrot.lane.b32.xlu0 %v5091_v61, %s6553_s26  ;;  %v10333_v61 = vld [vmem:[#allocation2] sm:$0xff]  ;;  %v4868_v37 = vmul.f32 %v11474_v48, %v10311_v1 }
 0x6dc   : > { %5165 = vrot.lane.b32.xlu1 %v5094_v63, %s6553_s26  ;;  %v4840_v16 = vmul.f32 %v10333_v61, %v10319_v11  ;;  %11484 = vst [vmem:[#allocation37_spill] sm:$0xff] %v10375_v44 }
 0x6dd   : > { %v4730_v40 = vpop.permute.xlu0 %4729 }
 0x6de   : > { %v4759_v50 = vsel %vm4209_vm5, %v4730_v40, %v4732_v43  ;;  %4821 = vst.msk [vmem:[%s8532_s10 + $0x238] sm:$0xff] %vm4801_vm8, %v4730_v40  ;;  %v4736_v30 = vpop.permute.xlu1 %4735  ;;  %v10339_v43 = vld [vmem:[#allocation2 + $0x10] sm:$0xff] }
 0x6df   : > { %4822 = vst [vmem:[%s8532_s10 + $0x240] sm:$0xff] %v4759_v50  ;;  %4826 = vst.msk [vmem:[%s8532_s10 + $0x2a0] sm:$0xff] %vm4804_vm7, %v4736_v30  ;;  %5163 = vrot.lane.b32.xlu0 %v5093_v8, %s6553_s26  ;;  %v4842_v63 = vmul.f32 %v10339_v43, %v10319_v11  ;;  %v10343_v40 = vld [vmem:[#allocation2 + $0xd0] sm:$0xff]  ;;  %v10347_v50 = vld [vmem:[#allocation2 + $0xe0] sm:$0xff] }
 0x6e0   : > { %11480 = vst [vmem:[#allocation20_spill] sm:$0xff] %v10343_v40  ;;  %v4867_v8 = vmul.f32 %v10343_v40, %v10311_v1  ;;  %11481 = vst [vmem:[#allocation45_spill] sm:$0xff] %v10347_v50 }
 0x6e1   : > { %v4734_v26 = vpop.permute.xlu0 %4733 }
 0x6e2   : > { %v4760_v56 = vsel %vm4209_vm5, %v4734_v26, %v4736_v30  ;;  %4824 = vst.msk [vmem:[%s8532_s10 + $0x290] sm:$0xff] %vm4801_vm8, %v4734_v26  ;;  %v4740_v23 = vpop.permute.xlu1 %4739  ;;  %v4869_v30 = vmul.f32 %v10347_v50, %v10311_v1  ;;  %v10383_v50 = vld [vmem:[#allocation2 + $0x100] sm:$0xff] }
 0x6e3   : > { %4825 = vst [vmem:[%s8532_s10 + $0x298] sm:$0xff] %v4760_v56  ;;  %4829 = vst.msk [vmem:[%s8532_s10 + $0x2f8] sm:$0xff] %vm4804_vm7, %v4740_v23  ;;  %v4889_v56 = vadd.f32 %v4865_v9, %v4840_v16  ;;  %v4891_v9 = vadd.f32 %v4867_v8, %v4842_v63 }
 0x6e4   : > { %11485 = vst [vmem:[#allocation35_spill] sm:$0xff] %v10383_v50 }
 0x6e5   : > { %v4738_v0 = vpop.permute.xlu0 %4737 }
 0x6e6   : > { %v4761_v33 = vsel %vm4209_vm5, %v4738_v0, %v4740_v23  ;;  %4827 = vst.msk [vmem:[%s8532_s10 + $0x2e8] sm:$0xff] %vm4801_vm8, %v4738_v0  ;;  %v4744_v18 = vpop.permute.xlu1 %4743  ;;  %v10351_v23 = vld [vmem:[#allocation2 + $0x18] sm:$0xff]  ;;  %v10355_v0 = vld [vmem:[#allocation2 + $0x20] sm:$0xff] }
 0x6e7   : > { %4828 = vst [vmem:[%s8532_s10 + $0x2f0] sm:$0xff] %v4761_v33  ;;  %4832 = vst.msk [vmem:[%s8532_s10 + $0x350] sm:$0xff] %vm4804_vm7, %v4744_v18  ;;  %v4843_v48 = vmul.f32 %v10351_v23, %v10319_v11  ;;  %v4844_v33 = vmul.f32 %v10355_v0, %v10319_v11 }
 0x6e9   : > { %v4742_v36 = vpop.permute.xlu0 %4741 }
 0x6ea   : > { %v4762_v55 = vsel %vm4209_vm5, %v4742_v36, %v4744_v18  ;;  %4830 = vst.msk [vmem:[%s8532_s10 + $0x340] sm:$0xff] %vm4801_vm8, %v4742_v36  ;;  %v4748_v46 = vpop.permute.xlu1 %4747 }
 0x6eb   : > { %4831 = vst [vmem:[%s8532_s10 + $0x348] sm:$0xff] %v4762_v55  ;;  %4835 = vst.msk [vmem:[%s8532_s10 + $0x3a8] sm:$0xff] %vm4804_vm7, %v4748_v46  ;;  %v10362_v55 = vld [vmem:[#allocation2 + $0x30] sm:$0xff] }
 0x6ec   : > { %11482 = vst [vmem:[#allocation41_spill] sm:$0xff] %v10362_v55 }
 0x6ed   : > { %v4746_v7 = vpop.permute.xlu0 %4745 }
 0x6ee   : > { %v4763_v59 = vsel %vm4209_vm5, %v4746_v7, %v4748_v46  ;;  %4833 = vst.msk [vmem:[%s8532_s10 + $0x398] sm:$0xff] %vm4801_vm8, %v4746_v7  ;;  %v4752_v31 = vpop.permute.xlu1 %4751  ;;  %v4846_v46 = vmul.f32 %v10362_v55, %v10319_v11  ;;  %v10366_v7 = vld [vmem:[#allocation2 + $0xf0] sm:$0xff] }
 0x6ef   : > { %4834 = vst [vmem:[%s8532_s10 + $0x3a0] sm:$0xff] %v4763_v59  ;;  %4838 = vst.msk [vmem:[%s8532_s10 + $0x400] sm:$0xff] %vm4804_vm7, %v4752_v31  ;;  %v4871_v59 = vmul.f32 %v10366_v7, %v10311_v1 }
 0x6f0   : > { %11483 = vst [vmem:[#allocation30_spill] sm:$0xff] %v10366_v7  ;;  %v4893_v7 = vadd.f32 %v4869_v30, %v4844_v33  ;;  %v10394_v30 = vld [vmem:[#allocation2 + $0x50] sm:$0xff] }
 0x6f1   : > { %v4750_v17 = vpop.permute.xlu0 %4749  ;;  %v4895_v51 = vadd.f32 %v4871_v59, %v4846_v46  ;;  %11486 = vst [vmem:[#allocation27_spill] sm:$0xff] %v10394_v30  ;;  %v10398_v33 = vmul.f32 %v10394_v30, %v10319_v11  ;;  %v10405_v46 = vld [vmem:[#allocation2 + $0x110] sm:$0xff]  ;;  %v10409_v30 = vld [vmem:[#allocation2 + $0x60] sm:$0xff] }
 0x6f2   : > { %v4764_v4 = vsel %vm4209_vm5, %v4750_v17, %v4752_v31  ;;  %4836 = vst.msk [vmem:[%s8532_s10 + $0x3f0] sm:$0xff] %vm4801_vm8, %v4750_v17  ;;  %v4965_v47 = vpop.permute.xlu1 %4964  ;;  %v10371_v31 = vstv %s10315_s5  ;;  %11487 = vst [vmem:[#allocation23_spill] sm:$0xff] %v10405_v46  ;;  %v4875_v59 = vmul.f32 %v10405_v46, %v10311_v1  ;;  %s6464_s5 = scalar_lea.vmem %s6463_s22, 33792 }
 0x6f3   : > { %4837 = vst [vmem:[%s8532_s10 + $0x3f8] sm:$0xff] %v4764_v4  ;;  %v5047_v26 = vadd.f32 %v4965_v47, %v4890_v24  ;;  %v4892_v4 = vadd.f32 %v4868_v37, %v4843_v48  ;;  %v10379_v24 = vld [vmem:[#allocation2 + $0x28] sm:$0xff]  ;;  %v4873_v37 = vmul.f32 %v10383_v50, %v10311_v1  ;;  %11488 = vst [vmem:[#allocation28_spill] sm:$0xff] %v10409_v30  ;;  %p6466_p4 = scmp.lt.s32.totalorder %s6464_s5, %s6458_s17 }
 0x6f4   : > { %v4845_v16 = vmul.f32 %v10379_v24, %v10319_v11 }
 0x6f5   : > { %v4963_v22 = vpop.permute.xlu0 %4962  ;;  %p6467_p2 = por %p6466_p4, %p6465_p6 }
 0x6f6   : > { %v10275_v29 = vpop.permute.xlu1 %4968  ;;  %v5010_v36 = vsel %vm2762_vm1, %v4963_v22, %v4965_v47  ;;  %v4848_v47 = vmul.f32 %v10375_v44, %v10319_v11 }
 0x6f7   : > { %v5046_v48 = vadd.f32 %v5010_v36, %v4889_v56  ;;  %v5049_v54 = vadd.f32 %v10275_v29, %v4892_v4  ;;  %v4894_v4 = vadd.f32 %v4870_v5, %v4845_v16  ;;  %p6468_p0 = pnand %p6467_p2, %p6461_p9 }
 0x6f9   : > { %v10277_v14 = vpop.permute.xlu0 %4966 }
 0x6fa   : > { %v10279_v15 = vpop.permute.xlu1 %4972  ;;  %v5011_v40 = vsel %vm2762_vm1, %v10277_v14, %v10275_v29 }
 0x6fb   : > { %v5048_v14 = vadd.f32 %v5011_v40, %v4891_v9  ;;  %v5051_v5 = vadd.f32 %v10279_v15, %v4894_v4 }
 0x6fd   : > { %v10281_v62 = vpop.permute.xlu0 %4970 }
 0x6fe   : > { %v10283_v20 = vpop.permute.xlu1 %4976  ;;  %v5012_v40 = vsel %vm2762_vm1, %v10281_v62, %v10279_v15 }
 0x6ff   : > { %v5050_v62 = vadd.f32 %v5012_v40, %v4893_v7 }
 0x701   : > { %v10285_v6 = vpop.permute.xlu0 %4974 }
 0x702   : > { %v10287_v42 = vpop.permute.xlu1 %4980 }
 0x705   : > { %v10289_v53 = vpop.permute.xlu0 %4978 }
 0x706   : > { %v10291_v2 = vpop.permute.xlu1 %4984 }
 0x709   : > { %v10293_v57 = vpop.permute.xlu0 %4982 }
 0x70a   : > { %v10295_v39 = vpop.permute.xlu1 %4988 }
 0x70d   : > { %v10297_v52 = vpop.permute.xlu0 %4986 }
 0x70e   : > { %v10299_v21 = vpop.permute.xlu1 %4992 }
 0x711   : > { %v10301_v35 = vpop.permute.xlu0 %4990 }
 0x712   : > { %v10303_v10 = vpop.permute.xlu1 %4996 }
 0x715   : > { %v10305_v58 = vpop.permute.xlu0 %4994 }
 0x716   : > { %v10307_v27 = vpop.permute.xlu1 %5000 }
 0x719   : > { %v10309_v12 = vpop.permute.xlu0 %4998 }
 0x71a   : > { %v10313_v38 = vpop.permute.xlu1 %5004 }
 0x71d   : > { %v10329_v45 = vpop.permute.xlu0 %5002 }
 0x71e   : > { %v10331_v60 = vpop.permute.xlu1 %5008 }
 0x721   : > { %v10359_v18 = vpop.permute.xlu0 %5006 }
 0x722   : > { %v5122_v17 = vpop.permute.xlu1 %5121 }
 0x723   : > { %v5204_v22 = vadd.f32 %v5122_v17, %v5047_v26  ;;  %v4872_v26 = vmul.f32 %v11478_v32, %v10311_v1 }
 0x725   : > { %v5229_v63 = vadd.f32 %v10371_v31, %v5204_v22  ;;  %v5120_v8 = vpop.permute.xlu0 %5119  ;;  %v10401_v22 = vld [vmem:[#allocation2 + $0x38] sm:$0xff] }
 0x726   : > { %v5167_v56 = vsel %vm2762_vm1, %v5120_v8, %v5122_v17  ;;  %v5126_v36 = vpop.permute.xlu1 %5125  ;;  %v4847_v32 = vmul.f32 %v10401_v22, %v10319_v11  ;;  %v10413_v17 = vmul.f32 %v10409_v30, %v10319_v11  ;;  %v4897_v8 = vadd.f32 %v4873_v37, %v4848_v47 }
 0x727   : > { %v5253_v50 = vmax.f32 %v5229_v63, 0.0  ;;  %v5203_v44 = vadd.f32 %v5167_v56, %v5046_v48  ;;  %v5206_v29 = vadd.f32 %v5126_v36, %v5049_v54  ;;  %v4874_v63 = vmul.f32 %v9913_v3, %v10311_v1 }
 0x728   : > { %v4896_v54 = vadd.f32 %v4872_v26, %v4847_v32  ;;  %v10430_v26 = vld [vmem:[#allocation2 + $0x120] sm:$0xff]  ;;  %v5013_v47 = vsel %vm2762_vm1, %v10285_v6, %v10283_v20  ;;  %v4876_v32 = vmul.f32 %v9932_v13, %v10311_v1 }
 0x729   : > { %v5228_v9 = vadd.f32 %v10371_v31, %v5203_v44  ;;  %v5231_v16 = vadd.f32 %v10371_v31, %v5206_v29  ;;  %5302 = vrot.lane.b32.xlu1 %v5253_v50, %s6558_s29  ;;  %v5124_v48 = vpop.permute.xlu0 %5123  ;;  %v10426_v29 = vld [vmem:[#allocation2 + $0x48] sm:$0xff]  ;;  %v10434_v3 = vmul.f32 %v10430_v26, %v10311_v1 }
 0x72a   : > { %v5168_v56 = vsel %vm2762_vm1, %v5124_v48, %v5126_v36  ;;  %v5130_v4 = vpop.permute.xlu1 %5129  ;;  %v5053_v44 = vadd.f32 %v10283_v20, %v4896_v54  ;;  %v4849_v50 = vmul.f32 %v10426_v29, %v10319_v11  ;;  %v5052_v48 = vadd.f32 %v5013_v47, %v4895_v51  ;;  %v10453_v54 = vld [vmem:[#allocation2 + $0x58] sm:$0xff] }
 0x72b   : > { %v5252_v46 = vmax.f32 %v5228_v9, 0.0  ;;  %v5255_v30 = vmax.f32 %v5231_v16, 0.0  ;;  %v5205_v55 = vadd.f32 %v5168_v56, %v5048_v14  ;;  %v5208_v15 = vadd.f32 %v5130_v4, %v5051_v5  ;;  %v10445_v5 = vld [vmem:[#allocation2 + $0x70] sm:$0xff] }
 0x72c   : > { %v4898_v14 = vadd.f32 %v4874_v63, %v4849_v50  ;;  %v10449_v40 = vmul.f32 %v10445_v5, %v10319_v11  ;;  %v4851_v13 = vmul.f32 %v10453_v54, %v10319_v11  ;;  %v10457_v63 = vld [vmem:[#allocation2 + $0x130] sm:$0xff]  ;;  %v4899_v50 = vadd.f32 %v4875_v59, %v10398_v33 }
 0x72d   : > { %v5230_v37 = vadd.f32 %v10371_v31, %v5205_v55  ;;  %v5233_v7 = vadd.f32 %v10371_v31, %v5208_v15  ;;  %5306 = vrot.lane.b32.xlu1 %v5255_v30, %s6558_s29  ;;  %5300 = vrot.lane.b32.xlu0 %v5252_v46, %s6558_s29  ;;  %v5128_v36 = vpop.permute.xlu0 %5127  ;;  %v4879_v56 = vmul.f32 %v10457_v63, %v10311_v1 }
 0x72e   : > { %v5169_v20 = vsel %vm2762_vm1, %v5128_v36, %v5130_v4  ;;  %v5134_v6 = vpop.permute.xlu1 %5133  ;;  %v5055_v46 = vadd.f32 %v10287_v42, %v4898_v14  ;;  %v5014_v4 = vsel %vm2762_vm1, %v10289_v53, %v10287_v42  ;;  %v4878_v47 = vmul.f32 %v9951_v25, %v10311_v1 }
 0x72f   : > { %v5254_v55 = vmax.f32 %v5230_v37, 0.0  ;;  %v5257_v9 = vmax.f32 %v5233_v7, 0.0  ;;  %v5207_v16 = vadd.f32 %v5169_v20, %v5050_v62  ;;  %v5210_v30 = vadd.f32 %v5134_v6, %v5053_v44 }
 0x730   : > { %v4900_v44 = vadd.f32 %v4876_v32, %v4851_v13  ;;  %v5054_v20 = vadd.f32 %v5014_v4, %v4897_v8  ;;  %v5015_v33 = vsel %vm2762_vm1, %v10293_v57, %v10291_v2 }
 0x731   : > { %v5232_v15 = vadd.f32 %v10371_v31, %v5207_v16  ;;  %v5235_v51 = vadd.f32 %v10371_v31, %v5210_v30  ;;  %5310 = vrot.lane.b32.xlu1 %v5257_v9, %s6558_s29  ;;  %5304 = vrot.lane.b32.xlu0 %v5254_v55, %s6558_s29  ;;  %v5132_v62 = vpop.permute.xlu0 %5131  ;;  %v10473_v9 = vld [vmem:[#allocation2 + $0x68] sm:$0xff]  ;;  %v10477_v55 = vld [vmem:[#allocation2 + $0x80] sm:$0xff] }
 0x732   : > { %v5170_v37 = vsel %vm2762_vm1, %v5132_v62, %v5134_v6  ;;  %v5138_v7 = vpop.permute.xlu1 %5137  ;;  %v5057_v16 = vadd.f32 %v10291_v2, %v4900_v44  ;;  %v4853_v32 = vmul.f32 %v10473_v9, %v10319_v11  ;;  %11489 = vst [vmem:[#allocation16_spill] sm:$0xff] %v10477_v55  ;;  %v4856_v25 = vmul.f32 %v10477_v55, %v10319_v11 }
 0x733   : > { %v5256_v36 = vmax.f32 %v5232_v15, 0.0  ;;  %v5259_v42 = vmax.f32 %v5235_v51, 0.0  ;;  %v5209_v53 = vadd.f32 %v5170_v37, %v5052_v48  ;;  %v5212_v14 = vadd.f32 %v5138_v7, %v5055_v46  ;;  %v10490_v46 = vld [vmem:[#allocation2 + $0x140] sm:$0xff] }
 0x734   : > { %v4902_v30 = vadd.f32 %v4878_v47, %v4853_v32  ;;  %v4880_v48 = vmul.f32 %v9970_v49, %v10311_v1  ;;  %11490 = vst [vmem:[#allocation34_spill] sm:$0xff] %v10490_v46  ;;  %v4881_v13 = vmul.f32 %v10490_v46, %v10311_v1  ;;  %v5056_v44 = vadd.f32 %v5015_v33, %v4899_v50  ;;  %v10500_v47 = vld [vmem:[#allocation2 + $0x90] sm:$0xff] }
 0x735   : > { %v5234_v59 = vadd.f32 %v10371_v31, %v5209_v53  ;;  %v5237_v8 = vadd.f32 %v10371_v31, %v5212_v14  ;;  %5314 = vrot.lane.b32.xlu1 %v5259_v42, %s6558_s29  ;;  %5308 = vrot.lane.b32.xlu0 %v5256_v36, %s6558_s29  ;;  %v5136_v6 = vpop.permute.xlu0 %5135  ;;  %v10496_v36 = vld [vmem:[#allocation2 + $0x78] sm:$0xff]  ;;  %11491 = vst [vmem:[#allocation19_spill] sm:$0xff] %v10500_v47 }
 0x736   : > { %v5171_v2 = vsel %vm2762_vm1, %v5136_v6, %v5138_v7  ;;  %v5142_v57 = vpop.permute.xlu1 %5141  ;;  %v5059_v37 = vadd.f32 %v10295_v39, %v4902_v30  ;;  %v4855_v49 = vmul.f32 %v10496_v36, %v10319_v11  ;;  %v4858_v42 = vmul.f32 %v10500_v47, %v10319_v11 }
 0x737   : > { %v5258_v4 = vmax.f32 %v5234_v59, 0.0  ;;  %v5261_v15 = vmax.f32 %v5237_v8, 0.0  ;;  %v5211_v51 = vadd.f32 %v5171_v2, %v5054_v20  ;;  %v5214_v62 = vadd.f32 %v5142_v57, %v5057_v16 }
 0x738   : > { %v5016_v7 = vsel %vm2762_vm1, %v10297_v52, %v10295_v39  ;;  %v4901_v20 = vadd.f32 %v10434_v3, %v10413_v17  ;;  %v4904_v16 = vadd.f32 %v4880_v48, %v4855_v49  ;;  %v4882_v32 = vmul.f32 %v9989_v34, %v10311_v1 }
 0x739   : > { %v5236_v53 = vadd.f32 %v10371_v31, %v5211_v51  ;;  %v5239_v50 = vadd.f32 %v10371_v31, %v5214_v62  ;;  %5318 = vrot.lane.b32.xlu1 %v5261_v15, %s6558_s29  ;;  %5312 = vrot.lane.b32.xlu0 %v5258_v4, %s6558_s29  ;;  %v5140_v14 = vpop.permute.xlu0 %5139  ;;  %v4903_v4 = vadd.f32 %v4879_v56, %v10449_v40  ;;  %v10518_v15 = vld [vmem:[#allocation2 + $0x88] sm:$0xff]  ;;  %v10529_v40 = vld [vmem:[#allocation2 + $0x158] sm:$0xff]  ;;  %v10533_v62 = vld [vmem:[#allocation2 + $0x150] sm:$0xff] }
 0x73a   : > { %v5172_v33 = vsel %vm2762_vm1, %v5140_v14, %v5142_v57  ;;  %v5146_v59 = vpop.permute.xlu1 %5145  ;;  %v5058_v30 = vadd.f32 %v5016_v7, %v4901_v20  ;;  %v5061_v2 = vadd.f32 %v10299_v21, %v4904_v16  ;;  %v4857_v17 = vmul.f32 %v10518_v15, %v10319_v11  ;;  %11492 = vst [vmem:[#allocation32_spill] sm:$0xff] %v10529_v40  ;;  %v10539_v16 = vld [vmem:[#allocation2 + $0x98] sm:$0xff] }
 0x73b   : > { %v5260_v39 = vmax.f32 %v5236_v53, 0.0  ;;  %v5263_v52 = vmax.f32 %v5239_v50, 0.0  ;;  %v5213_v8 = vadd.f32 %v5172_v33, %v5056_v44  ;;  %v5216_v6 = vadd.f32 %v5146_v59, %v5059_v37  ;;  %11493 = vst [vmem:[#allocation40_spill] sm:$0xff] %v10533_v62  ;;  %11494 = vst [vmem:[#allocation43_spill] sm:$0xff] %v10539_v16 }
 0x73c   : > { %v5017_v34 = vsel %vm2762_vm1, %v10301_v35, %v10299_v21  ;;  %v4906_v51 = vadd.f32 %v4882_v32, %v4857_v17  ;;  %v4884_v56 = vmul.f32 %v10529_v40, %v10311_v1  ;;  %v4883_v21 = vmul.f32 %v10533_v62, %v10311_v1 }
 0x73d   : > { %v5238_v3 = vadd.f32 %v10371_v31, %v5213_v8  ;;  %v5241_v48 = vadd.f32 %v10371_v31, %v5216_v6  ;;  %5322 = vrot.lane.b32.xlu1 %v5263_v52, %s6558_s29  ;;  %5316 = vrot.lane.b32.xlu0 %v5260_v39, %s6558_s29  ;;  %v5144_v57 = vpop.permute.xlu0 %5143  ;;  %v5060_v50 = vadd.f32 %v5017_v34, %v4903_v4  ;;  %v10554_v6 = vld [vmem:[#allocation2 + $0x160] sm:$0xff] }
 0x73e   : > { %v5173_v35 = vsel %vm2762_vm1, %v5144_v57, %v5146_v59  ;;  %v5150_v44 = vpop.permute.xlu1 %5149  ;;  %v5063_v14 = vadd.f32 %v10303_v10, %v4906_v51  ;;  %v4905_v20 = vadd.f32 %v4881_v13, %v4856_v25  ;;  %v4859_v32 = vmul.f32 %v10539_v16, %v10319_v11  ;;  %v10550_v25 = vld [vmem:[#allocation2 + $0x168] sm:$0xff]  ;;  %11496 = vst [vmem:[#allocation42_spill] sm:$0xff] %v10554_v6 }
 0x73f   : > { %v5262_v37 = vmax.f32 %v5238_v3, 0.0  ;;  %v5265_v49 = vmax.f32 %v5241_v48, 0.0  ;;  %v5215_v7 = vadd.f32 %v5173_v35, %v5058_v30  ;;  %v5218_v53 = vadd.f32 %v5150_v44, %v5061_v2  ;;  %11495 = vst [vmem:[#allocation17_spill] sm:$0xff] %v10550_v25  ;;  %v10560_v51 = vld [vmem:[#allocation2 + $0xa8] sm:$0xff] }
 0x740   : > { %v5018_v33 = vsel %vm2762_vm1, %v10305_v58, %v10303_v10  ;;  %v4908_v8 = vadd.f32 %v4884_v56, %v4859_v32  ;;  %v4886_v13 = vmul.f32 %v10550_v25, %v10311_v1  ;;  %v4885_v10 = vmul.f32 %v10554_v6, %v10311_v1  ;;  %11497 = vst [vmem:[#allocation18_spill] sm:$0xff] %v10560_v51 }
 0x741   : > { %v5240_v59 = vadd.f32 %v10371_v31, %v5215_v7  ;;  %v5243_v39 = vadd.f32 %v10371_v31, %v5218_v53  ;;  %5326 = vrot.lane.b32.xlu1 %v5265_v49, %s6558_s29  ;;  %5320 = vrot.lane.b32.xlu0 %v5262_v37, %s6558_s29  ;;  %v5148_v52 = vpop.permute.xlu0 %5147  ;;  %v5062_v3 = vadd.f32 %v5018_v33, %v4905_v20  ;;  %v10575_v53 = vld [vmem:[#allocation2 + $0x178] sm:$0xff] }
 0x742   : > { %v5174_v58 = vsel %vm2762_vm1, %v5148_v52, %v5150_v44  ;;  %v5154_v30 = vpop.permute.xlu1 %5153  ;;  %v5065_v48 = vadd.f32 %v10307_v27, %v4908_v8  ;;  %v4907_v57 = vadd.f32 %v4883_v21, %v4858_v42  ;;  %v4861_v56 = vmul.f32 %v10560_v51, %v10319_v11  ;;  %v10571_v42 = vld [vmem:[#allocation2 + $0xb8] sm:$0xff]  ;;  %11499 = vst [vmem:[#allocation44_spill] sm:$0xff] %v10575_v53 }
 0x743   : > { %v5264_v2 = vmax.f32 %v5240_v59, 0.0  ;;  %v5267_v4 = vmax.f32 %v5243_v39, 0.0  ;;  %v5217_v17 = vadd.f32 %v5174_v58, %v5060_v50  ;;  %v5220_v34 = vadd.f32 %v5154_v30, %v5063_v14  ;;  %11498 = vst [vmem:[#allocation36_spill] sm:$0xff] %v10571_v42 }
 0x744   : > { %v5019_v35 = vsel %vm2762_vm1, %v10309_v12, %v10307_v27  ;;  %v4910_v7 = vadd.f32 %v4886_v13, %v4861_v56  ;;  %v4863_v21 = vmul.f32 %v10571_v42, %v10319_v11  ;;  %v4888_v27 = vmul.f32 %v10575_v53, %v10311_v1 }
 0x745   : > { %v5242_v44 = vadd.f32 %v10371_v31, %v5217_v17  ;;  %v5245_v37 = vadd.f32 %v10371_v31, %v5220_v34  ;;  %5330 = vrot.lane.b32.xlu1 %v5267_v4, %s6558_s29  ;;  %5324 = vrot.lane.b32.xlu0 %v5264_v2, %s6558_s29  ;;  %v5152_v49 = vpop.permute.xlu0 %5151  ;;  %v5064_v59 = vadd.f32 %v5019_v35, %v4907_v57  ;;  %v10590_v17 = vld [vmem:[#allocation2 + $0x170] sm:$0xff] }
 0x746   : > { %v5175_v12 = vsel %vm2762_vm1, %v5152_v49, %v5154_v30  ;;  %v5158_v50 = vpop.permute.xlu1 %5157  ;;  %v5067_v39 = vadd.f32 %v10313_v38, %v4910_v7  ;;  %v4860_v52 = vmul.f32 %v10119_v41, %v10319_v11  ;;  %v5020_v8 = vsel %vm2762_vm1, %v10329_v45, %v10313_v38  ;;  %11500 = vst [vmem:[#allocation25_spill] sm:$0xff] %v10590_v17 }
 0x747   : > { %v5266_v14 = vmax.f32 %v5242_v44, 0.0  ;;  %v5269_v20 = vmax.f32 %v5245_v37, 0.0  ;;  %v5219_v32 = vadd.f32 %v5175_v12, %v5062_v3  ;;  %v5222_v33 = vadd.f32 %v5158_v50, %v5065_v48 }
 0x748   : > { %v4909_v2 = vadd.f32 %v4885_v10, %v4860_v52  ;;  %v4912_v4 = vadd.f32 %v4888_v27, %v4863_v21  ;;  %v4887_v34 = vmul.f32 %v10590_v17, %v10311_v1  ;;  %v4862_v44 = vmul.f32 %v10125_v19, %v10319_v11 }
 0x749   : > { %v5244_v13 = vadd.f32 %v10371_v31, %v5219_v32  ;;  %v5247_v58 = vadd.f32 %v10371_v31, %v5222_v33  ;;  %5334 = vrot.lane.b32.xlu1 %v5269_v20, %s6558_s29  ;;  %5328 = vrot.lane.b32.xlu0 %v5266_v14, %s6558_s29  ;;  %v5156_v30 = vpop.permute.xlu0 %5155  ;;  %v5021_v21 = vsel %vm2762_vm1, %v10359_v18, %v10331_v60 }
 0x74a   : > { %v5176_v3 = vsel %vm2762_vm1, %v5156_v30, %v5158_v50  ;;  %v5162_v48 = vpop.permute.xlu1 %5161  ;;  %v5066_v35 = vadd.f32 %v5020_v8, %v4909_v2  ;;  %v5069_v37 = vadd.f32 %v10331_v60, %v4912_v4  ;;  %v4911_v7 = vadd.f32 %v4887_v34, %v4862_v44  ;;  %v11502_v44 = vld [vmem:[#allocation37_spill] sm:$0xff] }
 0x74b   : > { %v5268_v38 = vmax.f32 %v5244_v13, 0.0  ;;  %v5271_v45 = vmax.f32 %v5247_v58, 0.0  ;;  %v5221_v57 = vadd.f32 %v5176_v3, %v5064_v59  ;;  %v5224_v56 = vadd.f32 %v5162_v48, %v5067_v39 }
 0x74c   : > { %v5068_v32 = vadd.f32 %v5021_v21, %v4911_v7  ;;  %v5484_v58 = vstv %s6146_s20  ;;  %v11504_v21 = vld [vmem:[#allocation28_spill] sm:$0xff] }
 0x74d   : > { %v5246_v10 = vadd.f32 %v10371_v31, %v5221_v57  ;;  %v5249_v49 = vadd.f32 %v10371_v31, %v5224_v56  ;;  %5338 = vrot.lane.b32.xlu1 %v5271_v45, %s6558_s29  ;;  %5332 = vrot.lane.b32.xlu0 %v5268_v38, %s6558_s29  ;;  %v5160_v1 = vpop.permute.xlu0 %5159  ;;  %v5486_v2 = vmul.f32 %v10321_v28, %v5484_v58  ;;  %v11501_v57 = vld [vmem:[#allocation41_spill] sm:$0xff] }
 0x74e   : > { %v5177_v27 = vsel %vm2762_vm1, %v5160_v1, %v5162_v48  ;;  %v5166_v12 = vpop.permute.xlu1 %5165  ;;  %v5488_v4 = vmul.f32 %v10351_v23, %v5484_v58  ;;  %v5485_v34 = vmul.f32 %v10333_v61, %v5484_v58  ;;  %v5487_v3 = vmul.f32 %v10339_v43, %v5484_v58 }
 0x74f   : > { %v5270_v11 = vmax.f32 %v5246_v10, 0.0  ;;  %v5273_v50 = vmax.f32 %v5249_v49, 0.0  ;;  %v5223_v14 = vadd.f32 %v5177_v27, %v5066_v35  ;;  %v5226_v20 = vadd.f32 %v5166_v12, %v5069_v37  ;;  %v11503_v49 = vld [vmem:[#allocation27_spill] sm:$0xff] }
 0x750   : > { %v5492_v48 = vmul.f32 %v10401_v22, %v5484_v58  ;;  %v5489_v38 = vmul.f32 %v10355_v0, %v5484_v58  ;;  %v5494_v45 = vmul.f32 %v10426_v29, %v5484_v58  ;;  %v5491_v56 = vmul.f32 %v11501_v57, %v5484_v58 }
 0x751   : > { %v5248_v33 = vadd.f32 %v10371_v31, %v5223_v14  ;;  %v5251_v59 = vadd.f32 %v10371_v31, %v5226_v20  ;;  %5342 = vrot.lane.b32.xlu1 %v5273_v50, %s6558_s29  ;;  %5336 = vrot.lane.b32.xlu0 %v5270_v11, %s6558_s29  ;;  %v5164_v39 = vpop.permute.xlu0 %5163  ;;  %v5496_v35 = vmul.f32 %v10453_v54, %v5484_v58 }
 0x752   : > { %v5178_v60 = vsel %vm2762_vm1, %v5164_v39, %v5166_v12  ;;  %v5493_v37 = vmul.f32 %v11502_v44, %v5484_v58  ;;  %v5498_v10 = vmul.f32 %v10473_v9, %v5484_v58  ;;  %v5495_v1 = vmul.f32 %v11503_v49, %v5484_v58 }
 0x753   : > { %v5272_v18 = vmax.f32 %v5248_v33, 0.0  ;;  %v5275_v52 = vmax.f32 %v5251_v59, 0.0  ;;  %v5225_v8 = vadd.f32 %v5178_v60, %v5068_v32  ;;  %v5500_v7 = vmul.f32 %v10496_v36, %v5484_v58  ;;  %v10663_v60 = vld [vmem:[#allocation2 + $0xc8] sm:$0xff] }
 0x754   : > { %v5497_v27 = vmul.f32 %v11504_v21, %v5484_v58  ;;  %v5502_v12 = vmul.f32 %v10518_v15, %v5484_v58  ;;  %v5499_v11 = vmul.f32 %v10445_v5, %v5484_v58  ;;  %v5504_v50 = vmul.f32 %v10539_v16, %v5484_v58 }
 0x755   : > { %v5250_v13 = vadd.f32 %v10371_v31, %v5225_v8  ;;  %5346 = vrot.lane.b32.xlu1 %v5275_v52, %s6558_s29  ;;  %5340 = vrot.lane.b32.xlu0 %v5272_v18, %s6558_s29  ;;  %v5490_v31 = vmul.f32 %v10379_v24, %v5484_v58  ;;  %v5501_v14 = vmul.f32 %v10477_v55, %v5484_v58  ;;  %v10661_v39 = vstv %s6147_s23  ;;  %v10670_v8 = vld [vmem:[#allocation2 + $0xd8] sm:$0xff] }
 0x756   : > { %v5506_v20 = vmul.f32 %v10560_v51, %v5484_v58  ;;  %v5503_v32 = vmul.f32 %v10500_v47, %v5484_v58  ;;  %v5508_v33 = vmul.f32 %v10571_v42, %v5484_v58  ;;  %v5505_v59 = vmul.f32 %v10119_v41, %v5484_v58 }
 0x757   : > { %v5274_v30 = vmax.f32 %v5250_v13, 0.0  ;;  %v5643_v18 = vmul.f32 %v10663_v60, %v10661_v39  ;;  %v5507_v52 = vmul.f32 %v10125_v19, %v5484_v58  ;;  %v5645_v41 = vmul.f32 %v10670_v8, %v10661_v39  ;;  %v11505_v13 = vld [vmem:[#allocation22_spill] sm:$0xff]  ;;  %v11506_v58 = vld [vmem:[#allocation20_spill] sm:$0xff] }
 0x758   : > { %v10853_v51 = vstv %s6144_s7 }
 0x759   : > { %5535 = vrot.lane.b32.xlu1 %v5486_v2, %s6553_s26  ;;  %5344 = vrot.lane.b32.xlu0 %v5274_v30, %s6558_s29  ;;  %v5642_v30 = vmul.f32 %v11505_v13, %v10661_v39  ;;  %v10678_v2 = vld [vmem:[#allocation2 + $0xe8] sm:$0xff] }
 0x75a   : > { %v5647_v19 = vmul.f32 %v10678_v2, %v10661_v39 }
 0x75d   : > { %5539 = vrot.lane.b32.xlu1 %v5488_v4, %s6553_s26  ;;  %5533 = vrot.lane.b32.xlu0 %v5485_v34, %s6553_s26  ;;  %v5644_v4 = vmul.f32 %v11506_v58, %v10661_v39  ;;  %v10686_v34 = vld [vmem:[#allocation2 + $0xf8] sm:$0xff] }
 0x761   : > { %5543 = vrot.lane.b32.xlu1 %v5490_v31, %s6553_s26  ;;  %5537 = vrot.lane.b32.xlu0 %v5487_v3, %s6553_s26  ;;  %v5649_v31 = vmul.f32 %v10686_v34, %v10661_v39  ;;  %v11507_v3 = vld [vmem:[#allocation45_spill] sm:$0xff] }
 0x765   : > { %5547 = vrot.lane.b32.xlu1 %v5492_v48, %s6553_s26  ;;  %5541 = vrot.lane.b32.xlu0 %v5489_v38, %s6553_s26  ;;  %v5646_v48 = vmul.f32 %v11507_v3, %v10661_v39  ;;  %v10694_v38 = vld [vmem:[#allocation2 + $0x108] sm:$0xff] }
 0x769   : > { %5551 = vrot.lane.b32.xlu1 %v5494_v45, %s6553_s26  ;;  %5545 = vrot.lane.b32.xlu0 %v5491_v56, %s6553_s26  ;;  %v5651_v45 = vmul.f32 %v10694_v38, %v10661_v39  ;;  %v11508_v56 = vld [vmem:[#allocation30_spill] sm:$0xff] }
 0x76d   : > { %5555 = vrot.lane.b32.xlu1 %v5496_v35, %s6553_s26  ;;  %5549 = vrot.lane.b32.xlu0 %v5493_v37, %s6553_s26  ;;  %v5648_v35 = vmul.f32 %v11508_v56, %v10661_v39 }
 0x771   : > { %5559 = vrot.lane.b32.xlu1 %v5498_v10, %s6553_s26  ;;  %5553 = vrot.lane.b32.xlu0 %v5495_v1, %s6553_s26  ;;  %v10702_v10 = vld [vmem:[#allocation2 + $0x118] sm:$0xff] }
 0x772   : > { %v5653_v1 = vmul.f32 %v10702_v10, %v10661_v39 }
 0x775   : > { %5563 = vrot.lane.b32.xlu1 %v5500_v7, %s6553_s26  ;;  %5557 = vrot.lane.b32.xlu0 %v5497_v27, %s6553_s26  ;;  %v11509_v7 = vld [vmem:[#allocation35_spill] sm:$0xff] }
 0x776   : > { %v5650_v27 = vmul.f32 %v11509_v7, %v10661_v39 }
 0x779   : > { %5567 = vrot.lane.b32.xlu1 %v5502_v12, %s6553_s26  ;;  %5561 = vrot.lane.b32.xlu0 %v5499_v11, %s6553_s26 }
 0x77d   : > { %5571 = vrot.lane.b32.xlu1 %v5504_v50, %s6553_s26  ;;  %5565 = vrot.lane.b32.xlu0 %v5501_v14, %s6553_s26  ;;  %v10710_v50 = vld [vmem:[#allocation2 + $0x128] sm:$0xff] }
 0x77e   : > { %v5655_v14 = vmul.f32 %v10710_v50, %v10661_v39 }
 0x781   : > { %5575 = vrot.lane.b32.xlu1 %v5506_v20, %s6553_s26  ;;  %5569 = vrot.lane.b32.xlu0 %v5503_v32, %s6553_s26  ;;  %v11510_v20 = vld [vmem:[#allocation23_spill] sm:$0xff] }
 0x782   : > { %v5652_v32 = vmul.f32 %v11510_v20, %v10661_v39 }
 0x785   : > { %5579 = vrot.lane.b32.xlu1 %v5508_v33, %s6553_s26  ;;  %5573 = vrot.lane.b32.xlu0 %v5505_v59, %s6553_s26 }
 0x789   : > { %5692 = vrot.lane.b32.xlu1 %v5643_v18, %s6553_s26  ;;  %5577 = vrot.lane.b32.xlu0 %v5507_v52, %s6553_s26  ;;  %v10723_v52 = vld [vmem:[#allocation2 + $0x138] sm:$0xff] }
 0x78d   : > { %5696 = vrot.lane.b32.xlu1 %v5645_v41, %s6553_s26  ;;  %5690 = vrot.lane.b32.xlu0 %v5642_v30, %s6553_s26  ;;  %v5657_v41 = vmul.f32 %v10723_v52, %v10661_v39  ;;  %v5654_v30 = vmul.f32 %v10430_v26, %v10661_v39 }
 0x791   : > { %5700 = vrot.lane.b32.xlu1 %v5647_v19, %s6553_s26  ;;  %5694 = vrot.lane.b32.xlu0 %v5644_v4, %s6553_s26 }
 0x795   : > { %5704 = vrot.lane.b32.xlu1 %v5649_v31, %s6553_s26  ;;  %5698 = vrot.lane.b32.xlu0 %v5646_v48, %s6553_s26  ;;  %v10736_v48 = vld [vmem:[#allocation2 + $0x148] sm:$0xff] }
 0x799   : > { %5708 = vrot.lane.b32.xlu1 %v5651_v45, %s6553_s26  ;;  %5702 = vrot.lane.b32.xlu0 %v5648_v35, %s6553_s26  ;;  %v5659_v45 = vmul.f32 %v10736_v48, %v10661_v39  ;;  %v5656_v35 = vmul.f32 %v10457_v63, %v10661_v39 }
 0x79b   : > { %v5303_v37 = vpop.permute.xlu1 %5302 }
 0x79d   : > { %5712 = vrot.lane.b32.xlu1 %v5653_v1, %s6553_s26  ;;  %5706 = vrot.lane.b32.xlu0 %v5650_v27, %s6553_s26 }
 0x79f   : > { %v5307_v12 = vpop.permute.xlu1 %5306  ;;  %v5301_v11 = vpop.permute.xlu0 %5300 }
 0x7a0   : > { %v5348_v33 = vsel %vm4804_vm7, %v5301_v11, %v5303_v37  ;;  %5385 = vst.msk [vmem:[%s8532_s10 + $0x38] sm:$0xff] %vm5384_vm9, %v5301_v11  ;;  %v5658_v11 = vmul.f32 %v10490_v46, %v10661_v39  ;;  %v5413_v46 = vmul.f32 %v10339_v43, %v10853_v51 }
 0x7a1   : > { %5387 = vst.msk [vmem:[%s8532_s10 + $0x40] sm:$0xff] %vm5386_vm10, %v5348_v33  ;;  %5716 = vrot.lane.b32.xlu1 %v5655_v14, %s6553_s26  ;;  %5710 = vrot.lane.b32.xlu0 %v5652_v32, %s6553_s26 }
 0x7a3   : > { %v5311_v59 = vpop.permute.xlu1 %5310  ;;  %v5305_v18 = vpop.permute.xlu0 %5304 }
 0x7a4   : > { %v5349_v19 = vsel %vm4804_vm7, %v5305_v18, %v5307_v12  ;;  %5388 = vst.msk [vmem:[%s8532_s10 + $0x90] sm:$0xff] %vm5384_vm9, %v5305_v18  ;;  %v5661_v12 = vmul.f32 %v10529_v40, %v10661_v39  ;;  %v5660_v18 = vmul.f32 %v10533_v62, %v10661_v39 }
 0x7a5   : > { %5389 = vst.msk [vmem:[%s8532_s10 + $0x98] sm:$0xff] %vm5386_vm10, %v5349_v19  ;;  %5720 = vrot.lane.b32.xlu1 %v5657_v41, %s6553_s26  ;;  %5714 = vrot.lane.b32.xlu0 %v5654_v30, %s6553_s26 }
 0x7a7   : > { %v5315_v4 = vpop.permute.xlu1 %5314  ;;  %v5309_v31 = vpop.permute.xlu0 %5308 }
 0x7a8   : > { %v5350_v37 = vsel %vm4804_vm7, %v5309_v31, %v5311_v59  ;;  %5390 = vst.msk [vmem:[%s8532_s10 + $0xe8] sm:$0xff] %vm5384_vm9, %v5309_v31  ;;  %v5663_v59 = vmul.f32 %v10550_v25, %v10661_v39  ;;  %v5662_v31 = vmul.f32 %v10554_v6, %v10661_v39  ;;  %v5412_v25 = vmul.f32 %v10321_v28, %v10853_v51 }
 0x7a9   : > { %5391 = vst.msk [vmem:[%s8532_s10 + $0xf0] sm:$0xff] %vm5386_vm10, %v5350_v37  ;;  %5724 = vrot.lane.b32.xlu1 %v5659_v45, %s6553_s26  ;;  %5718 = vrot.lane.b32.xlu0 %v5656_v35, %s6553_s26 }
 0x7ab   : > { %v5319_v1 = vpop.permute.xlu1 %5318  ;;  %v5313_v27 = vpop.permute.xlu0 %5312 }
 0x7ac   : > { %v5351_v14 = vsel %vm4804_vm7, %v5313_v27, %v5315_v4  ;;  %5392 = vst.msk [vmem:[%s8532_s10 + $0x140] sm:$0xff] %vm5384_vm9, %v5313_v27  ;;  %v5665_v4 = vmul.f32 %v10575_v53, %v10661_v39 }
 0x7ad   : > { %5393 = vst.msk [vmem:[%s8532_s10 + $0x148] sm:$0xff] %vm5386_vm10, %v5351_v14  ;;  %5728 = vrot.lane.b32.xlu1 %v5661_v12, %s6553_s26  ;;  %5722 = vrot.lane.b32.xlu0 %v5658_v11, %s6553_s26 }
 0x7af   : > { %v5323_v32 = vpop.permute.xlu1 %5322  ;;  %v5317_v33 = vpop.permute.xlu0 %5316 }
 0x7b0   : > { %v5352_v41 = vsel %vm4804_vm7, %v5317_v33, %v5319_v1  ;;  %5394 = vst.msk [vmem:[%s8532_s10 + $0x198] sm:$0xff] %vm5384_vm9, %v5317_v33  ;;  %v5664_v1 = vmul.f32 %v10590_v17, %v10661_v39 }
 0x7b1   : > { %5395 = vst.msk [vmem:[%s8532_s10 + $0x1a0] sm:$0xff] %vm5386_vm10, %v5352_v41  ;;  %5732 = vrot.lane.b32.xlu1 %v5663_v59, %s6553_s26  ;;  %5726 = vrot.lane.b32.xlu0 %v5660_v18, %s6553_s26 }
 0x7b3   : > { %v5327_v30 = vpop.permute.xlu1 %5326  ;;  %v5321_v19 = vpop.permute.xlu0 %5320 }
 0x7b4   : > { %v5353_v45 = vsel %vm4804_vm7, %v5321_v19, %v5323_v32  ;;  %5396 = vst.msk [vmem:[%s8532_s10 + $0x1f0] sm:$0xff] %vm5384_vm9, %v5321_v19 }
 0x7b5   : > { %5397 = vst.msk [vmem:[%s8532_s10 + $0x1f8] sm:$0xff] %vm5386_vm10, %v5353_v45  ;;  %5736 = vrot.lane.b32.xlu1 %v5665_v4, %s6553_s26  ;;  %5730 = vrot.lane.b32.xlu0 %v5662_v31, %s6553_s26 }
 0x7b7   : > { %v5331_v35 = vpop.permute.xlu1 %5330  ;;  %v5325_v37 = vpop.permute.xlu0 %5324 }
 0x7b8   : > { %v5354_v27 = vsel %vm4804_vm7, %v5325_v37, %v5327_v30  ;;  %5398 = vst.msk [vmem:[%s8532_s10 + $0x248] sm:$0xff] %vm5384_vm9, %v5325_v37 }
 0x7b9   : > { %5399 = vst.msk [vmem:[%s8532_s10 + $0x250] sm:$0xff] %vm5386_vm10, %v5354_v27  ;;  %5734 = vrot.lane.b32.xlu0 %v5664_v1, %s6553_s26  ;;  %s6145_s26 = sld [smem:[#allocation3 + $0x15]] }
 0x7bb   : > { %v5335_v12 = vpop.permute.xlu1 %5334  ;;  %v5329_v11 = vpop.permute.xlu0 %5328 }
 0x7bc   : > { %v5355_v14 = vsel %vm4804_vm7, %v5329_v11, %v5331_v35  ;;  %5400 = vst.msk [vmem:[%s8532_s10 + $0x2a0] sm:$0xff] %vm5384_vm9, %v5329_v11 }
 0x7bd   : > { %5401 = vst.msk [vmem:[%s8532_s10 + $0x2a8] sm:$0xff] %vm5386_vm10, %v5355_v14 }
 0x7bf   : > { %v5339_v39 = vpop.permute.xlu1 %5338  ;;  %v5333_v32 = vpop.permute.xlu0 %5332  ;;  %v10845_v6 = vstv %s6145_s26 }
 0x7c0   : > { %v5356_v33 = vsel %vm4804_vm7, %v5333_v32, %v5335_v12  ;;  %5402 = vst.msk [vmem:[%s8532_s10 + $0x2f8] sm:$0xff] %vm5384_vm9, %v5333_v32  ;;  %v5437_v47 = vmul.f32 %v10663_v60, %v10845_v6  ;;  %v5439_v55 = vmul.f32 %v10670_v8, %v10845_v6  ;;  %v5414_v60 = vmul.f32 %v10351_v23, %v10853_v51 }
 0x7c1   : > { %5403 = vst.msk [vmem:[%s8532_s10 + $0x300] sm:$0xff] %vm5386_vm10, %v5356_v33  ;;  %v5441_v28 = vmul.f32 %v10678_v2, %v10845_v6  ;;  %v5438_v23 = vmul.f32 %v11506_v58, %v10845_v6 }
 0x7c3   : > { %v5343_v59 = vpop.permute.xlu1 %5342  ;;  %v5337_v18 = vpop.permute.xlu0 %5336  ;;  %v5462_v58 = vadd.f32 %v5438_v23, %v5413_v46 }
 0x7c4   : > { %v5357_v41 = vsel %vm4804_vm7, %v5337_v18, %v5339_v39  ;;  %5404 = vst.msk [vmem:[%s8532_s10 + $0x350] sm:$0xff] %vm5384_vm9, %v5337_v18 }
 0x7c5   : > { %5405 = vst.msk [vmem:[%s8532_s10 + $0x358] sm:$0xff] %vm5386_vm10, %v5357_v41 }
 0x7c7   : > { %v5347_v30 = vpop.permute.xlu1 %5346  ;;  %v5341_v19 = vpop.permute.xlu0 %5340 }
 0x7c8   : > { %v5358_v4 = vsel %vm4804_vm7, %v5341_v19, %v5343_v59  ;;  %5406 = vst.msk [vmem:[%s8532_s10 + $0x3a8] sm:$0xff] %vm5384_vm9, %v5341_v19 }
 0x7c9   : > { %5407 = vst.msk [vmem:[%s8532_s10 + $0x3b0] sm:$0xff] %vm5386_vm10, %v5358_v4 }
 0x7cb   : > { %v5536_v31 = vpop.permute.xlu1 %5535  ;;  %v5345_v45 = vpop.permute.xlu0 %5344 }
 0x7cc   : > { %v5359_v35 = vsel %vm4804_vm7, %v5345_v45, %v5347_v30  ;;  %5408 = vst.msk [vmem:[%s8532_s10 + $0x400] sm:$0xff] %vm5384_vm9, %v5345_v45 }
 0x7cd   : > { %5409 = vst.msk [vmem:[%s8532_s10 + $0x408] sm:$0xff] %vm5386_vm10, %v5359_v35 }
 0x7cf   : > { %v5540_v37 = vpop.permute.xlu1 %5539  ;;  %v5534_v1 = vpop.permute.xlu0 %5533 }
 0x7d0   : > { %v5581_v8 = vsel %vm2762_vm1, %v5534_v1, %v5536_v31 }
 0x7d3   : > { %v10815_v27 = vpop.permute.xlu1 %5543  ;;  %v5538_v12 = vpop.permute.xlu0 %5537 }
 0x7d7   : > { %v10817_v11 = vpop.permute.xlu1 %5547  ;;  %v10819_v14 = vpop.permute.xlu0 %5541 }
 0x7db   : > { %v10821_v39 = vpop.permute.xlu1 %5551  ;;  %v10823_v32 = vpop.permute.xlu0 %5545 }
 0x7df   : > { %v10825_v33 = vpop.permute.xlu1 %5555  ;;  %v10827_v59 = vpop.permute.xlu0 %5549 }
 0x7e3   : > { %v10829_v18 = vpop.permute.xlu1 %5559  ;;  %v10831_v41 = vpop.permute.xlu0 %5553 }
 0x7e7   : > { %v10833_v30 = vpop.permute.xlu1 %5563  ;;  %v10835_v19 = vpop.permute.xlu0 %5557 }
 0x7eb   : > { %v10837_v4 = vpop.permute.xlu1 %5567  ;;  %v10839_v45 = vpop.permute.xlu0 %5561 }
 0x7ec   : > { %11511 = vst [vmem:[#allocation26_spill] sm:$0xff] %v10837_v4  ;;  %11512 = vst [vmem:[#allocation33_spill] sm:$0xff] %v10839_v45  ;;  %v5411_v4 = vmul.f32 %v10333_v61, %v10853_v51 }
 0x7ef   : > { %v10841_v35 = vpop.permute.xlu1 %5571  ;;  %v10843_v17 = vpop.permute.xlu0 %5565 }
 0x7f0   : > { %11513 = vst [vmem:[#allocation24_spill] sm:$0xff] %v10841_v35  ;;  %11514 = vst [vmem:[#allocation15_spill] sm:$0xff] %v10843_v17  ;;  %v5461_v17 = vadd.f32 %v5437_v47, %v5412_v25  ;;  %v5463_v25 = vadd.f32 %v5439_v55, %v5414_v60  ;;  %v5443_v55 = vmul.f32 %v10686_v34, %v10845_v6 }
 0x7f1   : > { %v5440_v60 = vmul.f32 %v11507_v3, %v10845_v6  ;;  %v5415_v34 = vmul.f32 %v10355_v0, %v10853_v51  ;;  %v5583_v0 = vsel %vm2762_vm1, %v10819_v14, %v10815_v27 }
 0x7f2   : > { %v5620_v61 = vadd.f32 %v5540_v37, %v5463_v25 }
 0x7f3   : > { %v10847_v53 = vpop.permute.xlu1 %5575  ;;  %v10849_v42 = vpop.permute.xlu0 %5569 }
 0x7f4   : > { %11515 = vst [vmem:[#allocation29_spill] sm:$0xff] %v10847_v53  ;;  %11516 = vst [vmem:[#allocation38_spill] sm:$0xff] %v10849_v42  ;;  %v5436_v53 = vmul.f32 %v11505_v13, %v10845_v6  ;;  %v5618_v42 = vadd.f32 %v5536_v31, %v5461_v17  ;;  %v5416_v17 = vmul.f32 %v10379_v24, %v10853_v51 }
 0x7f6   : > { %v5460_v13 = vadd.f32 %v5436_v53, %v5411_v4  ;;  %v5465_v40 = vadd.f32 %v5441_v28, %v5416_v17  ;;  %v5582_v53 = vsel %vm2762_vm1, %v5538_v12, %v5540_v37  ;;  %v5442_v37 = vmul.f32 %v11508_v56, %v10845_v6 }
 0x7f7   : > { %v10857_v62 = vpop.permute.xlu1 %5579  ;;  %v10859_v35 = vpop.permute.xlu0 %5573  ;;  %v5619_v46 = vadd.f32 %v5582_v53, %v5462_v58  ;;  %v5420_v17 = vmul.f32 %v10426_v29, %v10853_v51 }
 0x7f8   : > { %11517 = vst [vmem:[#allocation31_spill] sm:$0xff] %v10857_v62  ;;  %11518 = vst [vmem:[#allocation21_spill] sm:$0xff] %v10859_v35  ;;  %v10871_v62 = vstv %s6152_s28  ;;  %v5617_v2 = vadd.f32 %v5581_v8, %v5460_v13  ;;  %v5622_v43 = vadd.f32 %v10815_v27, %v5465_v40  ;;  %v5464_v13 = vadd.f32 %v5440_v60, %v5415_v34 }
 0x7f9   : > { %v5446_v34 = vmul.f32 %v11510_v20, %v10845_v6 }
 0x7fa   : > { %v5621_v14 = vadd.f32 %v5583_v0, %v5464_v13 }
 0x7fb   : > { %v5693_v35 = vpop.permute.xlu1 %5692  ;;  %v10873_v47 = vpop.permute.xlu0 %5577 }
 0x7fc   : > { %v5775_v16 = vadd.f32 %v5693_v35, %v5618_v42 }
 0x7fe   : > { %v5800_v45 = vadd.f32 %v10871_v62, %v5775_v16  ;;  %v5418_v16 = vmul.f32 %v10401_v22, %v10853_v51  ;;  %v5445_v22 = vmul.f32 %v10694_v38, %v10845_v6 }
 0x7ff   : > { %v5697_v31 = vpop.permute.xlu1 %5696  ;;  %v5691_v42 = vpop.permute.xlu0 %5690 }
 0x800   : > { %v5824_v1 = vmax.f32 %v5800_v45, 0.0  ;;  %v5777_v24 = vadd.f32 %v5697_v31, %v5620_v61  ;;  %v5738_v4 = vsel %vm2762_vm1, %v5691_v42, %v5693_v35  ;;  %v5467_v45 = vadd.f32 %v5443_v55, %v5418_v16 }
 0x801   : > { %v5774_v28 = vadd.f32 %v5738_v4, %v5617_v2  ;;  %v5417_v2 = vmul.f32 %v11501_v57, %v10853_v51  ;;  %v5444_v55 = vmul.f32 %v11509_v7, %v10845_v6  ;;  %v5447_v42 = vmul.f32 %v10702_v10, %v10845_v6 }
 0x802   : > { %v5802_v12 = vadd.f32 %v10871_v62, %v5777_v24  ;;  %5873 = vrot.lane.b32.xlu1 %v5824_v1, %s6559_s30  ;;  %v5624_v38 = vadd.f32 %v10817_v11, %v5467_v45  ;;  %v5584_v57 = vsel %vm2762_vm1, %v10823_v32, %v10817_v11  ;;  %v5422_v16 = vmul.f32 %v10453_v54, %v10853_v51 }
 0x803   : > { %v5799_v3 = vadd.f32 %v10871_v62, %v5774_v28  ;;  %v5701_v35 = vpop.permute.xlu1 %5700  ;;  %v5695_v40 = vpop.permute.xlu0 %5694  ;;  %v5466_v58 = vadd.f32 %v5442_v37, %v5417_v2  ;;  %v5449_v37 = vmul.f32 %v10710_v50, %v10845_v6 }
 0x804   : > { %v5826_v25 = vmax.f32 %v5802_v12, 0.0  ;;  %v5779_v56 = vadd.f32 %v5701_v35, %v5622_v43  ;;  %v5739_v8 = vsel %vm2762_vm1, %v5695_v40, %v5697_v31  ;;  %v5469_v31 = vadd.f32 %v5445_v22, %v5420_v17 }
 0x805   : > { %v5823_v23 = vmax.f32 %v5799_v3, 0.0  ;;  %v5776_v61 = vadd.f32 %v5739_v8, %v5619_v46  ;;  %v5419_v43 = vmul.f32 %v11502_v44, %v10853_v51  ;;  %v5623_v32 = vadd.f32 %v5584_v57, %v5466_v58 }
 0x806   : > { %v5804_v27 = vadd.f32 %v10871_v62, %v5779_v56  ;;  %5877 = vrot.lane.b32.xlu1 %v5826_v25, %s6559_s30  ;;  %v5626_v28 = vadd.f32 %v10821_v39, %v5469_v31  ;;  %v5471_v12 = vadd.f32 %v5447_v42, %v5422_v16  ;;  %v5585_v44 = vsel %vm2762_vm1, %v10827_v59, %v10821_v39 }
 0x807   : > { %v5801_v29 = vadd.f32 %v10871_v62, %v5776_v61  ;;  %v5705_v53 = vpop.permute.xlu1 %5704  ;;  %5871 = vrot.lane.b32.xlu0 %v5823_v23, %s6559_s30  ;;  %v5699_v1 = vpop.permute.xlu0 %5698  ;;  %v5424_v40 = vmul.f32 %v10473_v9, %v10853_v51  ;;  %v5421_v56 = vmul.f32 %v11503_v49, %v10853_v51  ;;  %v5448_v8 = vmul.f32 %v10430_v26, %v10845_v6 }
 0x808   : > { %v5828_v7 = vmax.f32 %v5804_v27, 0.0  ;;  %v5781_v24 = vadd.f32 %v5705_v53, %v5624_v38  ;;  %v5740_v4 = vsel %vm2762_vm1, %v5699_v1, %v5701_v35  ;;  %v5468_v35 = vadd.f32 %v5444_v55, %v5419_v43  ;;  %v11519_v43 = vld [vmem:[#allocation34_spill] sm:$0xff] }
 0x809   : > { %v5825_v60 = vmax.f32 %v5801_v29, 0.0  ;;  %v5778_v10 = vadd.f32 %v5740_v4, %v5621_v14  ;;  %v5628_v25 = vadd.f32 %v10825_v33, %v5471_v12  ;;  %v5473_v13 = vadd.f32 %v5449_v37, %v5424_v40 }
 0x80a   : > { %v5806_v11 = vadd.f32 %v10871_v62, %v5781_v24  ;;  %5881 = vrot.lane.b32.xlu1 %v5828_v7, %s6559_s30  ;;  %v5625_v59 = vadd.f32 %v5585_v44, %v5468_v35  ;;  %v5451_v17 = vmul.f32 %v10723_v52, %v10845_v6  ;;  %v5586_v49 = vsel %vm2762_vm1, %v10831_v41, %v10825_v33 }
 0x80b   : > { %v5803_v54 = vadd.f32 %v10871_v62, %v5778_v10  ;;  %v5709_v46 = vpop.permute.xlu1 %5708  ;;  %5875 = vrot.lane.b32.xlu0 %v5825_v60, %s6559_s30  ;;  %v5703_v45 = vpop.permute.xlu0 %5702  ;;  %v5470_v55 = vadd.f32 %v5446_v34, %v5421_v56  ;;  %v5426_v27 = vmul.f32 %v10496_v36, %v10853_v51  ;;  %v5630_v31 = vadd.f32 %v10829_v18, %v5473_v13  ;;  %v11524_v56 = vld [vmem:[#allocation16_spill] sm:$0xff] }
 0x80c   : > { %v5830_v20 = vmax.f32 %v5806_v11, 0.0  ;;  %v5783_v22 = vadd.f32 %v5709_v46, %v5626_v28  ;;  %v5741_v3 = vsel %vm2762_vm1, %v5703_v45, %v5705_v53  ;;  %v5423_v42 = vmul.f32 %v11504_v21, %v10853_v51 }
 0x80d   : > { %v5827_v0 = vmax.f32 %v5803_v54, 0.0  ;;  %v5780_v50 = vadd.f32 %v5741_v3, %v5623_v32  ;;  %v5450_v29 = vmul.f32 %v10457_v63, %v10845_v6  ;;  %v5627_v41 = vadd.f32 %v5586_v49, %v5470_v55  ;;  %v11520_v32 = vld [vmem:[#allocation32_spill] sm:$0xff]  ;;  %v11522_v3 = vld [vmem:[#allocation43_spill] sm:$0xff] }
 0x80e   : > { %v5808_v39 = vadd.f32 %v10871_v62, %v5783_v22  ;;  %5885 = vrot.lane.b32.xlu1 %v5830_v20, %s6559_s30  ;;  %v5475_v53 = vadd.f32 %v5451_v17, %v5426_v27  ;;  %v5453_v1 = vmul.f32 %v10736_v48, %v10845_v6  ;;  %v5587_v21 = vsel %vm2762_vm1, %v10835_v19, %v10829_v18 }
 0x80f   : > { %v5805_v9 = vadd.f32 %v10871_v62, %v5780_v50  ;;  %v5713_v23 = vpop.permute.xlu1 %5712  ;;  %5879 = vrot.lane.b32.xlu0 %v5827_v0, %s6559_s30  ;;  %v5707_v61 = vpop.permute.xlu0 %5706  ;;  %v5472_v58 = vadd.f32 %v5448_v8, %v5423_v42  ;;  %v5428_v16 = vmul.f32 %v10518_v15, %v10853_v51  ;;  %v5425_v28 = vmul.f32 %v10445_v5, %v10853_v51  ;;  %v11521_v5 = vld [vmem:[#allocation33_spill] sm:$0xff]  ;;  %v11523_v50 = vld [vmem:[#allocation26_spill] sm:$0xff] }
 0x810   : > { %v5832_v26 = vmax.f32 %v5808_v39, 0.0  ;;  %v5785_v38 = vadd.f32 %v5713_v23, %v5628_v25  ;;  %v5742_v2 = vsel %vm2762_vm1, %v5707_v61, %v5709_v46  ;;  %v5632_v10 = vadd.f32 %v10833_v30, %v5475_v53  ;;  %v11525_v39 = vld [vmem:[#allocation40_spill] sm:$0xff] }
 0x811   : > { %v5829_v14 = vmax.f32 %v5805_v9, 0.0  ;;  %v5782_v52 = vadd.f32 %v5742_v2, %v5625_v59  ;;  %v5452_v34 = vmul.f32 %v11519_v43, %v10845_v6  ;;  %v5629_v19 = vadd.f32 %v5587_v21, %v5472_v58  ;;  %v11526_v9 = vld [vmem:[#allocation17_spill] sm:$0xff] }
 0x812   : > { %v5810_v33 = vadd.f32 %v10871_v62, %v5785_v38  ;;  %5889 = vrot.lane.b32.xlu1 %v5832_v26, %s6559_s30  ;;  %v5477_v11 = vadd.f32 %v5453_v1, %v5428_v16  ;;  %v5455_v12 = vmul.f32 %v11520_v32, %v10845_v6  ;;  %v5588_v46 = vsel %vm2762_vm1, %v11521_v5, %v10833_v30  ;;  %v11527_v38 = vld [vmem:[#allocation15_spill] sm:$0xff] }
 0x813   : > { %v5807_v36 = vadd.f32 %v10871_v62, %v5782_v52  ;;  %v5717_v57 = vpop.permute.xlu1 %5716  ;;  %5883 = vrot.lane.b32.xlu0 %v5829_v14, %s6559_s30  ;;  %v5711_v7 = vpop.permute.xlu0 %5710  ;;  %v5474_v22 = vadd.f32 %v5450_v29, %v5425_v28  ;;  %v5430_v35 = vmul.f32 %v11522_v3, %v10853_v51  ;;  %v5427_v8 = vmul.f32 %v11524_v56, %v10853_v51  ;;  %v11530_v1 = vld [vmem:[#allocation19_spill] sm:$0xff] }
 0x814   : > { %v5834_v63 = vmax.f32 %v5810_v33, 0.0  ;;  %v5787_v24 = vadd.f32 %v5717_v57, %v5630_v31  ;;  %v5743_v4 = vsel %vm2762_vm1, %v5711_v7, %v5713_v23  ;;  %v5634_v25 = vadd.f32 %v11523_v50, %v5477_v11  ;;  %v11528_v31 = vld [vmem:[#allocation18_spill] sm:$0xff] }
 0x815   : > { %v5831_v60 = vmax.f32 %v5807_v36, 0.0  ;;  %v5784_v48 = vadd.f32 %v5743_v4, %v5627_v41  ;;  %v5454_v59 = vmul.f32 %v11525_v39, %v10845_v6  ;;  %v5631_v13 = vadd.f32 %v5588_v46, %v5474_v22  ;;  %v11529_v41 = vld [vmem:[#allocation24_spill] sm:$0xff]  ;;  %v11534_v11 = vld [vmem:[#allocation42_spill] sm:$0xff]  ;;  %v11537_v39 = vld [vmem:[#allocation25_spill] sm:$0xff] }
 0x816   : > { %v5812_v18 = vadd.f32 %v10871_v62, %v5787_v24  ;;  %5893 = vrot.lane.b32.xlu1 %v5834_v63, %s6559_s30  ;;  %v5479_v17 = vadd.f32 %v5455_v12, %v5430_v35  ;;  %v5457_v23 = vmul.f32 %v11526_v9, %v10845_v6  ;;  %v5589_v2 = vsel %vm2762_vm1, %v11527_v38, %v11523_v50  ;;  %v11532_v4 = vld [vmem:[#allocation44_spill] sm:$0xff] }
 0x817   : > { %v5809_v15 = vadd.f32 %v10871_v62, %v5784_v48  ;;  %v5721_v37 = vpop.permute.xlu1 %5720  ;;  %5887 = vrot.lane.b32.xlu0 %v5831_v60, %s6559_s30  ;;  %v5715_v54 = vpop.permute.xlu0 %5714  ;;  %v5476_v52 = vadd.f32 %v5452_v34, %v5427_v8  ;;  %v5432_v42 = vmul.f32 %v11528_v31, %v10853_v51  ;;  %v5429_v36 = vmul.f32 %v11530_v1, %v10853_v51 }
 0x818   : > { %v5836_v45 = vmax.f32 %v5812_v18, 0.0  ;;  %v5789_v44 = vadd.f32 %v5721_v37, %v5632_v10  ;;  %v5744_v20 = vsel %vm2762_vm1, %v5715_v54, %v5717_v57  ;;  %v5636_v53 = vadd.f32 %v11529_v41, %v5479_v17  ;;  %v11531_v57 = vld [vmem:[#allocation36_spill] sm:$0xff]  ;;  %v11533_v10 = vld [vmem:[#allocation38_spill] sm:$0xff]  ;;  %v11538_v17 = vld [vmem:[#allocation31_spill] sm:$0xff] }
 0x819   : > { %v5833_v40 = vmax.f32 %v5809_v15, 0.0  ;;  %v5786_v0 = vadd.f32 %v5744_v20, %v5629_v19  ;;  %v5434_v7 = vmul.f32 %v11531_v57, %v10853_v51  ;;  %v5633_v63 = vadd.f32 %v5589_v2, %v5476_v52 }
 0x81a   : > { %v5814_v30 = vadd.f32 %v10871_v62, %v5789_v44  ;;  %5897 = vrot.lane.b32.xlu1 %v5836_v45, %s6559_s30  ;;  %v5481_v24 = vadd.f32 %v5457_v23, %v5432_v42  ;;  %v5459_v58 = vmul.f32 %v11532_v4, %v10845_v6  ;;  %v5590_v28 = vsel %vm2762_vm1, %v11533_v10, %v11529_v41  ;;  %v6400_v44 = vld [vmem:[#allocation2 + $0xa0] sm:$0xff] }
 0x81b   : > { %v5811_v61 = vadd.f32 %v10871_v62, %v5786_v0  ;;  %v5725_v49 = vpop.permute.xlu1 %5724  ;;  %5891 = vrot.lane.b32.xlu0 %v5833_v40, %s6559_s30  ;;  %v5719_v26 = vpop.permute.xlu0 %5718  ;;  %v5478_v19 = vadd.f32 %v5454_v59, %v5429_v36  ;;  %v5456_v32 = vmul.f32 %v11534_v11, %v10845_v6  ;;  %v5431_v20 = vmul.f32 %v6400_v44, %v10853_v51  ;;  %v11536_v40 = vld [vmem:[#allocation21_spill] sm:$0xff] }
 0x81c   : > { %v5838_v55 = vmax.f32 %v5814_v30, 0.0  ;;  %v5791_v27 = vadd.f32 %v5725_v49, %v5634_v25  ;;  %v5745_v14 = vsel %vm2762_vm1, %v5719_v26, %v5721_v37  ;;  %v11535_v37 = vld [vmem:[#allocation29_spill] sm:$0xff]  ;;  %v5483_v45 = vadd.f32 %v5459_v58, %v5434_v7 }
 0x81d   : > { %v5835_v29 = vmax.f32 %v5811_v61, 0.0  ;;  %v5788_v33 = vadd.f32 %v5745_v14, %v5631_v13  ;;  %v5638_v54 = vadd.f32 %v11535_v37, %v5481_v24  ;;  %v5635_v46 = vadd.f32 %v5590_v28, %v5478_v19 }
 0x81e   : > { %v5816_v21 = vadd.f32 %v10871_v62, %v5791_v27  ;;  %5901 = vrot.lane.b32.xlu1 %v5838_v55, %s6559_s30  ;;  %v5591_v0 = vsel %vm2762_vm1, %v11536_v40, %v11535_v37  ;;  %v5480_v8 = vadd.f32 %v5456_v32, %v5431_v20  ;;  %v5458_v59 = vmul.f32 %v11537_v39, %v10845_v6 }
 0x81f   : > { %v5813_v16 = vadd.f32 %v10871_v62, %v5788_v33  ;;  %v5729_v60 = vpop.permute.xlu1 %5728  ;;  %5895 = vrot.lane.b32.xlu0 %v5835_v29, %s6559_s30  ;;  %v5723_v48 = vpop.permute.xlu0 %5722  ;;  %v5640_v9 = vadd.f32 %v11538_v17, %v5483_v45  ;;  %v5592_v6 = vsel %vm2762_vm1, %v10873_v47, %v11538_v17 }
 0x820   : > { %v5840_v43 = vmax.f32 %v5816_v21, 0.0  ;;  %v5793_v34 = vadd.f32 %v5729_v60, %v5636_v53  ;;  %v5746_v18 = vsel %vm2762_vm1, %v5723_v48, %v5725_v49  ;;  %v5637_v61 = vadd.f32 %v5591_v0, %v5480_v8  ;;  %v6401_v49 = vld [vmem:[#allocation2 + $0xb0] sm:$0xff] }
 0x821   : > { %v5837_v12 = vmax.f32 %v5813_v16, 0.0  ;;  %v5790_v15 = vadd.f32 %v5746_v18, %v5633_v63  ;;  %v5433_v26 = vmul.f32 %v6401_v49, %v10853_v51 }
 0x822   : > { %v5818_v5 = vadd.f32 %v10871_v62, %v5793_v34  ;;  %5905 = vrot.lane.b32.xlu1 %v5840_v43, %s6559_s30 }
 0x823   : > { %v5815_v22 = vadd.f32 %v10871_v62, %v5790_v15  ;;  %v5733_v3 = vpop.permute.xlu1 %5732  ;;  %5899 = vrot.lane.b32.xlu0 %v5837_v12, %s6559_s30  ;;  %v5727_v35 = vpop.permute.xlu0 %5726  ;;  %v5482_v31 = vadd.f32 %v5458_v59, %v5433_v26 }
 0x824   : > { %v5842_v50 = vmax.f32 %v5818_v5, 0.0  ;;  %v5795_v25 = vadd.f32 %v5733_v3, %v5638_v54  ;;  %v5747_v56 = vsel %vm2762_vm1, %v5727_v35, %v5729_v60 }
 0x825   : > { %v5839_v30 = vmax.f32 %v5815_v22, 0.0  ;;  %v5792_v13 = vadd.f32 %v5747_v56, %v5635_v46  ;;  %v5639_v51 = vadd.f32 %v5592_v6, %v5482_v31 }
 0x826   : > { %v5820_v23 = vadd.f32 %v10871_v62, %v5795_v25  ;;  %5909 = vrot.lane.b32.xlu1 %v5842_v50, %s6559_s30 }
 0x827   : > { %v5817_v38 = vadd.f32 %v10871_v62, %v5792_v13  ;;  %v5737_v2 = vpop.permute.xlu1 %5736  ;;  %5903 = vrot.lane.b32.xlu0 %v5839_v30, %s6559_s30  ;;  %v5731_v55 = vpop.permute.xlu0 %5730 }
 0x828   : > { %v5844_v27 = vmax.f32 %v5820_v23, 0.0  ;;  %v5797_v14 = vadd.f32 %v5737_v2, %v5640_v9  ;;  %v5748_v52 = vsel %vm2762_vm1, %v5731_v55, %v5733_v3 }
 0x829   : > { %v5841_v42 = vmax.f32 %v5817_v38, 0.0  ;;  %v5794_v29 = vadd.f32 %v5748_v52, %v5637_v61 }
 0x82a   : > { %v5822_v33 = vadd.f32 %v10871_v62, %v5797_v14  ;;  %5913 = vrot.lane.b32.xlu1 %v5844_v27, %s6559_s30 }
 0x82b   : > { %v5819_v41 = vadd.f32 %v10871_v62, %v5794_v29  ;;  %5907 = vrot.lane.b32.xlu0 %v5841_v42, %s6559_s30  ;;  %v5735_v53 = vpop.permute.xlu0 %5734 }
 0x82c   : > { %v5846_v47 = vmax.f32 %v5822_v33, 0.0  ;;  %v5749_v1 = vsel %vm2762_vm1, %v5735_v53, %v5737_v2 }
 0x82d   : > { %v5843_v36 = vmax.f32 %v5819_v41, 0.0  ;;  %v5796_v57 = vadd.f32 %v5749_v1, %v5639_v51 }
 0x82e   : > { %5917 = vrot.lane.b32.xlu1 %v5846_v47, %s6559_s30 }
 0x82f   : > { %v5821_v7 = vadd.f32 %v10871_v62, %v5796_v57  ;;  %5911 = vrot.lane.b32.xlu0 %v5843_v36, %s6559_s30 }
 0x831   : > { %v5845_v21 = vmax.f32 %v5821_v7, 0.0 }
 0x833   : > { %5915 = vrot.lane.b32.xlu0 %v5845_v21, %s6559_s30 }
 0x874   : > { %v5874_v63 = vpop.permute.xlu1 %5873 }
 0x875   : > { %5971 = vst.msk [vmem:[%s8532_s10 + $0x50] sm:$0xff] %vm5970_vm11, %v5874_v63 }
 0x878   : > { %v5878_v24 = vpop.permute.xlu1 %5877 }
 0x879   : > { %5974 = vst.msk [vmem:[%s8532_s10 + $0xa8] sm:$0xff] %vm5970_vm11, %v5878_v24  ;;  %v5872_v4 = vpop.permute.xlu0 %5871 }
 0x87a   : > { %v5919_v62 = vsel %vm5386_vm10, %v5872_v4, %v5874_v63  ;;  %5968 = vst.msk [vmem:[%s8532_s10 + $0x40] sm:$0xff] %vm5967_vm12, %v5872_v4 }
 0x87b   : > { %5969 = vst [vmem:[%s8532_s10 + $0x48] sm:$0xff] %v5919_v62 }
 0x87c   : > { %v5882_v58 = vpop.permute.xlu1 %5881 }
 0x87d   : > { %5977 = vst.msk [vmem:[%s8532_s10 + $0x100] sm:$0xff] %vm5970_vm11, %v5882_v58  ;;  %v5876_v16 = vpop.permute.xlu0 %5875 }
 0x87e   : > { %v5920_v60 = vsel %vm5386_vm10, %v5876_v16, %v5878_v24  ;;  %5972 = vst.msk [vmem:[%s8532_s10 + $0x98] sm:$0xff] %vm5967_vm12, %v5876_v16 }
 0x87f   : > { %5973 = vst [vmem:[%s8532_s10 + $0xa0] sm:$0xff] %v5920_v60 }
 0x880   : > { %v5886_v48 = vpop.permute.xlu1 %5885 }
 0x881   : > { %5980 = vst.msk [vmem:[%s8532_s10 + $0x158] sm:$0xff] %vm5970_vm11, %v5886_v48  ;;  %v5880_v10 = vpop.permute.xlu0 %5879 }
 0x882   : > { %v5921_v28 = vsel %vm5386_vm10, %v5880_v10, %v5882_v58  ;;  %5975 = vst.msk [vmem:[%s8532_s10 + $0xf0] sm:$0xff] %vm5967_vm12, %v5880_v10 }
 0x883   : > { %5976 = vst [vmem:[%s8532_s10 + $0xf8] sm:$0xff] %v5921_v28 }
 0x884   : > { %v5890_v43 = vpop.permute.xlu1 %5889 }
 0x885   : > { %5983 = vst.msk [vmem:[%s8532_s10 + $0x1b0] sm:$0xff] %vm5970_vm11, %v5890_v43  ;;  %v5884_v34 = vpop.permute.xlu0 %5883 }
 0x886   : > { %v5922_v18 = vsel %vm5386_vm10, %v5884_v34, %v5886_v48  ;;  %5978 = vst.msk [vmem:[%s8532_s10 + $0x148] sm:$0xff] %vm5967_vm12, %v5884_v34 }
 0x887   : > { %5979 = vst [vmem:[%s8532_s10 + $0x150] sm:$0xff] %v5922_v18 }
 0x888   : > { %v5894_v19 = vpop.permute.xlu1 %5893 }
 0x889   : > { %5986 = vst.msk [vmem:[%s8532_s10 + $0x208] sm:$0xff] %vm5970_vm11, %v5894_v19  ;;  %v5888_v11 = vpop.permute.xlu0 %5887 }
 0x88a   : > { %v5923_v32 = vsel %vm5386_vm10, %v5888_v11, %v5890_v43  ;;  %5981 = vst.msk [vmem:[%s8532_s10 + $0x1a0] sm:$0xff] %vm5967_vm12, %v5888_v11 }
 0x88b   : > { %5982 = vst [vmem:[%s8532_s10 + $0x1a8] sm:$0xff] %v5923_v32 }
 0x88c   : > { %v5898_v12 = vpop.permute.xlu1 %5897 }
 0x88d   : > { %5989 = vst.msk [vmem:[%s8532_s10 + $0x260] sm:$0xff] %vm5970_vm11, %v5898_v12  ;;  %v5892_v15 = vpop.permute.xlu0 %5891 }
 0x88e   : > { %v5924_v37 = vsel %vm5386_vm10, %v5892_v15, %v5894_v19  ;;  %5984 = vst.msk [vmem:[%s8532_s10 + $0x1f8] sm:$0xff] %vm5967_vm12, %v5892_v15 }
 0x88f   : > { %5985 = vst [vmem:[%s8532_s10 + $0x200] sm:$0xff] %v5924_v37 }
 0x890   : > { %v5902_v54 = vpop.permute.xlu1 %5901 }
 0x891   : > { %5992 = vst.msk [vmem:[%s8532_s10 + $0x2b8] sm:$0xff] %vm5970_vm11, %v5902_v54  ;;  %v5896_v5 = vpop.permute.xlu0 %5895 }
 0x892   : > { %v5925_v46 = vsel %vm5386_vm10, %v5896_v5, %v5898_v12  ;;  %5987 = vst.msk [vmem:[%s8532_s10 + $0x250] sm:$0xff] %vm5967_vm12, %v5896_v5 }
 0x893   : > { %5988 = vst [vmem:[%s8532_s10 + $0x258] sm:$0xff] %v5925_v46 }
 0x894   : > { %v5906_v45 = vpop.permute.xlu1 %5905 }
 0x895   : > { %5995 = vst.msk [vmem:[%s8532_s10 + $0x310] sm:$0xff] %vm5970_vm11, %v5906_v45  ;;  %v5900_v44 = vpop.permute.xlu0 %5899 }
 0x896   : > { %v5926_v20 = vsel %vm5386_vm10, %v5900_v44, %v5902_v54  ;;  %5990 = vst.msk [vmem:[%s8532_s10 + $0x2a8] sm:$0xff] %vm5967_vm12, %v5900_v44 }
 0x897   : > { %5991 = vst [vmem:[%s8532_s10 + $0x2b0] sm:$0xff] %v5926_v20 }
 0x898   : > { %v5910_v22 = vpop.permute.xlu1 %5909 }
 0x899   : > { %5998 = vst.msk [vmem:[%s8532_s10 + $0x368] sm:$0xff] %vm5970_vm11, %v5910_v22  ;;  %v5904_v3 = vpop.permute.xlu0 %5903 }
 0x89a   : > { %v5927_v35 = vsel %vm5386_vm10, %v5904_v3, %v5906_v45  ;;  %5993 = vst.msk [vmem:[%s8532_s10 + $0x300] sm:$0xff] %vm5967_vm12, %v5904_v3 }
 0x89b   : > { %5994 = vst [vmem:[%s8532_s10 + $0x308] sm:$0xff] %v5927_v35 }
 0x89c   : > { %v5914_v40 = vpop.permute.xlu1 %5913 }
 0x89d   : > { %6001 = vst.msk [vmem:[%s8532_s10 + $0x3c0] sm:$0xff] %vm5970_vm11, %v5914_v40  ;;  %v5908_v0 = vpop.permute.xlu0 %5907 }
 0x89e   : > { %v5928_v50 = vsel %vm5386_vm10, %v5908_v0, %v5910_v22  ;;  %5996 = vst.msk [vmem:[%s8532_s10 + $0x358] sm:$0xff] %vm5967_vm12, %v5908_v0 }
 0x89f   : > { %5997 = vst [vmem:[%s8532_s10 + $0x360] sm:$0xff] %v5928_v50 }
 0x8a0   : > { %v5918_v25 = vpop.permute.xlu1 %5917 }
 0x8a1   : > { %6004 = vst.msk [vmem:[%s8532_s10 + $0x418] sm:$0xff] %vm5970_vm11, %v5918_v25  ;;  %v5912_v56 = vpop.permute.xlu0 %5911 }
 0x8a2   : > { %v5929_v8 = vsel %vm5386_vm10, %v5912_v56, %v5914_v40  ;;  %5999 = vst.msk [vmem:[%s8532_s10 + $0x3b0] sm:$0xff] %vm5967_vm12, %v5912_v56 }
 0x8a3   : > { %6000 = vst [vmem:[%s8532_s10 + $0x3b8] sm:$0xff] %v5929_v8 }
 0x8a5   : > { %v5916_v39 = vpop.permute.xlu0 %5915 }
 0x8a6   : > { %v5930_v59 = vsel %vm5386_vm10, %v5916_v39, %v5918_v25  ;;  %6002 = vst.msk [vmem:[%s8532_s10 + $0x408] sm:$0xff] %vm5967_vm12, %v5916_v39 }
 0x8a7   : > { %6003 = vst [vmem:[%s8532_s10 + $0x410] sm:$0xff] %v5930_v59 }
 0x8a8   : > { %6471 = shalt.err (!%p6468_p0)
}
 0x8a9   : > { %s6472_s10 = scalar_lea.hbm %s11130_s11, 16896  ;;  %s6476_s23 = scalar_lea.hbm %s11183_s3, 33792 }
 0x8aa   : > { %p6473_p7 = scmp.ne.s32.totalorder %s11130_s11, %s6472_s10  ;;  %p6477_p11 = scmp.lt.u32.totalorder %s11130_s11, %s11183_s3 }
 0x8ab   : > { %p6478_p12 = scmp.lt.u32.totalorder %s6476_s23, %s6472_s10  ;;  %p6480_p3 = scmp.lt.u32.totalorder %s6472_s10, %s11130_s11 }
 0x8ac   : > { %p6474_p1 = pnand %p6473_p7, %p11539_p10 }
 0x8ad   : > { %p6479_p13 = por %p6478_p12, %p6477_p11 }
 0x8ae   : > { %p6475_p5 = pneg %p6474_p1 }
 0x8af   : > { %p6481_p8 = por %p6480_p3, %p6479_p13 }
 0x8b1   : > { %p6482_p9 = pnand %p6481_p8, %p6475_p5 }
 0x8b3   : > { %6485 = shalt.err (!%p6482_p9)
}
 0x8b4   : > { %s6561_s28 = smov 1408   ;;  %s6562_s30 = smov 88  }
 0x8b5   : > { %6173 = dma.vmem_to_hbm [thread:$0]  (%p11539_p10), %s11132_s8, 16896, %s11130_s11, %s6006_s16, %s6561_s28, %s6561_s28, %s6562_s30  }
 0x8b6 PF: > { %s6035_s6 = sand.u32 1, %s6520_s12   ;;  %p11540_p6 = scmp.ne.s32.totalorder %s11304_s25, 0 }
 0x8b7   : > { %p11541_p4 = scmp.ge.s32.totalorder %s6532_s15, 2  ;;  %s6036_s9 = scalar_lea.sflag [#allocation5], %s6035_s6 }
 0x8b9   : > { %p6187_p2 = pnand %p11541_p4, %p11540_p6 }
 0x8bb   : > { %6515 = dma.done.wait (!%p6187_p2), %s6036_s9, 16896  }
 0x8bc   : > { %6517 = vsyncadd (!%p6187_p2), %s6036_s9, 4294950400  ;;  %p18_p0 = scmp.ge.s32.totalorder %s6608_s18, 4   ;;  %s11542_s12 = smov %s6524_s13 }
 0x8bd   : > { %s11543_s13 = smov %s6528_s14  ;;  %s11544_s14 = smov %s6620_s21 }
 0x8be   : > { %s11545_s15 = smov %s6608_s18  ;;  %20 = sbr.rel (!%p18_p0) target bundleno = 7 (0x7), region = 87 }
 0x8c5   :  { %6041 = vsyncpa [#allocation4], 1 }
 0x8c6   :  { %6043 = vsyncpa [#allocation4 + $0x1], 1 }
 0x8c7   :  { %6044 = vsyncpa [#allocation5], 1 }
 0x8c8   :  { %6046 = vsyncpa [#allocation5 + $0x1], 1 }
 0x8c9   :  { %6047 = vsyncpa [#allocation6], 1 }
 0x8ca   :  { %6049 = vsyncpa [#allocation6 + $0x1], 1 }
 0x8cb   :  { %6050 = vsyncpa [#allocation8], 1 }

</bundles_post_ra>
